<compile_context>
chip_gen: v7x
topology: tpu7x:2x2x1
jax: 0.10.0
libtpu: 0.0.40
codegen_flags: <defaults>
</compile_context>

<pallas_src>
import functools

import jax
import jax.numpy as jnp
from jax.experimental import pallas as pl
from jax.experimental.pallas import tpu as pltpu

KH = KW = 5  # LeNet conv kernel size


def _geometry(width):
    """Static index geometry for the flattened-spatial (lane) layout."""
    s0 = width                      # lane stride of one input row (32)
    oh1 = width - KH + 1            # 28  conv1 output side
    ph1 = oh1 // 2                  # 14  pool1 output side
    oh2 = ph1 - KH + 1              # 10  conv2 output side
    ph2 = oh2 // 2                  # 5   pool2 output side
    l1 = s0 * (oh1 - 1) + (oh1 - 1) + 1            # 892 conv1 span
    l1p = 2 * s0 * (ph1 - 1) + 2 * (ph1 - 1) + 1   # 859 pool1 span
    l2 = 2 * s0 * (oh2 - 1) + 2 * (oh2 - 1) + 1    # 595 conv2 span
    l2p = 4 * s0 * (ph2 - 1) + 4 * (ph2 - 1) + 1   # 529 pool2 span
    return s0, oh1, ph1, oh2, ph2, l1, l1p, l2, l2p


def _lenet_kernel(x_ref, w1_ref, b1_ref, w2_ref, b2_ref,
                  f1w_ref, f1b_ref, f2w_ref, f2b_ref, f3w_ref, f3b_ref,
                  o_ref,
                  c1_sc, p1_sc, c2_sc, p2_sc,
                  *, width):
    s0, oh1, ph1, oh2, ph2, l1, l1p, l2, l2p = _geometry(width)
    ic = x_ref.shape[1]

    # ---- conv1 + bias + ReLU : 25 tap-shifted products, f32 accumulator ----
    acc1 = jnp.zeros((w1_ref.shape[1], l1), jnp.float32)
    for ki in range(KH):
        for kj in range(KW):
            s = s0 * ki + kj
            xs = x_ref[0, :, s:s + l1]            # (IC, L1)  bf16
            wt = w1_ref[KW * ki + kj]             # (OC1, IC) bf16
            if ic == 1:                           # outer product on the VPU
                acc1 = acc1 + wt.astype(jnp.float32) * xs.astype(jnp.float32)
            else:                                 # MXU matmul, f32 accumulate
                acc1 = acc1 + jnp.dot(wt, xs,
                                      preferred_element_type=jnp.float32)
    c1_sc[...] = jnp.maximum(acc1 + b1_ref[...], 0.0)

    # ---- 2x2 / stride-2 max-pool (shifted max; sparse output grid) --------
    p1 = c1_sc[:, 0:l1p]
    for d in (1, s0, s0 + 1):
        p1 = jnp.maximum(p1, c1_sc[:, d:d + l1p])
    p1_sc[...] = p1.astype(jnp.bfloat16)

    # ---- conv2 + bias + ReLU (row stride 2*s0, col stride 2) --------------
    acc2 = jnp.zeros((w2_ref.shape[1], l2), jnp.float32)
    for ki in range(KH):
        for kj in range(KW):
            s = 2 * s0 * ki + 2 * kj
            acc2 = acc2 + jnp.dot(w2_ref[KW * ki + kj], p1_sc[:, s:s + l2],
                                  preferred_element_type=jnp.float32)
    c2_sc[...] = jnp.maximum(acc2 + b2_ref[...], 0.0)

    # ---- second 2x2 / stride-2 max-pool ------------------------------------
    p2 = c2_sc[:, 0:l2p]
    for d in (2, 2 * s0, 2 * s0 + 2):
        p2 = jnp.maximum(p2, c2_sc[:, d:d + l2p])
    p2_sc[...] = p2.astype(jnp.bfloat16)

    # ---- flatten (NCHW order folded into fc1 weight) + fc1 + ReLU ----------
    z3 = jnp.zeros((f1w_ref.shape[1], 1), jnp.float32)
    for i in range(ph2):
        for j in range(ph2):
            r = 4 * s0 * i + 4 * j                # pooled position (i, j)
            z3 = z3 + jnp.dot(f1w_ref[ph2 * i + j], p2_sc[:, r:r + 1],
                              preferred_element_type=jnp.float32)
    a3 = jnp.maximum(z3 + f1b_ref[...], 0.0)

    # ---- fc2 + ReLU, fc3 ----------------------------------------------------
    z4 = jnp.dot(f2w_ref[...], a3.astype(jnp.bfloat16),
                 preferred_element_type=jnp.float32) + f2b_ref[...]
    a4 = jnp.maximum(z4, 0.0)
    z5 = jnp.dot(f3w_ref[...], a4.astype(jnp.bfloat16),
                 preferred_element_type=jnp.float32) + f3b_ref[...]
    o_ref[0] = z5.astype(o_ref.dtype)             # (num_classes, 1)


def lenet_forward(kparams, x_nchw):
    n, ic, h, w = x_nchw.shape
    assert h == 32 and w == 32, "LeNet fc1 (16*5*5) requires 32x32 input"
    _, _, _, _, _, l1, l1p, l2, l2p = _geometry(w)
    oc1 = kparams["w1r"].shape[1]
    oc2 = kparams["w2r"].shape[1]
    ncls = kparams["f3w"].shape[0]

    # Free, contiguous reshape NCHW -> (N, C, H*W); bf16 MXU operands.
    x_flat = x_nchw.reshape(n, ic, h * w).astype(jnp.bfloat16)

    kern = functools.partial(_lenet_kernel, width=w)
    out = pl.pallas_call(
        kern,
        out_shape=jax.ShapeDtypeStruct((n, ncls, 1), jnp.float32),
        grid=(n,),
        in_specs=[
            pl.BlockSpec((1, ic, h * w), lambda b: (b, 0, 0)),
            pl.BlockSpec(kparams["w1r"].shape, lambda b: (0, 0, 0)),
            pl.BlockSpec(kparams["b1"].shape, lambda b: (0, 0)),
            pl.BlockSpec(kparams["w2r"].shape, lambda b: (0, 0, 0)),
            pl.BlockSpec(kparams["b2"].shape, lambda b: (0, 0)),
            pl.BlockSpec(kparams["f1w"].shape, lambda b: (0, 0, 0)),
            pl.BlockSpec(kparams["f1b"].shape, lambda b: (0, 0)),
            pl.BlockSpec(kparams["f2w"].shape, lambda b: (0, 0)),
            pl.BlockSpec(kparams["f2b"].shape, lambda b: (0, 0)),
            pl.BlockSpec(kparams["f3w"].shape, lambda b: (0, 0)),
            pl.BlockSpec(kparams["f3b"].shape, lambda b: (0, 0)),
        ],
        out_specs=pl.BlockSpec((1, ncls, 1), lambda b: (b, 0, 0)),
        scratch_shapes=[
            pltpu.VMEM((oc1, l1), jnp.float32),    # conv1 post-relu
            pltpu.VMEM((oc1, l1p), jnp.bfloat16),  # pool1 output
            pltpu.VMEM((oc2, l2), jnp.float32),    # conv2 post-relu
            pltpu.VMEM((oc2, l2p), jnp.bfloat16),  # pool2 output
        ],
        compiler_params=pltpu.CompilerParams(
            dimension_semantics=("parallel",)),
    )(x_flat, kparams["w1r"], kparams["b1"], kparams["w2r"], kparams["b2"],
      kparams["f1w"], kparams["f1b"], kparams["f2w"], kparams["f2b"],
      kparams["f3w"], kparams["f3b"])
    return out.reshape(n, ncls)


# ---------------------------------------------------------------------------
# Parameters: raw PyTorch-layout params + one-time kernel-layout preparation.
# ---------------------------------------------------------------------------
def init_params(key, in_channels, num_classes=10):
    ks = jax.random.split(key, 5)
    p = {}
    p["conv1_w"] = jax.random.normal(ks[0], (6, in_channels, KH, KW), jnp.float32) * 0.1
    p["conv1_b"] = jnp.zeros((6,), jnp.float32)
    p["conv2_w"] = jax.random.normal(ks[1], (16, 6, KH, KW), jnp.float32) * 0.1
    p["conv2_b"] = jnp.zeros((16,), jnp.float32)
    p["fc1_w"] = jax.random.normal(ks[2], (120, 16 * 5 * 5), jnp.float32) * 0.05
    p["fc1_b"] = jnp.zeros((120,), jnp.float32)
    p["fc2_w"] = jax.random.normal(ks[3], (84, 120), jnp.float32) * 0.05
    p["fc2_b"] = jnp.zeros((84,), jnp.float32)
    p["fc3_w"] = jax.random.normal(ks[4], (num_classes, 84), jnp.float32) * 0.05
    p["fc3_b"] = jnp.zeros((num_classes,), jnp.float32)
    return p


def prepare_params(p):
    """One-time layout/dtype prep (hoisted out of the forward pass)."""
    oc1, ic = p["conv1_w"].shape[:2]
    oc2 = p["conv2_w"].shape[0]
    sp = 5  # pooled spatial side feeding fc1 (16 * 5 * 5 features)
    kp = {}
    # conv weights -> (tap, out_ch, in_ch), bf16.
    kp["w1r"] = (p["conv1_w"].transpose(2, 3, 0, 1)
                 .reshape(KH * KW, oc1, ic).astype(jnp.bfloat16))
    kp["b1"] = p["conv1_b"].reshape(oc1, 1).astype(jnp.float32)
    kp["w2r"] = (p["conv2_w"].transpose(2, 3, 0, 1)
                 .reshape(KH * KW, oc2, oc1).astype(jnp.bfloat16))
    kp["b2"] = p["conv2_b"].reshape(oc2, 1).astype(jnp.float32)
    # fc1: torch flat index = c*25 + 5*i + j  ->  (tap, out, channel).
    kp["f1w"] = (p["fc1_w"].reshape(-1, oc2, sp * sp)
                 .transpose(2, 0, 1).astype(jnp.bfloat16))
    kp["f1b"] = p["fc1_b"].reshape(-1, 1).astype(jnp.float32)
    kp["f2w"] = p["fc2_w"].astype(jnp.bfloat16)
    kp["f2b"] = p["fc2_b"].reshape(-1, 1).astype(jnp.float32)
    kp["f3w"] = p["fc3_w"].astype(jnp.bfloat16)
    kp["f3b"] = p["fc3_b"].reshape(-1, 1).astype(jnp.float32)
    return kp


# ---------------------------------------------------------------------------
# Pure-JAX reference (f32) matching the PyTorch module, for a sanity check.
# ---------------------------------------------------------------------------
def _maxpool2x2_ref(x):
    n, c, h, w = x.shape
    return x.reshape(n, c, h // 2, 2, w // 2, 2).max(axis=(3, 5))


def lenet_reference(p, x):
    dn = ("NCHW", "OIHW", "NCHW")
    z1 = jax.lax.conv_general_dilated(x, p["conv1_w"], (1, 1), "VALID",
                                      dimension_numbers=dn)
    a1 = _maxpool2x2_ref(jnp.maximum(z1 + p["conv1_b"][None, :, None, None], 0.0))
    z2 = jax.lax.conv_general_dilated(a1, p["conv2_w"], (1, 1), "VALID",
                                      dimension_numbers=dn)
    a2 = _maxpool2x2_ref(jnp.maximum(z2 + p["conv2_b"][None, :, None, None], 0.0))
    flat = a2.reshape(a2.shape[0], -1)
    a3 = jnp.maximum(flat @ p["fc1_w"].T + p["fc1_b"], 0.0)
    a4 = jnp.maximum(a3 @ p["fc2_w"].T + p["fc2_b"], 0.0)
    return a4 @ p["fc3_w"].T + p["fc3_b"]


if __name__ == "__main__":
    key = jax.random.PRNGKey(0)
    pkey, xkey = jax.random.split(key)
    in_channels = 1
    raw_params = init_params(pkey, in_channels=in_channels, num_classes=10)
    kparams = prepare_params(raw_params)
    # LeNet's fc1 expects 16*5*5 features -> 32x32 spatial input.
    x = jax.random.normal(xkey, (2, in_channels, 32, 32), jnp.float32)

    out = jax.jit(lenet_forward)(kparams, x)
    out = jax.block_until_ready(out)
    assert out.shape == (2, 10) and out.dtype == jnp.float32

    # Numerical sanity check vs. f32 reference (kernel uses bf16 operands).
    ref = lenet_reference(raw_params, x)
    err = float(jnp.max(jnp.abs(out - ref)))
    scale = float(jnp.max(jnp.abs(ref)))
    assert err <= 0.05 * scale + 5e-3, (err, scale)
    print("KERNEL_OK")
</pallas_src>

<mosaic_0001>
module attributes {stable_mosaic.version = 11 : i64} {
  func.func @_lenet_kernel(%arg0: i32, %arg1: memref<1x1x1024xbf16, #tpu.memory_space<vmem>>, %arg2: memref<25x6x1xbf16, #tpu.memory_space<vmem>>, %arg3: memref<6x1xf32, #tpu.memory_space<vmem>>, %arg4: memref<25x16x6xbf16, #tpu.memory_space<vmem>>, %arg5: memref<16x1xf32, #tpu.memory_space<vmem>>, %arg6: memref<25x120x16xbf16, #tpu.memory_space<vmem>>, %arg7: memref<120x1xf32, #tpu.memory_space<vmem>>, %arg8: memref<84x120xbf16, #tpu.memory_space<vmem>>, %arg9: memref<84x1xf32, #tpu.memory_space<vmem>>, %arg10: memref<10x84xbf16, #tpu.memory_space<vmem>>, %arg11: memref<10x1xf32, #tpu.memory_space<vmem>>, %arg12: memref<1x10x1xf32, #tpu.memory_space<vmem>>, %arg13: memref<6x892xf32, #tpu.memory_space<vmem>>, %arg14: memref<6x859xbf16, #tpu.memory_space<vmem>>, %arg15: memref<16x595xf32, #tpu.memory_space<vmem>>, %arg16: memref<16x529xbf16, #tpu.memory_space<vmem>>) attributes {dimension_semantics = [#tpu.dimension_semantics<parallel>], iteration_bounds = array<i64: 2>, scalar_prefetch = 0 : i64, scratch_operands = 4 : i64, tpu.core_type = #tpu.core_type<tc>, window_params = [{transform_indices = @transform_0, window_bounds = array<i64: 1, 1, 1024>}, {pipeline_mode = #tpu.pipeline_mode<synchronous>, transform_indices = @transform_1, window_bounds = array<i64: 25, 6, 1>}, {pipeline_mode = #tpu.pipeline_mode<synchronous>, transform_indices = @transform_2, window_bounds = array<i64: 6, 1>}, {pipeline_mode = #tpu.pipeline_mode<synchronous>, transform_indices = @transform_3, window_bounds = array<i64: 25, 16, 6>}, {pipeline_mode = #tpu.pipeline_mode<synchronous>, transform_indices = @transform_4, window_bounds = array<i64: 16, 1>}, {pipeline_mode = #tpu.pipeline_mode<synchronous>, transform_indices = @transform_5, window_bounds = array<i64: 25, 120, 16>}, {pipeline_mode = #tpu.pipeline_mode<synchronous>, transform_indices = @transform_6, window_bounds = array<i64: 120, 1>}, {pipeline_mode = #tpu.pipeline_mode<synchronous>, transform_indices = @transform_7, window_bounds = array<i64: 84, 120>}, {pipeline_mode = #tpu.pipeline_mode<synchronous>, transform_indices = @transform_8, window_bounds = array<i64: 84, 1>}, {pipeline_mode = #tpu.pipeline_mode<synchronous>, transform_indices = @transform_9, window_bounds = array<i64: 10, 84>}, {pipeline_mode = #tpu.pipeline_mode<synchronous>, transform_indices = @transform_10, window_bounds = array<i64: 10, 1>}, {transform_indices = @transform_11, window_bounds = array<i64: 1, 10, 1>}]} {
    %cst = arith.constant 0.000000e+00 : f32
    %0 = vector.broadcast %cst : f32 to vector<6x892xf32>
    %c0 = arith.constant 0 : index
    %c0_0 = arith.constant 0 : index
    %c0_1 = arith.constant 0 : index
    %1 = vector.load %arg1[%c0, %c0_0, %c0_1] : memref<1x1x1024xbf16, #tpu.memory_space<vmem>>, vector<1x1x892xbf16>
    %2 = vector.shape_cast %1 : vector<1x1x892xbf16> to vector<1x892xbf16>
    %c0_2 = arith.constant 0 : index
    %c0_3 = arith.constant 0 : index
    %c0_4 = arith.constant 0 : index
    %3 = vector.load %arg2[%c0_2, %c0_3, %c0_4] : memref<25x6x1xbf16, #tpu.memory_space<vmem>>, vector<1x6x1xbf16>
    %4 = vector.shape_cast %3 : vector<1x6x1xbf16> to vector<6x1xbf16>
    %5 = arith.extf %4 : vector<6x1xbf16> to vector<6x1xf32>
    %6 = arith.extf %2 : vector<1x892xbf16> to vector<1x892xf32>
    %7 = vector.broadcast %5 : vector<6x1xf32> to vector<6x892xf32>
    %8 = vector.broadcast %6 : vector<1x892xf32> to vector<6x892xf32>
    %9 = arith.mulf %7, %8 : vector<6x892xf32>
    %10 = arith.addf %0, %9 : vector<6x892xf32>
    %c0_5 = arith.constant 0 : index
    %c0_6 = arith.constant 0 : index
    %c1 = arith.constant 1 : index
    %11 = vector.load %arg1[%c0_5, %c0_6, %c1] : memref<1x1x1024xbf16, #tpu.memory_space<vmem>>, vector<1x1x892xbf16>
    %12 = vector.shape_cast %11 : vector<1x1x892xbf16> to vector<1x892xbf16>
    %c1_7 = arith.constant 1 : index
    %c0_8 = arith.constant 0 : index
    %c0_9 = arith.constant 0 : index
    %13 = vector.load %arg2[%c1_7, %c0_8, %c0_9] : memref<25x6x1xbf16, #tpu.memory_space<vmem>>, vector<1x6x1xbf16>
    %14 = vector.shape_cast %13 : vector<1x6x1xbf16> to vector<6x1xbf16>
    %15 = arith.extf %14 : vector<6x1xbf16> to vector<6x1xf32>
    %16 = arith.extf %12 : vector<1x892xbf16> to vector<1x892xf32>
    %17 = vector.broadcast %15 : vector<6x1xf32> to vector<6x892xf32>
    %18 = vector.broadcast %16 : vector<1x892xf32> to vector<6x892xf32>
    %19 = arith.mulf %17, %18 : vector<6x892xf32>
    %20 = arith.addf %10, %19 : vector<6x892xf32>
    %c0_10 = arith.constant 0 : index
    %c0_11 = arith.constant 0 : index
    %c2 = arith.constant 2 : index
    %21 = vector.load %arg1[%c0_10, %c0_11, %c2] : memref<1x1x1024xbf16, #tpu.memory_space<vmem>>, vector<1x1x892xbf16>
    %22 = vector.shape_cast %21 : vector<1x1x892xbf16> to vector<1x892xbf16>
    %c2_12 = arith.constant 2 : index
    %c0_13 = arith.constant 0 : index
    %c0_14 = arith.constant 0 : index
    %23 = vector.load %arg2[%c2_12, %c0_13, %c0_14] : memref<25x6x1xbf16, #tpu.memory_space<vmem>>, vector<1x6x1xbf16>
    %24 = vector.shape_cast %23 : vector<1x6x1xbf16> to vector<6x1xbf16>
    %25 = arith.extf %24 : vector<6x1xbf16> to vector<6x1xf32>
    %26 = arith.extf %22 : vector<1x892xbf16> to vector<1x892xf32>
    %27 = vector.broadcast %25 : vector<6x1xf32> to vector<6x892xf32>
    %28 = vector.broadcast %26 : vector<1x892xf32> to vector<6x892xf32>
    %29 = arith.mulf %27, %28 : vector<6x892xf32>
    %30 = arith.addf %20, %29 : vector<6x892xf32>
    %c0_15 = arith.constant 0 : index
    %c0_16 = arith.constant 0 : index
    %c3 = arith.constant 3 : index
    %31 = vector.load %arg1[%c0_15, %c0_16, %c3] : memref<1x1x1024xbf16, #tpu.memory_space<vmem>>, vector<1x1x892xbf16>
    %32 = vector.shape_cast %31 : vector<1x1x892xbf16> to vector<1x892xbf16>
    %c3_17 = arith.constant 3 : index
    %c0_18 = arith.constant 0 : index
    %c0_19 = arith.constant 0 : index
    %33 = vector.load %arg2[%c3_17, %c0_18, %c0_19] : memref<25x6x1xbf16, #tpu.memory_space<vmem>>, vector<1x6x1xbf16>
    %34 = vector.shape_cast %33 : vector<1x6x1xbf16> to vector<6x1xbf16>
    %35 = arith.extf %34 : vector<6x1xbf16> to vector<6x1xf32>
    %36 = arith.extf %32 : vector<1x892xbf16> to vector<1x892xf32>
    %37 = vector.broadcast %35 : vector<6x1xf32> to vector<6x892xf32>
    %38 = vector.broadcast %36 : vector<1x892xf32> to vector<6x892xf32>
    %39 = arith.mulf %37, %38 : vector<6x892xf32>
    %40 = arith.addf %30, %39 : vector<6x892xf32>
    %c0_20 = arith.constant 0 : index
    %c0_21 = arith.constant 0 : index
    %c4 = arith.constant 4 : index
    %41 = vector.load %arg1[%c0_20, %c0_21, %c4] : memref<1x1x1024xbf16, #tpu.memory_space<vmem>>, vector<1x1x892xbf16>
    %42 = vector.shape_cast %41 : vector<1x1x892xbf16> to vector<1x892xbf16>
    %c4_22 = arith.constant 4 : index
    %c0_23 = arith.constant 0 : index
    %c0_24 = arith.constant 0 : index
    %43 = vector.load %arg2[%c4_22, %c0_23, %c0_24] : memref<25x6x1xbf16, #tpu.memory_space<vmem>>, vector<1x6x1xbf16>
    %44 = vector.shape_cast %43 : vector<1x6x1xbf16> to vector<6x1xbf16>
    %45 = arith.extf %44 : vector<6x1xbf16> to vector<6x1xf32>
    %46 = arith.extf %42 : vector<1x892xbf16> to vector<1x892xf32>
    %47 = vector.broadcast %45 : vector<6x1xf32> to vector<6x892xf32>
    %48 = vector.broadcast %46 : vector<1x892xf32> to vector<6x892xf32>
    %49 = arith.mulf %47, %48 : vector<6x892xf32>
    %50 = arith.addf %40, %49 : vector<6x892xf32>
    %c0_25 = arith.constant 0 : index
    %c0_26 = arith.constant 0 : index
    %c32 = arith.constant 32 : index
    %51 = vector.load %arg1[%c0_25, %c0_26, %c32] : memref<1x1x1024xbf16, #tpu.memory_space<vmem>>, vector<1x1x892xbf16>
    %52 = vector.shape_cast %51 : vector<1x1x892xbf16> to vector<1x892xbf16>
    %c5 = arith.constant 5 : index
    %c0_27 = arith.constant 0 : index
    %c0_28 = arith.constant 0 : index
    %53 = vector.load %arg2[%c5, %c0_27, %c0_28] : memref<25x6x1xbf16, #tpu.memory_space<vmem>>, vector<1x6x1xbf16>
    %54 = vector.shape_cast %53 : vector<1x6x1xbf16> to vector<6x1xbf16>
    %55 = arith.extf %54 : vector<6x1xbf16> to vector<6x1xf32>
    %56 = arith.extf %52 : vector<1x892xbf16> to vector<1x892xf32>
    %57 = vector.broadcast %55 : vector<6x1xf32> to vector<6x892xf32>
    %58 = vector.broadcast %56 : vector<1x892xf32> to vector<6x892xf32>
    %59 = arith.mulf %57, %58 : vector<6x892xf32>
    %60 = arith.addf %50, %59 : vector<6x892xf32>
    %c0_29 = arith.constant 0 : index
    %c0_30 = arith.constant 0 : index
    %c33 = arith.constant 33 : index
    %61 = vector.load %arg1[%c0_29, %c0_30, %c33] : memref<1x1x1024xbf16, #tpu.memory_space<vmem>>, vector<1x1x892xbf16>
    %62 = vector.shape_cast %61 : vector<1x1x892xbf16> to vector<1x892xbf16>
    %c6 = arith.constant 6 : index
    %c0_31 = arith.constant 0 : index
    %c0_32 = arith.constant 0 : index
    %63 = vector.load %arg2[%c6, %c0_31, %c0_32] : memref<25x6x1xbf16, #tpu.memory_space<vmem>>, vector<1x6x1xbf16>
    %64 = vector.shape_cast %63 : vector<1x6x1xbf16> to vector<6x1xbf16>
    %65 = arith.extf %64 : vector<6x1xbf16> to vector<6x1xf32>
    %66 = arith.extf %62 : vector<1x892xbf16> to vector<1x892xf32>
    %67 = vector.broadcast %65 : vector<6x1xf32> to vector<6x892xf32>
    %68 = vector.broadcast %66 : vector<1x892xf32> to vector<6x892xf32>
    %69 = arith.mulf %67, %68 : vector<6x892xf32>
    %70 = arith.addf %60, %69 : vector<6x892xf32>
    %c0_33 = arith.constant 0 : index
    %c0_34 = arith.constant 0 : index
    %c34 = arith.constant 34 : index
    %71 = vector.load %arg1[%c0_33, %c0_34, %c34] : memref<1x1x1024xbf16, #tpu.memory_space<vmem>>, vector<1x1x892xbf16>
    %72 = vector.shape_cast %71 : vector<1x1x892xbf16> to vector<1x892xbf16>
    %c7 = arith.constant 7 : index
    %c0_35 = arith.constant 0 : index
    %c0_36 = arith.constant 0 : index
    %73 = vector.load %arg2[%c7, %c0_35, %c0_36] : memref<25x6x1xbf16, #tpu.memory_space<vmem>>, vector<1x6x1xbf16>
    %74 = vector.shape_cast %73 : vector<1x6x1xbf16> to vector<6x1xbf16>
    %75 = arith.extf %74 : vector<6x1xbf16> to vector<6x1xf32>
    %76 = arith.extf %72 : vector<1x892xbf16> to vector<1x892xf32>
    %77 = vector.broadcast %75 : vector<6x1xf32> to vector<6x892xf32>
    %78 = vector.broadcast %76 : vector<1x892xf32> to vector<6x892xf32>
    %79 = arith.mulf %77, %78 : vector<6x892xf32>
    %80 = arith.addf %70, %79 : vector<6x892xf32>
    %c0_37 = arith.constant 0 : index
    %c0_38 = arith.constant 0 : index
    %c35 = arith.constant 35 : index
    %81 = vector.load %arg1[%c0_37, %c0_38, %c35] : memref<1x1x1024xbf16, #tpu.memory_space<vmem>>, vector<1x1x892xbf16>
    %82 = vector.shape_cast %81 : vector<1x1x892xbf16> to vector<1x892xbf16>
    %c8 = arith.constant 8 : index
    %c0_39 = arith.constant 0 : index
    %c0_40 = arith.constant 0 : index
    %83 = vector.load %arg2[%c8, %c0_39, %c0_40] : memref<25x6x1xbf16, #tpu.memory_space<vmem>>, vector<1x6x1xbf16>
    %84 = vector.shape_cast %83 : vector<1x6x1xbf16> to vector<6x1xbf16>
    %85 = arith.extf %84 : vector<6x1xbf16> to vector<6x1xf32>
    %86 = arith.extf %82 : vector<1x892xbf16> to vector<1x892xf32>
    %87 = vector.broadcast %85 : vector<6x1xf32> to vector<6x892xf32>
    %88 = vector.broadcast %86 : vector<1x892xf32> to vector<6x892xf32>
    %89 = arith.mulf %87, %88 : vector<6x892xf32>
    %90 = arith.addf %80, %89 : vector<6x892xf32>
    %c0_41 = arith.constant 0 : index
    %c0_42 = arith.constant 0 : index
    %c36 = arith.constant 36 : index
    %91 = vector.load %arg1[%c0_41, %c0_42, %c36] : memref<1x1x1024xbf16, #tpu.memory_space<vmem>>, vector<1x1x892xbf16>
    %92 = vector.shape_cast %91 : vector<1x1x892xbf16> to vector<1x892xbf16>
    %c9 = arith.constant 9 : index
    %c0_43 = arith.constant 0 : index
    %c0_44 = arith.constant 0 : index
    %93 = vector.load %arg2[%c9, %c0_43, %c0_44] : memref<25x6x1xbf16, #tpu.memory_space<vmem>>, vector<1x6x1xbf16>
    %94 = vector.shape_cast %93 : vector<1x6x1xbf16> to vector<6x1xbf16>
    %95 = arith.extf %94 : vector<6x1xbf16> to vector<6x1xf32>
    %96 = arith.extf %92 : vector<1x892xbf16> to vector<1x892xf32>
    %97 = vector.broadcast %95 : vector<6x1xf32> to vector<6x892xf32>
    %98 = vector.broadcast %96 : vector<1x892xf32> to vector<6x892xf32>
    %99 = arith.mulf %97, %98 : vector<6x892xf32>
    %100 = arith.addf %90, %99 : vector<6x892xf32>
    %c0_45 = arith.constant 0 : index
    %c0_46 = arith.constant 0 : index
    %c64 = arith.constant 64 : index
    %101 = vector.load %arg1[%c0_45, %c0_46, %c64] : memref<1x1x1024xbf16, #tpu.memory_space<vmem>>, vector<1x1x892xbf16>
    %102 = vector.shape_cast %101 : vector<1x1x892xbf16> to vector<1x892xbf16>
    %c10 = arith.constant 10 : index
    %c0_47 = arith.constant 0 : index
    %c0_48 = arith.constant 0 : index
    %103 = vector.load %arg2[%c10, %c0_47, %c0_48] : memref<25x6x1xbf16, #tpu.memory_space<vmem>>, vector<1x6x1xbf16>
    %104 = vector.shape_cast %103 : vector<1x6x1xbf16> to vector<6x1xbf16>
    %105 = arith.extf %104 : vector<6x1xbf16> to vector<6x1xf32>
    %106 = arith.extf %102 : vector<1x892xbf16> to vector<1x892xf32>
    %107 = vector.broadcast %105 : vector<6x1xf32> to vector<6x892xf32>
    %108 = vector.broadcast %106 : vector<1x892xf32> to vector<6x892xf32>
    %109 = arith.mulf %107, %108 : vector<6x892xf32>
    %110 = arith.addf %100, %109 : vector<6x892xf32>
    %c0_49 = arith.constant 0 : index
    %c0_50 = arith.constant 0 : index
    %c65 = arith.constant 65 : index
    %111 = vector.load %arg1[%c0_49, %c0_50, %c65] : memref<1x1x1024xbf16, #tpu.memory_space<vmem>>, vector<1x1x892xbf16>
    %112 = vector.shape_cast %111 : vector<1x1x892xbf16> to vector<1x892xbf16>
    %c11 = arith.constant 11 : index
    %c0_51 = arith.constant 0 : index
    %c0_52 = arith.constant 0 : index
    %113 = vector.load %arg2[%c11, %c0_51, %c0_52] : memref<25x6x1xbf16, #tpu.memory_space<vmem>>, vector<1x6x1xbf16>
    %114 = vector.shape_cast %113 : vector<1x6x1xbf16> to vector<6x1xbf16>
    %115 = arith.extf %114 : vector<6x1xbf16> to vector<6x1xf32>
    %116 = arith.extf %112 : vector<1x892xbf16> to vector<1x892xf32>
    %117 = vector.broadcast %115 : vector<6x1xf32> to vector<6x892xf32>
    %118 = vector.broadcast %116 : vector<1x892xf32> to vector<6x892xf32>
    %119 = arith.mulf %117, %118 : vector<6x892xf32>
    %120 = arith.addf %110, %119 : vector<6x892xf32>
    %c0_53 = arith.constant 0 : index
    %c0_54 = arith.constant 0 : index
    %c66 = arith.constant 66 : index
    %121 = vector.load %arg1[%c0_53, %c0_54, %c66] : memref<1x1x1024xbf16, #tpu.memory_space<vmem>>, vector<1x1x892xbf16>
    %122 = vector.shape_cast %121 : vector<1x1x892xbf16> to vector<1x892xbf16>
    %c12 = arith.constant 12 : index
    %c0_55 = arith.constant 0 : index
    %c0_56 = arith.constant 0 : index
    %123 = vector.load %arg2[%c12, %c0_55, %c0_56] : memref<25x6x1xbf16, #tpu.memory_space<vmem>>, vector<1x6x1xbf16>
    %124 = vector.shape_cast %123 : vector<1x6x1xbf16> to vector<6x1xbf16>
    %125 = arith.extf %124 : vector<6x1xbf16> to vector<6x1xf32>
    %126 = arith.extf %122 : vector<1x892xbf16> to vector<1x892xf32>
    %127 = vector.broadcast %125 : vector<6x1xf32> to vector<6x892xf32>
    %128 = vector.broadcast %126 : vector<1x892xf32> to vector<6x892xf32>
    %129 = arith.mulf %127, %128 : vector<6x892xf32>
    %130 = arith.addf %120, %129 : vector<6x892xf32>
    %c0_57 = arith.constant 0 : index
    %c0_58 = arith.constant 0 : index
    %c67 = arith.constant 67 : index
    %131 = vector.load %arg1[%c0_57, %c0_58, %c67] : memref<1x1x1024xbf16, #tpu.memory_space<vmem>>, vector<1x1x892xbf16>
    %132 = vector.shape_cast %131 : vector<1x1x892xbf16> to vector<1x892xbf16>
    %c13 = arith.constant 13 : index
    %c0_59 = arith.constant 0 : index
    %c0_60 = arith.constant 0 : index
    %133 = vector.load %arg2[%c13, %c0_59, %c0_60] : memref<25x6x1xbf16, #tpu.memory_space<vmem>>, vector<1x6x1xbf16>
    %134 = vector.shape_cast %133 : vector<1x6x1xbf16> to vector<6x1xbf16>
    %135 = arith.extf %134 : vector<6x1xbf16> to vector<6x1xf32>
    %136 = arith.extf %132 : vector<1x892xbf16> to vector<1x892xf32>
    %137 = vector.broadcast %135 : vector<6x1xf32> to vector<6x892xf32>
    %138 = vector.broadcast %136 : vector<1x892xf32> to vector<6x892xf32>
    %139 = arith.mulf %137, %138 : vector<6x892xf32>
    %140 = arith.addf %130, %139 : vector<6x892xf32>
    %c0_61 = arith.constant 0 : index
    %c0_62 = arith.constant 0 : index
    %c68 = arith.constant 68 : index
    %141 = vector.load %arg1[%c0_61, %c0_62, %c68] : memref<1x1x1024xbf16, #tpu.memory_space<vmem>>, vector<1x1x892xbf16>
    %142 = vector.shape_cast %141 : vector<1x1x892xbf16> to vector<1x892xbf16>
    %c14 = arith.constant 14 : index
    %c0_63 = arith.constant 0 : index
    %c0_64 = arith.constant 0 : index
    %143 = vector.load %arg2[%c14, %c0_63, %c0_64] : memref<25x6x1xbf16, #tpu.memory_space<vmem>>, vector<1x6x1xbf16>
    %144 = vector.shape_cast %143 : vector<1x6x1xbf16> to vector<6x1xbf16>
    %145 = arith.extf %144 : vector<6x1xbf16> to vector<6x1xf32>
    %146 = arith.extf %142 : vector<1x892xbf16> to vector<1x892xf32>
    %147 = vector.broadcast %145 : vector<6x1xf32> to vector<6x892xf32>
    %148 = vector.broadcast %146 : vector<1x892xf32> to vector<6x892xf32>
    %149 = arith.mulf %147, %148 : vector<6x892xf32>
    %150 = arith.addf %140, %149 : vector<6x892xf32>
    %c0_65 = arith.constant 0 : index
    %c0_66 = arith.constant 0 : index
    %c96 = arith.constant 96 : index
    %151 = vector.load %arg1[%c0_65, %c0_66, %c96] : memref<1x1x1024xbf16, #tpu.memory_space<vmem>>, vector<1x1x892xbf16>
    %152 = vector.shape_cast %151 : vector<1x1x892xbf16> to vector<1x892xbf16>
    %c15 = arith.constant 15 : index
    %c0_67 = arith.constant 0 : index
    %c0_68 = arith.constant 0 : index
    %153 = vector.load %arg2[%c15, %c0_67, %c0_68] : memref<25x6x1xbf16, #tpu.memory_space<vmem>>, vector<1x6x1xbf16>
    %154 = vector.shape_cast %153 : vector<1x6x1xbf16> to vector<6x1xbf16>
    %155 = arith.extf %154 : vector<6x1xbf16> to vector<6x1xf32>
    %156 = arith.extf %152 : vector<1x892xbf16> to vector<1x892xf32>
    %157 = vector.broadcast %155 : vector<6x1xf32> to vector<6x892xf32>
    %158 = vector.broadcast %156 : vector<1x892xf32> to vector<6x892xf32>
    %159 = arith.mulf %157, %158 : vector<6x892xf32>
    %160 = arith.addf %150, %159 : vector<6x892xf32>
    %c0_69 = arith.constant 0 : index
    %c0_70 = arith.constant 0 : index
    %c97 = arith.constant 97 : index
    %161 = vector.load %arg1[%c0_69, %c0_70, %c97] : memref<1x1x1024xbf16, #tpu.memory_space<vmem>>, vector<1x1x892xbf16>
    %162 = vector.shape_cast %161 : vector<1x1x892xbf16> to vector<1x892xbf16>
    %c16 = arith.constant 16 : index
    %c0_71 = arith.constant 0 : index
    %c0_72 = arith.constant 0 : index
    %163 = vector.load %arg2[%c16, %c0_71, %c0_72] : memref<25x6x1xbf16, #tpu.memory_space<vmem>>, vector<1x6x1xbf16>
    %164 = vector.shape_cast %163 : vector<1x6x1xbf16> to vector<6x1xbf16>
    %165 = arith.extf %164 : vector<6x1xbf16> to vector<6x1xf32>
    %166 = arith.extf %162 : vector<1x892xbf16> to vector<1x892xf32>
    %167 = vector.broadcast %165 : vector<6x1xf32> to vector<6x892xf32>
    %168 = vector.broadcast %166 : vector<1x892xf32> to vector<6x892xf32>
    %169 = arith.mulf %167, %168 : vector<6x892xf32>
    %170 = arith.addf %160, %169 : vector<6x892xf32>
    %c0_73 = arith.constant 0 : index
    %c0_74 = arith.constant 0 : index
    %c98 = arith.constant 98 : index
    %171 = vector.load %arg1[%c0_73, %c0_74, %c98] : memref<1x1x1024xbf16, #tpu.memory_space<vmem>>, vector<1x1x892xbf16>
    %172 = vector.shape_cast %171 : vector<1x1x892xbf16> to vector<1x892xbf16>
    %c17 = arith.constant 17 : index
    %c0_75 = arith.constant 0 : index
    %c0_76 = arith.constant 0 : index
    %173 = vector.load %arg2[%c17, %c0_75, %c0_76] : memref<25x6x1xbf16, #tpu.memory_space<vmem>>, vector<1x6x1xbf16>
    %174 = vector.shape_cast %173 : vector<1x6x1xbf16> to vector<6x1xbf16>
    %175 = arith.extf %174 : vector<6x1xbf16> to vector<6x1xf32>
    %176 = arith.extf %172 : vector<1x892xbf16> to vector<1x892xf32>
    %177 = vector.broadcast %175 : vector<6x1xf32> to vector<6x892xf32>
    %178 = vector.broadcast %176 : vector<1x892xf32> to vector<6x892xf32>
    %179 = arith.mulf %177, %178 : vector<6x892xf32>
    %180 = arith.addf %170, %179 : vector<6x892xf32>
    %c0_77 = arith.constant 0 : index
    %c0_78 = arith.constant 0 : index
    %c99 = arith.constant 99 : index
    %181 = vector.load %arg1[%c0_77, %c0_78, %c99] : memref<1x1x1024xbf16, #tpu.memory_space<vmem>>, vector<1x1x892xbf16>
    %182 = vector.shape_cast %181 : vector<1x1x892xbf16> to vector<1x892xbf16>
    %c18 = arith.constant 18 : index
    %c0_79 = arith.constant 0 : index
    %c0_80 = arith.constant 0 : index
    %183 = vector.load %arg2[%c18, %c0_79, %c0_80] : memref<25x6x1xbf16, #tpu.memory_space<vmem>>, vector<1x6x1xbf16>
    %184 = vector.shape_cast %183 : vector<1x6x1xbf16> to vector<6x1xbf16>
    %185 = arith.extf %184 : vector<6x1xbf16> to vector<6x1xf32>
    %186 = arith.extf %182 : vector<1x892xbf16> to vector<1x892xf32>
    %187 = vector.broadcast %185 : vector<6x1xf32> to vector<6x892xf32>
    %188 = vector.broadcast %186 : vector<1x892xf32> to vector<6x892xf32>
    %189 = arith.mulf %187, %188 : vector<6x892xf32>
    %190 = arith.addf %180, %189 : vector<6x892xf32>
    %c0_81 = arith.constant 0 : index
    %c0_82 = arith.constant 0 : index
    %c100 = arith.constant 100 : index
    %191 = vector.load %arg1[%c0_81, %c0_82, %c100] : memref<1x1x1024xbf16, #tpu.memory_space<vmem>>, vector<1x1x892xbf16>
    %192 = vector.shape_cast %191 : vector<1x1x892xbf16> to vector<1x892xbf16>
    %c19 = arith.constant 19 : index
    %c0_83 = arith.constant 0 : index
    %c0_84 = arith.constant 0 : index
    %193 = vector.load %arg2[%c19, %c0_83, %c0_84] : memref<25x6x1xbf16, #tpu.memory_space<vmem>>, vector<1x6x1xbf16>
    %194 = vector.shape_cast %193 : vector<1x6x1xbf16> to vector<6x1xbf16>
    %195 = arith.extf %194 : vector<6x1xbf16> to vector<6x1xf32>
    %196 = arith.extf %192 : vector<1x892xbf16> to vector<1x892xf32>
    %197 = vector.broadcast %195 : vector<6x1xf32> to vector<6x892xf32>
    %198 = vector.broadcast %196 : vector<1x892xf32> to vector<6x892xf32>
    %199 = arith.mulf %197, %198 : vector<6x892xf32>
    %200 = arith.addf %190, %199 : vector<6x892xf32>
    %c0_85 = arith.constant 0 : index
    %c0_86 = arith.constant 0 : index
    %c128 = arith.constant 128 : index
    %201 = vector.load %arg1[%c0_85, %c0_86, %c128] : memref<1x1x1024xbf16, #tpu.memory_space<vmem>>, vector<1x1x892xbf16>
    %202 = vector.shape_cast %201 : vector<1x1x892xbf16> to vector<1x892xbf16>
    %c20 = arith.constant 20 : index
    %c0_87 = arith.constant 0 : index
    %c0_88 = arith.constant 0 : index
    %203 = vector.load %arg2[%c20, %c0_87, %c0_88] : memref<25x6x1xbf16, #tpu.memory_space<vmem>>, vector<1x6x1xbf16>
    %204 = vector.shape_cast %203 : vector<1x6x1xbf16> to vector<6x1xbf16>
    %205 = arith.extf %204 : vector<6x1xbf16> to vector<6x1xf32>
    %206 = arith.extf %202 : vector<1x892xbf16> to vector<1x892xf32>
    %207 = vector.broadcast %205 : vector<6x1xf32> to vector<6x892xf32>
    %208 = vector.broadcast %206 : vector<1x892xf32> to vector<6x892xf32>
    %209 = arith.mulf %207, %208 : vector<6x892xf32>
    %210 = arith.addf %200, %209 : vector<6x892xf32>
    %c0_89 = arith.constant 0 : index
    %c0_90 = arith.constant 0 : index
    %c129 = arith.constant 129 : index
    %211 = vector.load %arg1[%c0_89, %c0_90, %c129] : memref<1x1x1024xbf16, #tpu.memory_space<vmem>>, vector<1x1x892xbf16>
    %212 = vector.shape_cast %211 : vector<1x1x892xbf16> to vector<1x892xbf16>
    %c21 = arith.constant 21 : index
    %c0_91 = arith.constant 0 : index
    %c0_92 = arith.constant 0 : index
    %213 = vector.load %arg2[%c21, %c0_91, %c0_92] : memref<25x6x1xbf16, #tpu.memory_space<vmem>>, vector<1x6x1xbf16>
    %214 = vector.shape_cast %213 : vector<1x6x1xbf16> to vector<6x1xbf16>
    %215 = arith.extf %214 : vector<6x1xbf16> to vector<6x1xf32>
    %216 = arith.extf %212 : vector<1x892xbf16> to vector<1x892xf32>
    %217 = vector.broadcast %215 : vector<6x1xf32> to vector<6x892xf32>
    %218 = vector.broadcast %216 : vector<1x892xf32> to vector<6x892xf32>
    %219 = arith.mulf %217, %218 : vector<6x892xf32>
    %220 = arith.addf %210, %219 : vector<6x892xf32>
    %c0_93 = arith.constant 0 : index
    %c0_94 = arith.constant 0 : index
    %c130 = arith.constant 130 : index
    %221 = vector.load %arg1[%c0_93, %c0_94, %c130] : memref<1x1x1024xbf16, #tpu.memory_space<vmem>>, vector<1x1x892xbf16>
    %222 = vector.shape_cast %221 : vector<1x1x892xbf16> to vector<1x892xbf16>
    %c22 = arith.constant 22 : index
    %c0_95 = arith.constant 0 : index
    %c0_96 = arith.constant 0 : index
    %223 = vector.load %arg2[%c22, %c0_95, %c0_96] : memref<25x6x1xbf16, #tpu.memory_space<vmem>>, vector<1x6x1xbf16>
    %224 = vector.shape_cast %223 : vector<1x6x1xbf16> to vector<6x1xbf16>
    %225 = arith.extf %224 : vector<6x1xbf16> to vector<6x1xf32>
    %226 = arith.extf %222 : vector<1x892xbf16> to vector<1x892xf32>
    %227 = vector.broadcast %225 : vector<6x1xf32> to vector<6x892xf32>
    %228 = vector.broadcast %226 : vector<1x892xf32> to vector<6x892xf32>
    %229 = arith.mulf %227, %228 : vector<6x892xf32>
    %230 = arith.addf %220, %229 : vector<6x892xf32>
    %c0_97 = arith.constant 0 : index
    %c0_98 = arith.constant 0 : index
    %c131 = arith.constant 131 : index
    %231 = vector.load %arg1[%c0_97, %c0_98, %c131] : memref<1x1x1024xbf16, #tpu.memory_space<vmem>>, vector<1x1x892xbf16>
    %232 = vector.shape_cast %231 : vector<1x1x892xbf16> to vector<1x892xbf16>
    %c23 = arith.constant 23 : index
    %c0_99 = arith.constant 0 : index
    %c0_100 = arith.constant 0 : index
    %233 = vector.load %arg2[%c23, %c0_99, %c0_100] : memref<25x6x1xbf16, #tpu.memory_space<vmem>>, vector<1x6x1xbf16>
    %234 = vector.shape_cast %233 : vector<1x6x1xbf16> to vector<6x1xbf16>
    %235 = arith.extf %234 : vector<6x1xbf16> to vector<6x1xf32>
    %236 = arith.extf %232 : vector<1x892xbf16> to vector<1x892xf32>
    %237 = vector.broadcast %235 : vector<6x1xf32> to vector<6x892xf32>
    %238 = vector.broadcast %236 : vector<1x892xf32> to vector<6x892xf32>
    %239 = arith.mulf %237, %238 : vector<6x892xf32>
    %240 = arith.addf %230, %239 : vector<6x892xf32>
    %c0_101 = arith.constant 0 : index
    %c0_102 = arith.constant 0 : index
    %c132 = arith.constant 132 : index
    %241 = vector.load %arg1[%c0_101, %c0_102, %c132] : memref<1x1x1024xbf16, #tpu.memory_space<vmem>>, vector<1x1x892xbf16>
    %242 = vector.shape_cast %241 : vector<1x1x892xbf16> to vector<1x892xbf16>
    %c24 = arith.constant 24 : index
    %c0_103 = arith.constant 0 : index
    %c0_104 = arith.constant 0 : index
    %243 = vector.load %arg2[%c24, %c0_103, %c0_104] : memref<25x6x1xbf16, #tpu.memory_space<vmem>>, vector<1x6x1xbf16>
    %244 = vector.shape_cast %243 : vector<1x6x1xbf16> to vector<6x1xbf16>
    %245 = arith.extf %244 : vector<6x1xbf16> to vector<6x1xf32>
    %246 = arith.extf %242 : vector<1x892xbf16> to vector<1x892xf32>
    %247 = vector.broadcast %245 : vector<6x1xf32> to vector<6x892xf32>
    %248 = vector.broadcast %246 : vector<1x892xf32> to vector<6x892xf32>
    %249 = arith.mulf %247, %248 : vector<6x892xf32>
    %250 = arith.addf %240, %249 : vector<6x892xf32>
    %c0_105 = arith.constant 0 : index
    %c0_106 = arith.constant 0 : index
    %251 = vector.load %arg3[%c0_105, %c0_106] : memref<6x1xf32, #tpu.memory_space<vmem>>, vector<6x1xf32>
    %252 = vector.broadcast %251 : vector<6x1xf32> to vector<6x892xf32>
    %253 = arith.addf %250, %252 : vector<6x892xf32>
    %cst_107 = arith.constant 0.000000e+00 : f32
    %254 = vector.broadcast %cst_107 : f32 to vector<6x892xf32>
    %255 = arith.maximumf %253, %254 : vector<6x892xf32>
    %c0_108 = arith.constant 0 : index
    %c0_109 = arith.constant 0 : index
    %256 = vector.load %arg13[%c0_108, %c0_109] : memref<6x892xf32, #tpu.memory_space<vmem>>, vector<6x892xf32>
    tpu.vector_store %arg13[%c0_108, %c0_109], %255 {strides = array<i32>} : memref<6x892xf32, #tpu.memory_space<vmem>>, vector<6x892xf32>,
    %c0_110 = arith.constant 0 : index
    %c0_111 = arith.constant 0 : index
    %257 = vector.load %arg13[%c0_110, %c0_111] : memref<6x892xf32, #tpu.memory_space<vmem>>, vector<6x859xf32>
    %c0_112 = arith.constant 0 : index
    %c1_113 = arith.constant 1 : index
    %258 = vector.load %arg13[%c0_112, %c1_113] : memref<6x892xf32, #tpu.memory_space<vmem>>, vector<6x859xf32>
    %259 = arith.maximumf %257, %258 : vector<6x859xf32>
    %c0_114 = arith.constant 0 : index
    %c32_115 = arith.constant 32 : index
    %260 = vector.load %arg13[%c0_114, %c32_115] : memref<6x892xf32, #tpu.memory_space<vmem>>, vector<6x859xf32>
    %261 = arith.maximumf %259, %260 : vector<6x859xf32>
    %c0_116 = arith.constant 0 : index
    %c33_117 = arith.constant 33 : index
    %262 = vector.load %arg13[%c0_116, %c33_117] : memref<6x892xf32, #tpu.memory_space<vmem>>, vector<6x859xf32>
    %263 = arith.maximumf %261, %262 : vector<6x859xf32>
    %264 = arith.truncf %263 : vector<6x859xf32> to vector<6x859xbf16>
    %c0_118 = arith.constant 0 : index
    %c0_119 = arith.constant 0 : index
    %265 = vector.load %arg14[%c0_118, %c0_119] : memref<6x859xbf16, #tpu.memory_space<vmem>>, vector<6x859xbf16>
    tpu.vector_store %arg14[%c0_118, %c0_119], %264 {strides = array<i32>} : memref<6x859xbf16, #tpu.memory_space<vmem>>, vector<6x859xbf16>,
    %cst_120 = arith.constant 0.000000e+00 : f32
    %266 = vector.broadcast %cst_120 : f32 to vector<16x595xf32>
    %c0_121 = arith.constant 0 : index
    %c0_122 = arith.constant 0 : index
    %c0_123 = arith.constant 0 : index
    %267 = vector.load %arg4[%c0_121, %c0_122, %c0_123] : memref<25x16x6xbf16, #tpu.memory_space<vmem>>, vector<1x16x6xbf16>
    %268 = vector.shape_cast %267 : vector<1x16x6xbf16> to vector<16x6xbf16>
    %c0_124 = arith.constant 0 : index
    %c0_125 = arith.constant 0 : index
    %269 = vector.load %arg14[%c0_124, %c0_125] : memref<6x859xbf16, #tpu.memory_space<vmem>>, vector<6x595xbf16>
    %cst_126 = arith.constant dense<0.000000e+00> : vector<16x595xf32>
    %270 = tpu.matmul %268, %269, %cst_126 {dimension_numbers = #tpu.dot_dimension_numbers<[1], [0], [0], [1], [0, 0, 1, 1], [], []>} : vector<16x6xbf16>, vector<6x595xbf16>, vector<16x595xf32> -> vector<16x595xf32>
    %271 = arith.addf %266, %270 : vector<16x595xf32>
    %c1_127 = arith.constant 1 : index
    %c0_128 = arith.constant 0 : index
    %c0_129 = arith.constant 0 : index
    %272 = vector.load %arg4[%c1_127, %c0_128, %c0_129] : memref<25x16x6xbf16, #tpu.memory_space<vmem>>, vector<1x16x6xbf16>
    %273 = vector.shape_cast %272 : vector<1x16x6xbf16> to vector<16x6xbf16>
    %c0_130 = arith.constant 0 : index
    %c2_131 = arith.constant 2 : index
    %274 = vector.load %arg14[%c0_130, %c2_131] : memref<6x859xbf16, #tpu.memory_space<vmem>>, vector<6x595xbf16>
    %cst_132 = arith.constant dense<0.000000e+00> : vector<16x595xf32>
    %275 = tpu.matmul %273, %274, %cst_132 {dimension_numbers = #tpu.dot_dimension_numbers<[1], [0], [0], [1], [0, 0, 1, 1], [], []>} : vector<16x6xbf16>, vector<6x595xbf16>, vector<16x595xf32> -> vector<16x595xf32>
    %276 = arith.addf %271, %275 : vector<16x595xf32>
    %c2_133 = arith.constant 2 : index
    %c0_134 = arith.constant 0 : index
    %c0_135 = arith.constant 0 : index
    %277 = vector.load %arg4[%c2_133, %c0_134, %c0_135] : memref<25x16x6xbf16, #tpu.memory_space<vmem>>, vector<1x16x6xbf16>
    %278 = vector.shape_cast %277 : vector<1x16x6xbf16> to vector<16x6xbf16>
    %c0_136 = arith.constant 0 : index
    %c4_137 = arith.constant 4 : index
    %279 = vector.load %arg14[%c0_136, %c4_137] : memref<6x859xbf16, #tpu.memory_space<vmem>>, vector<6x595xbf16>
    %cst_138 = arith.constant dense<0.000000e+00> : vector<16x595xf32>
    %280 = tpu.matmul %278, %279, %cst_138 {dimension_numbers = #tpu.dot_dimension_numbers<[1], [0], [0], [1], [0, 0, 1, 1], [], []>} : vector<16x6xbf16>, vector<6x595xbf16>, vector<16x595xf32> -> vector<16x595xf32>
    %281 = arith.addf %276, %280 : vector<16x595xf32>
    %c3_139 = arith.constant 3 : index
    %c0_140 = arith.constant 0 : index
    %c0_141 = arith.constant 0 : index
    %282 = vector.load %arg4[%c3_139, %c0_140, %c0_141] : memref<25x16x6xbf16, #tpu.memory_space<vmem>>, vector<1x16x6xbf16>
    %283 = vector.shape_cast %282 : vector<1x16x6xbf16> to vector<16x6xbf16>
    %c0_142 = arith.constant 0 : index
    %c6_143 = arith.constant 6 : index
    %284 = vector.load %arg14[%c0_142, %c6_143] : memref<6x859xbf16, #tpu.memory_space<vmem>>, vector<6x595xbf16>
    %cst_144 = arith.constant dense<0.000000e+00> : vector<16x595xf32>
    %285 = tpu.matmul %283, %284, %cst_144 {dimension_numbers = #tpu.dot_dimension_numbers<[1], [0], [0], [1], [0, 0, 1, 1], [], []>} : vector<16x6xbf16>, vector<6x595xbf16>, vector<16x595xf32> -> vector<16x595xf32>
    %286 = arith.addf %281, %285 : vector<16x595xf32>
    %c4_145 = arith.constant 4 : index
    %c0_146 = arith.constant 0 : index
    %c0_147 = arith.constant 0 : index
    %287 = vector.load %arg4[%c4_145, %c0_146, %c0_147] : memref<25x16x6xbf16, #tpu.memory_space<vmem>>, vector<1x16x6xbf16>
    %288 = vector.shape_cast %287 : vector<1x16x6xbf16> to vector<16x6xbf16>
    %c0_148 = arith.constant 0 : index
    %c8_149 = arith.constant 8 : index
    %289 = vector.load %arg14[%c0_148, %c8_149] : memref<6x859xbf16, #tpu.memory_space<vmem>>, vector<6x595xbf16>
    %cst_150 = arith.constant dense<0.000000e+00> : vector<16x595xf32>
    %290 = tpu.matmul %288, %289, %cst_150 {dimension_numbers = #tpu.dot_dimension_numbers<[1], [0], [0], [1], [0, 0, 1, 1], [], []>} : vector<16x6xbf16>, vector<6x595xbf16>, vector<16x595xf32> -> vector<16x595xf32>
    %291 = arith.addf %286, %290 : vector<16x595xf32>
    %c5_151 = arith.constant 5 : index
    %c0_152 = arith.constant 0 : index
    %c0_153 = arith.constant 0 : index
    %292 = vector.load %arg4[%c5_151, %c0_152, %c0_153] : memref<25x16x6xbf16, #tpu.memory_space<vmem>>, vector<1x16x6xbf16>
    %293 = vector.shape_cast %292 : vector<1x16x6xbf16> to vector<16x6xbf16>
    %c0_154 = arith.constant 0 : index
    %c64_155 = arith.constant 64 : index
    %294 = vector.load %arg14[%c0_154, %c64_155] : memref<6x859xbf16, #tpu.memory_space<vmem>>, vector<6x595xbf16>
    %cst_156 = arith.constant dense<0.000000e+00> : vector<16x595xf32>
    %295 = tpu.matmul %293, %294, %cst_156 {dimension_numbers = #tpu.dot_dimension_numbers<[1], [0], [0], [1], [0, 0, 1, 1], [], []>} : vector<16x6xbf16>, vector<6x595xbf16>, vector<16x595xf32> -> vector<16x595xf32>
    %296 = arith.addf %291, %295 : vector<16x595xf32>
    %c6_157 = arith.constant 6 : index
    %c0_158 = arith.constant 0 : index
    %c0_159 = arith.constant 0 : index
    %297 = vector.load %arg4[%c6_157, %c0_158, %c0_159] : memref<25x16x6xbf16, #tpu.memory_space<vmem>>, vector<1x16x6xbf16>
    %298 = vector.shape_cast %297 : vector<1x16x6xbf16> to vector<16x6xbf16>
    %c0_160 = arith.constant 0 : index
    %c66_161 = arith.constant 66 : index
    %299 = vector.load %arg14[%c0_160, %c66_161] : memref<6x859xbf16, #tpu.memory_space<vmem>>, vector<6x595xbf16>
    %cst_162 = arith.constant dense<0.000000e+00> : vector<16x595xf32>
    %300 = tpu.matmul %298, %299, %cst_162 {dimension_numbers = #tpu.dot_dimension_numbers<[1], [0], [0], [1], [0, 0, 1, 1], [], []>} : vector<16x6xbf16>, vector<6x595xbf16>, vector<16x595xf32> -> vector<16x595xf32>
    %301 = arith.addf %296, %300 : vector<16x595xf32>
    %c7_163 = arith.constant 7 : index
    %c0_164 = arith.constant 0 : index
    %c0_165 = arith.constant 0 : index
    %302 = vector.load %arg4[%c7_163, %c0_164, %c0_165] : memref<25x16x6xbf16, #tpu.memory_space<vmem>>, vector<1x16x6xbf16>
    %303 = vector.shape_cast %302 : vector<1x16x6xbf16> to vector<16x6xbf16>
    %c0_166 = arith.constant 0 : index
    %c68_167 = arith.constant 68 : index
    %304 = vector.load %arg14[%c0_166, %c68_167] : memref<6x859xbf16, #tpu.memory_space<vmem>>, vector<6x595xbf16>
    %cst_168 = arith.constant dense<0.000000e+00> : vector<16x595xf32>
    %305 = tpu.matmul %303, %304, %cst_168 {dimension_numbers = #tpu.dot_dimension_numbers<[1], [0], [0], [1], [0, 0, 1, 1], [], []>} : vector<16x6xbf16>, vector<6x595xbf16>, vector<16x595xf32> -> vector<16x595xf32>
    %306 = arith.addf %301, %305 : vector<16x595xf32>
    %c8_169 = arith.constant 8 : index
    %c0_170 = arith.constant 0 : index
    %c0_171 = arith.constant 0 : index
    %307 = vector.load %arg4[%c8_169, %c0_170, %c0_171] : memref<25x16x6xbf16, #tpu.memory_space<vmem>>, vector<1x16x6xbf16>
    %308 = vector.shape_cast %307 : vector<1x16x6xbf16> to vector<16x6xbf16>
    %c0_172 = arith.constant 0 : index
    %c70 = arith.constant 70 : index
    %309 = vector.load %arg14[%c0_172, %c70] : memref<6x859xbf16, #tpu.memory_space<vmem>>, vector<6x595xbf16>
    %cst_173 = arith.constant dense<0.000000e+00> : vector<16x595xf32>
    %310 = tpu.matmul %308, %309, %cst_173 {dimension_numbers = #tpu.dot_dimension_numbers<[1], [0], [0], [1], [0, 0, 1, 1], [], []>} : vector<16x6xbf16>, vector<6x595xbf16>, vector<16x595xf32> -> vector<16x595xf32>
    %311 = arith.addf %306, %310 : vector<16x595xf32>
    %c9_174 = arith.constant 9 : index
    %c0_175 = arith.constant 0 : index
    %c0_176 = arith.constant 0 : index
    %312 = vector.load %arg4[%c9_174, %c0_175, %c0_176] : memref<25x16x6xbf16, #tpu.memory_space<vmem>>, vector<1x16x6xbf16>
    %313 = vector.shape_cast %312 : vector<1x16x6xbf16> to vector<16x6xbf16>
    %c0_177 = arith.constant 0 : index
    %c72 = arith.constant 72 : index
    %314 = vector.load %arg14[%c0_177, %c72] : memref<6x859xbf16, #tpu.memory_space<vmem>>, vector<6x595xbf16>
    %cst_178 = arith.constant dense<0.000000e+00> : vector<16x595xf32>
    %315 = tpu.matmul %313, %314, %cst_178 {dimension_numbers = #tpu.dot_dimension_numbers<[1], [0], [0], [1], [0, 0, 1, 1], [], []>} : vector<16x6xbf16>, vector<6x595xbf16>, vector<16x595xf32> -> vector<16x595xf32>
    %316 = arith.addf %311, %315 : vector<16x595xf32>
    %c10_179 = arith.constant 10 : index
    %c0_180 = arith.constant 0 : index
    %c0_181 = arith.constant 0 : index
    %317 = vector.load %arg4[%c10_179, %c0_180, %c0_181] : memref<25x16x6xbf16, #tpu.memory_space<vmem>>, vector<1x16x6xbf16>
    %318 = vector.shape_cast %317 : vector<1x16x6xbf16> to vector<16x6xbf16>
    %c0_182 = arith.constant 0 : index
    %c128_183 = arith.constant 128 : index
    %319 = vector.load %arg14[%c0_182, %c128_183] : memref<6x859xbf16, #tpu.memory_space<vmem>>, vector<6x595xbf16>
    %cst_184 = arith.constant dense<0.000000e+00> : vector<16x595xf32>
    %320 = tpu.matmul %318, %319, %cst_184 {dimension_numbers = #tpu.dot_dimension_numbers<[1], [0], [0], [1], [0, 0, 1, 1], [], []>} : vector<16x6xbf16>, vector<6x595xbf16>, vector<16x595xf32> -> vector<16x595xf32>
    %321 = arith.addf %316, %320 : vector<16x595xf32>
    %c11_185 = arith.constant 11 : index
    %c0_186 = arith.constant 0 : index
    %c0_187 = arith.constant 0 : index
    %322 = vector.load %arg4[%c11_185, %c0_186, %c0_187] : memref<25x16x6xbf16, #tpu.memory_space<vmem>>, vector<1x16x6xbf16>
    %323 = vector.shape_cast %322 : vector<1x16x6xbf16> to vector<16x6xbf16>
    %c0_188 = arith.constant 0 : index
    %c130_189 = arith.constant 130 : index
    %324 = vector.load %arg14[%c0_188, %c130_189] : memref<6x859xbf16, #tpu.memory_space<vmem>>, vector<6x595xbf16>
    %cst_190 = arith.constant dense<0.000000e+00> : vector<16x595xf32>
    %325 = tpu.matmul %323, %324, %cst_190 {dimension_numbers = #tpu.dot_dimension_numbers<[1], [0], [0], [1], [0, 0, 1, 1], [], []>} : vector<16x6xbf16>, vector<6x595xbf16>, vector<16x595xf32> -> vector<16x595xf32>
    %326 = arith.addf %321, %325 : vector<16x595xf32>
    %c12_191 = arith.constant 12 : index
    %c0_192 = arith.constant 0 : index
    %c0_193 = arith.constant 0 : index
    %327 = vector.load %arg4[%c12_191, %c0_192, %c0_193] : memref<25x16x6xbf16, #tpu.memory_space<vmem>>, vector<1x16x6xbf16>
    %328 = vector.shape_cast %327 : vector<1x16x6xbf16> to vector<16x6xbf16>
    %c0_194 = arith.constant 0 : index
    %c132_195 = arith.constant 132 : index
    %329 = vector.load %arg14[%c0_194, %c132_195] : memref<6x859xbf16, #tpu.memory_space<vmem>>, vector<6x595xbf16>
    %cst_196 = arith.constant dense<0.000000e+00> : vector<16x595xf32>
    %330 = tpu.matmul %328, %329, %cst_196 {dimension_numbers = #tpu.dot_dimension_numbers<[1], [0], [0], [1], [0, 0, 1, 1], [], []>} : vector<16x6xbf16>, vector<6x595xbf16>, vector<16x595xf32> -> vector<16x595xf32>
    %331 = arith.addf %326, %330 : vector<16x595xf32>
    %c13_197 = arith.constant 13 : index
    %c0_198 = arith.constant 0 : index
    %c0_199 = arith.constant 0 : index
    %332 = vector.load %arg4[%c13_197, %c0_198, %c0_199] : memref<25x16x6xbf16, #tpu.memory_space<vmem>>, vector<1x16x6xbf16>
    %333 = vector.shape_cast %332 : vector<1x16x6xbf16> to vector<16x6xbf16>
    %c0_200 = arith.constant 0 : index
    %c134 = arith.constant 134 : index
    %334 = vector.load %arg14[%c0_200, %c134] : memref<6x859xbf16, #tpu.memory_space<vmem>>, vector<6x595xbf16>
    %cst_201 = arith.constant dense<0.000000e+00> : vector<16x595xf32>
    %335 = tpu.matmul %333, %334, %cst_201 {dimension_numbers = #tpu.dot_dimension_numbers<[1], [0], [0], [1], [0, 0, 1, 1], [], []>} : vector<16x6xbf16>, vector<6x595xbf16>, vector<16x595xf32> -> vector<16x595xf32>
    %336 = arith.addf %331, %335 : vector<16x595xf32>
    %c14_202 = arith.constant 14 : index
    %c0_203 = arith.constant 0 : index
    %c0_204 = arith.constant 0 : index
    %337 = vector.load %arg4[%c14_202, %c0_203, %c0_204] : memref<25x16x6xbf16, #tpu.memory_space<vmem>>, vector<1x16x6xbf16>
    %338 = vector.shape_cast %337 : vector<1x16x6xbf16> to vector<16x6xbf16>
    %c0_205 = arith.constant 0 : index
    %c136 = arith.constant 136 : index
    %339 = vector.load %arg14[%c0_205, %c136] : memref<6x859xbf16, #tpu.memory_space<vmem>>, vector<6x595xbf16>
    %cst_206 = arith.constant dense<0.000000e+00> : vector<16x595xf32>
    %340 = tpu.matmul %338, %339, %cst_206 {dimension_numbers = #tpu.dot_dimension_numbers<[1], [0], [0], [1], [0, 0, 1, 1], [], []>} : vector<16x6xbf16>, vector<6x595xbf16>, vector<16x595xf32> -> vector<16x595xf32>
    %341 = arith.addf %336, %340 : vector<16x595xf32>
    %c15_207 = arith.constant 15 : index
    %c0_208 = arith.constant 0 : index
    %c0_209 = arith.constant 0 : index
    %342 = vector.load %arg4[%c15_207, %c0_208, %c0_209] : memref<25x16x6xbf16, #tpu.memory_space<vmem>>, vector<1x16x6xbf16>
    %343 = vector.shape_cast %342 : vector<1x16x6xbf16> to vector<16x6xbf16>
    %c0_210 = arith.constant 0 : index
    %c192 = arith.constant 192 : index
    %344 = vector.load %arg14[%c0_210, %c192] : memref<6x859xbf16, #tpu.memory_space<vmem>>, vector<6x595xbf16>
    %cst_211 = arith.constant dense<0.000000e+00> : vector<16x595xf32>
    %345 = tpu.matmul %343, %344, %cst_211 {dimension_numbers = #tpu.dot_dimension_numbers<[1], [0], [0], [1], [0, 0, 1, 1], [], []>} : vector<16x6xbf16>, vector<6x595xbf16>, vector<16x595xf32> -> vector<16x595xf32>
    %346 = arith.addf %341, %345 : vector<16x595xf32>
    %c16_212 = arith.constant 16 : index
    %c0_213 = arith.constant 0 : index
    %c0_214 = arith.constant 0 : index
    %347 = vector.load %arg4[%c16_212, %c0_213, %c0_214] : memref<25x16x6xbf16, #tpu.memory_space<vmem>>, vector<1x16x6xbf16>
    %348 = vector.shape_cast %347 : vector<1x16x6xbf16> to vector<16x6xbf16>
    %c0_215 = arith.constant 0 : index
    %c194 = arith.constant 194 : index
    %349 = vector.load %arg14[%c0_215, %c194] : memref<6x859xbf16, #tpu.memory_space<vmem>>, vector<6x595xbf16>
    %cst_216 = arith.constant dense<0.000000e+00> : vector<16x595xf32>
    %350 = tpu.matmul %348, %349, %cst_216 {dimension_numbers = #tpu.dot_dimension_numbers<[1], [0], [0], [1], [0, 0, 1, 1], [], []>} : vector<16x6xbf16>, vector<6x595xbf16>, vector<16x595xf32> -> vector<16x595xf32>
    %351 = arith.addf %346, %350 : vector<16x595xf32>
    %c17_217 = arith.constant 17 : index
    %c0_218 = arith.constant 0 : index
    %c0_219 = arith.constant 0 : index
    %352 = vector.load %arg4[%c17_217, %c0_218, %c0_219] : memref<25x16x6xbf16, #tpu.memory_space<vmem>>, vector<1x16x6xbf16>
    %353 = vector.shape_cast %352 : vector<1x16x6xbf16> to vector<16x6xbf16>
    %c0_220 = arith.constant 0 : index
    %c196 = arith.constant 196 : index
    %354 = vector.load %arg14[%c0_220, %c196] : memref<6x859xbf16, #tpu.memory_space<vmem>>, vector<6x595xbf16>
    %cst_221 = arith.constant dense<0.000000e+00> : vector<16x595xf32>
    %355 = tpu.matmul %353, %354, %cst_221 {dimension_numbers = #tpu.dot_dimension_numbers<[1], [0], [0], [1], [0, 0, 1, 1], [], []>} : vector<16x6xbf16>, vector<6x595xbf16>, vector<16x595xf32> -> vector<16x595xf32>
    %356 = arith.addf %351, %355 : vector<16x595xf32>
    %c18_222 = arith.constant 18 : index
    %c0_223 = arith.constant 0 : index
    %c0_224 = arith.constant 0 : index
    %357 = vector.load %arg4[%c18_222, %c0_223, %c0_224] : memref<25x16x6xbf16, #tpu.memory_space<vmem>>, vector<1x16x6xbf16>
    %358 = vector.shape_cast %357 : vector<1x16x6xbf16> to vector<16x6xbf16>
    %c0_225 = arith.constant 0 : index
    %c198 = arith.constant 198 : index
    %359 = vector.load %arg14[%c0_225, %c198] : memref<6x859xbf16, #tpu.memory_space<vmem>>, vector<6x595xbf16>
    %cst_226 = arith.constant dense<0.000000e+00> : vector<16x595xf32>
    %360 = tpu.matmul %358, %359, %cst_226 {dimension_numbers = #tpu.dot_dimension_numbers<[1], [0], [0], [1], [0, 0, 1, 1], [], []>} : vector<16x6xbf16>, vector<6x595xbf16>, vector<16x595xf32> -> vector<16x595xf32>
    %361 = arith.addf %356, %360 : vector<16x595xf32>
    %c19_227 = arith.constant 19 : index
    %c0_228 = arith.constant 0 : index
    %c0_229 = arith.constant 0 : index
    %362 = vector.load %arg4[%c19_227, %c0_228, %c0_229] : memref<25x16x6xbf16, #tpu.memory_space<vmem>>, vector<1x16x6xbf16>
    %363 = vector.shape_cast %362 : vector<1x16x6xbf16> to vector<16x6xbf16>
    %c0_230 = arith.constant 0 : index
    %c200 = arith.constant 200 : index
    %364 = vector.load %arg14[%c0_230, %c200] : memref<6x859xbf16, #tpu.memory_space<vmem>>, vector<6x595xbf16>
    %cst_231 = arith.constant dense<0.000000e+00> : vector<16x595xf32>
    %365 = tpu.matmul %363, %364, %cst_231 {dimension_numbers = #tpu.dot_dimension_numbers<[1], [0], [0], [1], [0, 0, 1, 1], [], []>} : vector<16x6xbf16>, vector<6x595xbf16>, vector<16x595xf32> -> vector<16x595xf32>
    %366 = arith.addf %361, %365 : vector<16x595xf32>
    %c20_232 = arith.constant 20 : index
    %c0_233 = arith.constant 0 : index
    %c0_234 = arith.constant 0 : index
    %367 = vector.load %arg4[%c20_232, %c0_233, %c0_234] : memref<25x16x6xbf16, #tpu.memory_space<vmem>>, vector<1x16x6xbf16>
    %368 = vector.shape_cast %367 : vector<1x16x6xbf16> to vector<16x6xbf16>
    %c0_235 = arith.constant 0 : index
    %c256 = arith.constant 256 : index
    %369 = vector.load %arg14[%c0_235, %c256] : memref<6x859xbf16, #tpu.memory_space<vmem>>, vector<6x595xbf16>
    %cst_236 = arith.constant dense<0.000000e+00> : vector<16x595xf32>
    %370 = tpu.matmul %368, %369, %cst_236 {dimension_numbers = #tpu.dot_dimension_numbers<[1], [0], [0], [1], [0, 0, 1, 1], [], []>} : vector<16x6xbf16>, vector<6x595xbf16>, vector<16x595xf32> -> vector<16x595xf32>
    %371 = arith.addf %366, %370 : vector<16x595xf32>
    %c21_237 = arith.constant 21 : index
    %c0_238 = arith.constant 0 : index
    %c0_239 = arith.constant 0 : index
    %372 = vector.load %arg4[%c21_237, %c0_238, %c0_239] : memref<25x16x6xbf16, #tpu.memory_space<vmem>>, vector<1x16x6xbf16>
    %373 = vector.shape_cast %372 : vector<1x16x6xbf16> to vector<16x6xbf16>
    %c0_240 = arith.constant 0 : index
    %c258 = arith.constant 258 : index
    %374 = vector.load %arg14[%c0_240, %c258] : memref<6x859xbf16, #tpu.memory_space<vmem>>, vector<6x595xbf16>
    %cst_241 = arith.constant dense<0.000000e+00> : vector<16x595xf32>
    %375 = tpu.matmul %373, %374, %cst_241 {dimension_numbers = #tpu.dot_dimension_numbers<[1], [0], [0], [1], [0, 0, 1, 1], [], []>} : vector<16x6xbf16>, vector<6x595xbf16>, vector<16x595xf32> -> vector<16x595xf32>
    %376 = arith.addf %371, %375 : vector<16x595xf32>
    %c22_242 = arith.constant 22 : index
    %c0_243 = arith.constant 0 : index
    %c0_244 = arith.constant 0 : index
    %377 = vector.load %arg4[%c22_242, %c0_243, %c0_244] : memref<25x16x6xbf16, #tpu.memory_space<vmem>>, vector<1x16x6xbf16>
    %378 = vector.shape_cast %377 : vector<1x16x6xbf16> to vector<16x6xbf16>
    %c0_245 = arith.constant 0 : index
    %c260 = arith.constant 260 : index
    %379 = vector.load %arg14[%c0_245, %c260] : memref<6x859xbf16, #tpu.memory_space<vmem>>, vector<6x595xbf16>
    %cst_246 = arith.constant dense<0.000000e+00> : vector<16x595xf32>
    %380 = tpu.matmul %378, %379, %cst_246 {dimension_numbers = #tpu.dot_dimension_numbers<[1], [0], [0], [1], [0, 0, 1, 1], [], []>} : vector<16x6xbf16>, vector<6x595xbf16>, vector<16x595xf32> -> vector<16x595xf32>
    %381 = arith.addf %376, %380 : vector<16x595xf32>
    %c23_247 = arith.constant 23 : index
    %c0_248 = arith.constant 0 : index
    %c0_249 = arith.constant 0 : index
    %382 = vector.load %arg4[%c23_247, %c0_248, %c0_249] : memref<25x16x6xbf16, #tpu.memory_space<vmem>>, vector<1x16x6xbf16>
    %383 = vector.shape_cast %382 : vector<1x16x6xbf16> to vector<16x6xbf16>
    %c0_250 = arith.constant 0 : index
    %c262 = arith.constant 262 : index
    %384 = vector.load %arg14[%c0_250, %c262] : memref<6x859xbf16, #tpu.memory_space<vmem>>, vector<6x595xbf16>
    %cst_251 = arith.constant dense<0.000000e+00> : vector<16x595xf32>
    %385 = tpu.matmul %383, %384, %cst_251 {dimension_numbers = #tpu.dot_dimension_numbers<[1], [0], [0], [1], [0, 0, 1, 1], [], []>} : vector<16x6xbf16>, vector<6x595xbf16>, vector<16x595xf32> -> vector<16x595xf32>
    %386 = arith.addf %381, %385 : vector<16x595xf32>
    %c24_252 = arith.constant 24 : index
    %c0_253 = arith.constant 0 : index
    %c0_254 = arith.constant 0 : index
    %387 = vector.load %arg4[%c24_252, %c0_253, %c0_254] : memref<25x16x6xbf16, #tpu.memory_space<vmem>>, vector<1x16x6xbf16>
    %388 = vector.shape_cast %387 : vector<1x16x6xbf16> to vector<16x6xbf16>
    %c0_255 = arith.constant 0 : index
    %c264 = arith.constant 264 : index
    %389 = vector.load %arg14[%c0_255, %c264] : memref<6x859xbf16, #tpu.memory_space<vmem>>, vector<6x595xbf16>
    %cst_256 = arith.constant dense<0.000000e+00> : vector<16x595xf32>
    %390 = tpu.matmul %388, %389, %cst_256 {dimension_numbers = #tpu.dot_dimension_numbers<[1], [0], [0], [1], [0, 0, 1, 1], [], []>} : vector<16x6xbf16>, vector<6x595xbf16>, vector<16x595xf32> -> vector<16x595xf32>
    %391 = arith.addf %386, %390 : vector<16x595xf32>
    %c0_257 = arith.constant 0 : index
    %c0_258 = arith.constant 0 : index
    %392 = vector.load %arg5[%c0_257, %c0_258] : memref<16x1xf32, #tpu.memory_space<vmem>>, vector<16x1xf32>
    %393 = vector.broadcast %392 : vector<16x1xf32> to vector<16x595xf32>
    %394 = arith.addf %391, %393 : vector<16x595xf32>
    %cst_259 = arith.constant 0.000000e+00 : f32
    %395 = vector.broadcast %cst_259 : f32 to vector<16x595xf32>
    %396 = arith.maximumf %394, %395 : vector<16x595xf32>
    %c0_260 = arith.constant 0 : index
    %c0_261 = arith.constant 0 : index
    %397 = vector.load %arg15[%c0_260, %c0_261] : memref<16x595xf32, #tpu.memory_space<vmem>>, vector<16x595xf32>
    tpu.vector_store %arg15[%c0_260, %c0_261], %396 {strides = array<i32>} : memref<16x595xf32, #tpu.memory_space<vmem>>, vector<16x595xf32>,
    %c0_262 = arith.constant 0 : index
    %c0_263 = arith.constant 0 : index
    %398 = vector.load %arg15[%c0_262, %c0_263] : memref<16x595xf32, #tpu.memory_space<vmem>>, vector<16x529xf32>
    %c0_264 = arith.constant 0 : index
    %c2_265 = arith.constant 2 : index
    %399 = vector.load %arg15[%c0_264, %c2_265] : memref<16x595xf32, #tpu.memory_space<vmem>>, vector<16x529xf32>
    %400 = arith.maximumf %398, %399 : vector<16x529xf32>
    %c0_266 = arith.constant 0 : index
    %c64_267 = arith.constant 64 : index
    %401 = vector.load %arg15[%c0_266, %c64_267] : memref<16x595xf32, #tpu.memory_space<vmem>>, vector<16x529xf32>
    %402 = arith.maximumf %400, %401 : vector<16x529xf32>
    %c0_268 = arith.constant 0 : index
    %c66_269 = arith.constant 66 : index
    %403 = vector.load %arg15[%c0_268, %c66_269] : memref<16x595xf32, #tpu.memory_space<vmem>>, vector<16x529xf32>
    %404 = arith.maximumf %402, %403 : vector<16x529xf32>
    %405 = arith.truncf %404 : vector<16x529xf32> to vector<16x529xbf16>
    %c0_270 = arith.constant 0 : index
    %c0_271 = arith.constant 0 : index
    %406 = vector.load %arg16[%c0_270, %c0_271] : memref<16x529xbf16, #tpu.memory_space<vmem>>, vector<16x529xbf16>
    tpu.vector_store %arg16[%c0_270, %c0_271], %405 {strides = array<i32>} : memref<16x529xbf16, #tpu.memory_space<vmem>>, vector<16x529xbf16>,
    %cst_272 = arith.constant 0.000000e+00 : f32
    %407 = vector.broadcast %cst_272 : f32 to vector<120x1xf32>
    %c0_273 = arith.constant 0 : index
    %c0_274 = arith.constant 0 : index
    %c0_275 = arith.constant 0 : index
    %408 = vector.load %arg6[%c0_273, %c0_274, %c0_275] : memref<25x120x16xbf16, #tpu.memory_space<vmem>>, vector<1x120x16xbf16>
    %409 = vector.shape_cast %408 : vector<1x120x16xbf16> to vector<120x16xbf16>
    %c0_276 = arith.constant 0 : index
    %c0_277 = arith.constant 0 : index
    %410 = vector.load %arg16[%c0_276, %c0_277] : memref<16x529xbf16, #tpu.memory_space<vmem>>, vector<16x1xbf16>
    %cst_278 = arith.constant dense<0.000000e+00> : vector<120x1xf32>
    %411 = tpu.matmul %409, %410, %cst_278 {dimension_numbers = #tpu.dot_dimension_numbers<[1], [0], [0], [1], [0, 0, 1, 1], [], []>} : vector<120x16xbf16>, vector<16x1xbf16>, vector<120x1xf32> -> vector<120x1xf32>
    %412 = arith.addf %407, %411 : vector<120x1xf32>
    %c1_279 = arith.constant 1 : index
    %c0_280 = arith.constant 0 : index
    %c0_281 = arith.constant 0 : index
    %413 = vector.load %arg6[%c1_279, %c0_280, %c0_281] : memref<25x120x16xbf16, #tpu.memory_space<vmem>>, vector<1x120x16xbf16>
    %414 = vector.shape_cast %413 : vector<1x120x16xbf16> to vector<120x16xbf16>
    %c0_282 = arith.constant 0 : index
    %c4_283 = arith.constant 4 : index
    %415 = vector.load %arg16[%c0_282, %c4_283] : memref<16x529xbf16, #tpu.memory_space<vmem>>, vector<16x1xbf16>
    %cst_284 = arith.constant dense<0.000000e+00> : vector<120x1xf32>
    %416 = tpu.matmul %414, %415, %cst_284 {dimension_numbers = #tpu.dot_dimension_numbers<[1], [0], [0], [1], [0, 0, 1, 1], [], []>} : vector<120x16xbf16>, vector<16x1xbf16>, vector<120x1xf32> -> vector<120x1xf32>
    %417 = arith.addf %412, %416 : vector<120x1xf32>
    %c2_285 = arith.constant 2 : index
    %c0_286 = arith.constant 0 : index
    %c0_287 = arith.constant 0 : index
    %418 = vector.load %arg6[%c2_285, %c0_286, %c0_287] : memref<25x120x16xbf16, #tpu.memory_space<vmem>>, vector<1x120x16xbf16>
    %419 = vector.shape_cast %418 : vector<1x120x16xbf16> to vector<120x16xbf16>
    %c0_288 = arith.constant 0 : index
    %c8_289 = arith.constant 8 : index
    %420 = vector.load %arg16[%c0_288, %c8_289] : memref<16x529xbf16, #tpu.memory_space<vmem>>, vector<16x1xbf16>
    %cst_290 = arith.constant dense<0.000000e+00> : vector<120x1xf32>
    %421 = tpu.matmul %419, %420, %cst_290 {dimension_numbers = #tpu.dot_dimension_numbers<[1], [0], [0], [1], [0, 0, 1, 1], [], []>} : vector<120x16xbf16>, vector<16x1xbf16>, vector<120x1xf32> -> vector<120x1xf32>
    %422 = arith.addf %417, %421 : vector<120x1xf32>
    %c3_291 = arith.constant 3 : index
    %c0_292 = arith.constant 0 : index
    %c0_293 = arith.constant 0 : index
    %423 = vector.load %arg6[%c3_291, %c0_292, %c0_293] : memref<25x120x16xbf16, #tpu.memory_space<vmem>>, vector<1x120x16xbf16>
    %424 = vector.shape_cast %423 : vector<1x120x16xbf16> to vector<120x16xbf16>
    %c0_294 = arith.constant 0 : index
    %c12_295 = arith.constant 12 : index
    %425 = vector.load %arg16[%c0_294, %c12_295] : memref<16x529xbf16, #tpu.memory_space<vmem>>, vector<16x1xbf16>
    %cst_296 = arith.constant dense<0.000000e+00> : vector<120x1xf32>
    %426 = tpu.matmul %424, %425, %cst_296 {dimension_numbers = #tpu.dot_dimension_numbers<[1], [0], [0], [1], [0, 0, 1, 1], [], []>} : vector<120x16xbf16>, vector<16x1xbf16>, vector<120x1xf32> -> vector<120x1xf32>
    %427 = arith.addf %422, %426 : vector<120x1xf32>
    %c4_297 = arith.constant 4 : index
    %c0_298 = arith.constant 0 : index
    %c0_299 = arith.constant 0 : index
    %428 = vector.load %arg6[%c4_297, %c0_298, %c0_299] : memref<25x120x16xbf16, #tpu.memory_space<vmem>>, vector<1x120x16xbf16>
    %429 = vector.shape_cast %428 : vector<1x120x16xbf16> to vector<120x16xbf16>
    %c0_300 = arith.constant 0 : index
    %c16_301 = arith.constant 16 : index
    %430 = vector.load %arg16[%c0_300, %c16_301] : memref<16x529xbf16, #tpu.memory_space<vmem>>, vector<16x1xbf16>
    %cst_302 = arith.constant dense<0.000000e+00> : vector<120x1xf32>
    %431 = tpu.matmul %429, %430, %cst_302 {dimension_numbers = #tpu.dot_dimension_numbers<[1], [0], [0], [1], [0, 0, 1, 1], [], []>} : vector<120x16xbf16>, vector<16x1xbf16>, vector<120x1xf32> -> vector<120x1xf32>
    %432 = arith.addf %427, %431 : vector<120x1xf32>
    %c5_303 = arith.constant 5 : index
    %c0_304 = arith.constant 0 : index
    %c0_305 = arith.constant 0 : index
    %433 = vector.load %arg6[%c5_303, %c0_304, %c0_305] : memref<25x120x16xbf16, #tpu.memory_space<vmem>>, vector<1x120x16xbf16>
    %434 = vector.shape_cast %433 : vector<1x120x16xbf16> to vector<120x16xbf16>
    %c0_306 = arith.constant 0 : index
    %c128_307 = arith.constant 128 : index
    %435 = vector.load %arg16[%c0_306, %c128_307] : memref<16x529xbf16, #tpu.memory_space<vmem>>, vector<16x1xbf16>
    %cst_308 = arith.constant dense<0.000000e+00> : vector<120x1xf32>
    %436 = tpu.matmul %434, %435, %cst_308 {dimension_numbers = #tpu.dot_dimension_numbers<[1], [0], [0], [1], [0, 0, 1, 1], [], []>} : vector<120x16xbf16>, vector<16x1xbf16>, vector<120x1xf32> -> vector<120x1xf32>
    %437 = arith.addf %432, %436 : vector<120x1xf32>
    %c6_309 = arith.constant 6 : index
    %c0_310 = arith.constant 0 : index
    %c0_311 = arith.constant 0 : index
    %438 = vector.load %arg6[%c6_309, %c0_310, %c0_311] : memref<25x120x16xbf16, #tpu.memory_space<vmem>>, vector<1x120x16xbf16>
    %439 = vector.shape_cast %438 : vector<1x120x16xbf16> to vector<120x16xbf16>
    %c0_312 = arith.constant 0 : index
    %c132_313 = arith.constant 132 : index
    %440 = vector.load %arg16[%c0_312, %c132_313] : memref<16x529xbf16, #tpu.memory_space<vmem>>, vector<16x1xbf16>
    %cst_314 = arith.constant dense<0.000000e+00> : vector<120x1xf32>
    %441 = tpu.matmul %439, %440, %cst_314 {dimension_numbers = #tpu.dot_dimension_numbers<[1], [0], [0], [1], [0, 0, 1, 1], [], []>} : vector<120x16xbf16>, vector<16x1xbf16>, vector<120x1xf32> -> vector<120x1xf32>
    %442 = arith.addf %437, %441 : vector<120x1xf32>
    %c7_315 = arith.constant 7 : index
    %c0_316 = arith.constant 0 : index
    %c0_317 = arith.constant 0 : index
    %443 = vector.load %arg6[%c7_315, %c0_316, %c0_317] : memref<25x120x16xbf16, #tpu.memory_space<vmem>>, vector<1x120x16xbf16>
    %444 = vector.shape_cast %443 : vector<1x120x16xbf16> to vector<120x16xbf16>
    %c0_318 = arith.constant 0 : index
    %c136_319 = arith.constant 136 : index
    %445 = vector.load %arg16[%c0_318, %c136_319] : memref<16x529xbf16, #tpu.memory_space<vmem>>, vector<16x1xbf16>
    %cst_320 = arith.constant dense<0.000000e+00> : vector<120x1xf32>
    %446 = tpu.matmul %444, %445, %cst_320 {dimension_numbers = #tpu.dot_dimension_numbers<[1], [0], [0], [1], [0, 0, 1, 1], [], []>} : vector<120x16xbf16>, vector<16x1xbf16>, vector<120x1xf32> -> vector<120x1xf32>
    %447 = arith.addf %442, %446 : vector<120x1xf32>
    %c8_321 = arith.constant 8 : index
    %c0_322 = arith.constant 0 : index
    %c0_323 = arith.constant 0 : index
    %448 = vector.load %arg6[%c8_321, %c0_322, %c0_323] : memref<25x120x16xbf16, #tpu.memory_space<vmem>>, vector<1x120x16xbf16>
    %449 = vector.shape_cast %448 : vector<1x120x16xbf16> to vector<120x16xbf16>
    %c0_324 = arith.constant 0 : index
    %c140 = arith.constant 140 : index
    %450 = vector.load %arg16[%c0_324, %c140] : memref<16x529xbf16, #tpu.memory_space<vmem>>, vector<16x1xbf16>
    %cst_325 = arith.constant dense<0.000000e+00> : vector<120x1xf32>
    %451 = tpu.matmul %449, %450, %cst_325 {dimension_numbers = #tpu.dot_dimension_numbers<[1], [0], [0], [1], [0, 0, 1, 1], [], []>} : vector<120x16xbf16>, vector<16x1xbf16>, vector<120x1xf32> -> vector<120x1xf32>
    %452 = arith.addf %447, %451 : vector<120x1xf32>
    %c9_326 = arith.constant 9 : index
    %c0_327 = arith.constant 0 : index
    %c0_328 = arith.constant 0 : index
    %453 = vector.load %arg6[%c9_326, %c0_327, %c0_328] : memref<25x120x16xbf16, #tpu.memory_space<vmem>>, vector<1x120x16xbf16>
    %454 = vector.shape_cast %453 : vector<1x120x16xbf16> to vector<120x16xbf16>
    %c0_329 = arith.constant 0 : index
    %c144 = arith.constant 144 : index
    %455 = vector.load %arg16[%c0_329, %c144] : memref<16x529xbf16, #tpu.memory_space<vmem>>, vector<16x1xbf16>
    %cst_330 = arith.constant dense<0.000000e+00> : vector<120x1xf32>
    %456 = tpu.matmul %454, %455, %cst_330 {dimension_numbers = #tpu.dot_dimension_numbers<[1], [0], [0], [1], [0, 0, 1, 1], [], []>} : vector<120x16xbf16>, vector<16x1xbf16>, vector<120x1xf32> -> vector<120x1xf32>
    %457 = arith.addf %452, %456 : vector<120x1xf32>
    %c10_331 = arith.constant 10 : index
    %c0_332 = arith.constant 0 : index
    %c0_333 = arith.constant 0 : index
    %458 = vector.load %arg6[%c10_331, %c0_332, %c0_333] : memref<25x120x16xbf16, #tpu.memory_space<vmem>>, vector<1x120x16xbf16>
    %459 = vector.shape_cast %458 : vector<1x120x16xbf16> to vector<120x16xbf16>
    %c0_334 = arith.constant 0 : index
    %c256_335 = arith.constant 256 : index
    %460 = vector.load %arg16[%c0_334, %c256_335] : memref<16x529xbf16, #tpu.memory_space<vmem>>, vector<16x1xbf16>
    %cst_336 = arith.constant dense<0.000000e+00> : vector<120x1xf32>
    %461 = tpu.matmul %459, %460, %cst_336 {dimension_numbers = #tpu.dot_dimension_numbers<[1], [0], [0], [1], [0, 0, 1, 1], [], []>} : vector<120x16xbf16>, vector<16x1xbf16>, vector<120x1xf32> -> vector<120x1xf32>
    %462 = arith.addf %457, %461 : vector<120x1xf32>
    %c11_337 = arith.constant 11 : index
    %c0_338 = arith.constant 0 : index
    %c0_339 = arith.constant 0 : index
    %463 = vector.load %arg6[%c11_337, %c0_338, %c0_339] : memref<25x120x16xbf16, #tpu.memory_space<vmem>>, vector<1x120x16xbf16>
    %464 = vector.shape_cast %463 : vector<1x120x16xbf16> to vector<120x16xbf16>
    %c0_340 = arith.constant 0 : index
    %c260_341 = arith.constant 260 : index
    %465 = vector.load %arg16[%c0_340, %c260_341] : memref<16x529xbf16, #tpu.memory_space<vmem>>, vector<16x1xbf16>
    %cst_342 = arith.constant dense<0.000000e+00> : vector<120x1xf32>
    %466 = tpu.matmul %464, %465, %cst_342 {dimension_numbers = #tpu.dot_dimension_numbers<[1], [0], [0], [1], [0, 0, 1, 1], [], []>} : vector<120x16xbf16>, vector<16x1xbf16>, vector<120x1xf32> -> vector<120x1xf32>
    %467 = arith.addf %462, %466 : vector<120x1xf32>
    %c12_343 = arith.constant 12 : index
    %c0_344 = arith.constant 0 : index
    %c0_345 = arith.constant 0 : index
    %468 = vector.load %arg6[%c12_343, %c0_344, %c0_345] : memref<25x120x16xbf16, #tpu.memory_space<vmem>>, vector<1x120x16xbf16>
    %469 = vector.shape_cast %468 : vector<1x120x16xbf16> to vector<120x16xbf16>
    %c0_346 = arith.constant 0 : index
    %c264_347 = arith.constant 264 : index
    %470 = vector.load %arg16[%c0_346, %c264_347] : memref<16x529xbf16, #tpu.memory_space<vmem>>, vector<16x1xbf16>
    %cst_348 = arith.constant dense<0.000000e+00> : vector<120x1xf32>
    %471 = tpu.matmul %469, %470, %cst_348 {dimension_numbers = #tpu.dot_dimension_numbers<[1], [0], [0], [1], [0, 0, 1, 1], [], []>} : vector<120x16xbf16>, vector<16x1xbf16>, vector<120x1xf32> -> vector<120x1xf32>
    %472 = arith.addf %467, %471 : vector<120x1xf32>
    %c13_349 = arith.constant 13 : index
    %c0_350 = arith.constant 0 : index
    %c0_351 = arith.constant 0 : index
    %473 = vector.load %arg6[%c13_349, %c0_350, %c0_351] : memref<25x120x16xbf16, #tpu.memory_space<vmem>>, vector<1x120x16xbf16>
    %474 = vector.shape_cast %473 : vector<1x120x16xbf16> to vector<120x16xbf16>
    %c0_352 = arith.constant 0 : index
    %c268 = arith.constant 268 : index
    %475 = vector.load %arg16[%c0_352, %c268] : memref<16x529xbf16, #tpu.memory_space<vmem>>, vector<16x1xbf16>
    %cst_353 = arith.constant dense<0.000000e+00> : vector<120x1xf32>
    %476 = tpu.matmul %474, %475, %cst_353 {dimension_numbers = #tpu.dot_dimension_numbers<[1], [0], [0], [1], [0, 0, 1, 1], [], []>} : vector<120x16xbf16>, vector<16x1xbf16>, vector<120x1xf32> -> vector<120x1xf32>
    %477 = arith.addf %472, %476 : vector<120x1xf32>
    %c14_354 = arith.constant 14 : index
    %c0_355 = arith.constant 0 : index
    %c0_356 = arith.constant 0 : index
    %478 = vector.load %arg6[%c14_354, %c0_355, %c0_356] : memref<25x120x16xbf16, #tpu.memory_space<vmem>>, vector<1x120x16xbf16>
    %479 = vector.shape_cast %478 : vector<1x120x16xbf16> to vector<120x16xbf16>
    %c0_357 = arith.constant 0 : index
    %c272 = arith.constant 272 : index
    %480 = vector.load %arg16[%c0_357, %c272] : memref<16x529xbf16, #tpu.memory_space<vmem>>, vector<16x1xbf16>
    %cst_358 = arith.constant dense<0.000000e+00> : vector<120x1xf32>
    %481 = tpu.matmul %479, %480, %cst_358 {dimension_numbers = #tpu.dot_dimension_numbers<[1], [0], [0], [1], [0, 0, 1, 1], [], []>} : vector<120x16xbf16>, vector<16x1xbf16>, vector<120x1xf32> -> vector<120x1xf32>
    %482 = arith.addf %477, %481 : vector<120x1xf32>
    %c15_359 = arith.constant 15 : index
    %c0_360 = arith.constant 0 : index
    %c0_361 = arith.constant 0 : index
    %483 = vector.load %arg6[%c15_359, %c0_360, %c0_361] : memref<25x120x16xbf16, #tpu.memory_space<vmem>>, vector<1x120x16xbf16>
    %484 = vector.shape_cast %483 : vector<1x120x16xbf16> to vector<120x16xbf16>
    %c0_362 = arith.constant 0 : index
    %c384 = arith.constant 384 : index
    %485 = vector.load %arg16[%c0_362, %c384] : memref<16x529xbf16, #tpu.memory_space<vmem>>, vector<16x1xbf16>
    %cst_363 = arith.constant dense<0.000000e+00> : vector<120x1xf32>
    %486 = tpu.matmul %484, %485, %cst_363 {dimension_numbers = #tpu.dot_dimension_numbers<[1], [0], [0], [1], [0, 0, 1, 1], [], []>} : vector<120x16xbf16>, vector<16x1xbf16>, vector<120x1xf32> -> vector<120x1xf32>
    %487 = arith.addf %482, %486 : vector<120x1xf32>
    %c16_364 = arith.constant 16 : index
    %c0_365 = arith.constant 0 : index
    %c0_366 = arith.constant 0 : index
    %488 = vector.load %arg6[%c16_364, %c0_365, %c0_366] : memref<25x120x16xbf16, #tpu.memory_space<vmem>>, vector<1x120x16xbf16>
    %489 = vector.shape_cast %488 : vector<1x120x16xbf16> to vector<120x16xbf16>
    %c0_367 = arith.constant 0 : index
    %c388 = arith.constant 388 : index
    %490 = vector.load %arg16[%c0_367, %c388] : memref<16x529xbf16, #tpu.memory_space<vmem>>, vector<16x1xbf16>
    %cst_368 = arith.constant dense<0.000000e+00> : vector<120x1xf32>
    %491 = tpu.matmul %489, %490, %cst_368 {dimension_numbers = #tpu.dot_dimension_numbers<[1], [0], [0], [1], [0, 0, 1, 1], [], []>} : vector<120x16xbf16>, vector<16x1xbf16>, vector<120x1xf32> -> vector<120x1xf32>
    %492 = arith.addf %487, %491 : vector<120x1xf32>
    %c17_369 = arith.constant 17 : index
    %c0_370 = arith.constant 0 : index
    %c0_371 = arith.constant 0 : index
    %493 = vector.load %arg6[%c17_369, %c0_370, %c0_371] : memref<25x120x16xbf16, #tpu.memory_space<vmem>>, vector<1x120x16xbf16>
    %494 = vector.shape_cast %493 : vector<1x120x16xbf16> to vector<120x16xbf16>
    %c0_372 = arith.constant 0 : index
    %c392 = arith.constant 392 : index
    %495 = vector.load %arg16[%c0_372, %c392] : memref<16x529xbf16, #tpu.memory_space<vmem>>, vector<16x1xbf16>
    %cst_373 = arith.constant dense<0.000000e+00> : vector<120x1xf32>
    %496 = tpu.matmul %494, %495, %cst_373 {dimension_numbers = #tpu.dot_dimension_numbers<[1], [0], [0], [1], [0, 0, 1, 1], [], []>} : vector<120x16xbf16>, vector<16x1xbf16>, vector<120x1xf32> -> vector<120x1xf32>
    %497 = arith.addf %492, %496 : vector<120x1xf32>
    %c18_374 = arith.constant 18 : index
    %c0_375 = arith.constant 0 : index
    %c0_376 = arith.constant 0 : index
    %498 = vector.load %arg6[%c18_374, %c0_375, %c0_376] : memref<25x120x16xbf16, #tpu.memory_space<vmem>>, vector<1x120x16xbf16>
    %499 = vector.shape_cast %498 : vector<1x120x16xbf16> to vector<120x16xbf16>
    %c0_377 = arith.constant 0 : index
    %c396 = arith.constant 396 : index
    %500 = vector.load %arg16[%c0_377, %c396] : memref<16x529xbf16, #tpu.memory_space<vmem>>, vector<16x1xbf16>
    %cst_378 = arith.constant dense<0.000000e+00> : vector<120x1xf32>
    %501 = tpu.matmul %499, %500, %cst_378 {dimension_numbers = #tpu.dot_dimension_numbers<[1], [0], [0], [1], [0, 0, 1, 1], [], []>} : vector<120x16xbf16>, vector<16x1xbf16>, vector<120x1xf32> -> vector<120x1xf32>
    %502 = arith.addf %497, %501 : vector<120x1xf32>
    %c19_379 = arith.constant 19 : index
    %c0_380 = arith.constant 0 : index
    %c0_381 = arith.constant 0 : index
    %503 = vector.load %arg6[%c19_379, %c0_380, %c0_381] : memref<25x120x16xbf16, #tpu.memory_space<vmem>>, vector<1x120x16xbf16>
    %504 = vector.shape_cast %503 : vector<1x120x16xbf16> to vector<120x16xbf16>
    %c0_382 = arith.constant 0 : index
    %c400 = arith.constant 400 : index
    %505 = vector.load %arg16[%c0_382, %c400] : memref<16x529xbf16, #tpu.memory_space<vmem>>, vector<16x1xbf16>
    %cst_383 = arith.constant dense<0.000000e+00> : vector<120x1xf32>
    %506 = tpu.matmul %504, %505, %cst_383 {dimension_numbers = #tpu.dot_dimension_numbers<[1], [0], [0], [1], [0, 0, 1, 1], [], []>} : vector<120x16xbf16>, vector<16x1xbf16>, vector<120x1xf32> -> vector<120x1xf32>
    %507 = arith.addf %502, %506 : vector<120x1xf32>
    %c20_384 = arith.constant 20 : index
    %c0_385 = arith.constant 0 : index
    %c0_386 = arith.constant 0 : index
    %508 = vector.load %arg6[%c20_384, %c0_385, %c0_386] : memref<25x120x16xbf16, #tpu.memory_space<vmem>>, vector<1x120x16xbf16>
    %509 = vector.shape_cast %508 : vector<1x120x16xbf16> to vector<120x16xbf16>
    %c0_387 = arith.constant 0 : index
    %c512 = arith.constant 512 : index
    %510 = vector.load %arg16[%c0_387, %c512] : memref<16x529xbf16, #tpu.memory_space<vmem>>, vector<16x1xbf16>
    %cst_388 = arith.constant dense<0.000000e+00> : vector<120x1xf32>
    %511 = tpu.matmul %509, %510, %cst_388 {dimension_numbers = #tpu.dot_dimension_numbers<[1], [0], [0], [1], [0, 0, 1, 1], [], []>} : vector<120x16xbf16>, vector<16x1xbf16>, vector<120x1xf32> -> vector<120x1xf32>
    %512 = arith.addf %507, %511 : vector<120x1xf32>
    %c21_389 = arith.constant 21 : index
    %c0_390 = arith.constant 0 : index
    %c0_391 = arith.constant 0 : index
    %513 = vector.load %arg6[%c21_389, %c0_390, %c0_391] : memref<25x120x16xbf16, #tpu.memory_space<vmem>>, vector<1x120x16xbf16>
    %514 = vector.shape_cast %513 : vector<1x120x16xbf16> to vector<120x16xbf16>
    %c0_392 = arith.constant 0 : index
    %c516 = arith.constant 516 : index
    %515 = vector.load %arg16[%c0_392, %c516] : memref<16x529xbf16, #tpu.memory_space<vmem>>, vector<16x1xbf16>
    %cst_393 = arith.constant dense<0.000000e+00> : vector<120x1xf32>
    %516 = tpu.matmul %514, %515, %cst_393 {dimension_numbers = #tpu.dot_dimension_numbers<[1], [0], [0], [1], [0, 0, 1, 1], [], []>} : vector<120x16xbf16>, vector<16x1xbf16>, vector<120x1xf32> -> vector<120x1xf32>
    %517 = arith.addf %512, %516 : vector<120x1xf32>
    %c22_394 = arith.constant 22 : index
    %c0_395 = arith.constant 0 : index
    %c0_396 = arith.constant 0 : index
    %518 = vector.load %arg6[%c22_394, %c0_395, %c0_396] : memref<25x120x16xbf16, #tpu.memory_space<vmem>>, vector<1x120x16xbf16>
    %519 = vector.shape_cast %518 : vector<1x120x16xbf16> to vector<120x16xbf16>
    %c0_397 = arith.constant 0 : index
    %c520 = arith.constant 520 : index
    %520 = vector.load %arg16[%c0_397, %c520] : memref<16x529xbf16, #tpu.memory_space<vmem>>, vector<16x1xbf16>
    %cst_398 = arith.constant dense<0.000000e+00> : vector<120x1xf32>
    %521 = tpu.matmul %519, %520, %cst_398 {dimension_numbers = #tpu.dot_dimension_numbers<[1], [0], [0], [1], [0, 0, 1, 1], [], []>} : vector<120x16xbf16>, vector<16x1xbf16>, vector<120x1xf32> -> vector<120x1xf32>
    %522 = arith.addf %517, %521 : vector<120x1xf32>
    %c23_399 = arith.constant 23 : index
    %c0_400 = arith.constant 0 : index
    %c0_401 = arith.constant 0 : index
    %523 = vector.load %arg6[%c23_399, %c0_400, %c0_401] : memref<25x120x16xbf16, #tpu.memory_space<vmem>>, vector<1x120x16xbf16>
    %524 = vector.shape_cast %523 : vector<1x120x16xbf16> to vector<120x16xbf16>
    %c0_402 = arith.constant 0 : index
    %c524 = arith.constant 524 : index
    %525 = vector.load %arg16[%c0_402, %c524] : memref<16x529xbf16, #tpu.memory_space<vmem>>, vector<16x1xbf16>
    %cst_403 = arith.constant dense<0.000000e+00> : vector<120x1xf32>
    %526 = tpu.matmul %524, %525, %cst_403 {dimension_numbers = #tpu.dot_dimension_numbers<[1], [0], [0], [1], [0, 0, 1, 1], [], []>} : vector<120x16xbf16>, vector<16x1xbf16>, vector<120x1xf32> -> vector<120x1xf32>
    %527 = arith.addf %522, %526 : vector<120x1xf32>
    %c24_404 = arith.constant 24 : index
    %c0_405 = arith.constant 0 : index
    %c0_406 = arith.constant 0 : index
    %528 = vector.load %arg6[%c24_404, %c0_405, %c0_406] : memref<25x120x16xbf16, #tpu.memory_space<vmem>>, vector<1x120x16xbf16>
    %529 = vector.shape_cast %528 : vector<1x120x16xbf16> to vector<120x16xbf16>
    %c0_407 = arith.constant 0 : index
    %c528 = arith.constant 528 : index
    %530 = vector.load %arg16[%c0_407, %c528] : memref<16x529xbf16, #tpu.memory_space<vmem>>, vector<16x1xbf16>
    %cst_408 = arith.constant dense<0.000000e+00> : vector<120x1xf32>
    %531 = tpu.matmul %529, %530, %cst_408 {dimension_numbers = #tpu.dot_dimension_numbers<[1], [0], [0], [1], [0, 0, 1, 1], [], []>} : vector<120x16xbf16>, vector<16x1xbf16>, vector<120x1xf32> -> vector<120x1xf32>
    %532 = arith.addf %527, %531 : vector<120x1xf32>
    %c0_409 = arith.constant 0 : index
    %c0_410 = arith.constant 0 : index
    %533 = vector.load %arg7[%c0_409, %c0_410] : memref<120x1xf32, #tpu.memory_space<vmem>>, vector<120x1xf32>
    %534 = arith.addf %532, %533 : vector<120x1xf32>
    %cst_411 = arith.constant 0.000000e+00 : f32
    %535 = vector.broadcast %cst_411 : f32 to vector<120x1xf32>
    %536 = arith.maximumf %534, %535 : vector<120x1xf32>
    %c0_412 = arith.constant 0 : index
    %c0_413 = arith.constant 0 : index
    %537 = vector.load %arg8[%c0_412, %c0_413] : memref<84x120xbf16, #tpu.memory_space<vmem>>, vector<84x120xbf16>
    %538 = arith.truncf %536 : vector<120x1xf32> to vector<120x1xbf16>
    %cst_414 = arith.constant dense<0.000000e+00> : vector<84x1xf32>
    %539 = tpu.matmul %537, %538, %cst_414 {dimension_numbers = #tpu.dot_dimension_numbers<[1], [0], [0], [1], [0, 0, 1, 1], [], []>} : vector<84x120xbf16>, vector<120x1xbf16>, vector<84x1xf32> -> vector<84x1xf32>
    %c0_415 = arith.constant 0 : index
    %c0_416 = arith.constant 0 : index
    %540 = vector.load %arg9[%c0_415, %c0_416] : memref<84x1xf32, #tpu.memory_space<vmem>>, vector<84x1xf32>
    %541 = arith.addf %539, %540 : vector<84x1xf32>
    %cst_417 = arith.constant 0.000000e+00 : f32
    %542 = vector.broadcast %cst_417 : f32 to vector<84x1xf32>
    %543 = arith.maximumf %541, %542 : vector<84x1xf32>
    %c0_418 = arith.constant 0 : index
    %c0_419 = arith.constant 0 : index
    %544 = vector.load %arg10[%c0_418, %c0_419] : memref<10x84xbf16, #tpu.memory_space<vmem>>, vector<10x84xbf16>
    %545 = arith.truncf %543 : vector<84x1xf32> to vector<84x1xbf16>
    %cst_420 = arith.constant dense<0.000000e+00> : vector<10x1xf32>
    %546 = tpu.matmul %544, %545, %cst_420 {dimension_numbers = #tpu.dot_dimension_numbers<[1], [0], [0], [1], [0, 0, 1, 1], [], []>} : vector<10x84xbf16>, vector<84x1xbf16>, vector<10x1xf32> -> vector<10x1xf32>
    %c0_421 = arith.constant 0 : index
    %c0_422 = arith.constant 0 : index
    %547 = vector.load %arg11[%c0_421, %c0_422] : memref<10x1xf32, #tpu.memory_space<vmem>>, vector<10x1xf32>
    %548 = arith.addf %546, %547 : vector<10x1xf32>
    %c0_423 = arith.constant 0 : index
    %c0_424 = arith.constant 0 : index
    %c0_425 = arith.constant 0 : index
    %549 = vector.load %arg12[%c0_423, %c0_424, %c0_425] : memref<1x10x1xf32, #tpu.memory_space<vmem>>, vector<1x10x1xf32>
    %550 = vector.shape_cast %549 : vector<1x10x1xf32> to vector<10x1xf32>
    %551 = vector.shape_cast %548 : vector<10x1xf32> to vector<1x10x1xf32>
    tpu.vector_store %arg12[%c0_423, %c0_424, %c0_425], %551 {strides = array<i32>} : memref<1x10x1xf32, #tpu.memory_space<vmem>>, vector<1x10x1xf32>,
    return
  }
  func.func @transform_0(%arg0: i32) -> (i32, i32, i32) {
    %c0_i32 = arith.constant 0 : i32
    %c0_i32_0 = arith.constant 0 : i32
    %c0_i32_1 = arith.constant 0 : i32
    return %arg0, %c0_i32, %c0_i32_0 : i32, i32, i32
  }
  func.func @transform_1(%arg0: i32) -> (i32, i32, i32) {
    %c0_i32 = arith.constant 0 : i32
    %c0_i32_0 = arith.constant 0 : i32
    %c0_i32_1 = arith.constant 0 : i32
    %c0_i32_2 = arith.constant 0 : i32
    return %c0_i32, %c0_i32_0, %c0_i32_1 : i32, i32, i32
  }
  func.func @transform_2(%arg0: i32) -> (i32, i32) {
    %c0_i32 = arith.constant 0 : i32
    %c0_i32_0 = arith.constant 0 : i32
    %c0_i32_1 = arith.constant 0 : i32
    return %c0_i32, %c0_i32_0 : i32, i32
  }
  func.func @transform_3(%arg0: i32) -> (i32, i32, i32) {
    %c0_i32 = arith.constant 0 : i32
    %c0_i32_0 = arith.constant 0 : i32
    %c0_i32_1 = arith.constant 0 : i32
    %c0_i32_2 = arith.constant 0 : i32
    return %c0_i32, %c0_i32_0, %c0_i32_1 : i32, i32, i32
  }
  func.func @transform_4(%arg0: i32) -> (i32, i32) {
    %c0_i32 = arith.constant 0 : i32
    %c0_i32_0 = arith.constant 0 : i32
    %c0_i32_1 = arith.constant 0 : i32
    return %c0_i32, %c0_i32_0 : i32, i32
  }
  func.func @transform_5(%arg0: i32) -> (i32, i32, i32) {
    %c0_i32 = arith.constant 0 : i32
    %c0_i32_0 = arith.constant 0 : i32
    %c0_i32_1 = arith.constant 0 : i32
    %c0_i32_2 = arith.constant 0 : i32
    return %c0_i32, %c0_i32_0, %c0_i32_1 : i32, i32, i32
  }
  func.func @transform_6(%arg0: i32) -> (i32, i32) {
    %c0_i32 = arith.constant 0 : i32
    %c0_i32_0 = arith.constant 0 : i32
    %c0_i32_1 = arith.constant 0 : i32
    return %c0_i32, %c0_i32_0 : i32, i32
  }
  func.func @transform_7(%arg0: i32) -> (i32, i32) {
    %c0_i32 = arith.constant 0 : i32
    %c0_i32_0 = arith.constant 0 : i32
    %c0_i32_1 = arith.constant 0 : i32
    return %c0_i32, %c0_i32_0 : i32, i32
  }
  func.func @transform_8(%arg0: i32) -> (i32, i32) {
    %c0_i32 = arith.constant 0 : i32
    %c0_i32_0 = arith.constant 0 : i32
    %c0_i32_1 = arith.constant 0 : i32
    return %c0_i32, %c0_i32_0 : i32, i32
  }
  func.func @transform_9(%arg0: i32) -> (i32, i32) {
    %c0_i32 = arith.constant 0 : i32
    %c0_i32_0 = arith.constant 0 : i32
    %c0_i32_1 = arith.constant 0 : i32
    return %c0_i32, %c0_i32_0 : i32, i32
  }
  func.func @transform_10(%arg0: i32) -> (i32, i32) {
    %c0_i32 = arith.constant 0 : i32
    %c0_i32_0 = arith.constant 0 : i32
    %c0_i32_1 = arith.constant 0 : i32
    return %c0_i32, %c0_i32_0 : i32, i32
  }
  func.func @transform_11(%arg0: i32) -> (i32, i32, i32) {
    %c0_i32 = arith.constant 0 : i32
    %c0_i32_0 = arith.constant 0 : i32
    %c0_i32_1 = arith.constant 0 : i32
    return %arg0, %c0_i32, %c0_i32_0 : i32, i32, i32
  }
}

</mosaic_0001>

<bundles_post_ra>
// kernel: lenet_forward.1
= control target key start
LH: loop header
LB: loop body
LE: loop exit
PB: predicated region body
PF: predicated region fallthrough
CT: control target
= control target key end

     0   :  { %s15048_s17 = smov 0   ;;  %s18802_s0 = inlined_call_operand.vmem [shape: bf16[2,1,1024], index: 0, kind: input, shape index: {}]   ;;  %s18803_s1 = inlined_call_operand.vmem [shape: bf16[25,6,1], index: 1, kind: input, shape index: {}]   ;;  %s18804_s2 = inlined_call_operand.vmem [shape: f32[6,1], index: 2, kind: input, shape index: {}]   ;;  %s18805_s3 = inlined_call_operand.vmem [shape: bf16[25,16,6], index: 3, kind: input, shape index: {}]   ;;  %s18806_s4 = inlined_call_operand.vmem [shape: f32[16,1], index: 4, kind: input, shape index: {}]   ;;  %s18807_s5 = inlined_call_operand.vmem [shape: bf16[25,120,16], index: 5, kind: input, shape index: {}]   ;;  %s18808_s6 = inlined_call_operand.vmem [shape: f32[120,1], index: 6, kind: input, shape index: {}]   ;;  %s18809_s7 = inlined_call_operand.vmem [shape: bf16[84,120], index: 7, kind: input, shape index: {}]   ;;  %s18810_s8 = inlined_call_operand.vmem [shape: f32[84,1], index: 8, kind: input, shape index: {}]   ;;  %s18811_s9 = inlined_call_operand.vmem [shape: bf16[10,84], index: 9, kind: input, shape index: {}]   ;;  %s18812_s10 = inlined_call_operand.vmem [shape: f32[10,1], index: 10, kind: input, shape index: {}]   ;;  %s18813_s11 = inlined_call_operand.vmem [shape: f32[2,10,1], index: 11, kind: output, shape index: {}]  }
   0x1 LB: > { %s12011_s18 = sadd.s32 4294967295, %s14958_s17   ;;  %p12015_p0 = scmp.ge.s32.totalorder %s14958_s17, 1  ;;  %s14958_s17 = sphi %s15048_s17, %s21_s17  }
   0x2   : > { %p336_p1 = scmp.lt.s32.totalorder %s14958_s17, 3 }
   0x4   : > { %p337_p2 = pnand %p12015_p0, %p336_p1 }
   0x6   : > { %340 = sbr.rel (%p337_p2) target bundleno = 2831 (0xb0f), region = 64 }
   0xd   : > { %v12019_v0 = vld [vmem:[%s18803_s1 + $0x4] sm:$0x7]  ;;  %v12020_v1 = vld [vmem:[%s18803_s1 + $0x8] sm:$0x7]  ;;  %v18814_v2 = vmov 0   ;;  %p15086_p3 = scmp.lt.s32.totalorder %s12011_s18, 1  ;;  %v397_v30 = vlaneseq }
   0xe   : > { %14510 = vset.pattern.permute.xlu0 %v18814_v2  ;;  %v476_v3 = vunpack.c.l.bf16 %v12019_v0  ;;  %v533_v4 = vunpack.c.l.bf16 %v12020_v1  ;;  %v12021_v5 = vld [vmem:[%s18803_s1 + $0xc] sm:$0x7]  ;;  %v12022_v6 = vld [vmem:[%s18803_s1 + $0x10] sm:$0x7]  ;;  %14521 = vset.pattern.permute.xlu1 %v18814_v2  ;;  %v12027_v9 = vld [vmem:[%s18803_s1 + $0x24] sm:$0x7] }
   0xf   : > { %v590_v7 = vunpack.c.l.bf16 %v12021_v5  ;;  %v647_v8 = vunpack.c.l.bf16 %v12022_v6  ;;  %v12028_v10 = vld [vmem:[%s18803_s1 + $0x28] sm:$0x7]  ;;  %2337 = vmatprep.mubr.bf16.mxu1 %v18814_v2  ;;  %2294 = vmatprep.mubr.bf16.mxu0 %v18814_v2  ;;  %v12023_v12 = vld [vmem:[%s18803_s1 + $0x14] sm:$0x7]  ;;  %v12024_v13 = vld [vmem:[%s18803_s1 + $0x18] sm:$0x7]  ;;  %v1029_v15 = vunpack.c.l.bf16 %v12027_v9 }
  0x10   : > { %v14511_v11 = vpack.i.bf16 %v533_v4, %v476_v3  ;;  %v1091_v16 = vunpack.c.l.bf16 %v12028_v10  ;;  %v705_v17 = vunpack.c.l.bf16 %v12023_v12  ;;  %v12025_v18 = vld [vmem:[%s18803_s1 + $0x1c] sm:$0x7]  ;;  %v12026_v19 = vld [vmem:[%s18803_s1 + $0x20] sm:$0x7]  ;;  %v12031_v20 = vld [vmem:[%s18803_s1 + $0x34] sm:$0x7]  ;;  %v843_v22 = vunpack.c.l.bf16 %v12024_v13 }
  0x11   : > { %v14516_v14 = vpack.i.bf16 %v647_v8, %v590_v7  ;;  %v12032_v21 = vld [vmem:[%s18803_s1 + $0x38] sm:$0x7]  ;;  %v905_v23 = vunpack.c.l.bf16 %v12025_v18  ;;  %v967_v24 = vunpack.c.l.bf16 %v12026_v19  ;;  %v12029_v25 = vld [vmem:[%s18803_s1 + $0x2c] sm:$0x7]  ;;  %v12030_v26 = vld [vmem:[%s18803_s1 + $0x30] sm:$0x7]  ;;  %v1277_v32 = vunpack.c.l.bf16 %v12031_v20 }
  0x12   : > { %14512 = vperm.xlu0 %14510, %v14511_v11   ;;  %v12035_v27 = vld [vmem:[%s18803_s1 + $0x44] sm:$0x7]  ;;  %v12036_v28 = vld [vmem:[%s18803_s1 + $0x48] sm:$0x7]  ;;  %v14522_v29 = vpack.i.bf16 %v843_v22, %v705_v17  ;;  %s19091_s18 = smov (!%p15086_p3, %s12011_s18), 1  ;;  %v14532_v31 = vpack.i.bf16 %v1091_v16, %v1029_v15  ;;  %v1339_v33 = vunpack.c.l.bf16 %v12032_v21  ;;  %v1153_v37 = vunpack.c.l.bf16 %v12029_v25  ;;  %s14961_s22 = smov 127  }
  0x13   : > { %v12033_v34 = vld [vmem:[%s18803_s1 + $0x3c] sm:$0x7]  ;;  %v12034_v35 = vld [vmem:[%s18803_s1 + $0x40] sm:$0x7]  ;;  %v14527_v36 = vpack.i.bf16 %v967_v24, %v905_v23  ;;  %v1215_v38 = vunpack.c.l.bf16 %v12030_v26  ;;  %s12016_s16 = sshll.u32 %s19091_s18, 3  ;;  %v398_v41 = vshrl.u32 %v397_v30, 7  ;;  %v1525_v44 = vunpack.c.l.bf16 %v12035_v27 }
  0x14   : > { %14523 = vperm.xlu1 %14521, %v14522_v29   ;;  %s15130_s25 = scalar_lea.vmem %s18802_s0, %s12016_s16  ;;  %v12040_v39 = vld [vmem:[%s18803_s1 + $0x58] sm:$0x7]  ;;  %v12041_v40 = vld [vmem:[%s18803_s1 + $0x5c] sm:$0x7]  ;;  %v14542_v43 = vpack.i.bf16 %v1339_v33, %v1277_v32  ;;  %v1587_v45 = vunpack.c.l.bf16 %v12036_v28  ;;  %v12037_v46 = vld [vmem:[%s18803_s1 + $0x4c] sm:$0x7]  ;;  %v1401_v48 = vunpack.c.l.bf16 %v12033_v34  ;;  %v1463_v49 = vunpack.c.l.bf16 %v12034_v35 }
  0x15   : > { %v702_v42 = vld [vmem:[%s15130_s25] sm:$0xff]  ;;  %v14537_v47 = vpack.i.bf16 %v1215_v38, %v1153_v37  ;;  %v12039_v50 = vld [vmem:[%s18803_s1 + $0x54] sm:$0x7]  ;;  %v1857_v52 = vunpack.c.l.bf16 %v12040_v39  ;;  %v1913_v54 = vunpack.c.l.bf16 %v12041_v40  ;;  %v15153_v57 = vsub.s32 0, %v398_v41  ;;  %s14962_s16 = smov 126   ;;  %s14963_s23 = smov 125  }
  0x16   : > { %14517 = vperm.xlu0 %14510, %v14516_v14   ;;  %v15145_v51 = vunpack.c.l.bf16 %v702_v42  ;;  %v14552_v53 = vpack.i.bf16 %v1587_v45, %v1525_v44  ;;  %v386_v55 = vld [vmem:[%s18803_s1] sm:$0x7]  ;;  %v15155_v58 = vsub.s32 2, %v398_v41  ;;  %v14547_v59 = vpack.i.bf16 %v1463_v49, %v1401_v48  ;;  %s14964_s24 = smov 124   ;;  %s14966_s26 = smov 95  }
  0x17   : > { %v12042_v56 = vld [vmem:[%s18803_s1 + $0x60] sm:$0x7]  ;;  %v1649_v60 = vunpack.c.l.bf16 %v12037_v46  ;;  %v1801_v61 = vunpack.c.l.bf16 %v12039_v50  ;;  %v14562_v63 = vpack.i.bf16 %v1913_v54, %v1857_v52  ;;  %v387_v3 = vunpack.c.l.bf16 %v386_v55  ;;  %s14967_s27 = smov 94   ;;  %s14968_s28 = smov 93  }
  0x18   : > { %14528 = vperm.xlu1 %14521, %v14527_v36   ;;  %v722_v62 = vrot.slane %v15145_v51, %v15155_v58  ;;  %v1969_v4 = vunpack.c.l.bf16 %v12042_v56  ;;  %v15162_v6 = vsub.s32 6, %v398_v41  ;;  %v15164_v7 = vsub.s32 4, %v398_v41  ;;  %v1709_v8 = vld [vmem:[%s15130_s25 + $0x1] sm:$0x7f]  ;;  %s14969_s29 = smov 92   ;;  %s14970_s30 = smov 64  }
  0x19   : > { %v14557_v1 = vpack.i.bf16 %v1801_v61, %v1649_v60  ;;  %v1713_v9 = vunpack.c.l.bf16 %v1709_v8  ;;  %v1714_v10 = vunpack.c.h.bf16 %v1709_v8  ;;  %v385_v25 = vld [vmem:[%s15130_s25] sm:$0x7f]  ;;  %s14971_s12 = smov 63   ;;  %s14972_s13 = smov 62   ;;  %vm510_vm0 = vcmask 1039360  }
  0x1a   : > { %14533 = vperm.xlu0 %14510, %v14532_v31   ;;  %v15160_v0 = vrot.slane %v722_v62, %v15153_v57  ;;  %v14567_v5 = vpack.i.bf16 %v387_v3, %v1969_v4  ;;  %v388_v26 = vunpack.c.l.bf16 %v385_v25  ;;  %v389_v29 = vunpack.c.h.bf16 %v385_v25  ;;  %s14973_s14 = smov 61   ;;  %s14974_s15 = smov 60  }
  0x1b   : > { %v1733_v11 = vrot.slane %v1713_v9, %v15164_v7  ;;  %v1737_v12 = vrot.slane %v1713_v9, %v15162_v6  ;;  %v1741_v13 = vrot.slane %v1714_v10, %v15153_v57  ;;  %v1745_v14 = vrot.slane %v1714_v10, %v15155_v58  ;;  %s14975_s19 = smov 32   ;;  %s14976_s20 = smov 31  }
  0x1c   : > { %14538 = vperm.xlu1 %14521, %v14537_v47   ;;  %v1749_v15 = vrot.slane %v1714_v10, %v15164_v7  ;;  %v1725_v16 = vrot.slane %v1713_v9, %v15153_v57  ;;  %v1729_v17 = vrot.slane %v1713_v9, %v15155_v58  ;;  %v412_v27 = vrot.slane %v388_v26, %v15162_v6 }
  0x1d   : > { %v15175_v18 = vrot.slane %v1733_v11, %v15153_v57  ;;  %v15178_v19 = vrot.slane %v1737_v12, %v15153_v57  ;;  %v15181_v20 = vrot.slane %v1741_v13, %v15153_v57  ;;  %v15184_v21 = vrot.slane %v1745_v14, %v15153_v57 }
  0x1e   : > { %14543 = vperm.xlu0 %14510, %v14542_v43   ;;  %v15187_v22 = vrot.slane %v1749_v15, %v15153_v57  ;;  %v15190_v23 = vrot.slane %v1725_v16, %v15153_v57  ;;  %v15193_v24 = vrot.slane %v1729_v17, %v15153_v57  ;;  %v408_v28 = vrot.slane %v388_v26, %v15164_v7  ;;  %v14951_v15 = vld [vmem:[%s15130_s25] sm:$0xff]  ;;  %s14965_s25 = smov 96  }
  0x1f   : > { %18893 = vst [vmem:[#allocation6_spill] sm:$0xff] %v15175_v18  ;;  %18894 = vst [vmem:[#allocation7_spill] sm:$0xff] %v15178_v19  ;;  %v15199_v30 = vrot.slane %v412_v27, %v15153_v57  ;;  %v420_v32 = vrot.slane %v389_v29, %v15155_v58  ;;  %v416_v33 = vrot.slane %v389_v29, %v15153_v57  ;;  %v707_v16 = vunpack.c.h.bf16 %v14951_v15 }
  0x20   : > { %14548 = vperm.xlu1 %14521, %v14547_v59   ;;  %18895 = vst [vmem:[#allocation8_spill] sm:$0xff] %v15181_v20  ;;  %18896 = vst [vmem:[#allocation9_spill] sm:$0xff] %v15184_v21  ;;  %v15202_v31 = vrot.slane %v408_v28, %v15153_v57  ;;  %v424_v36 = vrot.slane %v389_v29, %v15164_v7  ;;  %v400_v56 = vrot.slane %v388_v26, %v15153_v57  ;;  %vm567_vm1 = vcmask 1031168  }
  0x21   : > { %18897 = vst [vmem:[#allocation10_spill] sm:$0xff] %v15187_v22  ;;  %18898 = vst [vmem:[#allocation11_spill] sm:$0xff] %v15190_v23  ;;  %v15210_v39 = vrot.slane %v420_v32, %v15153_v57  ;;  %v15213_v40 = vrot.slane %v416_v33, %v15153_v57  ;;  %v404_v62 = vrot.slane %v388_v26, %v15155_v58  ;;  %vm624_vm2 = vcmask 1022976  }
  0x22   : > { %14553 = vperm.xlu0 %14510, %v14552_v53   ;;  %18899 = vst [vmem:[#allocation12_spill] sm:$0xff] %v15193_v24  ;;  %v15220_v44 = vrot.slane %v424_v36, %v15153_v57  ;;  %v15250_v61 = vrot.slane %v400_v56, %v15153_v57  ;;  %v730_v11 = vrot.slane %v15145_v51, %v15162_v6  ;;  %vm681_vm3 = vcmask 1014784  }
  0x23   : > { %v15261_v4 = vrot.slane %v404_v62, %v15153_v57  ;;  %v726_v12 = vrot.slane %v15145_v51, %v15164_v7  ;;  %v734_v32 = vrot.slane %v707_v16, %v15153_v57  ;;  %v738_v33 = vrot.slane %v707_v16, %v15155_v58 }
  0x24   : > { %14558 = vperm.xlu1 %14521, %v14557_v1   ;;  %v15290_v26 = vrot.slane %v730_v11, %v15153_v57  ;;  %v746_v36 = vrot.slane %v707_v16, %v15162_v6  ;;  %vm819_vm4 = vcmask 785408   ;;  %vm881_vm5 = vcmask 777216  }
  0x25   : > { %v15293_v27 = vrot.slane %v726_v12, %v15153_v57  ;;  %vm943_vm6 = vcmask 769024   ;;  %vm1005_vm7 = vcmask 760832   ;;  %vm1067_vm8 = vcmask 752640  }
  0x26   : > { %14563 = vperm.xlu0 %14510, %v14562_v63   ;;  %v15320_v6 = vrot.slane %v746_v36, %v15153_v57  ;;  %vm1129_vm9 = vcmask 523264   ;;  %vm1191_vm10 = vcmask 515072   ;;  %vm1253_vm11 = vcmask 506880  }
  0x27   : > { %vm1315_vm12 = vcmask 498688   ;;  %vm1377_vm13 = vcmask 490496   ;;  %vm1439_vm14 = vcmask 261120   ;;  %vm1501_vm15 = vcmask 252928  }
  0x28   : > { %14568 = vperm.xlu1 %14521, %v14567_v5  }
  0x91   : > { %v14513_v34 = vpop.permute.xlu0 %14512 }
  0x92   : > { %v14514_v35 = vunpack.i.l.bf16 %v14513_v34  ;;  %v14515_v41 = vunpack.i.h.bf16 %v14513_v34 }
  0x93   : > { %v14524_v17 = vpop.permute.xlu1 %14523 }
  0x94   : > { %v485_v37 = vmul.f32 %v14514_v35, %v15199_v30  ;;  %v484_v38 = vmul.f32 %v14514_v35, %v15202_v31  ;;  %v487_v42 = vmul.f32 %v14514_v35, %v15210_v39  ;;  %v486_v43 = vmul.f32 %v14514_v35, %v15213_v40 }
  0x95   : > { %v541_v45 = vmul.f32 %v14515_v41, %v15202_v31  ;;  %v488_v46 = vmul.f32 %v14514_v35, %v15220_v44  ;;  %v543_v47 = vmul.f32 %v14515_v41, %v15213_v40  ;;  %v542_v48 = vmul.f32 %v14515_v41, %v15199_v30  ;;  %v14518_v49 = vpop.permute.xlu0 %14517 }
  0x96   : > { %502 = vrot.lane.b32.xlu1 %v485_v37, %s14961_s22  ;;  %500 = vrot.lane.b32.xlu0 %v484_v38, %s14961_s22  ;;  %v15232_v50 = vunpack.i.l.bf16 %v14518_v49  ;;  %v545_v52 = vmul.f32 %v14515_v41, %v15220_v44  ;;  %v544_v53 = vmul.f32 %v14515_v41, %v15210_v39  ;;  %v15255_v63 = vunpack.i.h.bf16 %v14518_v49 }
  0x97   : > { %v482_v3 = vmul.f32 %v14514_v35, %v15250_v61  ;;  %v483_v5 = vmul.f32 %v14514_v35, %v15261_v4  ;;  %v15285_v25 = vunpack.i.l.bf16 %v14524_v17  ;;  %v539_v28 = vmul.f32 %v14515_v41, %v15250_v61  ;;  %v14529_v56 = vpop.permute.xlu1 %14528 }
  0x98   : > { %v599_v54 = vmul.f32 %v15232_v50, %v15199_v30  ;;  %v598_v55 = vmul.f32 %v15232_v50, %v15202_v31  ;;  %v601_v59 = vmul.f32 %v15232_v50, %v15210_v39  ;;  %v600_v60 = vmul.f32 %v15232_v50, %v15213_v40 }
  0x99   : > { %v602_v1 = vmul.f32 %v15232_v50, %v15220_v44  ;;  %v655_v8 = vmul.f32 %v15255_v63, %v15202_v31  ;;  %v656_v9 = vmul.f32 %v15255_v63, %v15199_v30  ;;  %v657_v10 = vmul.f32 %v15255_v63, %v15213_v40 }
  0x9a   : > { %506 = vrot.lane.b32.xlu1 %v487_v42, %s14961_s22  ;;  %504 = vrot.lane.b32.xlu0 %v486_v43, %s14961_s22  ;;  %v658_v13 = vmul.f32 %v15255_v63, %v15210_v39  ;;  %v659_v14 = vmul.f32 %v15255_v63, %v15220_v44  ;;  %v540_v29 = vmul.f32 %v14515_v41, %v15261_v4  ;;  %v15390_v12 = vunpack.i.h.bf16 %v14529_v56 }
  0x9b   : > { %v789_v34 = vmul.f32 %v15285_v25, %v15293_v27  ;;  %v790_v35 = vmul.f32 %v15285_v25, %v15290_v26  ;;  %v15307_v37 = vrot.slane %v734_v32, %v15153_v57  ;;  %v742_v38 = vrot.slane %v707_v16, %v15164_v7  ;;  %v15396_v15 = vpop.permute.xlu1 %14538 }
  0x9c   : > { %v15311_v41 = vrot.slane %v738_v33, %v15153_v57  ;;  %v654_v62 = vmul.f32 %v15255_v63, %v15261_v4  ;;  %v976_v16 = vmul.f32 %v15390_v12, %v15290_v26  ;;  %v980_v33 = vmul.f32 %v15390_v12, %v15320_v6 }
  0x9d   : > { %v791_v58 = vmul.f32 %v15285_v25, %v15307_v37  ;;  %v15323_v43 = vrot.slane %v742_v38, %v15153_v57 }
  0x9e   : > { %557 = vrot.lane.b32.xlu1 %v541_v45, %s14962_s16  ;;  %508 = vrot.lane.b32.xlu0 %v488_v46, %s14961_s22  ;;  %v792_v42 = vmul.f32 %v15285_v25, %v15311_v41  ;;  %v794_v45 = vmul.f32 %v15285_v25, %v15320_v6  ;;  %v15333_v46 = vunpack.i.h.bf16 %v14524_v17 }
  0x9f   : > { %v793_v7 = vmul.f32 %v15285_v25, %v15323_v43  ;;  %v979_v32 = vmul.f32 %v15390_v12, %v15323_v43 }
  0xa0   : > { %v851_v49 = vmul.f32 %v15333_v46, %v15293_v27 }
  0xa2   : > { %561 = vrot.lane.b32.xlu1 %v543_v47, %s14962_s16  ;;  %559 = vrot.lane.b32.xlu0 %v542_v48, %s14962_s16  ;;  %v596_v47 = vmul.f32 %v15232_v50, %v15250_v61  ;;  %v597_v48 = vmul.f32 %v15232_v50, %v15261_v4  ;;  %v854_v50 = vmul.f32 %v15333_v46, %v15311_v41 }
  0xa6   : > { %565 = vrot.lane.b32.xlu1 %v545_v52, %s14962_s16  ;;  %563 = vrot.lane.b32.xlu0 %v544_v53, %s14962_s16  ;;  %v852_v52 = vmul.f32 %v15333_v46, %v15290_v26  ;;  %v853_v53 = vmul.f32 %v15333_v46, %v15307_v37 }
  0xaa   : > { %616 = vrot.lane.b32.xlu1 %v599_v54, %s14963_s23  ;;  %614 = vrot.lane.b32.xlu0 %v598_v55, %s14963_s23  ;;  %v855_v54 = vmul.f32 %v15333_v46, %v15323_v43  ;;  %v856_v55 = vmul.f32 %v15333_v46, %v15320_v6 }
  0xae   : > { %620 = vrot.lane.b32.xlu1 %v601_v59, %s14963_s23  ;;  %618 = vrot.lane.b32.xlu0 %v600_v60, %s14963_s23  ;;  %v15359_v59 = vunpack.i.l.bf16 %v14529_v56  ;;  %v653_v60 = vmul.f32 %v15255_v63, %v15250_v61 }
  0xb0   : > { %v916_v63 = vmul.f32 %v15359_v59, %v15311_v41 }
  0xb2   : > { %622 = vrot.lane.b32.xlu0 %v602_v1, %s14963_s23  ;;  %496 = vrot.lane.b32.xlu1 %v482_v3, %s14961_s22  ;;  %v913_v1 = vmul.f32 %v15359_v59, %v15293_v27  ;;  %v914_v3 = vmul.f32 %v15359_v59, %v15290_v26 }
  0xb6   : > { %498 = vrot.lane.b32.xlu0 %v483_v5, %s14961_s22  ;;  %671 = vrot.lane.b32.xlu1 %v655_v8, %s14964_s24  ;;  %v915_v5 = vmul.f32 %v15359_v59, %v15307_v37  ;;  %v718_v8 = vrot.slane %v15145_v51, %v15153_v57 }
  0xb8   : > { %v15386_v11 = vrot.slane %v718_v8, %v15153_v57  ;;  %v975_v57 = vmul.f32 %v15390_v12, %v15293_v27 }
  0xba   : > { %673 = vrot.lane.b32.xlu0 %v656_v9, %s14964_s24  ;;  %675 = vrot.lane.b32.xlu1 %v657_v10, %s14964_s24  ;;  %v917_v9 = vmul.f32 %v15359_v59, %v15323_v43  ;;  %v918_v10 = vmul.f32 %v15359_v59, %v15320_v6  ;;  %v787_v51 = vmul.f32 %v15285_v25, %v15386_v11 }
  0xbb   : > { %v849_v38 = vmul.f32 %v15333_v46, %v15386_v11 }
  0xbe   : > { %677 = vrot.lane.b32.xlu0 %v658_v13, %s14964_s24  ;;  %679 = vrot.lane.b32.xlu1 %v659_v14, %s14964_s24  ;;  %v788_v13 = vmul.f32 %v15285_v25, %v15160_v0  ;;  %v14534_v14 = vpop.permute.xlu0 %14533  ;;  %v15408_v25 = vpop.permute.xlu1 %14548 }
  0xbf   : > { %v15426_v36 = vunpack.i.l.bf16 %v14534_v14  ;;  %v15464_v56 = vunpack.i.h.bf16 %v14534_v14 }
  0xc1   : > { %v1099_v8 = vmul.f32 %v15464_v56, %v15293_v27 }
  0xc2   : > { %553 = vrot.lane.b32.xlu0 %v539_v28, %s14962_s16  ;;  %555 = vrot.lane.b32.xlu1 %v540_v29, %s14962_s16  ;;  %v15406_v17 = vpop.permute.xlu0 %14543  ;;  %v977_v28 = vmul.f32 %v15390_v12, %v15307_v37  ;;  %v978_v29 = vmul.f32 %v15390_v12, %v15311_v41 }
  0xc3   : > { %v15593_v2 = vunpack.i.l.bf16 %v15406_v17 }
  0xc6   : > { %807 = vrot.lane.b32.xlu0 %v789_v34, %s14965_s25  ;;  %809 = vrot.lane.b32.xlu1 %v790_v35, %s14965_s25  ;;  %v15420_v34 = vpop.permute.xlu0 %14553  ;;  %v15422_v35 = vpop.permute.xlu1 %14558 }
  0xca   : > { %811 = vrot.lane.b32.xlu0 %v791_v58, %s14965_s25  ;;  %813 = vrot.lane.b32.xlu1 %v792_v42, %s14965_s25  ;;  %v850_v58 = vmul.f32 %v15333_v46, %v15160_v0  ;;  %v15434_v42 = vpop.permute.xlu0 %14563 }
  0xce   : > { %815 = vrot.lane.b32.xlu0 %v793_v7, %s14965_s25  ;;  %817 = vrot.lane.b32.xlu1 %v794_v45, %s14965_s25  ;;  %v15436_v7 = vpop.permute.xlu1 %14568  ;;  %v1037_v45 = vmul.f32 %v15426_v36, %v15293_v27 }
  0xd2   : > { %610 = vrot.lane.b32.xlu0 %v596_v47, %s14963_s23  ;;  %612 = vrot.lane.b32.xlu1 %v597_v48, %s14963_s23  ;;  %v1038_v47 = vmul.f32 %v15426_v36, %v15290_v26 }
  0xd6   : > { %869 = vrot.lane.b32.xlu0 %v851_v49, %s14966_s26  ;;  %871 = vrot.lane.b32.xlu1 %v852_v52, %s14966_s26  ;;  %v1039_v49 = vmul.f32 %v15426_v36, %v15307_v37  ;;  %v1040_v52 = vmul.f32 %v15426_v36, %v15311_v41 }
  0xda   : > { %873 = vrot.lane.b32.xlu0 %v853_v53, %s14966_s26  ;;  %875 = vrot.lane.b32.xlu1 %v854_v50, %s14966_s26 }
  0xde   : > { %877 = vrot.lane.b32.xlu0 %v855_v54, %s14966_s26  ;;  %879 = vrot.lane.b32.xlu1 %v856_v55, %s14966_s26  ;;  %v1041_v54 = vmul.f32 %v15426_v36, %v15323_v43  ;;  %v1042_v55 = vmul.f32 %v15426_v36, %v15320_v6 }
  0xe2   : > { %667 = vrot.lane.b32.xlu0 %v653_v60, %s14964_s24  ;;  %669 = vrot.lane.b32.xlu1 %v654_v62, %s14964_s24 }
  0xe6   : > { %931 = vrot.lane.b32.xlu0 %v913_v1, %s14967_s27  ;;  %933 = vrot.lane.b32.xlu1 %v914_v3, %s14967_s27  ;;  %v911_v1 = vmul.f32 %v15359_v59, %v15386_v11  ;;  %v912_v3 = vmul.f32 %v15359_v59, %v15160_v0 }
  0xea   : > { %935 = vrot.lane.b32.xlu0 %v915_v5, %s14967_s27  ;;  %937 = vrot.lane.b32.xlu1 %v916_v63, %s14967_s27 }
  0xee   : > { %939 = vrot.lane.b32.xlu0 %v917_v9, %s14967_s27  ;;  %941 = vrot.lane.b32.xlu1 %v918_v10, %s14967_s27  ;;  %v1100_v9 = vmul.f32 %v15464_v56, %v15290_v26 }
  0xf2   : > { %803 = vrot.lane.b32.xlu0 %v787_v51, %s14965_s25  ;;  %805 = vrot.lane.b32.xlu1 %v788_v13, %s14965_s25  ;;  %v1101_v51 = vmul.f32 %v15464_v56, %v15307_v37  ;;  %v1102_v13 = vmul.f32 %v15464_v56, %v15311_v41 }
  0xf6   : > { %993 = vrot.lane.b32.xlu0 %v975_v57, %s14968_s28  ;;  %995 = vrot.lane.b32.xlu1 %v976_v16, %s14968_s28  ;;  %v1103_v16 = vmul.f32 %v15464_v56, %v15323_v43 }
  0xfa   : > { %997 = vrot.lane.b32.xlu0 %v977_v28, %s14968_s28  ;;  %999 = vrot.lane.b32.xlu1 %v978_v29, %s14968_s28  ;;  %v1104_v28 = vmul.f32 %v15464_v56, %v15320_v6  ;;  %v15507_v29 = vunpack.i.l.bf16 %v15396_v15 }
  0xfe   : > { %1001 = vrot.lane.b32.xlu0 %v979_v32, %s14968_s28  ;;  %1003 = vrot.lane.b32.xlu1 %v980_v33, %s14968_s28 }
 0x102   : > { %865 = vrot.lane.b32.xlu0 %v849_v38, %s14966_s26  ;;  %867 = vrot.lane.b32.xlu1 %v850_v58, %s14966_s26  ;;  %v973_v38 = vmul.f32 %v15390_v12, %v15386_v11  ;;  %v974_v58 = vmul.f32 %v15390_v12, %v15160_v0 }
 0x106   : > { %1055 = vrot.lane.b32.xlu0 %v1037_v45, %s14969_s29  ;;  %1057 = vrot.lane.b32.xlu1 %v1038_v47, %s14969_s29 }
 0x108   : > { %v15444_v46 = vpop.permute.xlu1 %502  ;;  %v15446_v48 = vpop.permute.xlu0 %500 }
 0x10a   : > { %1059 = vrot.lane.b32.xlu0 %v1039_v49, %s14969_s29  ;;  %1061 = vrot.lane.b32.xlu1 %v1040_v52, %s14969_s29  ;;  %v1161_v49 = vmul.f32 %v15507_v29, %v15293_v27  ;;  %v1162_v52 = vmul.f32 %v15507_v29, %v15290_v26 }
 0x10c   : > { %v15454_v53 = vpop.permute.xlu1 %506  ;;  %v15456_v50 = vpop.permute.xlu0 %504 }
 0x10e   : > { %1063 = vrot.lane.b32.xlu0 %v1041_v54, %s14969_s29  ;;  %1065 = vrot.lane.b32.xlu1 %v1042_v55, %s14969_s29  ;;  %v1163_v55 = vmul.f32 %v15507_v29, %v15307_v37 }
 0x110   : > { %v15466_v60 = vpop.permute.xlu1 %557  ;;  %v15468_v62 = vpop.permute.xlu0 %508 }
 0x112   : > { %927 = vrot.lane.b32.xlu0 %v911_v1, %s14967_s27  ;;  %929 = vrot.lane.b32.xlu1 %v912_v3, %s14967_s27  ;;  %v1164_v1 = vmul.f32 %v15507_v29, %v15311_v41  ;;  %s14987_s27 = smov 112  }
 0x114   : > { %v15476_v5 = vpop.permute.xlu1 %561  ;;  %v15478_v63 = vpop.permute.xlu0 %559 }
 0x116   : > { %1117 = vrot.lane.b32.xlu0 %v1099_v8, %s14970_s30  ;;  %1119 = vrot.lane.b32.xlu1 %v1100_v9, %s14970_s30  ;;  %v1165_v9 = vmul.f32 %v15507_v29, %v15323_v43 }
 0x118   : > { %v15486_v59 = vpop.permute.xlu1 %565  ;;  %v15488_v10 = vpop.permute.xlu0 %563 }
 0x11a   : > { %1121 = vrot.lane.b32.xlu0 %v1101_v51, %s14970_s30  ;;  %1123 = vrot.lane.b32.xlu1 %v1102_v13, %s14970_s30  ;;  %v1166_v51 = vmul.f32 %v15507_v29, %v15320_v6  ;;  %v15550_v13 = vunpack.i.h.bf16 %v15396_v15 }
 0x11c   : > { %v15496_v14 = vpop.permute.xlu1 %616  ;;  %v15498_v57 = vpop.permute.xlu0 %614  ;;  %v1223_v15 = vmul.f32 %v15550_v13, %v15293_v27 }
 0x11e   : > { %1125 = vrot.lane.b32.xlu0 %v1103_v16, %s14970_s30  ;;  %1127 = vrot.lane.b32.xlu1 %v1104_v28, %s14970_s30 }
 0x120   : > { %v15509_v32 = vpop.permute.xlu1 %620  ;;  %v15511_v33 = vpop.permute.xlu0 %618 }
 0x122   : > { %989 = vrot.lane.b32.xlu0 %v973_v38, %s14968_s28  ;;  %991 = vrot.lane.b32.xlu1 %v974_v58, %s14968_s28  ;;  %v1035_v38 = vmul.f32 %v15426_v36, %v15386_v11  ;;  %v1036_v58 = vmul.f32 %v15426_v36, %v15160_v0  ;;  %s14977_s28 = smov 30  }
 0x124   : > { %v15519_v45 = vpop.permute.xlu0 %622  ;;  %v15521_v47 = vpop.permute.xlu1 %496 }
 0x126   : > { %1179 = vrot.lane.b32.xlu0 %v1161_v49, %s14971_s12  ;;  %1181 = vrot.lane.b32.xlu1 %v1162_v52, %s14971_s12 }
 0x128   : > { %v15529_v12 = vpop.permute.xlu0 %498  ;;  %v15531_v54 = vpop.permute.xlu1 %671 }
 0x12a   : > { %1183 = vrot.lane.b32.xlu0 %v1163_v55, %s14971_s12  ;;  %1185 = vrot.lane.b32.xlu1 %v1164_v1, %s14971_s12  ;;  %v1224_v55 = vmul.f32 %v15550_v13, %v15290_v26 }
 0x12c   : > { %v15539_v3 = vpop.permute.xlu0 %673  ;;  %v15541_v8 = vpop.permute.xlu1 %675 }
 0x12e   : > { %1187 = vrot.lane.b32.xlu0 %v1165_v9, %s14971_s12  ;;  %1189 = vrot.lane.b32.xlu1 %v1166_v51, %s14971_s12  ;;  %v1225_v9 = vmul.f32 %v15550_v13, %v15307_v37  ;;  %v1226_v51 = vmul.f32 %v15550_v13, %v15311_v41 }
 0x130   : > { %v15552_v16 = vpop.permute.xlu0 %677  ;;  %v15554_v28 = vpop.permute.xlu1 %679 }
 0x132   : > { %1051 = vrot.lane.b32.xlu0 %v1035_v38, %s14969_s29  ;;  %1053 = vrot.lane.b32.xlu1 %v1036_v58, %s14969_s29  ;;  %s14978_s29 = smov 29  }
 0x134   : > { %v15562_v49 = vpop.permute.xlu0 %553  ;;  %v15564_v52 = vpop.permute.xlu1 %555 }
 0x136   : > { %1241 = vrot.lane.b32.xlu0 %v1223_v15, %s14972_s13  ;;  %1243 = vrot.lane.b32.xlu1 %v1224_v55, %s14972_s13  ;;  %v1227_v15 = vmul.f32 %v15550_v13, %v15323_v43  ;;  %v1228_v55 = vmul.f32 %v15550_v13, %v15320_v6 }
 0x138   : > { %v15572_v36 = vpop.permute.xlu0 %807  ;;  %v15574_v1 = vpop.permute.xlu1 %809 }
 0x139   : > { %18900 = vst [vmem:[#allocation13_spill] sm:$0xff] %v15572_v36  ;;  %v1285_v36 = vmul.f32 %v15593_v2, %v15293_v27 }
 0x13a   : > { %1245 = vrot.lane.b32.xlu0 %v1225_v9, %s14972_s13  ;;  %1247 = vrot.lane.b32.xlu1 %v1226_v51, %s14972_s13 }
 0x13c   : > { %v15582_v38 = vpop.permute.xlu0 %811  ;;  %v15584_v58 = vpop.permute.xlu1 %813 }
 0x13d   : > { %18901 = vst [vmem:[#allocation14_spill] sm:$0xff] %v15582_v38  ;;  %18902 = vst [vmem:[#allocation15_spill] sm:$0xff] %v15584_v58  ;;  %v1097_v58 = vmul.f32 %v15464_v56, %v15386_v11  ;;  %v1098_v38 = vmul.f32 %v15464_v56, %v15160_v0 }
 0x13e   : > { %1249 = vrot.lane.b32.xlu0 %v1227_v15, %s14972_s13  ;;  %1251 = vrot.lane.b32.xlu1 %v1228_v55, %s14972_s13 }
 0x140   : > { %v15595_v9 = vpop.permute.xlu0 %815  ;;  %v15597_v51 = vpop.permute.xlu1 %817 }
 0x141   : > { %18903 = vst [vmem:[#allocation16_spill] sm:$0xff] %v15595_v9  ;;  %18904 = vst [vmem:[#allocation17_spill] sm:$0xff] %v15597_v51  ;;  %v1286_v51 = vmul.f32 %v15593_v2, %v15290_v26 }
 0x142   : > { %1113 = vrot.lane.b32.xlu0 %v1097_v58, %s14970_s30  ;;  %1115 = vrot.lane.b32.xlu1 %v1098_v38, %s14970_s30  ;;  %v1287_v38 = vmul.f32 %v15593_v2, %v15307_v37 }
 0x144   : > { %v15605_v15 = vpop.permute.xlu0 %610  ;;  %v15607_v55 = vpop.permute.xlu1 %612 }
 0x145   : > { %18905 = vst [vmem:[#allocation18_spill] sm:$0xff] %v15605_v15  ;;  %18906 = vst [vmem:[#allocation19_spill] sm:$0xff] %v15607_v55  ;;  %v1288_v15 = vmul.f32 %v15593_v2, %v15311_v41 }
 0x146   : > { %1303 = vrot.lane.b32.xlu0 %v1285_v36, %s14973_s14  ;;  %1305 = vrot.lane.b32.xlu1 %v1286_v51, %s14973_s14  ;;  %v1289_v36 = vmul.f32 %v15593_v2, %v15323_v43  ;;  %v1290_v51 = vmul.f32 %v15593_v2, %v15320_v6 }
 0x148   : > { %v15615_v56 = vpop.permute.xlu0 %869  ;;  %v15617_v58 = vpop.permute.xlu1 %871 }
 0x149   : > { %18907 = vst [vmem:[#allocation20_spill] sm:$0xff] %v15615_v56  ;;  %18908 = vst [vmem:[#allocation21_spill] sm:$0xff] %v15617_v58  ;;  %v15636_v56 = vunpack.i.h.bf16 %v15406_v17 }
 0x14a   : > { %1307 = vrot.lane.b32.xlu0 %v1287_v38, %s14973_s14  ;;  %1309 = vrot.lane.b32.xlu1 %v1288_v15, %s14973_s14 }
 0x14b   : > { %v1347_v17 = vmul.f32 %v15636_v56, %v15293_v27 }
 0x14c   : > { %v15625_v55 = vpop.permute.xlu0 %873  ;;  %v15627_v9 = vpop.permute.xlu1 %875 }
 0x14d   : > { %18909 = vst [vmem:[#allocation22_spill] sm:$0xff] %v15625_v55  ;;  %18910 = vst [vmem:[#allocation23_spill] sm:$0xff] %v15627_v9  ;;  %v1159_v9 = vmul.f32 %v15507_v29, %v15386_v11  ;;  %v1160_v55 = vmul.f32 %v15507_v29, %v15160_v0 }
 0x14e   : > { %1311 = vrot.lane.b32.xlu0 %v1289_v36, %s14973_s14  ;;  %1313 = vrot.lane.b32.xlu1 %v1290_v51, %s14973_s14 }
 0x150   : > { %v15638_v38 = vpop.permute.xlu0 %877  ;;  %v15640_v15 = vpop.permute.xlu1 %879 }
 0x151   : > { %18911 = vst [vmem:[#allocation24_spill] sm:$0xff] %v15638_v38  ;;  %18912 = vst [vmem:[#allocation25_spill] sm:$0xff] %v15640_v15  ;;  %v1348_v15 = vmul.f32 %v15636_v56, %v15290_v26 }
 0x152   : > { %1175 = vrot.lane.b32.xlu0 %v1159_v9, %s14971_s12  ;;  %1177 = vrot.lane.b32.xlu1 %v1160_v55, %s14971_s12  ;;  %v1349_v55 = vmul.f32 %v15636_v56, %v15307_v37  ;;  %s14979_s12 = smov 28  }
 0x154   : > { %v15648_v36 = vpop.permute.xlu0 %667  ;;  %v15650_v51 = vpop.permute.xlu1 %669 }
 0x155   : > { %18913 = vst [vmem:[#allocation26_spill] sm:$0xff] %v15648_v36  ;;  %18914 = vst [vmem:[#allocation27_spill] sm:$0xff] %v15650_v51  ;;  %v1350_v36 = vmul.f32 %v15636_v56, %v15311_v41 }
 0x156   : > { %1365 = vrot.lane.b32.xlu0 %v1347_v17, %s14974_s15  ;;  %1367 = vrot.lane.b32.xlu1 %v1348_v15, %s14974_s15  ;;  %v1351_v15 = vmul.f32 %v15636_v56, %v15323_v43  ;;  %v1352_v17 = vmul.f32 %v15636_v56, %v15320_v6 }
 0x158   : > { %v15658_v29 = vpop.permute.xlu0 %931  ;;  %v15660_v9 = vpop.permute.xlu1 %933 }
 0x159   : > { %18915 = vst [vmem:[#allocation28_spill] sm:$0xff] %v15658_v29  ;;  %18916 = vst [vmem:[#allocation29_spill] sm:$0xff] %v15660_v9  ;;  %v15679_v29 = vunpack.i.l.bf16 %v15408_v25 }
 0x15a   : > { %1369 = vrot.lane.b32.xlu0 %v1349_v55, %s14974_s15  ;;  %1371 = vrot.lane.b32.xlu1 %v1350_v36, %s14974_s15 }
 0x15b   : > { %v1409_v9 = vmul.f32 %v15679_v29, %v15293_v27 }
 0x15c   : > { %v15668_v51 = vpop.permute.xlu0 %935  ;;  %v15670_v38 = vpop.permute.xlu1 %937 }
 0x15d   : > { %18917 = vst [vmem:[#allocation30_spill] sm:$0xff] %v15668_v51  ;;  %18918 = vst [vmem:[#allocation31_spill] sm:$0xff] %v15670_v38  ;;  %v1221_v38 = vmul.f32 %v15550_v13, %v15386_v11  ;;  %v1222_v51 = vmul.f32 %v15550_v13, %v15160_v0 }
 0x15e   : > { %1373 = vrot.lane.b32.xlu0 %v1351_v15, %s14974_s15  ;;  %1375 = vrot.lane.b32.xlu1 %v1352_v17, %s14974_s15 }
 0x160   : > { %v15681_v55 = vpop.permute.xlu0 %939  ;;  %v15683_v36 = vpop.permute.xlu1 %941 }
 0x161   : > { %18919 = vst [vmem:[#allocation32_spill] sm:$0xff] %v15681_v55  ;;  %18920 = vst [vmem:[#allocation33_spill] sm:$0xff] %v15683_v36  ;;  %v1410_v36 = vmul.f32 %v15679_v29, %v15290_v26 }
 0x162   : > { %1237 = vrot.lane.b32.xlu0 %v1221_v38, %s14972_s13  ;;  %1239 = vrot.lane.b32.xlu1 %v1222_v51, %s14972_s13  ;;  %v1411_v51 = vmul.f32 %v15679_v29, %v15307_v37 }
 0x164   : > { %v15691_v15 = vpop.permute.xlu0 %803  ;;  %v15693_v17 = vpop.permute.xlu1 %805 }
 0x165   : > { %18921 = vst [vmem:[#allocation34_spill] sm:$0xff] %v15691_v15  ;;  %18922 = vst [vmem:[#allocation35_spill] sm:$0xff] %v15693_v17  ;;  %v1412_v15 = vmul.f32 %v15679_v29, %v15311_v41 }
 0x166   : > { %1427 = vrot.lane.b32.xlu0 %v1409_v9, %s14975_s19  ;;  %1429 = vrot.lane.b32.xlu1 %v1410_v36, %s14975_s19  ;;  %v1413_v9 = vmul.f32 %v15679_v29, %v15323_v43  ;;  %v1414_v36 = vmul.f32 %v15679_v29, %v15320_v6 }
 0x168   : > { %v15701_v13 = vpop.permute.xlu0 %993  ;;  %v15703_v38 = vpop.permute.xlu1 %995 }
 0x169   : > { %18923 = vst [vmem:[#allocation36_spill] sm:$0xff] %v15701_v13  ;;  %18924 = vst [vmem:[#allocation37_spill] sm:$0xff] %v15703_v38  ;;  %v15722_v13 = vunpack.i.h.bf16 %v15408_v25 }
 0x16a   : > { %1431 = vrot.lane.b32.xlu0 %v1411_v51, %s14975_s19  ;;  %1433 = vrot.lane.b32.xlu1 %v1412_v15, %s14975_s19 }
 0x16b   : > { %v1471_v25 = vmul.f32 %v15722_v13, %v15293_v27 }
 0x16c   : > { %v15711_v17 = vpop.permute.xlu0 %997  ;;  %v15713_v55 = vpop.permute.xlu1 %999 }
 0x16d   : > { %18925 = vst [vmem:[#allocation38_spill] sm:$0xff] %v15711_v17  ;;  %18926 = vst [vmem:[#allocation39_spill] sm:$0xff] %v15713_v55  ;;  %v1283_v55 = vmul.f32 %v15593_v2, %v15386_v11  ;;  %v1284_v17 = vmul.f32 %v15593_v2, %v15160_v0 }
 0x16e   : > { %1435 = vrot.lane.b32.xlu0 %v1413_v9, %s14975_s19  ;;  %1437 = vrot.lane.b32.xlu1 %v1414_v36, %s14975_s19 }
 0x170   : > { %v15724_v51 = vpop.permute.xlu0 %1001  ;;  %v15726_v15 = vpop.permute.xlu1 %1003 }
 0x171   : > { %18927 = vst [vmem:[#allocation40_spill] sm:$0xff] %v15724_v51  ;;  %18928 = vst [vmem:[#allocation41_spill] sm:$0xff] %v15726_v15  ;;  %v1472_v15 = vmul.f32 %v15722_v13, %v15290_v26 }
 0x172   : > { %1299 = vrot.lane.b32.xlu0 %v1283_v55, %s14973_s14  ;;  %1301 = vrot.lane.b32.xlu1 %v1284_v17, %s14973_s14  ;;  %v1473_v17 = vmul.f32 %v15722_v13, %v15307_v37 }
 0x174   : > { %v15734_v9 = vpop.permute.xlu0 %865  ;;  %v15736_v36 = vpop.permute.xlu1 %867 }
 0x175   : > { %18929 = vst [vmem:[#allocation42_spill] sm:$0xff] %v15734_v9  ;;  %18930 = vst [vmem:[#allocation43_spill] sm:$0xff] %v15736_v36  ;;  %v1474_v9 = vmul.f32 %v15722_v13, %v15311_v41 }
 0x176   : > { %1489 = vrot.lane.b32.xlu0 %v1471_v25, %s14976_s20  ;;  %1491 = vrot.lane.b32.xlu1 %v1472_v15, %s14976_s20  ;;  %v12038_v25 = vld [vmem:[%s18803_s1 + $0x50] sm:$0x7] }
 0x178   : > { %v15744_v2 = vpop.permute.xlu0 %1055  ;;  %v15746_v55 = vpop.permute.xlu1 %1057 }
 0x179   : > { %18931 = vst [vmem:[#allocation44_spill] sm:$0xff] %v15744_v2  ;;  %18932 = vst [vmem:[#allocation45_spill] sm:$0xff] %v15746_v55  ;;  %v1475_v2 = vmul.f32 %v15722_v13, %v15323_v43  ;;  %v1476_v55 = vmul.f32 %v15722_v13, %v15320_v6 }
 0x17a   : > { %1493 = vrot.lane.b32.xlu0 %v1473_v17, %s14976_s20  ;;  %1495 = vrot.lane.b32.xlu1 %v1474_v9, %s14976_s20  ;;  %v1712_v17 = vunpack.c.l.bf16 %v12038_v25  ;;  %v15768_v9 = vunpack.i.l.bf16 %v15420_v34 }
 0x17c   : > { %v15757_v36 = vpop.permute.xlu0 %1059  ;;  %v15759_v15 = vpop.permute.xlu1 %1061 }
 0x17d   : > { %18933 = vst [vmem:[#allocation46_spill] sm:$0xff] %v15757_v36  ;;  %18934 = vst [vmem:[#allocation47_spill] sm:$0xff] %v15759_v15  ;;  %v1345_v15 = vmul.f32 %v15636_v56, %v15386_v11 }
 0x17e   : > { %1497 = vrot.lane.b32.xlu0 %v1475_v2, %s14976_s20  ;;  %1499 = vrot.lane.b32.xlu1 %v1476_v55, %s14976_s20  ;;  %v1346_v2 = vmul.f32 %v15636_v56, %v15160_v0  ;;  %v1533_v55 = vmul.f32 %v15768_v9, %v15293_v27 }
 0x180   : > { %v15770_v51 = vpop.permute.xlu0 %1063  ;;  %v15772_v38 = vpop.permute.xlu1 %1065 }
 0x182   : > { %1717 = vperm.xlu0 %14510, %v1712_v17   ;;  %1361 = vrot.lane.b32.xlu1 %v1345_v15, %s14974_s15  ;;  %v1534_v15 = vmul.f32 %v15768_v9, %v15290_v26 }
 0x184   : > { %v15777_v36 = vpop.permute.xlu0 %927  ;;  %v15779_v58 = vpop.permute.xlu1 %929 }
 0x185   : > { %18935 = vst [vmem:[#allocation48_spill] sm:$0xff] %v15777_v36  ;;  %18936 = vst [vmem:[#allocation49_spill] sm:$0xff] %v15779_v58  ;;  %v1535_v36 = vmul.f32 %v15768_v9, %v15307_v37 }
 0x186   : > { %1363 = vrot.lane.b32.xlu0 %v1346_v2, %s14974_s15  ;;  %1551 = vrot.lane.b32.xlu1 %v1533_v55, %s14977_s28  ;;  %v1536_v55 = vmul.f32 %v15768_v9, %v15311_v41 }
 0x188   : > { %v15787_v25 = vpop.permute.xlu0 %1117  ;;  %v15789_v17 = vpop.permute.xlu1 %1119 }
 0x189   : > { %18937 = vst [vmem:[#allocation50_spill] sm:$0xff] %v15787_v25  ;;  %18938 = vst [vmem:[#allocation51_spill] sm:$0xff] %v15789_v17  ;;  %v1537_v25 = vmul.f32 %v15768_v9, %v15323_v43  ;;  %v15808_v17 = vunpack.i.h.bf16 %v15420_v34  ;;  %v1408_v34 = vmul.f32 %v15679_v29, %v15160_v0 }
 0x18a   : > { %1553 = vrot.lane.b32.xlu0 %v1534_v15, %s14977_s28  ;;  %1555 = vrot.lane.b32.xlu1 %v1535_v36, %s14977_s28 }
 0x18c   : > { %v15797_v56 = vpop.permute.xlu0 %1121  ;;  %v15799_v2 = vpop.permute.xlu1 %1123 }
 0x18d   : > { %18939 = vst [vmem:[#allocation52_spill] sm:$0xff] %v15797_v56  ;;  %18940 = vst [vmem:[#allocation53_spill] sm:$0xff] %v15799_v2  ;;  %v1538_v2 = vmul.f32 %v15768_v9, %v15320_v6  ;;  %v1407_v56 = vmul.f32 %v15679_v29, %v15386_v11 }
 0x18e   : > { %1557 = vrot.lane.b32.xlu0 %v1536_v55, %s14977_s28  ;;  %1559 = vrot.lane.b32.xlu1 %v1537_v25, %s14977_s28 }
 0x190   : > { %v15810_v15 = vpop.permute.xlu0 %1125  ;;  %v15812_v36 = vpop.permute.xlu1 %1127 }
 0x191   : > { %18941 = vst [vmem:[#allocation54_spill] sm:$0xff] %v15810_v15  ;;  %18942 = vst [vmem:[#allocation55_spill] sm:$0xff] %v15812_v36  ;;  %v1595_v36 = vmul.f32 %v15808_v17, %v15293_v27 }
 0x192   : > { %1561 = vrot.lane.b32.xlu0 %v1538_v2, %s14977_s28  ;;  %1423 = vrot.lane.b32.xlu1 %v1407_v56, %s14975_s19  ;;  %v1596_v56 = vmul.f32 %v15808_v17, %v15290_v26 }
 0x194   : > { %v15820_v55 = vpop.permute.xlu0 %989  ;;  %v15822_v25 = vpop.permute.xlu1 %991 }
 0x195   : > { %18943 = vst [vmem:[#allocation56_spill] sm:$0xff] %v15820_v55  ;;  %18944 = vst [vmem:[#allocation57_spill] sm:$0xff] %v15822_v25  ;;  %v1597_v55 = vmul.f32 %v15808_v17, %v15307_v37 }
 0x196   : > { %1425 = vrot.lane.b32.xlu0 %v1408_v34, %s14975_s19  ;;  %1613 = vrot.lane.b32.xlu1 %v1595_v36, %s14978_s29  ;;  %v1598_v36 = vmul.f32 %v15808_v17, %v15311_v41 }
 0x198   : > { %v15830_v15 = vpop.permute.xlu0 %1179  ;;  %v15832_v2 = vpop.permute.xlu1 %1181 }
 0x199   : > { %18945 = vst [vmem:[#allocation58_spill] sm:$0xff] %v15830_v15  ;;  %18946 = vst [vmem:[#allocation59_spill] sm:$0xff] %v15832_v2  ;;  %v1599_v15 = vmul.f32 %v15808_v17, %v15323_v43  ;;  %v14560_v2 = vunpack.i.l.bf16 %v15422_v35 }
 0x19a   : > { %1615 = vrot.lane.b32.xlu0 %v1596_v56, %s14978_s29  ;;  %1617 = vrot.lane.b32.xlu1 %v1597_v55, %s14978_s29  ;;  %v1600_v55 = vmul.f32 %v15808_v17, %v15320_v6 }
 0x19c   : > { %v15840_v29 = vpop.permute.xlu0 %1183  ;;  %v15842_v34 = vpop.permute.xlu1 %1185 }
 0x19d   : > { %18947 = vst [vmem:[#allocation60_spill] sm:$0xff] %v15840_v29  ;;  %18948 = vst [vmem:[#allocation61_spill] sm:$0xff] %v15842_v34  ;;  %v1469_v34 = vmul.f32 %v15722_v13, %v15386_v11 }
 0x19e   : > { %1619 = vrot.lane.b32.xlu0 %v1598_v36, %s14978_s29  ;;  %1621 = vrot.lane.b32.xlu1 %v1599_v15, %s14978_s29  ;;  %v1470_v15 = vmul.f32 %v15722_v13, %v15160_v0 }
 0x1a0   : > { %v15851_v25 = vpop.permute.xlu0 %1187  ;;  %v15853_v56 = vpop.permute.xlu1 %1189 }
 0x1a1   : > { %18949 = vst [vmem:[#allocation62_spill] sm:$0xff] %v15851_v25  ;;  %18950 = vst [vmem:[#allocation63_spill] sm:$0xff] %v15853_v56  ;;  %v1657_v25 = vmul.f32 %v14560_v2, %v15293_v27 }
 0x1a2   : > { %1623 = vrot.lane.b32.xlu0 %v1600_v55, %s14978_s29  ;;  %1485 = vrot.lane.b32.xlu1 %v1469_v34, %s14976_s20  ;;  %v1658_v34 = vmul.f32 %v14560_v2, %v15290_v26  ;;  %v1659_v55 = vmul.f32 %v14560_v2, %v15307_v37  ;;  %v1662_v37 = vmul.f32 %v14560_v2, %v15320_v6 }
 0x1a3   : > { %v1593_v6 = vmul.f32 %v15808_v17, %v15386_v11 }
 0x1a4   : > { %v15861_v29 = vpop.permute.xlu0 %1051  ;;  %v15863_v36 = vpop.permute.xlu1 %1053 }
 0x1a6   : > { %1487 = vrot.lane.b32.xlu0 %v1470_v15, %s14976_s20  ;;  %1675 = vrot.lane.b32.xlu1 %v1657_v25, %s14979_s12  ;;  %v1660_v15 = vmul.f32 %v14560_v2, %v15311_v41  ;;  %v1661_v25 = vmul.f32 %v14560_v2, %v15323_v43  ;;  %v15896_v41 = vunpack.i.h.bf16 %v15422_v35  ;;  %v1594_v35 = vmul.f32 %v15808_v17, %v15160_v0 }
 0x1a8   : > { %v15870_v56 = vpop.permute.xlu0 %1241  ;;  %v15872_v58 = vpop.permute.xlu1 %1243 }
 0x1a9   : > { %18951 = vst [vmem:[#allocation64_spill] sm:$0xff] %v15870_v56 }
 0x1aa   : > { %1677 = vrot.lane.b32.xlu0 %v1658_v34, %s14979_s12  ;;  %1679 = vrot.lane.b32.xlu1 %v1659_v55, %s14979_s12  ;;  %v1531_v34 = vmul.f32 %v15768_v9, %v15386_v11 }
 0x1ac   : > { %v15878_v13 = vpop.permute.xlu0 %1245  ;;  %v15880_v27 = vpop.permute.xlu1 %1247 }
 0x1ae   : > { %1681 = vrot.lane.b32.xlu0 %v1660_v15, %s14979_s12  ;;  %1683 = vrot.lane.b32.xlu1 %v1661_v25, %s14979_s12  ;;  %v1532_v15 = vmul.f32 %v15768_v9, %v15160_v0 }
 0x1b0   : > { %v15886_v56 = vpop.permute.xlu0 %1249  ;;  %v15888_v26 = vpop.permute.xlu1 %1251 }
 0x1b2   : > { %1685 = vrot.lane.b32.xlu0 %v1662_v37, %s14979_s12  ;;  %1547 = vrot.lane.b32.xlu1 %v1531_v34, %s14977_s28  ;;  %v1809_v34 = vmul.f32 %v15896_v41, %v15175_v18 }
 0x1b4   : > { %v15898_v43 = vpop.permute.xlu0 %1113  ;;  %v15900_v55 = vpop.permute.xlu1 %1115 }
 0x1b5   : > { %18952 = vst [vmem:[#allocation65_spill] sm:$0xff] %v15898_v43 }
 0x1b6   : > { %1549 = vrot.lane.b32.xlu0 %v1532_v15, %s14977_s28  ;;  %1609 = vrot.lane.b32.xlu1 %v1593_v6, %s14978_s29  ;;  %v1810_v15 = vmul.f32 %v15896_v41, %v15178_v19  ;;  %v1811_v6 = vmul.f32 %v15896_v41, %v15181_v20 }
 0x1b8   : > { %v15908_v25 = vpop.permute.xlu0 %1303  ;;  %v15910_v37 = vpop.permute.xlu1 %1305 }
 0x1b9   : > { %18953 = vst [vmem:[#allocation66_spill] sm:$0xff] %v15908_v25 }
 0x1ba   : > { %1611 = vrot.lane.b32.xlu0 %v1594_v35, %s14978_s29  ;;  %1825 = vrot.lane.b32.xlu1 %v1809_v34, %s14961_s22  ;;  %v1812_v35 = vmul.f32 %v15896_v41, %v15184_v21  ;;  %v1813_v34 = vmul.f32 %v15896_v41, %v15187_v22 }
 0x1bc   : > { %v15918_v9 = vpop.permute.xlu0 %1307  ;;  %v15920_v43 = vpop.permute.xlu1 %1309 }
 0x1bd   : > { %18954 = vst [vmem:[#allocation67_spill] sm:$0xff] %v15918_v9  ;;  %18955 = vst [vmem:[#allocation68_spill] sm:$0xff] %v15920_v43  ;;  %v15939_v43 = vunpack.i.l.bf16 %v15434_v42 }
 0x1be   : > { %1827 = vrot.lane.b32.xlu0 %v1810_v15, %s14961_s22  ;;  %1829 = vrot.lane.b32.xlu1 %v1811_v6, %s14961_s22 }
 0x1c0   : > { %v15928_v17 = vpop.permute.xlu0 %1311  ;;  %v15930_v25 = vpop.permute.xlu1 %1313 }
 0x1c1   : > { %18956 = vst [vmem:[#allocation69_spill] sm:$0xff] %v15928_v17  ;;  %18957 = vst [vmem:[#allocation70_spill] sm:$0xff] %v15930_v25  ;;  %v1655_v17 = vmul.f32 %v14560_v2, %v15386_v11  ;;  %v1656_v25 = vmul.f32 %v14560_v2, %v15160_v0  ;;  %v1867_v2 = vmul.f32 %v15939_v43, %v15181_v20 }
 0x1c2   : > { %1831 = vrot.lane.b32.xlu0 %v1812_v35, %s14961_s22  ;;  %1833 = vrot.lane.b32.xlu1 %v1813_v34, %s14961_s22  ;;  %v1865_v34 = vmul.f32 %v15939_v43, %v15175_v18 }
 0x1c4   : > { %v15941_v15 = vpop.permute.xlu0 %1175  ;;  %v15943_v6 = vpop.permute.xlu1 %1177 }
 0x1c5   : > { %18958 = vst [vmem:[#allocation71_spill] sm:$0xff] %v15941_v15  ;;  %v1866_v15 = vmul.f32 %v15939_v43, %v15178_v19 }
 0x1c6   : > { %1671 = vrot.lane.b32.xlu0 %v1655_v17, %s14979_s12  ;;  %1673 = vrot.lane.b32.xlu1 %v1656_v25, %s14979_s12  ;;  %v1868_v25 = vmul.f32 %v15939_v43, %v15184_v21  ;;  %v2023_v17 = vld [vmem:[%s18804_s2] sm:$0x3f] }
 0x1c8   : > { %v15949_v9 = vpop.permute.xlu0 %1365  ;;  %v15951_v35 = vpop.permute.xlu1 %1367 }
 0x1c9   : > { %18959 = vst [vmem:[#allocation72_spill] sm:$0xff] %v15949_v9  ;;  %18960 = vst [vmem:[#allocation73_spill] sm:$0xff] %v15951_v35 }
 0x1ca   : > { %1881 = vrot.lane.b32.xlu0 %v1865_v34, %s14962_s16  ;;  %1883 = vrot.lane.b32.xlu1 %v1866_v15, %s14962_s16  ;;  %v14566_v15 = vunpack.i.h.bf16 %v15434_v42 }
 0x1cc   : > { %v15959_v11 = vpop.permute.xlu0 %1369  ;;  %v15961_v0 = vpop.permute.xlu1 %1371  ;;  %v1922_v35 = vmul.f32 %v14566_v15, %v15178_v19 }
 0x1cd   : > { %18961 = vst [vmem:[#allocation74_spill] sm:$0xff] %v15959_v11  ;;  %18962 = vst [vmem:[#allocation75_spill] sm:$0xff] %v15961_v0  ;;  %v1869_v0 = vmul.f32 %v15939_v43, %v15187_v22 }
 0x1ce   : > { %1885 = vrot.lane.b32.xlu0 %v1867_v2, %s14962_s16  ;;  %1887 = vrot.lane.b32.xlu1 %v1868_v25, %s14962_s16  ;;  %v1921_v25 = vmul.f32 %v14566_v15, %v15175_v18 }
 0x1d0   : > { %v15973_v34 = vpop.permute.xlu0 %1373  ;;  %v15975_v11 = vpop.permute.xlu1 %1375 }
 0x1d1   : > { %18963 = vst [vmem:[#allocation76_spill] sm:$0xff] %v15973_v34  ;;  %18964 = vst [vmem:[#allocation77_spill] sm:$0xff] %v15975_v11  ;;  %v1923_v11 = vmul.f32 %v14566_v15, %v15181_v20  ;;  %v1924_v34 = vmul.f32 %v14566_v15, %v15184_v21 }
 0x1d2   : > { %1889 = vrot.lane.b32.xlu0 %v1869_v0, %s14962_s16  ;;  %2026 = vperm.xlu1 %14521, %v2023_v17   ;;  %v14570_v17 = vunpack.i.l.bf16 %v15436_v7 }
 0x1d4   : > { %v15980_v9 = vpop.permute.xlu0 %1237  ;;  %v15982_v2 = vpop.permute.xlu1 %1239 }
 0x1d5   : > { %18965 = vst [vmem:[#allocation78_spill] sm:$0xff] %v15980_v9  ;;  %18966 = vst [vmem:[#allocation79_spill] sm:$0xff] %v15982_v2  ;;  %v1978_v2 = vmul.f32 %v14570_v17, %v15178_v19 }
 0x1d6   : > { %1937 = vrot.lane.b32.xlu0 %v1921_v25, %s14963_s23  ;;  %1939 = vrot.lane.b32.xlu1 %v1922_v35, %s14963_s23  ;;  %v1925_v25 = vmul.f32 %v14566_v15, %v15187_v22  ;;  %v1807_v35 = vmul.f32 %v15896_v41, %v15190_v23 }
 0x1d8   : > { %v15988_v42 = vpop.permute.xlu1 %1429  ;;  %v15992_v0 = vpop.permute.xlu0 %1427 }
 0x1d9   : > { %18967 = vst [vmem:[#allocation80_spill] sm:$0xff] %v15988_v42  ;;  %18968 = vst [vmem:[#allocation81_spill] sm:$0xff] %v15992_v0 }
 0x1da   : > { %1941 = vrot.lane.b32.xlu0 %v1923_v11, %s14963_s23  ;;  %1943 = vrot.lane.b32.xlu1 %v1924_v34, %s14963_s23  ;;  %v1808_v11 = vmul.f32 %v15896_v41, %v15193_v24  ;;  %v1977_v34 = vmul.f32 %v14570_v17, %v15175_v18  ;;  %v1980_v41 = vmul.f32 %v14570_v17, %v15184_v21 }
 0x1dc   : > { %v15997_v9 = vpop.permute.xlu1 %1433  ;;  %v16004_v42 = vpop.permute.xlu0 %1431 }
 0x1dd   : > { %18969 = vst [vmem:[#allocation82_spill] sm:$0xff] %v15997_v9 }
 0x1de   : > { %1945 = vrot.lane.b32.xlu0 %v1925_v25, %s14963_s23  ;;  %1821 = vrot.lane.b32.xlu1 %v1807_v35, %s14961_s22  ;;  %v1979_v25 = vmul.f32 %v14570_v17, %v15181_v20  ;;  %v1863_v20 = vmul.f32 %v15939_v43, %v15190_v23 }
 0x1e0   : > { %v16006_v0 = vpop.permute.xlu1 %1437  ;;  %v16017_v35 = vpop.permute.xlu0 %1435 }
 0x1e1   : > { %18970 = vst [vmem:[#allocation83_spill] sm:$0xff] %v16006_v0 }
 0x1e2   : > { %1823 = vrot.lane.b32.xlu0 %v1808_v11, %s14961_s22  ;;  %1993 = vrot.lane.b32.xlu1 %v1977_v34, %s14964_s24  ;;  %v1981_v11 = vmul.f32 %v14570_v17, %v15187_v22 }
 0x1e4   : > { %v16013_v9 = vpop.permute.xlu1 %1301  ;;  %v16027_v34 = vpop.permute.xlu0 %1299 }
 0x1e6   : > { %1995 = vrot.lane.b32.xlu0 %v1978_v2, %s14964_s24  ;;  %1997 = vrot.lane.b32.xlu1 %v1979_v25, %s14964_s24  ;;  %v1864_v2 = vmul.f32 %v15939_v43, %v15193_v24  ;;  %v1975_v43 = vmul.f32 %v14570_v17, %v15190_v23 }
 0x1e8   : > { %v16021_v0 = vpop.permute.xlu1 %1491  ;;  %v16041_v21 = vpop.permute.xlu0 %1489 }
 0x1ea   : > { %1999 = vrot.lane.b32.xlu0 %v1980_v41, %s14964_s24  ;;  %2001 = vrot.lane.b32.xlu1 %v1981_v11, %s14964_s24  ;;  %v1919_v41 = vmul.f32 %v14566_v15, %v15190_v23  ;;  %v1920_v11 = vmul.f32 %v14566_v15, %v15193_v24 }
 0x1ec   : > { %v16029_v19 = vpop.permute.xlu1 %1495 }
 0x1ed   : > { %18971 = vst [vmem:[#allocation84_spill] sm:$0xff] %v16029_v19 }
 0x1ee   : > { %1877 = vrot.lane.b32.xlu0 %v1863_v20, %s14962_s16  ;;  %1879 = vrot.lane.b32.xlu1 %v1864_v2, %s14962_s16  ;;  %v1976_v20 = vmul.f32 %v14570_v17, %v15193_v24  ;;  %v16051_v2 = vpop.permute.xlu0 %1493 }
 0x1f0   : > { %v16037_v25 = vpop.permute.xlu1 %1499 }
 0x1f2   : > { %1933 = vrot.lane.b32.xlu0 %v1919_v41, %s14963_s23  ;;  %1935 = vrot.lane.b32.xlu1 %v1920_v11, %s14963_s23  ;;  %v16057_v19 = vpop.permute.xlu0 %1497  ;;  %s14981_s23 = smov 120  }
 0x1f3   : > { %18975 = vst [vmem:[#allocation88_spill] sm:$0xff] %v16057_v19 }
 0x1f4   : > { %v16045_v18 = vpop.permute.xlu1 %1361 }
 0x1f5   : > { %18972 = vst [vmem:[#allocation85_spill] sm:$0xff] %v16045_v18 }
 0x1f6   : > { %1989 = vrot.lane.b32.xlu0 %v1975_v43, %s14964_s24  ;;  %1991 = vrot.lane.b32.xlu1 %v1976_v20, %s14964_s24 }
 0x1f8   : > { %v16053_v22 = vpop.permute.xlu1 %1551 }
 0x1f9   : > { %18973 = vst [vmem:[#allocation86_spill] sm:$0xff] %v16053_v22 }
 0x1fc   : > { %v16055_v15 = vpop.permute.xlu1 %1555 }
 0x1fd   : > { %18974 = vst [vmem:[#allocation87_spill] sm:$0xff] %v16055_v15 }
 0x200   : > { %v16059_v41 = vpop.permute.xlu1 %1559 }
 0x201   : > { %18976 = vst [vmem:[#allocation89_spill] sm:$0xff] %v16059_v41  ;;  %v16061_v11 = vpop.permute.xlu0 %1717 }
 0x202   : > { %18977 = vst [vmem:[#allocation90_spill] sm:$0xff] %v16061_v11 }
 0x204   : > { %v16063_v18 = vpop.permute.xlu1 %1423 }
 0x205   : > { %18978 = vst [vmem:[#allocation91_spill] sm:$0xff] %v16063_v18  ;;  %v16065_v23 = vpop.permute.xlu0 %1363  ;;  %v14571_v18 = vunpack.i.h.bf16 %v15436_v7  ;;  %v514_v7 = vsel %vm510_vm0, %v15444_v46, %v15456_v50 }
 0x206   : > { %18979 = vst [vmem:[#allocation92_spill] sm:$0xff] %v16065_v23 }
 0x208   : > { %v16067_v17 = vpop.permute.xlu1 %1613 }
 0x209   : > { %18980 = vst [vmem:[#allocation93_spill] sm:$0xff] %v16067_v17  ;;  %v16069_v43 = vpop.permute.xlu0 %1553 }
 0x20a   : > { %18981 = vst [vmem:[#allocation94_spill] sm:$0xff] %v16069_v43  ;;  %v461_v43 = vmul.f32 %v14571_v18, %v15261_v4 }
 0x20c   : > { %v16071_v20 = vpop.permute.xlu1 %1617 }
 0x20d   : > { %18982 = vst [vmem:[#allocation95_spill] sm:$0xff] %v16071_v20  ;;  %v16073_v24 = vpop.permute.xlu0 %1557  ;;  %v462_v20 = vmul.f32 %v14571_v18, %v15202_v31  ;;  %v466_v31 = vmul.f32 %v14571_v18, %v15220_v44 }
 0x20e   : > { %18983 = vst [vmem:[#allocation96_spill] sm:$0xff] %v16073_v24  ;;  %v463_v24 = vmul.f32 %v14571_v18, %v15199_v30  ;;  %v516_v30 = vsel %vm510_vm0, %v15454_v53, %v15468_v62 }
 0x210   : > { %v16075_v22 = vpop.permute.xlu1 %1621  ;;  %v527_v44 = vadd.f32 %v514_v7, %v463_v24  ;;  %v628_v24 = vsel %vm624_vm2, %v15496_v14, %v15511_v33 }
 0x211   : > { %18984 = vst [vmem:[#allocation97_spill] sm:$0xff] %v16075_v22  ;;  %v16077_v15 = vpop.permute.xlu0 %1561  ;;  %v513_v22 = vsel %vm510_vm0, %v15446_v48, %v15444_v46  ;;  %v460_v46 = vmul.f32 %v14571_v18, %v15250_v61  ;;  %v530_v61 = vadd.f32 %v15468_v62, %v466_v31  ;;  %v629_v62 = vsel %vm624_vm2, %v15511_v33, %v15509_v32 }
 0x212   : > { %18985 = vst [vmem:[#allocation98_spill] sm:$0xff] %v16077_v15  ;;  %v684_v33 = vsel %vm681_vm3, %v15531_v54, %v15539_v3 }
 0x214   : > { %v16079_v19 = vpop.permute.xlu1 %1485 }
 0x215   : > { %18986 = vst [vmem:[#allocation99_spill] sm:$0xff] %v16079_v19  ;;  %v16081_v41 = vpop.permute.xlu0 %1425  ;;  %v464_v19 = vmul.f32 %v14571_v18, %v15213_v40  ;;  %v570_v40 = vsel %vm567_vm1, %v15466_v60, %v15478_v63 }
 0x216   : > { %18987 = vst [vmem:[#allocation100_spill] sm:$0xff] %v16081_v41  ;;  %v465_v41 = vmul.f32 %v14571_v18, %v15210_v39  ;;  %v571_v39 = vsel %vm567_vm1, %v15478_v63, %v15476_v5 }
 0x217   : > { %v584_v63 = vadd.f32 %v571_v39, %v527_v44 }
 0x218   : > { %v16084_v11 = vpop.permute.xlu1 %1675  ;;  %v529_v15 = vadd.f32 %v516_v30, %v465_v41  ;;  %v587_v41 = vadd.f32 %v15486_v59, %v530_v61  ;;  %v18992_v61 = vld [vmem:[#allocation14_spill] sm:$0xff] }
 0x219   : > { %18988 = vst [vmem:[#allocation101_spill] sm:$0xff] %v16084_v11  ;;  %v16086_v17 = vpop.permute.xlu0 %1615  ;;  %v515_v11 = vsel %vm510_vm0, %v15456_v50, %v15454_v53  ;;  %v526_v50 = vadd.f32 %v513_v22, %v462_v20  ;;  %v572_v53 = vsel %vm567_vm1, %v15476_v5, %v15488_v10  ;;  %v573_v22 = vsel %vm567_vm1, %v15488_v10, %v15486_v59 }
 0x21a   : > { %18989 = vst [vmem:[#allocation102_spill] sm:$0xff] %v16086_v17  ;;  %v511_v20 = vsel %vm510_vm0, %v15521_v47, %v15529_v12  ;;  %v586_v7 = vadd.f32 %v573_v22, %v529_v15  ;;  %v685_v59 = vsel %vm681_vm3, %v15539_v3, %v15541_v8  ;;  %v644_v30 = vadd.f32 %v15519_v45, %v587_v41  ;;  %v18997_v41 = vld [vmem:[#allocation18_spill] sm:$0xff] }
 0x21b   : > { %v583_v18 = vadd.f32 %v570_v40, %v526_v50  ;;  %v524_v40 = vadd.f32 %v511_v20, %v460_v46 }
 0x21c   : > { %v16102_v17 = vpop.permute.xlu1 %1679  ;;  %v701_v46 = vadd.f32 %v15554_v28, %v644_v30 }
 0x21d   : > { %18990 = vst [vmem:[#allocation103_spill] sm:$0xff] %v16102_v17  ;;  %v16112_v23 = vpop.permute.xlu0 %1619  ;;  %v528_v17 = vadd.f32 %v515_v11, %v464_v19  ;;  %v627_v19 = vsel %vm624_vm2, %v15498_v57, %v15496_v14  ;;  %v630_v11 = vsel %vm624_vm2, %v15509_v32, %v15519_v45  ;;  %v512_v14 = vsel %vm510_vm0, %v15529_v12, %v15446_v48 }
 0x21e   : > { %v641_v32 = vadd.f32 %v628_v24, %v584_v63  ;;  %v643_v15 = vadd.f32 %v630_v11, %v586_v7  ;;  %v686_v48 = vsel %vm681_vm3, %v15541_v8, %v15552_v16  ;;  %v687_v12 = vsel %vm681_vm3, %v15552_v16, %v15554_v28  ;;  %v18993_v63 = vld [vmem:[#allocation15_spill] sm:$0xff] }
 0x21f   : > { %v585_v10 = vadd.f32 %v572_v53, %v528_v17  ;;  %v640_v17 = vadd.f32 %v627_v19, %v583_v18  ;;  %v525_v3 = vadd.f32 %v512_v14, %v461_v43  ;;  %v568_v45 = vsel %vm567_vm1, %v15562_v49, %v15564_v52  ;;  %v18991_v53 = vld [vmem:[#allocation13_spill] sm:$0xff]  ;;  %v18994_v19 = vld [vmem:[#allocation16_spill] sm:$0xff] }
 0x220   : > { %v16124_v4 = vpop.permute.xlu1 %1683  ;;  %v698_v44 = vadd.f32 %v685_v59, %v641_v32  ;;  %v569_v8 = vsel %vm567_vm1, %v15564_v52, %v15466_v60  ;;  %v822_v16 = vsel %vm819_vm4, %v18991_v53, %v15574_v1  ;;  %v823_v43 = vsel %vm819_vm4, %v15574_v1, %v18992_v61  ;;  %v18995_v60 = vld [vmem:[#allocation17_spill] sm:$0xff] }
 0x221   : > { %v16135_v5 = vpop.permute.xlu0 %1623  ;;  %v642_v31 = vadd.f32 %v629_v62, %v585_v10  ;;  %v697_v39 = vadd.f32 %v684_v33, %v640_v17  ;;  %v700_v22 = vadd.f32 %v687_v12, %v643_v15  ;;  %v824_v49 = vsel %vm819_vm4, %v18992_v61, %v18993_v63  ;;  %v18996_v62 = vld [vmem:[#allocation19_spill] sm:$0xff]  ;;  %v18998_v59 = vld [vmem:[#allocation21_spill] sm:$0xff]  ;;  %v18999_v17 = vld [vmem:[#allocation20_spill] sm:$0xff] }
 0x222   : > { %v825_v28 = vsel %vm819_vm4, %v18993_v63, %v18994_v19  ;;  %v581_v24 = vadd.f32 %v568_v45, %v524_v40  ;;  %v826_v52 = vsel %vm819_vm4, %v18994_v19, %v18995_v60  ;;  %v625_v10 = vsel %vm624_vm2, %v18997_v41, %v18996_v62  ;;  %v19000_v15 = vld [vmem:[#allocation22_spill] sm:$0xff] }
 0x223   : > { %v699_v18 = vadd.f32 %v686_v48, %v642_v31  ;;  %v626_v1 = vsel %vm624_vm2, %v18996_v62, %v15498_v57  ;;  %v582_v7 = vadd.f32 %v569_v8, %v525_v3  ;;  %v836_v14 = vadd.f32 %v822_v16, %v697_v39  ;;  %v19001_v48 = vld [vmem:[#allocation23_spill] sm:$0xff]  ;;  %v19002_v39 = vld [vmem:[#allocation24_spill] sm:$0xff]  ;;  %v19003_v16 = vld [vmem:[#allocation25_spill] sm:$0xff] }
 0x224   : > { %v16154_v47 = vpop.permute.xlu1 %1547  ;;  %v837_v33 = vadd.f32 %v823_v43, %v698_v44  ;;  %v884_v32 = vsel %vm881_vm5, %v18999_v17, %v18998_v59  ;;  %v839_v30 = vadd.f32 %v825_v28, %v700_v22  ;;  %v885_v40 = vsel %vm881_vm5, %v18998_v59, %v19000_v15  ;;  %v19004_v43 = vld [vmem:[#allocation27_spill] sm:$0xff]  ;;  %v19006_v28 = vld [vmem:[#allocation29_spill] sm:$0xff] }
 0x225   : > { %v16162_v50 = vpop.permute.xlu0 %1487  ;;  %v838_v31 = vadd.f32 %v824_v49, %v699_v18  ;;  %v886_v57 = vsel %vm881_vm5, %v19000_v15, %v19001_v48  ;;  %v840_v12 = vadd.f32 %v826_v52, %v701_v46  ;;  %v638_v45 = vadd.f32 %v625_v10, %v581_v24  ;;  %v19005_v18 = vld [vmem:[#allocation26_spill] sm:$0xff]  ;;  %v19007_v24 = vld [vmem:[#allocation28_spill] sm:$0xff]  ;;  %v19009_v10 = vld [vmem:[#allocation31_spill] sm:$0xff] }
 0x226   : > { %v639_v3 = vadd.f32 %v626_v1, %v582_v7  ;;  %v887_v44 = vsel %vm881_vm5, %v19001_v48, %v19002_v39  ;;  %v898_v8 = vadd.f32 %v884_v32, %v836_v14  ;;  %v888_v61 = vsel %vm881_vm5, %v19002_v39, %v19003_v16  ;;  %v19008_v52 = vld [vmem:[#allocation30_spill] sm:$0xff]  ;;  %v19010_v7 = vld [vmem:[#allocation32_spill] sm:$0xff]  ;;  %v19011_v14 = vld [vmem:[#allocation33_spill] sm:$0xff] }
 0x227   : > { %v682_v22 = vsel %vm681_vm3, %v19005_v18, %v19004_v43  ;;  %v683_v63 = vsel %vm681_vm3, %v19004_v43, %v15531_v54  ;;  %v899_v49 = vadd.f32 %v885_v40, %v837_v33  ;;  %v900_v19 = vadd.f32 %v886_v57, %v838_v31  ;;  %v19012_v40 = vld [vmem:[#allocation35_spill] sm:$0xff]  ;;  %v19013_v48 = vld [vmem:[#allocation34_spill] sm:$0xff]  ;;  %v19014_v16 = vld [vmem:[#allocation37_spill] sm:$0xff] }
 0x228   : > { %v16192_v11 = vpop.permute.xlu1 %1609  ;;  %v946_v60 = vsel %vm943_vm6, %v19007_v24, %v19006_v28  ;;  %v947_v62 = vsel %vm943_vm6, %v19006_v28, %v19008_v52  ;;  %v901_v41 = vadd.f32 %v887_v44, %v839_v30  ;;  %v948_v1 = vsel %vm943_vm6, %v19008_v52, %v19009_v10  ;;  %v19015_v43 = vld [vmem:[#allocation36_spill] sm:$0xff]  ;;  %v19019_v52 = vld [vmem:[#allocation41_spill] sm:$0xff] }
 0x229   : > { %v16194_v20 = vpop.permute.xlu0 %1677  ;;  %v949_v54 = vsel %vm943_vm6, %v19009_v10, %v19010_v7  ;;  %v950_v33 = vsel %vm943_vm6, %v19010_v7, %v19011_v14  ;;  %v902_v32 = vadd.f32 %v888_v61, %v840_v12  ;;  %v695_v31 = vadd.f32 %v682_v22, %v638_v45  ;;  %v19016_v61 = vld [vmem:[#allocation38_spill] sm:$0xff]  ;;  %v19020_v10 = vld [vmem:[#allocation43_spill] sm:$0xff] }
 0x22a   : > { %v696_v15 = vadd.f32 %v683_v63, %v639_v3  ;;  %v820_v30 = vsel %vm819_vm4, %v19013_v48, %v19012_v40  ;;  %v960_v57 = vadd.f32 %v946_v60, %v898_v8  ;;  %v961_v39 = vadd.f32 %v947_v62, %v899_v49  ;;  %v19017_v8 = vld [vmem:[#allocation39_spill] sm:$0xff]  ;;  %v19018_v60 = vld [vmem:[#allocation40_spill] sm:$0xff] }
 0x22b   : > { %v821_v44 = vsel %vm819_vm4, %v19012_v40, %v18991_v53  ;;  %v1008_v18 = vsel %vm1005_vm7, %v19015_v43, %v19014_v16  ;;  %v962_v12 = vadd.f32 %v948_v1, %v900_v19  ;;  %v963_v45 = vadd.f32 %v949_v54, %v901_v41  ;;  %v19021_v1 = vld [vmem:[#allocation42_spill] sm:$0xff] }
 0x22c   : > { %v16234_v59 = vpop.permute.xlu1 %1825  ;;  %v964_v3 = vadd.f32 %v950_v33, %v902_v32  ;;  %v1009_v22 = vsel %vm1005_vm7, %v19014_v16, %v19016_v61  ;;  %v834_v63 = vadd.f32 %v820_v30, %v695_v31  ;;  %v1010_v49 = vsel %vm1005_vm7, %v19016_v61, %v19017_v8  ;;  %v19022_v33 = vld [vmem:[#allocation45_spill] sm:$0xff]  ;;  %v19023_v32 = vld [vmem:[#allocation44_spill] sm:$0xff]  ;;  %v19024_v40 = vld [vmem:[#allocation46_spill] sm:$0xff] }
 0x22d   : > { %v16217_v46 = vpop.permute.xlu0 %1681  ;;  %v1011_v53 = vsel %vm1005_vm7, %v19017_v8, %v19018_v60  ;;  %v1012_v62 = vsel %vm1005_vm7, %v19018_v60, %v19019_v52  ;;  %v835_v19 = vadd.f32 %v821_v44, %v696_v15  ;;  %v1022_v41 = vadd.f32 %v1008_v18, %v960_v57  ;;  %v19025_v15 = vld [vmem:[#allocation47_spill] sm:$0xff]  ;;  %v19026_v60 = vld [vmem:[#allocation49_spill] sm:$0xff]  ;;  %v19027_v52 = vld [vmem:[#allocation48_spill] sm:$0xff] }
 0x22e   : > { %v882_v7 = vsel %vm881_vm5, %v19021_v1, %v19020_v10  ;;  %v883_v54 = vsel %vm881_vm5, %v19020_v10, %v18999_v17  ;;  %v1023_v14 = vadd.f32 %v1009_v22, %v961_v39  ;;  %v1070_v31 = vsel %vm1067_vm8, %v19023_v32, %v19022_v33 }
 0x22f   : > { %v1071_v48 = vsel %vm1067_vm8, %v19022_v33, %v19024_v40  ;;  %v1072_v30 = vsel %vm1067_vm8, %v19024_v40, %v19025_v15  ;;  %v1024_v16 = vadd.f32 %v1010_v49, %v962_v12  ;;  %v1025_v17 = vadd.f32 %v1011_v53, %v963_v45  ;;  %v19030_v53 = vld [vmem:[#allocation52_spill] sm:$0xff] }
 0x230   : > { %v16274_v57 = vpop.permute.xlu1 %1829  ;;  %v1026_v18 = vadd.f32 %v1012_v62, %v964_v3  ;;  %v1073_v39 = vsel %vm1067_vm8, %v19025_v15, %v15770_v51  ;;  %v896_v61 = vadd.f32 %v882_v7, %v834_v63  ;;  %v897_v22 = vadd.f32 %v883_v54, %v835_v19  ;;  %v19028_v3 = vld [vmem:[#allocation51_spill] sm:$0xff]  ;;  %v19029_v63 = vld [vmem:[#allocation50_spill] sm:$0xff]  ;;  %v19034_v15 = vld [vmem:[#allocation57_spill] sm:$0xff] }
 0x231   : > { %v16245_v28 = vpop.permute.xlu0 %1685  ;;  %v1074_v8 = vsel %vm1067_vm8, %v15770_v51, %v15772_v38  ;;  %v944_v10 = vsel %vm943_vm6, %v19027_v52, %v19026_v60  ;;  %v1084_v1 = vadd.f32 %v1070_v31, %v1022_v41  ;;  %v1085_v33 = vadd.f32 %v1071_v48, %v1023_v14  ;;  %v19031_v51 = vld [vmem:[#allocation53_spill] sm:$0xff]  ;;  %v19032_v54 = vld [vmem:[#allocation54_spill] sm:$0xff]  ;;  %v19033_v14 = vld [vmem:[#allocation55_spill] sm:$0xff] }
 0x232   : > { %v1086_v40 = vadd.f32 %v1072_v30, %v1024_v16  ;;  %v945_v12 = vsel %vm943_vm6, %v19026_v60, %v19007_v24  ;;  %v1087_v45 = vadd.f32 %v1073_v39, %v1025_v17  ;;  %v1132_v49 = vsel %vm1129_vm9, %v19029_v63, %v19028_v3  ;;  %v19035_v30 = vld [vmem:[#allocation56_spill] sm:$0xff]  ;;  %v19036_v39 = vld [vmem:[#allocation59_spill] sm:$0xff] }
 0x233   : > { %v1133_v38 = vsel %vm1129_vm9, %v19028_v3, %v19030_v53  ;;  %v1134_v62 = vsel %vm1129_vm9, %v19030_v53, %v19031_v51  ;;  %v1088_v41 = vadd.f32 %v1074_v8, %v1026_v18  ;;  %v958_v7 = vadd.f32 %v944_v10, %v896_v61  ;;  %v19037_v18 = vld [vmem:[#allocation58_spill] sm:$0xff]  ;;  %v19038_v3 = vld [vmem:[#allocation60_spill] sm:$0xff] }
 0x234   : > { %v1135_v24 = vsel %vm1129_vm9, %v19031_v51, %v19032_v54  ;;  %v1136_v31 = vsel %vm1129_vm9, %v19032_v54, %v19033_v14  ;;  %v959_v48 = vadd.f32 %v945_v12, %v897_v22  ;;  %v1006_v16 = vsel %vm1005_vm7, %v19035_v30, %v19034_v15  ;;  %v16316_v8 = vpop.permute.xlu1 %1833  ;;  %v19039_v51 = vld [vmem:[#allocation61_spill] sm:$0xff]  ;;  %v19040_v54 = vld [vmem:[#allocation62_spill] sm:$0xff] }
 0x235   : > { %v16276_v44 = vpop.permute.xlu0 %1549  ;;  %v1007_v17 = vsel %vm1005_vm7, %v19034_v15, %v19015_v43  ;;  %v1194_v61 = vsel %vm1191_vm10, %v19037_v18, %v19036_v39  ;;  %v1146_v60 = vadd.f32 %v1132_v49, %v1084_v1  ;;  %v1147_v52 = vadd.f32 %v1133_v38, %v1085_v33 }
 0x236   : > { %v1148_v10 = vadd.f32 %v1134_v62, %v1086_v40  ;;  %v1195_v22 = vsel %vm1191_vm10, %v19036_v39, %v19038_v3  ;;  %v1149_v12 = vadd.f32 %v1135_v24, %v1087_v45  ;;  %v1150_v53 = vadd.f32 %v1136_v31, %v1088_v41  ;;  %v19041_v40 = vld [vmem:[#allocation63_spill] sm:$0xff]  ;;  %v19042_v41 = vld [vmem:[#allocation64_spill] sm:$0xff] }
 0x237   : > { %v1196_v43 = vsel %vm1191_vm10, %v19038_v3, %v19039_v51  ;;  %v1197_v14 = vsel %vm1191_vm10, %v19039_v51, %v19040_v54  ;;  %v1020_v30 = vadd.f32 %v1006_v16, %v958_v7  ;;  %v1021_v1 = vadd.f32 %v1007_v17, %v959_v48  ;;  %v19043_v17 = vld [vmem:[#allocation65_spill] sm:$0xff] }
 0x238   : > { %v1208_v33 = vadd.f32 %v1194_v61, %v1146_v60  ;;  %v1198_v49 = vsel %vm1191_vm10, %v19040_v54, %v19041_v40  ;;  %v1209_v38 = vadd.f32 %v1195_v22, %v1147_v52  ;;  %v1068_v45 = vsel %vm1067_vm8, %v15861_v29, %v15863_v36  ;;  %v16356_v61 = vpop.permute.xlu1 %1673  ;;  %v19045_v22 = vld [vmem:[#allocation67_spill] sm:$0xff]  ;;  %v19046_v54 = vld [vmem:[#allocation68_spill] sm:$0xff] }
 0x239   : > { %v16299_v19 = vpop.permute.xlu0 %1611  ;;  %v1069_v62 = vsel %vm1067_vm8, %v15863_v36, %v19023_v32  ;;  %v1256_v24 = vsel %vm1253_vm11, %v19042_v41, %v15872_v58  ;;  %v1210_v7 = vadd.f32 %v1196_v43, %v1148_v10  ;;  %v1211_v31 = vadd.f32 %v1197_v14, %v1149_v12  ;;  %v19049_v40 = vld [vmem:[#allocation71_spill] sm:$0xff] }
 0x23a   : > { %v1257_v48 = vsel %vm1253_vm11, %v15872_v58, %v15878_v13  ;;  %v1258_v16 = vsel %vm1253_vm11, %v15878_v13, %v15880_v27  ;;  %v1212_v29 = vadd.f32 %v1198_v49, %v1150_v53  ;;  %v1259_v36 = vsel %vm1253_vm11, %v15880_v27, %v15886_v56 }
 0x23b   : > { %v1260_v32 = vsel %vm1253_vm11, %v15886_v56, %v15888_v26  ;;  %v1130_v39 = vsel %vm1129_vm9, %v19043_v17, %v15900_v55  ;;  %v1082_v60 = vadd.f32 %v1068_v45, %v1020_v30  ;;  %v1083_v52 = vadd.f32 %v1069_v62, %v1021_v1  ;;  %v19044_v56 = vld [vmem:[#allocation66_spill] sm:$0xff]  ;;  %v19054_v17 = vld [vmem:[#allocation76_spill] sm:$0xff] }
 0x23c   : > { %v1270_v13 = vadd.f32 %v1256_v24, %v1208_v33  ;;  %v1131_v10 = vsel %vm1129_vm9, %v15900_v55, %v19029_v63  ;;  %v1271_v27 = vadd.f32 %v1257_v48, %v1209_v38  ;;  %v1272_v3 = vadd.f32 %v1258_v16, %v1210_v7  ;;  %v19047_v55 = vld [vmem:[#allocation69_spill] sm:$0xff]  ;;  %v19048_v1 = vld [vmem:[#allocation70_spill] sm:$0xff]  ;;  %v19051_v7 = vld [vmem:[#allocation72_spill] sm:$0xff] }
 0x23d   : > { %v16327_v15 = vpop.permute.xlu0 %1827  ;;  %v1318_v26 = vsel %vm1315_vm12, %v19044_v56, %v15910_v37  ;;  %v1319_v12 = vsel %vm1315_vm12, %v15910_v37, %v19045_v22  ;;  %v1273_v53 = vadd.f32 %v1259_v36, %v1211_v31  ;;  %v1274_v51 = vadd.f32 %v1260_v32, %v1212_v29  ;;  %v19050_v24 = vld [vmem:[#allocation73_spill] sm:$0xff]  ;;  %v19052_v16 = vld [vmem:[#allocation74_spill] sm:$0xff]  ;;  %v19053_v36 = vld [vmem:[#allocation75_spill] sm:$0xff] }
 0x23e   : > { %v1144_v43 = vadd.f32 %v1130_v39, %v1082_v60  ;;  %v1320_v14 = vsel %vm1315_vm12, %v19045_v22, %v19046_v54  ;;  %v1145_v30 = vadd.f32 %v1131_v10, %v1083_v52  ;;  %v1321_v63 = vsel %vm1315_vm12, %v19046_v54, %v19047_v55  ;;  %v16398_v60 = vpop.permute.xlu1 %1883  ;;  %v19057_v22 = vld [vmem:[#allocation78_spill] sm:$0xff] }
 0x23f   : > { %v1322_v33 = vsel %vm1315_vm12, %v19047_v55, %v19048_v1  ;;  %v1192_v37 = vsel %vm1191_vm10, %v19049_v40, %v15943_v6  ;;  %v1332_v38 = vadd.f32 %v1318_v26, %v1270_v13  ;;  %v1333_v45 = vadd.f32 %v1319_v12, %v1271_v27  ;;  %v19055_v13 = vld [vmem:[#allocation77_spill] sm:$0xff]  ;;  %v19056_v26 = vld [vmem:[#allocation79_spill] sm:$0xff]  ;;  %v19058_v55 = vld [vmem:[#allocation80_spill] sm:$0xff] }
 0x240   : > { %v1193_v62 = vsel %vm1191_vm10, %v15943_v6, %v19037_v18  ;;  %v1380_v31 = vsel %vm1377_vm13, %v19051_v7, %v19050_v24  ;;  %vm1563_vm6 = vcmask 244736   ;;  %v1334_v48 = vadd.f32 %v1320_v14, %v1272_v3  ;;  %v19060_v40 = vld [vmem:[#allocation82_spill] sm:$0xff] }
 0x241   : > { %v16358_v58 = vpop.permute.xlu0 %1831  ;;  %v1381_v29 = vsel %vm1377_vm13, %v19050_v24, %v19052_v16  ;;  %v1382_v32 = vsel %vm1377_vm13, %v19052_v16, %v19053_v36  ;;  %v1383_v39 = vsel %vm1377_vm13, %v19053_v36, %v19054_v17  ;;  %v1335_v6 = vadd.f32 %v1321_v63, %v1273_v53  ;;  %v19059_v63 = vld [vmem:[#allocation81_spill] sm:$0xff] }
 0x242   : > { %v1336_v18 = vadd.f32 %v1322_v33, %v1274_v51  ;;  %v1206_v52 = vadd.f32 %v1192_v37, %v1144_v43  ;;  %v1384_v10 = vsel %vm1377_vm13, %v19054_v17, %v19055_v13  ;;  %v1207_v27 = vadd.f32 %v1193_v62, %v1145_v30  ;;  %v19061_v62 = vld [vmem:[#allocation83_spill] sm:$0xff]  ;;  %v16438_v36 = vpop.permute.xlu1 %1887 }
 0x243   : > { %v1394_v3 = vadd.f32 %v1380_v31, %v1332_v38  ;;  %v1254_v12 = vsel %vm1253_vm11, %v19057_v22, %v19056_v26  ;;  %v1255_v54 = vsel %vm1253_vm11, %v19056_v26, %v19042_v41  ;;  %vm1625_vm7 = vcmask 236544   ;;  %v19065_v26 = vld [vmem:[#allocation89_spill] sm:$0xff] }
 0x244   : > { %v1395_v53 = vadd.f32 %v1381_v29, %v1333_v45  ;;  %v1396_v51 = vadd.f32 %v1382_v32, %v1334_v48  ;;  %v1397_v43 = vadd.f32 %v1383_v39, %v1335_v6  ;;  %v1442_v1 = vsel %vm1439_vm14, %v19059_v63, %v19058_v55  ;;  %v19062_v39 = vld [vmem:[#allocation88_spill] sm:$0xff] }
 0x245   : > { %v16381_v49 = vpop.permute.xlu0 %1671  ;;  %v1398_v30 = vadd.f32 %v1384_v10, %v1336_v18  ;;  %v1443_v33 = vsel %vm1439_vm14, %v19058_v55, %v16004_v42  ;;  %v1444_v37 = vsel %vm1439_vm14, %v16004_v42, %v19060_v40  ;;  %v1445_v41 = vsel %vm1439_vm14, %v19060_v40, %v16017_v35  ;;  %v19063_v18 = vld [vmem:[#allocation84_spill] sm:$0xff]  ;;  %v19070_v55 = vld [vmem:[#allocation87_spill] sm:$0xff] }
 0x246   : > { %vm1687_vm8 = vcmask 228352   ;;  %v1268_v38 = vadd.f32 %v1254_v12, %v1206_v52  ;;  %v1269_v45 = vadd.f32 %v1255_v54, %v1207_v27  ;;  %v1446_v24 = vsel %vm1439_vm14, %v16017_v35, %v19061_v62  ;;  %v19066_v54 = vld [vmem:[#allocation92_spill] sm:$0xff] }
 0x247   : > { %v1316_v31 = vsel %vm1315_vm12, %v16027_v34, %v16013_v9  ;;  %v1456_v48 = vadd.f32 %v1442_v1, %v1394_v3  ;;  %v1317_v42 = vsel %vm1315_vm12, %v16013_v9, %v19044_v56  ;;  %v1504_v16 = vsel %vm1501_vm15, %v16041_v21, %v16021_v0  ;;  %v19064_v3 = vld [vmem:[#allocation98_spill] sm:$0xff] }
 0x248   : > { %v1505_v29 = vsel %vm1501_vm15, %v16021_v0, %v16051_v2  ;;  %v1457_v32 = vadd.f32 %v1443_v33, %v1395_v53  ;;  %v1458_v17 = vadd.f32 %v1444_v37, %v1396_v51  ;;  %v1459_v34 = vadd.f32 %v1445_v41, %v1397_v43  ;;  %v19068_v51 = vld [vmem:[#allocation94_spill] sm:$0xff]  ;;  %v19071_v41 = vld [vmem:[#allocation96_spill] sm:$0xff] }
 0x249   : > { %v16409_v14 = vpop.permute.xlu0 %1881  ;;  %v1508_v6 = vsel %vm1501_vm15, %v19062_v39, %v16037_v25  ;;  %v1460_v9 = vadd.f32 %v1446_v24, %v1398_v30  ;;  %v1330_v56 = vadd.f32 %v1316_v31, %v1268_v38  ;;  %v1506_v52 = vsel %vm1501_vm15, %v16051_v2, %v19063_v18  ;;  %v19067_v25 = vld [vmem:[#allocation85_spill] sm:$0xff]  ;;  %v19069_v43 = vld [vmem:[#allocation86_spill] sm:$0xff] }
 0x24a   : > { %v1507_v0 = vsel %vm1501_vm15, %v19063_v18, %v19062_v39  ;;  %v1331_v13 = vadd.f32 %v1317_v42, %v1269_v45  ;;  %v1518_v10 = vadd.f32 %v1504_v16, %v1456_v48  ;;  %v1519_v27 = vadd.f32 %v1505_v29, %v1457_v32  ;;  %v19072_v45 = vld [vmem:[#allocation97_spill] sm:$0xff]  ;;  %v19073_v42 = vld [vmem:[#allocation90_spill] sm:$0xff]  ;;  %v19077_v18 = vld [vmem:[#allocation95_spill] sm:$0xff] }
 0x24b   : > { %v1570_v22 = vsel %vm1563_vm6, %v19065_v26, %v19064_v3  ;;  %v1522_v12 = vadd.f32 %v1508_v6, %v1460_v9  ;;  %v1378_v53 = vsel %vm1377_vm13, %v19067_v25, %v19066_v54  ;;  %v1566_v2 = vsel %vm1563_vm6, %v19069_v43, %v19068_v51  ;;  %v19074_v16 = vld [vmem:[#allocation10_spill] sm:$0xff]  ;;  %v19076_v9 = vld [vmem:[#allocation93_spill] sm:$0xff] }
 0x24c   : > { %v1567_v1 = vsel %vm1563_vm6, %v19068_v51, %v19070_v55  ;;  %v1520_v40 = vadd.f32 %v1506_v52, %v1458_v17  ;;  %v1521_v37 = vadd.f32 %v1507_v0, %v1459_v34  ;;  %v1568_v38 = vsel %vm1563_vm6, %v19070_v55, %v19071_v41  ;;  %v19075_v6 = vld [vmem:[#allocation102_spill] sm:$0xff]  ;;  %v19080_v25 = vld [vmem:[#allocation101_spill] sm:$0xff]  ;;  %v19081_v51 = vld [vmem:[#allocation103_spill] sm:$0xff] }
 0x24d   : > { %v16440_v35 = vpop.permute.xlu0 %1885  ;;  %v1632_v62 = vsel %vm1625_vm7, %v19072_v45, %v16135_v5  ;;  %v1379_v24 = vsel %vm1377_vm13, %v19066_v54, %v19051_v7  ;;  %v1569_v31 = vsel %vm1563_vm6, %v19071_v41, %v19065_v26  ;;  %v1584_v48 = vadd.f32 %v1570_v22, %v1522_v12 }
 0x24e   : > { %v1791_v29 = vmul.f32 %v19074_v16, %v19073_v42  ;;  %v1392_v32 = vadd.f32 %v1378_v53, %v1330_v56  ;;  %v1580_v17 = vadd.f32 %v1566_v2, %v1518_v10  ;;  %v1581_v34 = vadd.f32 %v1567_v1, %v1519_v27  ;;  %v19078_v10 = vld [vmem:[#allocation100_spill] sm:$0xff]  ;;  %v19079_v27 = vld [vmem:[#allocation91_spill] sm:$0xff] }
 0x24f   : > { %v1694_v39 = vsel %vm1687_vm8, %v16124_v4, %v16245_v28  ;;  %v1582_v5 = vadd.f32 %v1568_v38, %v1520_v40  ;;  %v1628_v7 = vsel %vm1625_vm7, %v19076_v9, %v19075_v6  ;;  %v1629_v52 = vsel %vm1625_vm7, %v19075_v6, %v19077_v18 }
 0x250   : > { %v1646_v0 = vadd.f32 %v1632_v62, %v1584_v48  ;;  %v1583_v56 = vadd.f32 %v1569_v31, %v1521_v37  ;;  %v1440_v22 = vsel %vm1439_vm14, %v19079_v27, %v19078_v10  ;;  %v1630_v28 = vsel %vm1625_vm7, %v19077_v18, %v16112_v23  ;;  %v19082_v48 = vld [vmem:[#allocation99_spill] sm:$0xff] }
 0x251   : > { %v16463_v30 = vpop.permute.xlu0 %1889  ;;  %v16465_v33 = vpop.permute.xlu1 %2026  ;;  %v1631_v12 = vsel %vm1625_vm7, %v16112_v23, %v19072_v45  ;;  %v1441_v54 = vsel %vm1439_vm14, %v19078_v10, %v19059_v63  ;;  %v1690_v53 = vsel %vm1687_vm8, %v19080_v25, %v16194_v20  ;;  %v1691_v2 = vsel %vm1687_vm8, %v16194_v20, %v19081_v51 }
 0x252   : > { %v1708_v55 = vadd.f32 %v1694_v39, %v1646_v0  ;;  %v1642_v1 = vadd.f32 %v1628_v7, %v1580_v17  ;;  %v1643_v40 = vadd.f32 %v1629_v52, %v1581_v34  ;;  %v1692_v37 = vsel %vm1687_vm8, %v19081_v51, %v16217_v46 }
 0x253   : > { %v1693_v23 = vsel %vm1687_vm8, %v16217_v46, %v16124_v4  ;;  %v1393_v63 = vadd.f32 %v1379_v24, %v1331_v13  ;;  %v1454_v41 = vadd.f32 %v1440_v22, %v1392_v32  ;;  %v1644_v38 = vadd.f32 %v1630_v28, %v1582_v5  ;;  %v19083_v46 = vld [vmem:[#allocation6_spill] sm:$0xff]  ;;  %v19084_v24 = vld [vmem:[#allocation7_spill] sm:$0xff]  ;;  %v19085_v5 = vld [vmem:[#allocation8_spill] sm:$0xff] }
 0x254   : > { %v1645_v45 = vadd.f32 %v1631_v12, %v1583_v56  ;;  %v1502_v20 = vsel %vm1501_vm15, %v19082_v48, %v16162_v50  ;;  %v1503_v16 = vsel %vm1501_vm15, %v16162_v50, %v16041_v21  ;;  %v1704_v17 = vadd.f32 %v1690_v53, %v1642_v1  ;;  %v19086_v50 = vld [vmem:[#allocation9_spill] sm:$0xff] }
 0x255   : > { %v16490_v3 = vpop.permute.xlu0 %1937  ;;  %v1940_v26 = vpop.permute.xlu1 %1939  ;;  %v1705_v34 = vadd.f32 %v1691_v2, %v1643_v40  ;;  %v1455_v39 = vadd.f32 %v1441_v54, %v1393_v63  ;;  %v1706_v6 = vadd.f32 %v1692_v37, %v1644_v38  ;;  %v1798_v4 = vadd.f32 %v1791_v29, %v1708_v55 }
 0x256   : > { %v1707_v7 = vadd.f32 %v1693_v23, %v1645_v45  ;;  %v1787_v13 = vmul.f32 %v19083_v46, %v19073_v42  ;;  %v1788_v32 = vmul.f32 %v19084_v24, %v19073_v42  ;;  %v1789_v18 = vmul.f32 %v19085_v5, %v19073_v42 }
 0x257   : > { %v1516_v52 = vadd.f32 %v1502_v20, %v1454_v41  ;;  %v1517_v0 = vadd.f32 %v1503_v16, %v1455_v39  ;;  %v1565_v21 = vsel %vm1563_vm6, %v16276_v44, %v19069_v43  ;;  %v1790_v56 = vmul.f32 %v19086_v50, %v19073_v42 }
 0x258   : > { %v1794_v27 = vadd.f32 %v1787_v13, %v1704_v17  ;;  %v1795_v22 = vadd.f32 %v1788_v32, %v1705_v34  ;;  %v1837_v28 = vsel %vm510_vm0, %v16234_v59, %v16327_v15  ;;  %v1838_v12 = vsel %vm510_vm0, %v16327_v15, %v16274_v57 }
 0x259   : > { %v1942_v62 = vpop.permute.xlu0 %1941  ;;  %v1944_v31 = vpop.permute.xlu1 %1943  ;;  %v1854_v54 = vadd.f32 %v16316_v8, %v1798_v4  ;;  %v1564_v43 = vsel %vm1563_vm6, %v16154_v47, %v16276_v44  ;;  %v1796_v53 = vadd.f32 %v1789_v18, %v1706_v6  ;;  %v1797_v51 = vadd.f32 %v1790_v56, %v1707_v7 }
 0x25a   : > { %v1579_v2 = vadd.f32 %v1565_v21, %v1517_v0  ;;  %v1627_v55 = vsel %vm1625_vm7, %v16299_v19, %v19076_v9  ;;  %v1893_v1 = vsel %vm567_vm1, %v16409_v14, %v16398_v60  ;;  %v1894_v15 = vsel %vm567_vm1, %v16398_v60, %v16440_v35 }
 0x25b   : > { %v1850_v40 = vadd.f32 %v1837_v28, %v1794_v27  ;;  %v1851_v37 = vadd.f32 %v1838_v12, %v1795_v22  ;;  %v1839_v47 = vsel %vm510_vm0, %v16274_v57, %v16358_v58  ;;  %v1840_v44 = vsel %vm510_vm0, %v16358_v58, %v16316_v8 }
 0x25c   : > { %v1578_v63 = vadd.f32 %v1564_v43, %v1516_v52  ;;  %v1689_v41 = vsel %vm1687_vm8, %v16356_v61, %v19080_v25  ;;  %v1949_v60 = vsel %vm624_vm2, %v16490_v3, %v1940_v26  ;;  %v1950_v38 = vsel %vm624_vm2, %v1940_v26, %v1942_v62 }
 0x25d   : > { %v1946_v10 = vpop.permute.xlu0 %1945  ;;  %v16533_v29 = vpop.permute.xlu1 %1821  ;;  %v1626_v57 = vsel %vm1625_vm7, %v16192_v11, %v16299_v19  ;;  %v1641_v45 = vadd.f32 %v1627_v55, %v1579_v2  ;;  %v1906_v48 = vadd.f32 %v1893_v1, %v1850_v40  ;;  %v1907_v8 = vadd.f32 %v1894_v15, %v1851_v37 }
 0x25e   : > { %v1852_v58 = vadd.f32 %v1839_v47, %v1796_v53  ;;  %v1853_v20 = vadd.f32 %v1840_v44, %v1797_v51  ;;  %v1895_v16 = vsel %vm567_vm1, %v16440_v35, %v16438_v36  ;;  %v1896_v25 = vsel %vm567_vm1, %v16438_v36, %v16463_v30  ;;  %v19088_v53 = vld [vmem:[#allocation12_spill] sm:$0xff] }
 0x25f   : > { %v1688_v26 = vsel %vm1687_vm8, %v16381_v49, %v16356_v61  ;;  %v1910_v17 = vadd.f32 %v16463_v30, %v1854_v54  ;;  %v1962_v11 = vadd.f32 %v1949_v60, %v1906_v48  ;;  %v1963_v19 = vadd.f32 %v1950_v38, %v1907_v8  ;;  %v19087_v54 = vld [vmem:[#allocation11_spill] sm:$0xff] }
 0x260   : > { %v1951_v6 = vsel %vm624_vm2, %v1942_v62, %v1944_v31  ;;  %v1952_v7 = vsel %vm624_vm2, %v1944_v31, %v1946_v10  ;;  %v1908_v36 = vadd.f32 %v1895_v16, %v1852_v58  ;;  %v1909_v46 = vadd.f32 %v1896_v25, %v1853_v20 }
 0x261   : > { %v1824_v23 = vpop.permute.xlu0 %1823  ;;  %v16560_v9 = vpop.permute.xlu1 %1993  ;;  %v1640_v61 = vadd.f32 %v1626_v57, %v1578_v63  ;;  %v1703_v49 = vadd.f32 %v1689_v41, %v1641_v45  ;;  %v1966_v30 = vadd.f32 %v1946_v10, %v1910_v17  ;;  %vm2049_vm10 = vcmask 1012736  }
 0x262   : > { %v1964_v32 = vadd.f32 %v1951_v6, %v1908_v36  ;;  %v1965_v5 = vadd.f32 %v1952_v7, %v1909_v46  ;;  %v1785_v43 = vmul.f32 %v19087_v54, %v19073_v42  ;;  %v1786_v51 = vmul.f32 %v19088_v53, %v19073_v42 }
 0x263   : > { %v1702_v0 = vadd.f32 %v1688_v26, %v1640_v61  ;;  %v1835_v40 = vsel %vm510_vm0, %v16533_v29, %v1824_v23  ;;  %v1836_v37 = vsel %vm510_vm0, %v1824_v23, %v16234_v59  ;;  %vm2735_vm12 = vcmask 998400  }
 0x264   : > { %v1793_v63 = vadd.f32 %v1786_v51, %v1703_v49  ;;  %vm2913_vm14 = vcmask 982016   ;;  %vm3654_vm15 = vcmask 474112   ;;  %vm3835_vm6 = vcmask 457728  }
 0x265   : > { %v1996_v34 = vpop.permute.xlu0 %1995  ;;  %v1998_v39 = vpop.permute.xlu1 %1997  ;;  %v1792_v44 = vadd.f32 %v1785_v43, %v1702_v0  ;;  %vm11903_vm7 = vcmask 687104   ;;  %vm11952_vm8 = vcmask 7168  }
 0x266   : > { %v2005_v35 = vsel %vm681_vm3, %v16560_v9, %v1996_v34  ;;  %v2006_v4 = vsel %vm681_vm3, %v1996_v34, %v1998_v39  ;;  %v1849_v45 = vadd.f32 %v1836_v37, %v1793_v63 }
 0x267   : > { %v2018_v13 = vadd.f32 %v2005_v35, %v1962_v11  ;;  %v2019_v24 = vadd.f32 %v2006_v4, %v1963_v19  ;;  %v1848_v57 = vadd.f32 %v1835_v40, %v1792_v44 }
 0x269   : > { %v2031_v18 = vadd.f32 %v16465_v33, %v2018_v13  ;;  %v2032_v62 = vadd.f32 %v16465_v33, %v2019_v24  ;;  %v2000_v52 = vpop.permute.xlu0 %1999  ;;  %v2002_v31 = vpop.permute.xlu1 %2001 }
 0x26a   : > { %v2007_v21 = vsel %vm681_vm3, %v1998_v39, %v2000_v52  ;;  %v2008_v50 = vsel %vm681_vm3, %v2000_v52, %v2002_v31  ;;  %v2022_v56 = vadd.f32 %v2002_v31, %v1966_v30 }
 0x26b   : > { %v2038_v27 = vmax.f32 %v2031_v18, 0.0  ;;  %v2039_v22 = vmax.f32 %v2032_v62, 0.0  ;;  %v2020_v28 = vadd.f32 %v2007_v21, %v1964_v32  ;;  %v2021_v12 = vadd.f32 %v2008_v50, %v1965_v5 }
 0x26c   : > { %v2035_v10 = vadd.f32 %v16465_v33, %v2022_v56 }
 0x26d   : > { %2045 = vst [vmem:[#allocation2 + $0x10] sm:$0x3f] %v2038_v27  ;;  %2046 = vst [vmem:[#allocation2 + $0x18] sm:$0x3f] %v2039_v22  ;;  %v2033_v2 = vadd.f32 %v16465_v33, %v2020_v28  ;;  %v2034_v55 = vadd.f32 %v16465_v33, %v2021_v12  ;;  %v1878_v1 = vpop.permute.xlu0 %1877  ;;  %v1880_v15 = vpop.permute.xlu1 %1879 }
 0x26e   : > { %v2042_v47 = vmax.f32 %v2035_v10, 0.0  ;;  %v1891_v42 = vsel %vm567_vm1, %v1878_v1, %v1880_v15  ;;  %v1892_v38 = vsel %vm567_vm1, %v1880_v15, %v16409_v14 }
 0x26f   : > { %v2040_v41 = vmax.f32 %v2033_v2, 0.0  ;;  %v2041_v60 = vmax.f32 %v2034_v55, 0.0  ;;  %v1904_v8 = vadd.f32 %v1891_v42, %v1848_v57  ;;  %v1905_v58 = vadd.f32 %v1892_v38, %v1849_v45 }
 0x270   : > { %2050 = vst.msk [vmem:[#allocation2 + $0x30] sm:$0x3f] %vm2049_vm10, %v2042_v47  ;;  %vm11954_vm10 = vcmask 1024  }
 0x271   : > { %2047 = vst [vmem:[#allocation2 + $0x20] sm:$0x3f] %v2040_v41  ;;  %2048 = vst [vmem:[#allocation2 + $0x28] sm:$0x3f] %v2041_v60  ;;  %v1934_v29 = vpop.permute.xlu0 %1933  ;;  %v1936_v48 = vpop.permute.xlu1 %1935 }
 0x272   : > { %v1947_v59 = vsel %vm624_vm2, %v1934_v29, %v1936_v48  ;;  %v1948_v23 = vsel %vm624_vm2, %v1936_v48, %v16490_v3  ;;  %vm2199_vm2 = vcmask 739328  }
 0x273   : > { %v1960_v25 = vadd.f32 %v1947_v59, %v1904_v8  ;;  %v1961_v26 = vadd.f32 %v1948_v23, %v1905_v58 }
 0x274   : > { %v16608_v20 = vld [vmem:[#allocation2 + $0x10] sm:$0x3f]  ;;  %v16610_v16 = vld [vmem:[#allocation2 + $0x18] sm:$0x3f] }
 0x275   : > { %v1990_v14 = vpop.permute.xlu0 %1989  ;;  %v1992_v17 = vpop.permute.xlu1 %1991  ;;  %v14572_v11 = vpack.i.bf16 %v16610_v16, %v16608_v20 }
 0x276   : > { %v2003_v19 = vsel %vm681_vm3, %v1990_v14, %v1992_v17  ;;  %v2004_v34 = vsel %vm681_vm3, %v1992_v17, %v16560_v9 }
 0x277   : > { %v2016_v39 = vadd.f32 %v2003_v19, %v1960_v25  ;;  %v2017_v3 = vadd.f32 %v2004_v34, %v1961_v26  ;;  %14573 = vrot.lane.b32.xlu0 %v14572_v11, %s14961_s22  ;;  %v2057_v9 = vld [vmem:[#allocation2 + $0x30] sm:$0x3f] }
 0x278   : > { %v2055_v6 = vld [vmem:[#allocation2 + $0x20] sm:$0x3f]  ;;  %v16618_v7 = vld [vmem:[#allocation2 + $0x28] sm:$0x3f] }
 0x279   : > { %v2029_v35 = vadd.f32 %v16465_v33, %v2016_v39  ;;  %v2030_v4 = vadd.f32 %v16465_v33, %v2017_v3  ;;  %v14577_v36 = vpack.i.bf16 %v16618_v7, %v2055_v6 }
 0x27b   : > { %v2036_v46 = vmax.f32 %v2029_v35, 0.0  ;;  %v2037_v13 = vmax.f32 %v2030_v4, 0.0  ;;  %14578 = vrot.lane.b32.xlu1 %v14577_v36, %s14961_s22 }
 0x27d   : > { %2043 = vst [vmem:[#allocation2] sm:$0x3f] %v2036_v46  ;;  %2044 = vst [vmem:[#allocation2 + $0x8] sm:$0x3f] %v2037_v13 }
 0x27f   : > { %14588 = vrot.lane.b32.xlu1 %v14572_v11, %s14965_s25 }
 0x283   : > { %2111 = vrot.lane.b32.xlu1 %v2057_v9, %s14965_s25 }
 0x284   : > { %v16626_v24 = vld [vmem:[#allocation2] sm:$0x3f]  ;;  %v16631_v33 = vld [vmem:[#allocation2 + $0x8] sm:$0x3f] }
 0x285   : > { %v14582_v61 = vpack.i.bf16 %v16626_v24, %v2057_v9  ;;  %v14612_v49 = vpack.i.bf16 %v16631_v33, %v16626_v24 }
 0x287   : > { %14603 = vrot.lane.b32.xlu1 %v14577_v36, %s14966_s26  ;;  %14583 = vrot.lane.b32.xlu0 %v14582_v61, %s14961_s22 }
 0x28b   : > { %2067 = vrot.lane.b32.xlu1 %v16631_v33, %s14961_s22  ;;  %14593 = vrot.lane.b32.xlu0 %v14577_v36, %s14965_s25  ;;  %s14980_s22 = smov 122  }
 0x28f   : > { %14613 = vrot.lane.b32.xlu1 %v14612_v49, %s14966_s26  ;;  %14598 = vrot.lane.b32.xlu0 %v14572_v11, %s14966_s26 }
 0x293   : > { %2145 = vrot.lane.b32.xlu0 %v2057_v9, %s14966_s26  ;;  %s14983_s26 = smov 56  }
 0x297   : > { %14608 = vrot.lane.b32.xlu0 %v14612_v49, %s14965_s25  ;;  %s14982_s25 = smov 58  }
 0x2e9   : > { %v14574_v5 = vpop.permute.xlu0 %14573 }
 0x2ea   : > { %v14576_v62 = vunpack.i.h.bf16 %v14574_v5  ;;  %v14575_v52 = vunpack.i.l.bf16 %v14574_v5 }
 0x2ec   : > { %v2081_v28 = vsel %vm510_vm0, %v14575_v52, %v14576_v62 }
 0x2ed   : > { %v14579_v30 = vpop.permute.xlu1 %14578  ;;  %v2094_v40 = vmax.f32 %v16608_v20, %v2081_v28 }
 0x2ee   : > { %v14581_v0 = vunpack.i.h.bf16 %v14579_v30  ;;  %v14580_v21 = vunpack.i.l.bf16 %v14579_v30 }
 0x2f0   : > { %v2082_v10 = vsel %vm510_vm0, %v14576_v62, %v14580_v21  ;;  %v2083_v54 = vsel %vm510_vm0, %v14580_v21, %v14581_v0 }
 0x2f1   : > { %v16642_v32 = vpop.permute.xlu1 %14588  ;;  %v2095_v37 = vmax.f32 %v16610_v16, %v2082_v10  ;;  %v2096_v47 = vmax.f32 %v2055_v6, %v2083_v54 }
 0x2f2   : > { %v14591_v50 = vunpack.i.h.bf16 %v16642_v32  ;;  %v14590_v56 = vunpack.i.l.bf16 %v16642_v32 }
 0x2f4   : > { %v2115_v51 = vsel %vm819_vm4, %v14590_v56, %v14591_v50 }
 0x2f5   : > { %v2112_v18 = vpop.permute.xlu1 %2111  ;;  %v2128_v45 = vmax.f32 %v2094_v40, %v2115_v51 }
 0x2f9   : > { %v14584_v31 = vpop.permute.xlu0 %14583  ;;  %v14604_v27 = vpop.permute.xlu1 %14603 }
 0x2fa   : > { %v14585_v22 = vunpack.i.l.bf16 %v14584_v31  ;;  %v14606_v44 = vunpack.i.h.bf16 %v14604_v27  ;;  %v14605_v60 = vunpack.i.l.bf16 %v14604_v27  ;;  %v14586_v17 = vunpack.i.h.bf16 %v14584_v31 }
 0x2fc   : > { %v2084_v2 = vsel %vm510_vm0, %v14581_v0, %v14585_v22  ;;  %v2098_v55 = vmax.f32 %v2057_v9, %v14585_v22  ;;  %v2151_v14 = vsel %vm881_vm5, %v14605_v60, %v14606_v44 }
 0x2fd   : > { %v14594_v12 = vpop.permute.xlu0 %14593  ;;  %v2068_v63 = vpop.permute.xlu1 %2067  ;;  %v2097_v59 = vmax.f32 %v16618_v7, %v2084_v2 }
 0x2fe   : > { %v14596_v43 = vunpack.i.h.bf16 %v14594_v12  ;;  %v14595_v53 = vunpack.i.l.bf16 %v14594_v12  ;;  %v2132_v58 = vmax.f32 %v2098_v55, %v2112_v18  ;;  %v2079_v7 = vsel %vm510_vm0, %v14586_v17, %v2068_v63 }
 0x2ff   : > { %v2080_v35 = vsel %vm510_vm0, %v2068_v63, %v14575_v52  ;;  %v2092_v30 = vmax.f32 %v16626_v24, %v2079_v7  ;;  %vm2246_vm0 = vcmask 1042432   ;;  %v14984_v17 = vmov 0.0  }
 0x300   : > { %v2116_v1 = vsel %vm819_vm4, %v14591_v50, %v14595_v53  ;;  %v2117_v15 = vsel %vm819_vm4, %v14595_v53, %v14596_v43  ;;  %v2118_v57 = vsel %vm819_vm4, %v14596_v43, %v2112_v18  ;;  %v2093_v32 = vmax.f32 %v16631_v33, %v2080_v35 }
 0x301   : > { %v14599_v41 = vpop.permute.xlu0 %14598  ;;  %v2129_v29 = vmax.f32 %v2095_v37, %v2116_v1  ;;  %v2130_v48 = vmax.f32 %v2096_v47, %v2117_v15  ;;  %v2131_v26 = vmax.f32 %v2097_v59, %v2118_v57  ;;  %v14614_v34 = vpop.permute.xlu1 %14613 }
 0x302   : > { %v14601_v42 = vunpack.i.h.bf16 %v14599_v41  ;;  %v14600_v38 = vunpack.i.l.bf16 %v14599_v41  ;;  %v14616_v13 = vunpack.i.h.bf16 %v14614_v34  ;;  %v14615_v9 = vunpack.i.l.bf16 %v14614_v34 }
 0x303   : > { %v2164_v3 = vmax.f32 %v2130_v48, %v2151_v14 }
 0x304   : > { %v2150_v23 = vsel %vm881_vm5, %v14601_v42, %v14605_v60  ;;  %v2149_v8 = vsel %vm881_vm5, %v14600_v38, %v14601_v42  ;;  %v2147_v31 = vsel %vm881_vm5, %v14615_v9, %v14616_v13  ;;  %v2148_v0 = vsel %vm881_vm5, %v14616_v13, %v14600_v38 }
 0x305   : > { %v2162_v20 = vmax.f32 %v2128_v45, %v2149_v8  ;;  %v2163_v16 = vmax.f32 %v2129_v29, %v2150_v23  ;;  %v2146_v25 = vpop.permute.xlu0 %2145  ;;  %v14708_v23 = vld [vmem:[%s18805_s3 + $0x8] sm:$0xff]  }
 0x306   : > { %v2152_v11 = vsel %vm881_vm5, %v14606_v44, %v2146_v25  ;;  %v2166_v19 = vmax.f32 %v2132_v58, %v2146_v25  ;;  %vm14985_vm5 = vmmov 0  }
 0x307   : > { %v13050_v39 = vpack.c.bf16 %v2163_v16, %v2162_v20  ;;  %v2165_v6 = vmax.f32 %v2131_v26, %v2152_v11  ;;  %v19089_v26 = vmov 0  }
 0x308   : > { %v13052_v4 = vpack.c.bf16 %v2166_v19, %v2166_v19 }
 0x309   : > { %2197 = vst [vmem:[#allocation3 + $0x8] sm:$0x77] %v13050_v39  ;;  %v13051_v36 = vpack.c.bf16 %v2165_v6, %v2164_v3  ;;  %v14609_v46 = vpop.permute.xlu0 %14608  ;;  %v14709_v6 = vld [vmem:[%s18805_s3] sm:$0xff]  }
 0x30a   : > { %2200 = vst.msk [vmem:[#allocation3 + $0x18] sm:$0x7] %vm2199_vm2, %v13052_v4  ;;  %v14611_v61 = vunpack.i.h.bf16 %v14609_v46  ;;  %v14610_v49 = vunpack.i.l.bf16 %v14609_v46 }
 0x30b   : > { %2198 = vst [vmem:[#allocation3 + $0x10] sm:$0x77] %v13051_v36 }
 0x30c   : > { %v2114_v5 = vsel %vm819_vm4, %v14611_v61, %v14590_v56  ;;  %v2113_v18 = vsel %vm819_vm4, %v14610_v49, %v14611_v61  ;;  %vm2242_vm4 = vcmask 48128  }
 0x30d   : > { %v2127_v62 = vmax.f32 %v2093_v32, %v2114_v5  ;;  %v2126_v52 = vmax.f32 %v2092_v30, %v2113_v18 }
 0x30f   : > { %v2160_v21 = vmax.f32 %v2126_v52, %v2147_v31  ;;  %v2161_v50 = vmax.f32 %v2127_v62, %v2148_v0 }
 0x310   : > { %v2204_v27 = vld [vmem:[#allocation3 + $0x8] sm:$0x77] }
 0x311   : > { %v13049_v22 = vpack.c.bf16 %v2161_v50, %v2160_v21  ;;  %v16669_v28 = vcombine.high %v2204_v27, %v2204_v27  ;;  %v16671_v24 = vcombine.low %v2204_v27, %v2204_v27  ;;  %v3077_v54 = vld [vmem:[#allocation3 + $0x8] sm:$0x77] }
 0x312   : > { %v16677_v33 = vld [vmem:[#allocation3 + $0x10] ss:$0 sps:$4 sm:$0x77]   ;;  %v12095_v43 = vcombine.low %v3077_v54, %v3077_v54  ;;  %v12096_v51 = vcombine.high %v3077_v54, %v3077_v54  ;;  %v16755_v63 = vld [vmem:[#allocation3 + $0x14] ss:$0 sps:$4 sm:$0x77]  }
 0x313   : > { %2196 = vst [vmem:[#allocation3] sm:$0x77] %v13049_v22  ;;  %2233 = vrot.lane.b32.xlu1 %v16669_v28, %s14962_s16  ;;  %2231 = vrot.lane.b32.xlu0 %v16671_v24, %s14962_s16  ;;  %v3078_v53 = vld [vmem:[#allocation3 + $0x10] sm:$0x77]  ;;  %v2404_v20 = vsel %vm2246_vm0, %v16671_v24, 0  ;;  %v2410_v4 = vsel %vm2246_vm0, %v16677_v33, 0 }
 0x314   : > { %v12097_v2 = vcombine.low %v3078_v53, %v3078_v53  ;;  %v12098_v1 = vcombine.high %v3078_v53, %v3078_v53  ;;  %v4000_v37 = vld [vmem:[#allocation3 + $0xc] sm:$0x77]  ;;  %v4888_v5 = vld [vmem:[#allocation3 + $0x14] sm:$0x77] }
 0x315   : > { %v16748_v47 = vcombine.low %v4000_v37, %v4000_v37  ;;  %v16753_v44 = vcombine.high %v4000_v37, %v4000_v37  ;;  %v4887_v13 = vld [vmem:[#allocation3 + $0xc] sm:$0x77]  ;;  %v16859_v50 = vcombine.low %v4888_v5, %v4888_v5 }
 0x316   : > { %v16846_v32 = vcombine.low %v4887_v13, %v4887_v13  ;;  %v16855_v0 = vcombine.high %v4887_v13, %v4887_v13 }
 0x317   : > { %2235 = vrot.lane.b32.xlu0 %v16677_v33, %s14962_s16 }
 0x31a   : > { %v2203_v56 = vld [vmem:[#allocation3] sm:$0x77] }
 0x31b   : > { %v16681_v12 = vcombine.low %v2203_v56, %v2203_v56  ;;  %v16683_v10 = vcombine.high %v2203_v56, %v2203_v56  ;;  %v3076_v55 = vld [vmem:[#allocation3] sm:$0x77]  ;;  %v14715_v56 = vld [vmem:[%s18805_s3 + $0x10] sm:$0xff]  }
 0x31c   : > { %v12093_v15 = vcombine.low %v3076_v55, %v3076_v55  ;;  %v12094_v40 = vcombine.high %v3076_v55, %v3076_v55  ;;  %v3999_v41 = vld [vmem:[#allocation3 + $0x4] sm:$0x77] }
 0x31d   : > { %2227 = vrot.lane.b32.xlu1 %v16681_v12, %s14962_s16  ;;  %2229 = vrot.lane.b32.xlu0 %v16683_v10, %s14962_s16  ;;  %v16761_v60 = vcombine.low %v3999_v41, %v3999_v41  ;;  %v16763_v42 = vcombine.high %v3999_v41, %v3999_v41  ;;  %v2398_v9 = vsel %vm2246_vm0, %v16681_v12, 0  ;;  %v4886_v27 = vld [vmem:[#allocation3 + $0x4] sm:$0x77] }
 0x31e   : > { %v14717_v41 = vld [vmem:[%s18805_s3 + $0x18] sm:$0xff]  }
 0x321   : > { %2551 = vrot.lane.b32.xlu1 %v16671_v24, %s14964_s24  ;;  %2553 = vrot.lane.b32.xlu0 %v16669_v28, %s14964_s24 }
 0x325   : > { %2555 = vrot.lane.b32.xlu1 %v16677_v33, %s14964_s24  ;;  %2547 = vrot.lane.b32.xlu0 %v16681_v12, %s14964_s24 }
 0x329   : > { %2549 = vrot.lane.b32.xlu1 %v16683_v10, %s14964_s24  ;;  %2729 = vrot.lane.b32.xlu0 %v16671_v24, %s14980_s22 }
 0x32d   : > { %2731 = vrot.lane.b32.xlu1 %v16669_v28, %s14980_s22  ;;  %2733 = vrot.lane.b32.xlu0 %v16677_v33, %s14980_s22 }
 0x331   : > { %2725 = vrot.lane.b32.xlu1 %v16681_v12, %s14980_s22  ;;  %2727 = vrot.lane.b32.xlu0 %v16683_v10, %s14980_s22 }
 0x335   : > { %2907 = vrot.lane.b32.xlu1 %v16671_v24, %s14981_s23  ;;  %2909 = vrot.lane.b32.xlu0 %v16669_v28, %s14981_s23 }
 0x339   : > { %2911 = vrot.lane.b32.xlu1 %v16677_v33, %s14981_s23  ;;  %2903 = vrot.lane.b32.xlu0 %v16681_v12, %s14981_s23  ;;  %v16869_v33 = vcombine.high %v4888_v5, %v4888_v5 }
 0x33d   : > { %2905 = vrot.lane.b32.xlu1 %v16683_v10, %s14981_s23  ;;  %3103 = vrot.lane.b32.xlu0 %v12095_v43, %s14970_s30 }
 0x341   : > { %3105 = vrot.lane.b32.xlu1 %v12096_v51, %s14970_s30  ;;  %3107 = vrot.lane.b32.xlu0 %v12097_v2, %s14970_s30 }
 0x345   : > { %3109 = vrot.lane.b32.xlu1 %v12098_v1, %s14970_s30  ;;  %3099 = vrot.lane.b32.xlu0 %v12093_v15, %s14970_s30 }
 0x349   : > { %3101 = vrot.lane.b32.xlu1 %v12094_v40, %s14970_s30  ;;  %3284 = vrot.lane.b32.xlu0 %v12095_v43, %s14972_s13 }
 0x34d   : > { %3286 = vrot.lane.b32.xlu1 %v12096_v51, %s14972_s13  ;;  %3288 = vrot.lane.b32.xlu0 %v12097_v2, %s14972_s13 }
 0x351   : > { %3280 = vrot.lane.b32.xlu1 %v12093_v15, %s14972_s13  ;;  %3282 = vrot.lane.b32.xlu0 %v12094_v40, %s14972_s13 }
 0x355   : > { %3465 = vrot.lane.b32.xlu1 %v12095_v43, %s14974_s15  ;;  %3467 = vrot.lane.b32.xlu0 %v12096_v51, %s14974_s15 }
 0x359   : > { %3469 = vrot.lane.b32.xlu1 %v12097_v2, %s14974_s15  ;;  %3290 = vrot.lane.b32.xlu0 %v12098_v1, %s14972_s13 }
 0x35d   : > { %3471 = vrot.lane.b32.xlu1 %v12098_v1, %s14974_s15  ;;  %3461 = vrot.lane.b32.xlu0 %v12093_v15, %s14974_s15 }
 0x361   : > { %3463 = vrot.lane.b32.xlu1 %v12094_v40, %s14974_s15  ;;  %3646 = vrot.lane.b32.xlu0 %v12095_v43, %s14982_s25 }
 0x365   : > { %3648 = vrot.lane.b32.xlu1 %v12096_v51, %s14982_s25  ;;  %3650 = vrot.lane.b32.xlu0 %v12097_v2, %s14982_s25 }
 0x369   : > { %3642 = vrot.lane.b32.xlu1 %v12093_v15, %s14982_s25  ;;  %3644 = vrot.lane.b32.xlu0 %v12094_v40, %s14982_s25 }
 0x36d   : > { %3827 = vrot.lane.b32.xlu1 %v12095_v43, %s14983_s26  ;;  %3829 = vrot.lane.b32.xlu0 %v12096_v51, %s14983_s26  ;;  %v16888_v51 = vcombine.high %v4886_v27, %v4886_v27 }
 0x371   : > { %3831 = vrot.lane.b32.xlu1 %v12097_v2, %s14983_s26  ;;  %3652 = vrot.lane.b32.xlu0 %v12098_v1, %s14982_s25 }
 0x375   : > { %3833 = vrot.lane.b32.xlu1 %v12098_v1, %s14983_s26  ;;  %3823 = vrot.lane.b32.xlu0 %v12093_v15, %s14983_s26 }
 0x379   : > { %3825 = vrot.lane.b32.xlu1 %v12094_v40, %s14983_s26  ;;  %4187 = vrot.lane.b32.xlu0 %v16748_v47, %s14962_s16 }
 0x37d   : > { %4189 = vrot.lane.b32.xlu1 %v16753_v44, %s14962_s16  ;;  %4191 = vrot.lane.b32.xlu0 %v16755_v63, %s14962_s16 }
 0x381   : > { %4183 = vrot.lane.b32.xlu1 %v16761_v60, %s14962_s16  ;;  %4185 = vrot.lane.b32.xlu0 %v16763_v42, %s14962_s16 }
 0x385   : > { %v2234_v38 = vpop.permute.xlu1 %2233  ;;  %v2232_v57 = vpop.permute.xlu0 %2231  ;;  %4364 = vrot.lane.b32.xlu1 %v16748_v47, %s14964_s24  ;;  %4366 = vrot.lane.b32.xlu0 %v16753_v44, %s14964_s24 }
 0x386   : > { %v2240_v45 = vsel %vm567_vm1, %v2232_v57, %v2234_v38 }
 0x387   : > { %v2254_v59 = vsel %vm2246_vm0, %v2240_v45, 0 }
 0x389   : > { %4368 = vrot.lane.b32.xlu1 %v16755_v63, %s14964_s24  ;;  %4360 = vrot.lane.b32.xlu0 %v16761_v60, %s14964_s24  ;;  %v2236_v29 = vpop.permute.xlu0 %2235 }
 0x38a   : > { %v2241_v48 = vsel %vm567_vm1, %v2234_v38, %v2236_v29  ;;  %v2260_v34 = vsel %vm2246_vm0, %v2236_v29, 0 }
 0x38b   : > { %12057 = vmatprep.subr.msk.bf16.mxu1 %vm2246_vm0, %v2241_v48 }
 0x38c   : > { %2306 = vmatpush1.bf16.msra.mxu1 %v2254_v59 }
 0x38d   : > { %4362 = vrot.lane.b32.xlu1 %v16763_v42, %s14964_s24  ;;  %4541 = vrot.lane.b32.xlu0 %v16748_v47, %s14980_s22 }
 0x38e   : > { %12063 = vmatprep.subr.msk.bf16.mxu1 %vm2246_vm0, %v16669_v28 }
 0x38f   : > { %v2228_v8 = vpop.permute.xlu1 %2227  ;;  %12058 = vmatmul.mubr.msk.bf16.vlgmr.msra.gmra.mrb[0].mxu1 %vm2242_vm4, %v14708_v23  ;;  %v2230_v58 = vpop.permute.xlu0 %2229 }
 0x390   : > { %2456 = vmatpush1.bf16.msra.mxu1 %v2404_v20  ;;  %v2239_v16 = vsel %vm567_vm1, %v2230_v58, %v2232_v57  ;;  %v2238_v25 = vsel %vm567_vm1, %v2228_v8, %v2230_v58  ;;  %2487 = vmatprep.mubr.bf16.mxu1 %v19089_v26 }
 0x391   : > { %4543 = vrot.lane.b32.xlu1 %v16753_v44, %s14980_s22  ;;  %4545 = vrot.lane.b32.xlu0 %v16755_v63, %s14980_s22  ;;  %v2248_v14 = vsel %vm2246_vm0, %v2238_v25, 0 }
 0x392   : > { %12055 = vmatprep.subr.msk.bf16.mxu0 %vm2246_vm0, %v2239_v16  ;;  %13355 = vmatprep.subr.bf16.mxu1 %v14984_v17 }
 0x393   : > { %2263 = vmatpush1.bf16.msra.mxu0 %v2248_v14  ;;  %v2552_v11 = vpop.permute.xlu1 %2551  ;;  %v2554_v19 = vpop.permute.xlu0 %2553 }
 0x394   : > { %13349 = vmatprep.subr.bf16.mxu0 %v14984_v17  ;;  %v2560_v30 = vsel %vm681_vm3, %v2552_v11, %v2554_v19 }
 0x395   : > { %4537 = vrot.lane.b32.xlu1 %v16761_v60, %s14980_s22  ;;  %4539 = vrot.lane.b32.xlu0 %v16763_v42, %s14980_s22  ;;  %v2572_v31 = vsel %vm2246_vm0, %v2560_v30, 0  ;;  %v14719_v30 = vld [vmem:[%s18805_s3 + $0x28] sm:$0xff]  }
 0x396   : > { %12056 = vmatmul.mubr.msk.bf16.vlgmr.msra.gmra.mrb[0].mxu0 %vm2242_vm4, %v14708_v23 }
 0x397   : > { %13350 = vmatpush3.bf16.msra.mxu0 %v2260_v34  ;;  %v16810_v39 = vpop.permute.xlu1 %2555  ;;  %v2548_v3 = vpop.permute.xlu0 %2547  ;;  %13351 = vmatprep.mubr.msk.bf16.mxu0 %vm14985_vm5, %v14984_v17 }
 0x398   : > { %12061 = vmatprep.subr.msk.bf16.mxu0 %vm2246_vm0, %v16683_v10  ;;  %v2561_v36 = vsel %vm681_vm3, %v2554_v19, %v16810_v39  ;;  %v16877_v10 = vcombine.low %v4886_v27, %v4886_v27  ;;  %v2578_v1 = vsel %vm2246_vm0, %v16810_v39, 0 }
 0x399   : > { %4718 = vrot.lane.b32.xlu1 %v16748_v47, %s14981_s23  ;;  %4720 = vrot.lane.b32.xlu0 %v16753_v44, %s14981_s23 }
 0x39b   : > { %v2550_v7 = vpop.permute.xlu1 %2549  ;;  %12064 = vmatmul.mubr.msk.bf16.vlgmr.msra.gmra.mrb[0].mxu1 %vm2242_vm4, %v14709_v6  ;;  %v16824_v35 = vpop.permute.xlu0 %2729 }
 0x39c   : > { %13356 = vmatpush3.bf16.msra.mxu1 %v2410_v4  ;;  %13357 = vmatprep.mubr.msk.bf16.mxu1 %vm14985_vm5, %v14984_v17  ;;  %v2559_v46 = vsel %vm681_vm3, %v2550_v7, %v2552_v11  ;;  %v2558_v18 = vsel %vm681_vm3, %v2548_v3, %v2550_v7 }
 0x39d   : > { %12071 = vmatprep.subr.msk.bf16.mxu1 %vm2246_vm0, %v2561_v36  ;;  %4722 = vrot.lane.b32.xlu1 %v16755_v63, %s14981_s23  ;;  %v2566_v22 = vsel %vm2246_vm0, %v2558_v18, 0 }
 0x39e   : > { %4714 = vrot.lane.b32.xlu0 %v16761_v60, %s14981_s23  ;;  %13352 = vmatmul.mubr.msk.bf16.vlgmr.msra.gmra.mrb[4].mxu0 %vm2242_vm4, %v14708_v23 }
 0x39f   : > { %2413 = vmatpush1.bf16.msra.mxu0 %v2398_v9  ;;  %v2732_v61 = vpop.permute.xlu1 %2731  ;;  %v16841_v49 = vpop.permute.xlu0 %2733  ;;  %2444 = vmatprep.mubr.bf16.mxu0 %v19089_v26 }
 0x3a0   : > { %12069 = vmatprep.subr.msk.bf16.mxu0 %vm2246_vm0, %v2559_v46  ;;  %v2739_v21 = vsel %vm2735_vm12, %v2732_v61, %v16841_v49  ;;  %v2738_v12 = vsel %vm2735_vm12, %v16824_v35, %v2732_v61  ;;  %v2756_v29 = vsel %vm2246_vm0, %v16841_v49, 0 }
 0x3a1   : > { %4716 = vrot.lane.b32.xlu1 %v16763_v42, %s14981_s23  ;;  %v2750_v53 = vsel %vm2246_vm0, %v2738_v12, 0 }
 0x3a2   : > { %4913 = vrot.lane.b32.xlu0 %v16846_v32, %s14970_s30 }
 0x3a3   : > { %v2726_v62 = vpop.permute.xlu1 %2725  ;;  %v2728_v52 = vpop.permute.xlu0 %2727  ;;  %13358 = vmatmul.mubr.msk.bf16.vlgmr.msra.gmra.mrb[4].mxu1 %vm2242_vm4, %v14709_v6 }
 0x3a4   : > { %2624 = vmatpush1.bf16.msra.mxu1 %v2572_v31  ;;  %2655 = vmatprep.mubr.bf16.mxu1 %v19089_v26  ;;  %v2737_v15 = vsel %vm2735_vm12, %v2728_v52, %v16824_v35  ;;  %v2736_v38 = vsel %vm2735_vm12, %v2726_v62, %v2728_v52 }
 0x3a5   : > { %12079 = vmatprep.subr.msk.bf16.mxu1 %vm2246_vm0, %v2739_v21  ;;  %4915 = vrot.lane.b32.xlu1 %v16855_v0, %s14970_s30  ;;  %v2744_v59 = vsel %vm2246_vm0, %v2736_v38, 0 }
 0x3a6   : > { %4917 = vrot.lane.b32.xlu0 %v16859_v50, %s14970_s30  ;;  %12062 = vmatmul.mubr.msk.bf16.vlgmr.msra.gmra.mrb[0].mxu0 %vm2242_vm4, %v14709_v6  ;;  %v14718_v6 = vld [vmem:[%s18805_s3 + $0x20] sm:$0xff]  }
 0x3a7   : > { %2581 = vmatpush1.bf16.msra.mxu0 %v2566_v22  ;;  %v2908_v28 = vpop.permute.xlu1 %2907  ;;  %v2910_v24 = vpop.permute.xlu0 %2909  ;;  %2612 = vmatprep.mubr.bf16.mxu0 %v19089_v26 }
 0x3a8   : > { %13361 = vmatprep.subr.bf16.mxu0 %v14984_v17  ;;  %v2916_v20 = vsel %vm2913_vm14, %v2908_v28, %v2910_v24 }
 0x3a9   : > { %4919 = vrot.lane.b32.xlu1 %v16869_v33, %s14970_s30  ;;  %v2928_v11 = vsel %vm2246_vm0, %v2916_v20, 0 }
 0x3aa   : > { %4909 = vrot.lane.b32.xlu0 %v16877_v10, %s14970_s30 }
 0x3ab   : > { %v16884_v54 = vpop.permute.xlu1 %2911  ;;  %v2904_v43 = vpop.permute.xlu0 %2903  ;;  %12072 = vmatmul.mubr.msk.bf16.vlgmr.msra.gmra.mrb[0].mxu1 %vm2242_vm4, %v14715_v56 }
 0x3ac   : > { %2802 = vmatpush1.bf16.msra.mxu1 %v2750_v53  ;;  %2833 = vmatprep.mubr.bf16.mxu1 %v19089_v26  ;;  %v2917_v48 = vsel %vm2913_vm14, %v2910_v24, %v16884_v54  ;;  %v2934_v9 = vsel %vm2246_vm0, %v16884_v54, 0  ;;  %v14723_v53 = vld [vmem:[%s18805_s3 + $0x30] sm:$0xff]  }
 0x3ad   : > { %4911 = vrot.lane.b32.xlu1 %v16888_v51, %s14970_s30  ;;  %13367 = vmatprep.subr.bf16.mxu1 %v14984_v17 }
 0x3ae   : > { %5093 = vrot.lane.b32.xlu0 %v16846_v32, %s14972_s13 }
 0x3af   : > { %v2906_v2 = vpop.permute.xlu1 %2905  ;;  %v16896_v55 = vpop.permute.xlu0 %3103 }
 0x3b0   : > { %v2915_v23 = vsel %vm2913_vm14, %v2906_v2, %v2908_v28  ;;  %v2914_v16 = vsel %vm2913_vm14, %v2904_v43, %v2906_v2 }
 0x3b1   : > { %5095 = vrot.lane.b32.xlu1 %v16855_v0, %s14972_s13  ;;  %v2922_v34 = vsel %vm2246_vm0, %v2914_v16, 0 }
 0x3b2   : > { %5097 = vrot.lane.b32.xlu0 %v16859_v50, %s14972_s13  ;;  %12070 = vmatmul.mubr.msk.bf16.vlgmr.msra.gmra.mrb[0].mxu0 %vm2242_vm4, %v14715_v56 }
 0x3b3   : > { %13362 = vmatpush3.bf16.msra.mxu0 %v2578_v1  ;;  %v3106_v40 = vpop.permute.xlu1 %3105  ;;  %v16907_v37 = vpop.permute.xlu0 %3107  ;;  %13363 = vmatprep.mubr.msk.bf16.mxu0 %vm14985_vm5, %v14984_v17  ;;  %v5804_v1 = vld [vmem:[#allocation3 + $0x8] sm:$0x77] }
 0x3b4   : > { %12077 = vmatprep.subr.msk.bf16.mxu0 %vm2246_vm0, %v2737_v15  ;;  %v3115_v19 = vsel %vm1129_vm9, %v3106_v40, %v16907_v37  ;;  %v3114_v7 = vsel %vm1129_vm9, %v16896_v55, %v3106_v40  ;;  %v17079_v40 = vcombine.low %v5804_v1, %v5804_v1 }
 0x3b5   : > { %5089 = vrot.lane.b32.xlu1 %v16877_v10, %s14972_s13  ;;  %v3127_v4 = vsel %vm2246_vm0, %v3114_v7, 0 }
 0x3b6   : > { %5091 = vrot.lane.b32.xlu0 %v16888_v51, %s14972_s13 }
 0x3b7   : > { %v16920_v57 = vpop.permute.xlu1 %3109  ;;  %v16922_v45 = vpop.permute.xlu0 %3099  ;;  %12080 = vmatmul.mubr.msk.bf16.vlgmr.msra.gmra.mrb[0].mxu1 %vm2242_vm4, %v14717_v41 }
 0x3b8   : > { %13368 = vmatpush3.bf16.msra.mxu1 %v2756_v29  ;;  %13369 = vmatprep.mubr.msk.bf16.mxu1 %vm14985_vm5, %v14984_v17  ;;  %v3116_v5 = vsel %vm1129_vm9, %v16907_v37, %v16920_v57  ;;  %v17081_v37 = vcombine.high %v5804_v1, %v5804_v1 }
 0x3b9   : > { %12087 = vmatprep.subr.msk.bf16.mxu1 %vm2246_vm0, %v2917_v48  ;;  %5273 = vrot.lane.b32.xlu1 %v16846_v32, %s14974_s15  ;;  %v3133_v18 = vsel %vm2246_vm0, %v3116_v5, 0  ;;  %v6688_v5 = vld [vmem:[%s18806_s4] sm:$0xff] }
 0x3ba   : > { %5275 = vrot.lane.b32.xlu0 %v16855_v0, %s14974_s15  ;;  %13364 = vmatmul.mubr.msk.bf16.vlgmr.msra.gmra.mrb[8].mxu0 %vm2242_vm4, %v14715_v56 }
 0x3bb   : > { %2759 = vmatpush1.bf16.msra.mxu0 %v2744_v59  ;;  %v3102_v8 = vpop.permute.xlu1 %3101  ;;  %v16939_v58 = vpop.permute.xlu0 %3284  ;;  %2790 = vmatprep.mubr.bf16.mxu0 %v19089_v26  ;;  %v14726_v59 = vld [vmem:[%s18805_s3 + $0x38] sm:$0xff]  }
 0x3bc   : > { %12085 = vmatprep.subr.msk.bf16.mxu0 %vm2246_vm0, %v2915_v23  ;;  %v3113_v61 = vsel %vm1129_vm9, %v3102_v8, %v16896_v55  ;;  %v3112_v62 = vsel %vm1129_vm9, %v16922_v45, %v3102_v8  ;;  %v17070_v55 = vld [vmem:[#allocation3 + $0x18] ss:$0 sps:$4 sm:$0x77]  }
 0x3bd   : > { %5277 = vrot.lane.b32.xlu1 %v16859_v50, %s14974_s15 }
 0x3be   : > { %5099 = vrot.lane.b32.xlu0 %v16869_v33, %s14972_s13 }
 0x3bf   : > { %v3287_v25 = vpop.permute.xlu1 %3286  ;;  %v16949_v14 = vpop.permute.xlu0 %3288  ;;  %13370 = vmatmul.mubr.msk.bf16.vlgmr.msra.gmra.mrb[8].mxu1 %vm2242_vm4, %v14717_v41 }
 0x3c0   : > { %2980 = vmatpush1.bf16.msra.mxu1 %v2928_v11  ;;  %3011 = vmatprep.mubr.bf16.mxu1 %v19089_v26  ;;  %v3296_v21 = vsel %vm1253_vm11, %v3287_v25, %v16949_v14  ;;  %v3295_v27 = vsel %vm1253_vm11, %v16939_v58, %v3287_v25 }
 0x3c1   : > { %12101 = vmatprep.subr.msk.bf16.mxu1 %vm2246_vm0, %v3115_v19  ;;  %5279 = vrot.lane.b32.xlu1 %v16869_v33, %s14974_s15  ;;  %v3308_v56 = vsel %vm2246_vm0, %v3295_v27, 0 }
 0x3c2   : > { %5269 = vrot.lane.b32.xlu0 %v16877_v10, %s14974_s15  ;;  %12078 = vmatmul.mubr.msk.bf16.vlgmr.msra.gmra.mrb[0].mxu0 %vm2242_vm4, %v14717_v41 }
 0x3c3   : > { %2937 = vmatpush1.bf16.msra.mxu0 %v2922_v34  ;;  %v3281_v39 = vpop.permute.xlu1 %3280  ;;  %v3283_v3 = vpop.permute.xlu0 %3282  ;;  %2968 = vmatprep.mubr.bf16.mxu0 %v19089_v26 }
 0x3c4   : > { %13373 = vmatprep.subr.bf16.mxu0 %v14984_v17  ;;  %v3293_v24 = vsel %vm1253_vm11, %v3281_v39, %v3283_v3 }
 0x3c5   : > { %5271 = vrot.lane.b32.xlu1 %v16888_v51, %s14974_s15  ;;  %s14986_s15 = smov 116  }
 0x3c6   : > { %5453 = vrot.lane.b32.xlu0 %v16846_v32, %s14982_s25 }
 0x3c7   : > { %v16974_v35 = vpop.permute.xlu1 %3465  ;;  %12088 = vmatmul.mubr.msk.bf16.vlgmr.msra.gmra.mrb[0].mxu1 %vm2242_vm4, %v14718_v6  ;;  %v3468_v36 = vpop.permute.xlu0 %3467 }
 0x3c8   : > { %3179 = vmatpush1.bf16.msra.mxu1 %v3127_v4  ;;  %3210 = vmatprep.mubr.bf16.mxu1 %v19089_v26 }
 0x3c9   : > { %5455 = vrot.lane.b32.xlu1 %v16855_v0, %s14982_s25  ;;  %13379 = vmatprep.subr.bf16.mxu1 %v14984_v17 }
 0x3ca   : > { %5457 = vrot.lane.b32.xlu0 %v16859_v50, %s14982_s25 }
 0x3cb   : > { %v16984_v46 = vpop.permute.xlu1 %3469  ;;  %v16988_v13 = vpop.permute.xlu0 %3290 }
 0x3cc   : > { %v3477_v12 = vsel %vm1377_vm13, %v3468_v36, %v16984_v46  ;;  %v3297_v57 = vsel %vm1253_vm11, %v16949_v14, %v16988_v13 }
 0x3cd   : > { %5449 = vrot.lane.b32.xlu1 %v16877_v10, %s14982_s25  ;;  %v3314_v45 = vsel %vm2246_vm0, %v3297_v57, 0  ;;  %v14730_v57 = vld [vmem:[%s18805_s3 + $0x58] sm:$0xff]  }
 0x3ce   : > { %5451 = vrot.lane.b32.xlu0 %v16888_v51, %s14982_s25  ;;  %12086 = vmatmul.mubr.msk.bf16.vlgmr.msra.gmra.mrb[0].mxu0 %vm2242_vm4, %v14718_v6 }
 0x3cf   : > { %13374 = vmatpush3.bf16.msra.mxu0 %v2934_v9  ;;  %v16997_v49 = vpop.permute.xlu1 %3471  ;;  %13375 = vmatprep.mubr.msk.bf16.mxu0 %vm14985_vm5, %v14984_v17  ;;  %v17018_v31 = vpop.permute.xlu0 %3461 }
 0x3d0   : > { %12099 = vmatprep.subr.msk.bf16.mxu0 %vm2246_vm0, %v3113_v61  ;;  %v3478_v23 = vsel %vm1377_vm13, %v16984_v46, %v16997_v49 }
 0x3d1   : > { %5633 = vrot.lane.b32.xlu1 %v16846_v32, %s14983_s26  ;;  %v3121_v32 = vsel %vm2246_vm0, %v3112_v62, 0 }
 0x3d2   : > { %5635 = vrot.lane.b32.xlu0 %v16855_v0, %s14983_s26  ;;  %v3294_v0 = vsel %vm1253_vm11, %v3283_v3, %v16939_v58  ;;  %v3495_v58 = vsel %vm2246_vm0, %v3478_v23, 0 }
 0x3d3   : > { %v17015_v52 = vpop.permute.xlu1 %3463  ;;  %12102 = vmatmul.mubr.msk.bf16.vlgmr.msra.gmra.mrb[0].mxu1 %vm2242_vm4, %v14719_v30  ;;  %v17041_v28 = vpop.permute.xlu0 %3646 }
 0x3d4   : > { %13380 = vmatpush3.bf16.msra.mxu1 %v3133_v18  ;;  %13381 = vmatprep.mubr.msk.bf16.mxu1 %vm14985_vm5, %v14984_v17  ;;  %v3475_v48 = vsel %vm1377_vm13, %v17015_v52, %v16974_v35  ;;  %v3474_v20 = vsel %vm1377_vm13, %v17018_v31, %v17015_v52  ;;  %v6689_v52 = vld [vmem:[%s18806_s4 + $0x8] sm:$0xff] }
 0x3d5   : > { %12109 = vmatprep.subr.msk.bf16.mxu1 %vm2246_vm0, %v3296_v21  ;;  %5637 = vrot.lane.b32.xlu1 %v16859_v50, %s14983_s26  ;;  %v5805_v50 = vld [vmem:[#allocation3 + $0x10] sm:$0x77]  ;;  %v3483_v11 = vsel %vm2246_vm0, %v3474_v20, 0 }
 0x3d6   : > { %5459 = vrot.lane.b32.xlu0 %v16869_v33, %s14982_s25  ;;  %13376 = vmatmul.mubr.msk.bf16.vlgmr.msra.gmra.mrb[12].mxu0 %vm2242_vm4, %v14718_v6  ;;  %v17050_v54 = vcombine.low %v5805_v50, %v5805_v50  ;;  %v17060_v43 = vcombine.high %v5805_v50, %v5805_v50  ;;  %v14728_v21 = vld [vmem:[%s18805_s3 + $0x48] sm:$0xff]  }
 0x3d7   : > { %3136 = vmatpush1.bf16.msra.mxu0 %v3121_v32  ;;  %3167 = vmatprep.mubr.bf16.mxu0 %v19089_v26  ;;  %v17037_v22 = vpop.permute.xlu1 %3648  ;;  %v17068_v2 = vpop.permute.xlu0 %3650 }
 0x3d8   : > { %12107 = vmatprep.subr.msk.bf16.mxu0 %vm2246_vm0, %v3294_v0  ;;  %v3658_v16 = vsel %vm3654_vm15, %v17037_v22, %v17068_v2  ;;  %v3657_v34 = vsel %vm3654_vm15, %v17041_v28, %v17037_v22 }
 0x3d9   : > { %5639 = vrot.lane.b32.xlu1 %v16869_v33, %s14983_s26  ;;  %v3302_v33 = vsel %vm2246_vm0, %v3293_v24, 0  ;;  %v3670_v6 = vsel %vm2246_vm0, %v3657_v34, 0 }
 0x3da   : > { %5629 = vrot.lane.b32.xlu0 %v16877_v10, %s14983_s26 }
 0x3db   : > { %13382 = vmatmul.mubr.msk.bf16.vlgmr.msra.gmra.mrb[12].mxu1 %vm2242_vm4, %v14719_v30  ;;  %v3643_v10 = vpop.permute.xlu1 %3642  ;;  %v3645_v38 = vpop.permute.xlu0 %3644 }
 0x3dc   : > { %3360 = vmatpush1.bf16.msra.mxu1 %v3308_v56  ;;  %3391 = vmatprep.mubr.bf16.mxu1 %v19089_v26  ;;  %v3656_v19 = vsel %vm3654_vm15, %v3645_v38, %v17041_v28  ;;  %v3655_v39 = vsel %vm3654_vm15, %v3643_v10, %v3645_v38 }
 0x3dd   : > { %12117 = vmatprep.subr.msk.bf16.mxu1 %vm2246_vm0, %v3477_v12  ;;  %5631 = vrot.lane.b32.xlu1 %v16888_v51, %s14983_s26  ;;  %v3476_v51 = vsel %vm1377_vm13, %v16974_v35, %v3468_v36  ;;  %v3664_v4 = vsel %vm2246_vm0, %v3655_v39, 0  ;;  %v14727_v36 = vld [vmem:[%s18805_s3 + $0x40] sm:$0xff]   ;;  %v4030_v12 = vsel %vm2246_vm0, %v16748_v47, 0 }
 0x3de   : > { %5992 = vrot.lane.b32.xlu0 %v17050_v54, %s14962_s16  ;;  %12100 = vmatmul.mubr.msk.bf16.vlgmr.msra.gmra.mrb[0].mxu0 %vm2242_vm4, %v14719_v30  ;;  %v3489_v15 = vsel %vm2246_vm0, %v3476_v51, 0  ;;  %v14731_v39 = vld [vmem:[%s18805_s3 + $0x60] sm:$0xff]  }
 0x3df   : > { %3317 = vmatpush1.bf16.msra.mxu0 %v3302_v33  ;;  %3348 = vmatprep.mubr.bf16.mxu0 %v19089_v26  ;;  %v17084_v41 = vpop.permute.xlu1 %3827  ;;  %v3830_v8 = vpop.permute.xlu0 %3829 }
 0x3e0   : > { %13385 = vmatprep.subr.bf16.mxu0 %v14984_v17  ;;  %v3838_v46 = vsel %vm3835_vm6, %v17084_v41, %v3830_v8 }
 0x3e1   : > { %5994 = vrot.lane.b32.xlu1 %v17060_v43, %s14962_s16  ;;  %v3851_v61 = vsel %vm2246_vm0, %v3838_v46, 0 }
 0x3e2   : > { %5996 = vrot.lane.b32.xlu0 %v17070_v55, %s14962_s16 }
 0x3e3   : > { %12110 = vmatmul.mubr.msk.bf16.vlgmr.msra.gmra.mrb[0].mxu1 %vm2242_vm4, %v14723_v53  ;;  %v17100_v29 = vpop.permute.xlu1 %3831  ;;  %v3653_v14 = vpop.permute.xlu0 %3652 }
 0x3e4   : > { %3541 = vmatpush1.bf16.msra.mxu1 %v3489_v15  ;;  %3572 = vmatprep.mubr.bf16.mxu1 %v19089_v26  ;;  %v3839_v35 = vsel %vm3835_vm6, %v3830_v8, %v17100_v29  ;;  %v3659_v49 = vsel %vm3654_vm15, %v17068_v2, %v3653_v14 }
 0x3e5   : > { %5988 = vrot.lane.b32.xlu1 %v17079_v40, %s14962_s16  ;;  %13391 = vmatprep.subr.bf16.mxu1 %v14984_v17  ;;  %v3676_v62 = vsel %vm2246_vm0, %v3659_v49, 0 }
 0x3e6   : > { %5990 = vrot.lane.b32.xlu0 %v17081_v37, %s14962_s16 }
 0x3e7   : > { %v3834_v25 = vpop.permute.xlu1 %3833  ;;  %v3824_v7 = vpop.permute.xlu0 %3823 }
 0x3e8   : > { %v3840_v32 = vsel %vm3835_vm6, %v17100_v29, %v3834_v25 }
 0x3e9   : > { %6169 = vrot.lane.b32.xlu1 %v17050_v54, %s14964_s24  ;;  %v3857_v22 = vsel %vm2246_vm0, %v3840_v32, 0 }
 0x3ea   : > { %6171 = vrot.lane.b32.xlu0 %v17060_v43, %s14964_s24  ;;  %12108 = vmatmul.mubr.msk.bf16.vlgmr.msra.gmra.mrb[0].mxu0 %vm2242_vm4, %v14723_v53 }
 0x3eb   : > { %13386 = vmatpush3.bf16.msra.mxu0 %v3314_v45  ;;  %13387 = vmatprep.mubr.msk.bf16.mxu0 %vm14985_vm5, %v14984_v17  ;;  %v3826_v3 = vpop.permute.xlu1 %3825  ;;  %v17168_v9 = vpop.permute.xlu0 %4187 }
 0x3ec   : > { %12115 = vmatprep.subr.msk.bf16.mxu0 %vm2246_vm0, %v3475_v48  ;;  %v3837_v31 = vsel %vm3835_vm6, %v3826_v3, %v17084_v41  ;;  %v3836_v50 = vsel %vm3835_vm6, %v3824_v7, %v3826_v3  ;;  %v4036_v41 = vsel %vm2246_vm0, %v16755_v63, 0 }
 0x3ed   : > { %6173 = vrot.lane.b32.xlu1 %v17070_v55, %s14964_s24  ;;  %v3845_v28 = vsel %vm2246_vm0, %v3836_v50, 0 }
 0x3ee   : > { %6165 = vrot.lane.b32.xlu0 %v17079_v40, %s14964_s24 }
 0x3ef   : > { %12118 = vmatmul.mubr.msk.bf16.vlgmr.msra.gmra.mrb[0].mxu1 %vm2242_vm4, %v14726_v59  ;;  %v4190_v13 = vpop.permute.xlu1 %4189  ;;  %v4192_v18 = vpop.permute.xlu0 %4191 }
 0x3f0   : > { %13392 = vmatpush3.bf16.msra.mxu1 %v3495_v58  ;;  %13393 = vmatprep.mubr.msk.bf16.mxu1 %vm14985_vm5, %v14984_v17  ;;  %v4195_v47 = vsel %vm567_vm1, %v17168_v9, %v4190_v13  ;;  %v4213_v63 = vsel %vm2246_vm0, %v4192_v18, 0 }
 0x3f1   : > { %12125 = vmatprep.subr.msk.bf16.mxu1 %vm2246_vm0, %v3658_v16  ;;  %6167 = vrot.lane.b32.xlu1 %v17081_v37, %s14964_s24  ;;  %v4207_v2 = vsel %vm2246_vm0, %v4195_v47, 0 }
 0x3f2   : > { %6346 = vrot.lane.b32.xlu0 %v17050_v54, %s14980_s22  ;;  %13388 = vmatmul.mubr.msk.bf16.vlgmr.msra.gmra.mrb[16].mxu0 %vm2242_vm4, %v14723_v53  ;;  %v4024_v53 = vsel %vm2246_vm0, %v16761_v60, 0 }
 0x3f3   : > { %3498 = vmatpush1.bf16.msra.mxu0 %v3483_v11  ;;  %3529 = vmatprep.mubr.bf16.mxu0 %v19089_v26  ;;  %v4184_v30 = vpop.permute.xlu1 %4183  ;;  %v4186_v27 = vpop.permute.xlu0 %4185 }
 0x3f4   : > { %12123 = vmatprep.subr.msk.bf16.mxu0 %vm2246_vm0, %v3656_v19  ;;  %v4194_v38 = vsel %vm567_vm1, %v4186_v27, %v17168_v9  ;;  %v4193_v45 = vsel %vm567_vm1, %v4184_v30, %v4186_v27  ;;  %v14732_v9 = vld [vmem:[%s18805_s3 + $0x68] sm:$0xff]  }
 0x3f5   : > { %6348 = vrot.lane.b32.xlu1 %v17060_v43, %s14980_s22  ;;  %v4201_v23 = vsel %vm2246_vm0, %v4193_v45, 0 }
 0x3f6   : > { %6350 = vrot.lane.b32.xlu0 %v17070_v55, %s14980_s22 }
 0x3f7   : > { %13394 = vmatmul.mubr.msk.bf16.vlgmr.msra.gmra.mrb[16].mxu1 %vm2242_vm4, %v14726_v59  ;;  %v4365_v0 = vpop.permute.xlu1 %4364  ;;  %v4367_v56 = vpop.permute.xlu0 %4366 }
 0x3f8   : > { %3722 = vmatpush1.bf16.msra.mxu1 %v3670_v6  ;;  %3753 = vmatprep.mubr.bf16.mxu1 %v19089_v26  ;;  %v4372_v58 = vsel %vm681_vm3, %v4365_v0, %v4367_v56 }
 0x3f9   : > { %12133 = vmatprep.subr.msk.bf16.mxu1 %vm2246_vm0, %v3839_v35  ;;  %6342 = vrot.lane.b32.xlu1 %v17079_v40, %s14980_s22  ;;  %v4384_v14 = vsel %vm2246_vm0, %v4372_v58, 0 }
 0x3fa   : > { %6344 = vrot.lane.b32.xlu0 %v17081_v37, %s14980_s22  ;;  %12116 = vmatmul.mubr.msk.bf16.vlgmr.msra.gmra.mrb[0].mxu0 %vm2242_vm4, %v14726_v59 }
 0x3fb   : > { %3679 = vmatpush1.bf16.msra.mxu0 %v3664_v4  ;;  %3710 = vmatprep.mubr.bf16.mxu0 %v19089_v26  ;;  %v17211_v24 = vpop.permute.xlu1 %4368  ;;  %v4361_v10 = vpop.permute.xlu0 %4360 }
 0x3fc   : > { %13397 = vmatprep.subr.bf16.mxu0 %v14984_v17  ;;  %v4373_v59 = vsel %vm681_vm3, %v4367_v56, %v17211_v24 }
 0x3fd   : > { %6523 = vrot.lane.b32.xlu1 %v17050_v54, %s14981_s23 }
 0x3fe   : > { %6525 = vrot.lane.b32.xlu0 %v17060_v43, %s14981_s23 }
 0x3ff   : > { %12126 = vmatmul.mubr.msk.bf16.vlgmr.msra.gmra.mrb[0].mxu1 %vm2242_vm4, %v14727_v36  ;;  %v4363_v33 = vpop.permute.xlu1 %4362  ;;  %v4542_v1 = vpop.permute.xlu0 %4541 }
 0x400   : > { %3903 = vmatpush1.bf16.msra.mxu1 %v3851_v61  ;;  %3934 = vmatprep.mubr.bf16.mxu1 %v19089_v26  ;;  %v4371_v8 = vsel %vm681_vm3, %v4363_v33, %v4365_v0  ;;  %v4370_v25 = vsel %vm681_vm3, %v4361_v10, %v4363_v33 }
 0x401   : > { %6527 = vrot.lane.b32.xlu1 %v17070_v55, %s14981_s23  ;;  %13403 = vmatprep.subr.bf16.mxu1 %v14984_v17  ;;  %v4378_v19 = vsel %vm2246_vm0, %v4370_v25, 0  ;;  %v14735_v25 = vld [vmem:[%s18805_s3 + $0x80] sm:$0xff]  }
 0x402   : > { %6519 = vrot.lane.b32.xlu0 %v17079_v40, %s14981_s23 }
 0x403   : > { %v4544_v51 = vpop.permute.xlu1 %4543  ;;  %v4546_v15 = vpop.permute.xlu0 %4545 }
 0x404   : > { %v4550_v11 = vsel %vm2735_vm12, %v4544_v51, %v4546_v15  ;;  %v4549_v3 = vsel %vm2735_vm12, %v4542_v1, %v4544_v51  ;;  %v4567_v49 = vsel %vm2246_vm0, %v4546_v15, 0  ;;  %v14734_v51 = vld [vmem:[%s18805_s3 + $0x78] sm:$0xff]  }
 0x405   : > { %6521 = vrot.lane.b32.xlu1 %v17081_v37, %s14981_s23  ;;  %v4561_v7 = vsel %vm2246_vm0, %v4549_v3, 0 }
 0x406   : > { %6692 = vperm.xlu0 %14510, %v6688_v5   ;;  %12124 = vmatmul.mubr.msk.bf16.vlgmr.msra.gmra.mrb[0].mxu0 %vm2242_vm4, %v14727_v36 }
 0x407   : > { %13398 = vmatpush3.bf16.msra.mxu0 %v3676_v62  ;;  %13399 = vmatprep.mubr.msk.bf16.mxu0 %vm14985_vm5, %v14984_v17  ;;  %v4538_v60 = vpop.permute.xlu1 %4537  ;;  %v4540_v48 = vpop.permute.xlu0 %4539 }
 0x408   : > { %12131 = vmatprep.subr.msk.bf16.mxu0 %vm2246_vm0, %v3837_v31  ;;  %v4548_v46 = vsel %vm2735_vm12, %v4540_v48, %v4542_v1  ;;  %v4547_v30 = vsel %vm2735_vm12, %v4538_v60, %v4540_v48 }
 0x409   : > { %6697 = vperm.xlu1 %14521, %v6689_v52   ;;  %v4555_v62 = vsel %vm2246_vm0, %v4547_v30, 0  ;;  %v14736_v30 = vld [vmem:[%s18805_s3 + $0x88] sm:$0xff]  }
 0x40b   : > { %12134 = vmatmul.mubr.msk.bf16.vlgmr.msra.gmra.mrb[0].mxu1 %vm2242_vm4, %v14728_v21  ;;  %v17248_v29 = vpop.permute.xlu1 %4718  ;;  %v4721_v16 = vpop.permute.xlu0 %4720 }
 0x40c   : > { %13404 = vmatpush3.bf16.msra.mxu1 %v3857_v22  ;;  %13405 = vmatprep.mubr.msk.bf16.mxu1 %vm14985_vm5, %v14984_v17 }
 0x40d   : > { %12146 = vmatprep.subr.msk.bf16.mxu1 %vm2246_vm0, %v16753_v44  ;;  %v4196_v44 = vsel %vm567_vm1, %v4190_v13, %v4192_v18 }
 0x40e   : > { %13400 = vmatmul.mubr.msk.bf16.vlgmr.msra.gmra.mrb[20].mxu0 %vm2242_vm4, %v14727_v36  ;;  %v4390_v36 = vsel %vm2246_vm0, %v17211_v24, 0  ;;  %v14733_v24 = vld [vmem:[%s18805_s3 + $0x70] sm:$0xff]  }
 0x40f   : > { %3860 = vmatpush1.bf16.msra.mxu0 %v3845_v28  ;;  %3891 = vmatprep.mubr.bf16.mxu0 %v19089_v26  ;;  %v17263_v20 = vpop.permute.xlu1 %4722 }
 0x410   : > { %12144 = vmatprep.subr.msk.bf16.mxu0 %vm2246_vm0, %v16763_v42  ;;  %v14729_v42 = vld [vmem:[%s18805_s3 + $0x50] sm:$0xff]   ;;  %v4715_v6 = vpop.permute.xlu0 %4714  ;;  %v4727_v5 = vsel %vm2913_vm14, %v4721_v16, %v17263_v20 }
 0x413   : > { %13406 = vmatmul.mubr.msk.bf16.vlgmr.msra.gmra.mrb[20].mxu1 %vm2242_vm4, %v14728_v21  ;;  %v4717_v34 = vpop.permute.xlu1 %4716 }
 0x414   : > { %4082 = vmatpush1.bf16.msra.mxu1 %v4030_v12  ;;  %4113 = vmatprep.mubr.bf16.mxu1 %v19089_v26  ;;  %v4914_v4 = vpop.permute.xlu0 %4913  ;;  %v4725_v31 = vsel %vm2913_vm14, %v4717_v34, %v17248_v29  ;;  %v4724_v0 = vsel %vm2913_vm14, %v4715_v6, %v4717_v34 }
 0x415   : > { %12154 = vmatprep.subr.msk.bf16.mxu1 %vm2246_vm0, %v4196_v44  ;;  %v4732_v28 = vsel %vm2246_vm0, %v4724_v0, 0 }
 0x416   : > { %12132 = vmatmul.mubr.msk.bf16.vlgmr.msra.gmra.mrb[0].mxu0 %vm2242_vm4, %v14728_v21  ;;  %v4726_v21 = vsel %vm2913_vm14, %v17248_v29, %v4721_v16 }
 0x417   : > { %4039 = vmatpush1.bf16.msra.mxu0 %v4024_v53  ;;  %4070 = vmatprep.mubr.bf16.mxu0 %v19089_v26  ;;  %v4916_v35 = vpop.permute.xlu1 %4915  ;;  %v4738_v32 = vsel %vm2246_vm0, %v4726_v21, 0 }
 0x418   : > { %13409 = vmatprep.subr.bf16.mxu0 %v14984_v17  ;;  %v4918_v61 = vpop.permute.xlu0 %4917  ;;  %v4923_v56 = vsel %vm1129_vm9, %v4914_v4, %v4916_v35 }
 0x419   : > { %v4924_v22 = vsel %vm1129_vm9, %v4916_v35, %v4918_v61  ;;  %v4936_v33 = vsel %vm2246_vm0, %v4923_v56, 0 }
 0x41b   : > { %12147 = vmatmul.mubr.msk.bf16.vlgmr.msra.gmra.mrb[0].mxu1 %vm2242_vm4, %v14729_v42  ;;  %v4920_v13 = vpop.permute.xlu1 %4919 }
 0x41c   : > { %4259 = vmatpush1.bf16.msra.mxu1 %v4207_v2  ;;  %4290 = vmatprep.mubr.bf16.mxu1 %v19089_v26  ;;  %v4910_v52 = vpop.permute.xlu0 %4909  ;;  %v4925_v2 = vsel %vm1129_vm9, %v4918_v61, %v4920_v13 }
 0x41d   : > { %13415 = vmatprep.subr.bf16.mxu1 %v14984_v17  ;;  %v4942_v15 = vsel %vm2246_vm0, %v4925_v2, 0 }
 0x41f   : > { %v4912_v18 = vpop.permute.xlu1 %4911 }
 0x420   : > { %v5094_v50 = vpop.permute.xlu0 %5093  ;;  %v4922_v47 = vsel %vm1129_vm9, %v4912_v18, %v4914_v4 }
 0x422   : > { %12145 = vmatmul.mubr.msk.bf16.vlgmr.msra.gmra.mrb[0].mxu0 %vm2242_vm4, %v14729_v42 }
 0x423   : > { %13410 = vmatpush3.bf16.msra.mxu0 %v4036_v41  ;;  %13411 = vmatprep.mubr.msk.bf16.mxu0 %vm14985_vm5, %v14984_v17  ;;  %v5096_v27 = vpop.permute.xlu1 %5095  ;;  %v4921_v41 = vsel %vm1129_vm9, %v4910_v52, %v4912_v18 }
 0x424   : > { %12152 = vmatprep.subr.msk.bf16.mxu0 %vm2246_vm0, %v4194_v38  ;;  %v5098_v44 = vpop.permute.xlu0 %5097 }
 0x425   : > { %v5104_v38 = vsel %vm1253_vm11, %v5096_v27, %v5098_v44 }
 0x427   : > { %12155 = vmatmul.mubr.msk.bf16.vlgmr.msra.gmra.mrb[0].mxu1 %vm2242_vm4, %v14730_v57  ;;  %v5090_v12 = vpop.permute.xlu1 %5089 }
 0x428   : > { %13416 = vmatpush3.bf16.msra.mxu1 %v4213_v63  ;;  %13417 = vmatprep.mubr.msk.bf16.mxu1 %vm14985_vm5, %v14984_v17  ;;  %v5092_v53 = vpop.permute.xlu0 %5091  ;;  %v5103_v63 = vsel %vm1253_vm11, %v5094_v50, %v5096_v27 }
 0x429   : > { %12162 = vmatprep.subr.msk.bf16.mxu1 %vm2246_vm0, %v4373_v59  ;;  %v5102_v45 = vsel %vm1253_vm11, %v5092_v53, %v5094_v50  ;;  %v5116_v59 = vsel %vm2246_vm0, %v5103_v63, 0 }
 0x42a   : > { %13412 = vmatmul.mubr.msk.bf16.vlgmr.msra.gmra.mrb[24].mxu0 %vm2242_vm4, %v14729_v42  ;;  %v4744_v42 = vsel %vm2246_vm0, %v17263_v20, 0 }
 0x42b   : > { %4216 = vmatpush1.bf16.msra.mxu0 %v4201_v23  ;;  %4247 = vmatprep.mubr.bf16.mxu0 %v19089_v26  ;;  %v5274_v10 = vpop.permute.xlu1 %5273  ;;  %v5101_v23 = vsel %vm1253_vm11, %v5090_v12, %v5092_v53  ;;  %v14737_v53 = vld [vmem:[%s18805_s3 + $0x90] sm:$0xff]  }
 0x42c   : > { %12160 = vmatprep.subr.msk.bf16.mxu0 %vm2246_vm0, %v4371_v8  ;;  %v5276_v60 = vpop.permute.xlu0 %5275  ;;  %v5110_v20 = vsel %vm2246_vm0, %v5101_v23, 0 }
 0x42f   : > { %13418 = vmatmul.mubr.msk.bf16.vlgmr.msra.gmra.mrb[24].mxu1 %vm2242_vm4, %v14730_v57  ;;  %v5278_v1 = vpop.permute.xlu1 %5277 }
 0x430   : > { %4436 = vmatpush1.bf16.msra.mxu1 %v4384_v14  ;;  %4467 = vmatprep.mubr.bf16.mxu1 %v19089_v26  ;;  %v5100_v48 = vpop.permute.xlu0 %5099  ;;  %v5284_v8 = vsel %vm1377_vm13, %v5276_v60, %v5278_v1  ;;  %v5283_v14 = vsel %vm1377_vm13, %v5274_v10, %v5276_v60 }
 0x431   : > { %12170 = vmatprep.subr.msk.bf16.mxu1 %vm2246_vm0, %v4550_v11  ;;  %v5296_v11 = vsel %vm2246_vm0, %v5283_v14, 0  ;;  %v5105_v6 = vsel %vm1253_vm11, %v5098_v44, %v5100_v48 }
 0x432   : > { %12153 = vmatmul.mubr.msk.bf16.vlgmr.msra.gmra.mrb[0].mxu0 %vm2242_vm4, %v14730_v57  ;;  %v4930_v57 = vsel %vm2246_vm0, %v4921_v41, 0 }
 0x433   : > { %4393 = vmatpush1.bf16.msra.mxu0 %v4378_v19  ;;  %4424 = vmatprep.mubr.bf16.mxu0 %v19089_v26  ;;  %v5280_v29 = vpop.permute.xlu1 %5279 }
 0x434   : > { %13421 = vmatprep.subr.bf16.mxu0 %v14984_v17  ;;  %v5270_v16 = vpop.permute.xlu0 %5269 }
 0x437   : > { %12163 = vmatmul.mubr.msk.bf16.vlgmr.msra.gmra.mrb[0].mxu1 %vm2242_vm4, %v14731_v39  ;;  %v5272_v58 = vpop.permute.xlu1 %5271 }
 0x438   : > { %4613 = vmatpush1.bf16.msra.mxu1 %v4561_v7  ;;  %4644 = vmatprep.mubr.bf16.mxu1 %v19089_v26  ;;  %v5454_v34 = vpop.permute.xlu0 %5453  ;;  %v5281_v21 = vsel %vm1377_vm13, %v5270_v16, %v5272_v58 }
 0x439   : > { %13427 = vmatprep.subr.bf16.mxu1 %v14984_v17 }
 0x43b   : > { %v5456_v19 = vpop.permute.xlu1 %5455 }
 0x43e   : > { %12161 = vmatmul.mubr.msk.bf16.vlgmr.msra.gmra.mrb[0].mxu0 %vm2242_vm4, %v14731_v39 }
 0x43f   : > { %13422 = vmatpush3.bf16.msra.mxu0 %v4390_v36  ;;  %13423 = vmatprep.mubr.msk.bf16.mxu0 %vm14985_vm5, %v14984_v17  ;;  %v5450_v4 = vpop.permute.xlu1 %5449  ;;  %v5122_v36 = vsel %vm2246_vm0, %v5105_v6, 0 }
 0x440   : > { %12168 = vmatprep.subr.msk.bf16.mxu0 %vm2246_vm0, %v4548_v46  ;;  %v5458_v46 = vpop.permute.xlu0 %5457 }
 0x441   : > { %v5464_v0 = vsel %vm3654_vm15, %v5456_v19, %v5458_v46 }
 0x443   : > { %12171 = vmatmul.mubr.msk.bf16.vlgmr.msra.gmra.mrb[0].mxu1 %vm2242_vm4, %v14732_v9 }
 0x444   : > { %13428 = vmatpush3.bf16.msra.mxu1 %v4567_v49  ;;  %13429 = vmatprep.mubr.msk.bf16.mxu1 %vm14985_vm5, %v14984_v17  ;;  %v5452_v27 = vpop.permute.xlu0 %5451 }
 0x445   : > { %12178 = vmatprep.subr.msk.bf16.mxu1 %vm2246_vm0, %v4727_v5  ;;  %v5285_v5 = vsel %vm1377_vm13, %v5278_v1, %v5280_v29  ;;  %v5462_v50 = vsel %vm3654_vm15, %v5452_v27, %v5454_v34  ;;  %v5461_v12 = vsel %vm3654_vm15, %v5450_v4, %v5452_v27 }
 0x446   : > { %13424 = vmatmul.mubr.msk.bf16.vlgmr.msra.gmra.mrb[28].mxu0 %vm2242_vm4, %v14731_v39 }
 0x447   : > { %4570 = vmatpush1.bf16.msra.mxu0 %v4555_v62  ;;  %4601 = vmatprep.mubr.bf16.mxu0 %v19089_v26 }
 0x448   : > { %12176 = vmatprep.subr.msk.bf16.mxu0 %vm2246_vm0, %v4725_v31  ;;  %v5302_v31 = vsel %vm2246_vm0, %v5285_v5, 0  ;;  %v5636_v44 = vpop.permute.xlu0 %5635 }
 0x44b   : > { %13430 = vmatmul.mubr.msk.bf16.vlgmr.msra.gmra.mrb[28].mxu1 %vm2242_vm4, %v14732_v9 }
 0x44c   : > { %4790 = vmatpush1.bf16.msra.mxu1 %v4738_v32  ;;  %4821 = vmatprep.mubr.bf16.mxu1 %v19089_v26  ;;  %v5634_v32 = vpop.permute.xlu1 %5633 }
 0x44d   : > { %12192 = vmatprep.subr.msk.bf16.mxu1 %vm2246_vm0, %v4924_v22  ;;  %v5290_v22 = vsel %vm2246_vm0, %v5281_v21, 0  ;;  %v5841_v21 = vsel %vm2246_vm0, %v17070_v55, 0 }
 0x44e   : > { %12169 = vmatmul.mubr.msk.bf16.vlgmr.msra.gmra.mrb[0].mxu0 %vm2242_vm4, %v14732_v9  ;;  %v5282_v9 = vsel %vm1377_vm13, %v5272_v58, %v5274_v10  ;;  %v5470_v10 = vsel %vm2246_vm0, %v5461_v12, 0  ;;  %vm6980_vm13 = vcmask 130048  }
 0x44f   : > { %4747 = vmatpush1.bf16.msra.mxu0 %v4732_v28  ;;  %4778 = vmatprep.mubr.bf16.mxu0 %v19089_v26  ;;  %v5463_v28 = vsel %vm3654_vm15, %v5454_v34, %v5456_v19 }
 0x450   : > { %13433 = vmatprep.subr.bf16.mxu0 %v14984_v17  ;;  %v5476_v56 = vsel %vm2246_vm0, %v5463_v28, 0 }
 0x453   : > { %12179 = vmatmul.mubr.msk.bf16.vlgmr.msra.gmra.mrb[0].mxu1 %vm2242_vm4, %v14733_v24 }
 0x454   : > { %4988 = vmatpush1.bf16.msra.mxu1 %v4936_v33  ;;  %5019 = vmatprep.mubr.bf16.mxu1 %v19089_v26 }
 0x455   : > { %13439 = vmatprep.subr.bf16.mxu1 %v14984_v17 }
 0x45a   : > { %12177 = vmatmul.mubr.msk.bf16.vlgmr.msra.gmra.mrb[0].mxu0 %vm2242_vm4, %v14733_v24 }
 0x45b   : > { %13434 = vmatpush3.bf16.msra.mxu0 %v4744_v42  ;;  %13435 = vmatprep.mubr.msk.bf16.mxu0 %vm14985_vm5, %v14984_v17  ;;  %v5643_v42 = vsel %vm3835_vm6, %v5634_v32, %v5636_v44 }
 0x45c   : > { %12190 = vmatprep.subr.msk.bf16.mxu0 %vm2246_vm0, %v4922_v47  ;;  %v5460_v47 = vpop.permute.xlu0 %5459  ;;  %v5656_v2 = vsel %vm2246_vm0, %v5643_v42, 0 }
 0x45d   : > { %v5465_v41 = vsel %vm3654_vm15, %v5458_v46, %v5460_v47  ;;  %v5829_v46 = vsel %vm2246_vm0, %v17079_v40, 0 }
 0x45e   : > { %v5482_v48 = vsel %vm2246_vm0, %v5465_v41, 0 }
 0x45f   : > { %12193 = vmatmul.mubr.msk.bf16.vlgmr.msra.gmra.mrb[0].mxu1 %vm2242_vm4, %v14734_v51 }
 0x460   : > { %13440 = vmatpush3.bf16.msra.mxu1 %v4942_v15  ;;  %13441 = vmatprep.mubr.msk.bf16.mxu1 %vm14985_vm5, %v14984_v17 }
 0x461   : > { %12200 = vmatprep.subr.msk.bf16.mxu1 %vm2246_vm0, %v5104_v38  ;;  %v5630_v38 = vpop.permute.xlu0 %5629 }
 0x462   : > { %13436 = vmatmul.mubr.msk.bf16.vlgmr.msra.gmra.mrb[32].mxu0 %vm2242_vm4, %v14733_v24  ;;  %v5638_v24 = vpop.permute.xlu1 %5637 }
 0x463   : > { %4945 = vmatpush1.bf16.msra.mxu0 %v4930_v57  ;;  %4976 = vmatprep.mubr.bf16.mxu0 %v19089_v26  ;;  %v5644_v33 = vsel %vm3835_vm6, %v5636_v44, %v5638_v24 }
 0x464   : > { %12198 = vmatprep.subr.msk.bf16.mxu0 %vm2246_vm0, %v5102_v45 }
 0x465   : > { %v5993_v14 = vpop.permute.xlu0 %5992 }
 0x467   : > { %13442 = vmatmul.mubr.msk.bf16.vlgmr.msra.gmra.mrb[32].mxu1 %vm2242_vm4, %v14734_v51 }
 0x468   : > { %5168 = vmatpush1.bf16.msra.mxu1 %v5116_v59  ;;  %5199 = vmatprep.mubr.bf16.mxu1 %v19089_v26 }
 0x469   : > { %12208 = vmatprep.subr.msk.bf16.mxu1 %vm2246_vm0, %v5284_v8 }
 0x46a   : > { %12191 = vmatmul.mubr.msk.bf16.vlgmr.msra.gmra.mrb[0].mxu0 %vm2242_vm4, %v14734_v51  ;;  %v5640_v51 = vpop.permute.xlu1 %5639 }
 0x46b   : > { %5125 = vmatpush1.bf16.msra.mxu0 %v5110_v20  ;;  %5156 = vmatprep.mubr.bf16.mxu0 %v19089_v26  ;;  %v14738_v20 = vld [vmem:[%s18805_s3 + $0x98] sm:$0xff]   ;;  %v5645_v16 = vsel %vm3835_vm6, %v5638_v24, %v5640_v51 }
 0x46c   : > { %13445 = vmatprep.subr.bf16.mxu0 %v14984_v17  ;;  %v5662_v34 = vsel %vm2246_vm0, %v5645_v16, 0 }
 0x46e   : > { %v5632_v45 = vpop.permute.xlu1 %5631 }
 0x46f   : > { %12201 = vmatmul.mubr.msk.bf16.vlgmr.msra.gmra.mrb[0].mxu1 %vm2242_vm4, %v14735_v25  ;;  %v5642_v23 = vsel %vm3835_vm6, %v5632_v45, %v5634_v32 }
 0x470   : > { %5348 = vmatpush1.bf16.msra.mxu1 %v5296_v11  ;;  %5379 = vmatprep.mubr.bf16.mxu1 %v19089_v26 }
 0x471   : > { %v2382_v39 = vpop.f32.mrb[4].mxu0  ;;  %13451 = vmatprep.subr.bf16.mxu1 %v14984_v17 }
 0x472   : > { %v13353_v3 = vpop.f32.mrb[5].mxu0  ;;  %v5995_v6 = vpop.permute.xlu1 %5994 }
 0x473   : > { %v2385_v7 = vpop.f32.mrb[6].mxu0 }
 0x474   : > { %v13354_v35 = vpop.f32.mrb[7].mxu0 }
 0x475   : > { %v5835_v35 = vsel %vm2246_vm0, %v17050_v54, 0  ;;  %v6000_v54 = vsel %vm567_vm1, %v5993_v14, %v5995_v6 }
 0x476   : > { %12199 = vmatmul.mubr.msk.bf16.vlgmr.msra.gmra.mrb[0].mxu0 %vm2242_vm4, %v14735_v25  ;;  %v2532_v13 = vpop.f32.mrb[4].mxu1 }
 0x477   : > { %13446 = vmatpush3.bf16.msra.mxu0 %v5122_v36  ;;  %v2533_v61 = vadd.f32 %v2532_v13, %v2382_v39  ;;  %v13359_v49 = vpop.f32.mrb[5].mxu1  ;;  %13447 = vmatprep.mubr.msk.bf16.mxu0 %vm14985_vm5, %v14984_v17  ;;  %v5641_v39 = vsel %vm3835_vm6, %v5630_v38, %v5632_v45 }
 0x478   : > { %12206 = vmatprep.subr.msk.bf16.mxu0 %vm2246_vm0, %v5282_v9  ;;  %v2535_v18 = vpop.f32.mrb[6].mxu1  ;;  %v5650_v3 = vsel %vm2246_vm0, %v5641_v39, 0  ;;  %v6012_v9 = vsel %vm2246_vm0, %v6000_v54, 0 }
 0x479   : > { %v2536_v62 = vadd.f32 %v2535_v18, %v2385_v7  ;;  %v13360_v52 = vpop.f32.mrb[7].mxu1  ;;  %v5997_v7 = vpop.permute.xlu0 %5996 }
 0x47a   : > { %v6001_v4 = vsel %vm567_vm1, %v5995_v6, %v5997_v7  ;;  %v6018_v55 = vsel %vm2246_vm0, %v5997_v7, 0 }
 0x47b   : > { %12209 = vmatmul.mubr.msk.bf16.vlgmr.msra.gmra.mrb[0].mxu1 %vm2242_vm4, %v14736_v30 }
 0x47c   : > { %13452 = vmatpush3.bf16.msra.mxu1 %v5302_v31  ;;  %13453 = vmatprep.mubr.msk.bf16.mxu1 %vm14985_vm5, %v14984_v17 }
 0x47d   : > { %12216 = vmatprep.subr.msk.bf16.mxu1 %vm2246_vm0, %v5464_v0  ;;  %v5991_v36 = vpop.permute.xlu0 %5990 }
 0x47e   : > { %13448 = vmatmul.mubr.msk.bf16.vlgmr.msra.gmra.mrb[36].mxu0 %vm2242_vm4, %v14735_v25  ;;  %v5999_v0 = vsel %vm567_vm1, %v5991_v36, %v5993_v14 }
 0x47f   : > { %5305 = vmatpush1.bf16.msra.mxu0 %v5290_v22  ;;  %5336 = vmatprep.mubr.bf16.mxu0 %v19089_v26 }
 0x480   : > { %12214 = vmatprep.subr.msk.bf16.mxu0 %vm2246_vm0, %v5462_v50  ;;  %v14740_v50 = vld [vmem:[%s18805_s3 + $0xa8] sm:$0xff]  }
 0x483   : > { %13454 = vmatmul.mubr.msk.bf16.vlgmr.msra.gmra.mrb[36].mxu1 %vm2242_vm4, %v14736_v30 }
 0x484   : > { %5528 = vmatpush1.bf16.msra.mxu1 %v5476_v56  ;;  %5559 = vmatprep.mubr.bf16.mxu1 %v19089_v26 }
 0x485   : > { %12224 = vmatprep.subr.msk.bf16.mxu1 %vm2246_vm0, %v5644_v33 }
 0x486   : > { %12207 = vmatmul.mubr.msk.bf16.vlgmr.msra.gmra.mrb[0].mxu0 %vm2242_vm4, %v14736_v30 }
 0x487   : > { %5485 = vmatpush1.bf16.msra.mxu0 %v5470_v10  ;;  %5516 = vmatprep.mubr.bf16.mxu0 %v19089_v26 }
 0x488   : > { %13457 = vmatprep.subr.bf16.mxu0 %v14984_v17 }
 0x48b   : > { %12217 = vmatmul.mubr.msk.bf16.vlgmr.msra.gmra.mrb[0].mxu1 %vm2242_vm4, %v14737_v53 }
 0x48c   : > { %5708 = vmatpush1.bf16.msra.mxu1 %v5656_v2  ;;  %5739 = vmatprep.mubr.bf16.mxu1 %v19089_v26 }
 0x48d   : > { %v2700_v1 = vpop.f32.mrb[8].mxu0  ;;  %13463 = vmatprep.subr.bf16.mxu1 %v14984_v17 }
 0x48e   : > { %v2711_v60 = vadd.f32 %v2700_v1, %v2533_v61  ;;  %v13365_v15 = vpop.f32.mrb[9].mxu0  ;;  %v6172_v61 = vpop.permute.xlu0 %6171 }
 0x48f   : > { %v2703_v57 = vpop.f32.mrb[10].mxu0 }
 0x490   : > { %v2716_v29 = vadd.f32 %v2703_v57, %v2536_v62  ;;  %v13366_v63 = vpop.f32.mrb[11].mxu0  ;;  %v14741_v57 = vld [vmem:[%s18805_s3 + $0xb0] sm:$0xff]  }
 0x492   : > { %12215 = vmatmul.mubr.msk.bf16.vlgmr.msra.gmra.mrb[0].mxu0 %vm2242_vm4, %v14737_v53  ;;  %v2878_v59 = vpop.f32.mrb[8].mxu1  ;;  %v6166_v31 = vpop.permute.xlu0 %6165 }
 0x493   : > { %13458 = vmatpush3.bf16.msra.mxu0 %v5482_v48  ;;  %v2889_v8 = vadd.f32 %v2878_v59, %v2711_v60  ;;  %v13371_v58 = vpop.f32.mrb[9].mxu1  ;;  %13459 = vmatprep.mubr.msk.bf16.mxu0 %vm14985_vm5, %v14984_v17 }
 0x494   : > { %12222 = vmatprep.subr.msk.bf16.mxu0 %vm2246_vm0, %v5642_v23  ;;  %v2881_v25 = vpop.f32.mrb[10].mxu1 }
 0x495   : > { %v2894_v11 = vadd.f32 %v2881_v25, %v2716_v29  ;;  %v13372_v19 = vpop.f32.mrb[11].mxu1 }
 0x496   : > { %v6347_v33 = vpop.permute.xlu0 %6346 }
 0x497   : > { %12225 = vmatmul.mubr.msk.bf16.vlgmr.msra.gmra.mrb[0].mxu1 %vm2242_vm4, %v14738_v20 }
 0x498   : > { %13464 = vmatpush3.bf16.msra.mxu1 %v5662_v34  ;;  %13465 = vmatprep.mubr.msk.bf16.mxu1 %vm14985_vm5, %v14984_v17 }
 0x499   : > { %12237 = vmatprep.subr.msk.bf16.mxu1 %vm2246_vm0, %v17060_v43  ;;  %v5989_v43 = vpop.permute.xlu1 %5988 }
 0x49a   : > { %13460 = vmatmul.mubr.msk.bf16.vlgmr.msra.gmra.mrb[40].mxu0 %vm2242_vm4, %v14737_v53  ;;  %v5998_v44 = vsel %vm567_vm1, %v5989_v43, %v5991_v36  ;;  %v6351_v2 = vpop.permute.xlu0 %6350 }
 0x49b   : > { %5665 = vmatpush1.bf16.msra.mxu0 %v5650_v3  ;;  %5696 = vmatprep.mubr.bf16.mxu0 %v19089_v26  ;;  %v6006_v53 = vsel %vm2246_vm0, %v5998_v44, 0  ;;  %v14742_v3 = vld [vmem:[%s18805_s3 + $0xb8] sm:$0xff]  }
 0x49c   : > { %12235 = vmatprep.subr.msk.bf16.mxu0 %vm2246_vm0, %v17081_v37  ;;  %v14739_v37 = vld [vmem:[%s18805_s3 + $0xa0] sm:$0xff]  }
 0x49d   : > { %v6170_v13 = vpop.permute.xlu1 %6169 }
 0x49e   : > { %v6177_v47 = vsel %vm681_vm3, %v6170_v13, %v6172_v61  ;;  %v6345_v58 = vpop.permute.xlu0 %6344 }
 0x49f   : > { %13466 = vmatmul.mubr.msk.bf16.vlgmr.msra.gmra.mrb[40].mxu1 %vm2242_vm4, %v14738_v20  ;;  %v6189_v1 = vsel %vm2246_vm0, %v6177_v47, 0  ;;  %v6353_v19 = vsel %vm2735_vm12, %v6345_v58, %v6347_v33 }
 0x4a0   : > { %5887 = vmatpush1.bf16.msra.mxu1 %v5835_v35  ;;  %5918 = vmatprep.mubr.bf16.mxu1 %v19089_v26 }
 0x4a1   : > { %12245 = vmatprep.subr.msk.bf16.mxu1 %vm2246_vm0, %v6001_v4  ;;  %v17453_v18 = vpop.permute.xlu1 %6173  ;;  %v6372_v4 = vsel %vm2246_vm0, %v6351_v2, 0 }
 0x4a2   : > { %12223 = vmatmul.mubr.msk.bf16.vlgmr.msra.gmra.mrb[0].mxu0 %vm2242_vm4, %v14738_v20  ;;  %v6178_v10 = vsel %vm681_vm3, %v6172_v61, %v17453_v18  ;;  %v6195_v25 = vsel %vm2246_vm0, %v17453_v18, 0  ;;  %v6526_v36 = vpop.permute.xlu0 %6525 }
 0x4a3   : > { %5844 = vmatpush1.bf16.msra.mxu0 %v5829_v46  ;;  %5875 = vmatprep.mubr.bf16.mxu0 %v19089_v26 }
 0x4a4   : > { %13469 = vmatprep.subr.bf16.mxu0 %v14984_v17 }
 0x4a5   : > { %v6168_v12 = vpop.permute.xlu1 %6167 }
 0x4a6   : > { %v6176_v42 = vsel %vm681_vm3, %v6168_v12, %v6170_v13  ;;  %v6175_v60 = vsel %vm681_vm3, %v6166_v31, %v6168_v12  ;;  %v6520_v61 = vpop.permute.xlu0 %6519  ;;  %vm6724_vm3 = vcmask 678912  }
 0x4a7   : > { %12238 = vmatmul.mubr.msk.bf16.vlgmr.msra.gmra.mrb[0].mxu1 %vm2242_vm4, %v14739_v37  ;;  %v6183_v41 = vsel %vm2246_vm0, %v6175_v60, 0 }
 0x4a8   : > { %6064 = vmatpush1.bf16.msra.mxu1 %v6012_v9  ;;  %6095 = vmatprep.mubr.bf16.mxu1 %v19089_v26 }
 0x4a9   : > { %v3056_v40 = vpop.f32.mrb[12].mxu0  ;;  %13475 = vmatprep.subr.bf16.mxu1 %v14984_v17  ;;  %v6349_v51 = vpop.permute.xlu1 %6348 }
 0x4aa   : > { %v3067_v49 = vadd.f32 %v3056_v40, %v2889_v8  ;;  %v13377_v30 = vpop.f32.mrb[13].mxu0  ;;  %v6355_v15 = vsel %vm2735_vm12, %v6349_v51, %v6351_v2  ;;  %v6354_v45 = vsel %vm2735_vm12, %v6347_v33, %v6349_v51 }
 0x4ab   : > { %v3059_v5 = vpop.f32.mrb[14].mxu0  ;;  %v6366_v29 = vsel %vm2246_vm0, %v6354_v45, 0 }
 0x4ac   : > { %v3072_v62 = vadd.f32 %v3059_v5, %v2894_v11  ;;  %v13378_v52 = vpop.f32.mrb[15].mxu0  ;;  %v14743_v5 = vld [vmem:[%s18805_s3 + $0xc0] sm:$0xff]  }
 0x4ad   : > { %v6343_v38 = vpop.permute.xlu1 %6342 }
 0x4ae   : > { %12236 = vmatmul.mubr.msk.bf16.vlgmr.msra.gmra.mrb[0].mxu0 %vm2242_vm4, %v14739_v37  ;;  %v3255_v32 = vpop.f32.mrb[12].mxu1  ;;  %v6352_v43 = vsel %vm2735_vm12, %v6343_v38, %v6345_v58 }
 0x4af   : > { %13470 = vmatpush3.bf16.msra.mxu0 %v5841_v21  ;;  %v3266_v27 = vadd.f32 %v3255_v32, %v3067_v49  ;;  %v13383_v22 = vpop.f32.mrb[13].mxu1  ;;  %13471 = vmatprep.mubr.msk.bf16.mxu0 %vm14985_vm5, %v14984_v17  ;;  %v6360_v54 = vsel %vm2246_vm0, %v6352_v43, 0 }
 0x4b0   : > { %12243 = vmatprep.subr.msk.bf16.mxu0 %vm2246_vm0, %v5999_v0  ;;  %v3258_v28 = vpop.f32.mrb[14].mxu1 }
 0x4b1   : > { %v3271_v24 = vadd.f32 %v3258_v28, %v3072_v62  ;;  %v13384_v56 = vpop.f32.mrb[15].mxu1  ;;  %v6524_v63 = vpop.permute.xlu1 %6523 }
 0x4b2   : > { %v6531_v9 = vsel %vm2913_vm14, %v6524_v63, %v6526_v36 }
 0x4b3   : > { %12246 = vmatmul.mubr.msk.bf16.vlgmr.msra.gmra.mrb[0].mxu1 %vm2242_vm4, %v14740_v50  ;;  %v6543_v40 = vsel %vm2246_vm0, %v6531_v9, 0 }
 0x4b4   : > { %13476 = vmatpush3.bf16.msra.mxu1 %v6018_v55  ;;  %13477 = vmatprep.mubr.msk.bf16.mxu1 %vm14985_vm5, %v14984_v17 }
 0x4b5   : > { %12253 = vmatprep.subr.msk.bf16.mxu1 %vm2246_vm0, %v6178_v10  ;;  %v6528_v14 = vpop.permute.xlu1 %6527 }
 0x4b6   : > { %13472 = vmatmul.mubr.msk.bf16.vlgmr.msra.gmra.mrb[44].mxu0 %vm2242_vm4, %v14739_v37  ;;  %v6532_v46 = vsel %vm2913_vm14, %v6526_v36, %v6528_v14  ;;  %v6549_v0 = vsel %vm2246_vm0, %v6528_v14, 0 }
 0x4b7   : > { %6021 = vmatpush1.bf16.msra.mxu0 %v6006_v53  ;;  %6052 = vmatprep.mubr.bf16.mxu0 %v19089_v26 }
 0x4b8   : > { %12251 = vmatprep.subr.msk.bf16.mxu0 %vm2246_vm0, %v6176_v42 }
 0x4b9   : > { %v6522_v37 = vpop.permute.xlu1 %6521 }
 0x4ba   : > { %v6530_v13 = vsel %vm2913_vm14, %v6522_v37, %v6524_v63  ;;  %v6529_v49 = vsel %vm2913_vm14, %v6520_v61, %v6522_v37 }
 0x4bb   : > { %13478 = vmatmul.mubr.msk.bf16.vlgmr.msra.gmra.mrb[44].mxu1 %vm2242_vm4, %v14740_v50  ;;  %v6537_v30 = vsel %vm2246_vm0, %v6529_v49, 0 }
 0x4bc   : > { %6241 = vmatpush1.bf16.msra.mxu1 %v6189_v1  ;;  %6272 = vmatprep.mubr.bf16.mxu1 %v19089_v26 }
 0x4bd   : > { %12261 = vmatprep.subr.msk.bf16.mxu1 %vm2246_vm0, %v6355_v15 }
 0x4be   : > { %12244 = vmatmul.mubr.msk.bf16.vlgmr.msra.gmra.mrb[0].mxu0 %vm2242_vm4, %v14740_v50 }
 0x4bf   : > { %6198 = vmatpush1.bf16.msra.mxu0 %v6183_v41  ;;  %6229 = vmatprep.mubr.bf16.mxu0 %v19089_v26 }
 0x4c0   : > { %13481 = vmatprep.subr.bf16.mxu0 %v14984_v17 }
 0x4c3   : > { %12254 = vmatmul.mubr.msk.bf16.vlgmr.msra.gmra.mrb[0].mxu1 %vm2242_vm4, %v14741_v57 }
 0x4c4   : > { %6418 = vmatpush1.bf16.msra.mxu1 %v6366_v29  ;;  %6449 = vmatprep.mubr.bf16.mxu1 %v19089_v26 }
 0x4c5   : > { %v3436_v48 = vpop.f32.mrb[16].mxu0  ;;  %13487 = vmatprep.subr.bf16.mxu1 %v14984_v17 }
 0x4c6   : > { %v3447_v59 = vadd.f32 %v3436_v48, %v3266_v27  ;;  %v13389_v23 = vpop.f32.mrb[17].mxu0 }
 0x4c7   : > { %v3439_v8 = vpop.f32.mrb[18].mxu0 }
 0x4c8   : > { %v3452_v20 = vadd.f32 %v3439_v8, %v3271_v24  ;;  %v13390_v16 = vpop.f32.mrb[19].mxu0 }
 0x4ca   : > { %12252 = vmatmul.mubr.msk.bf16.vlgmr.msra.gmra.mrb[0].mxu0 %vm2242_vm4, %v14741_v57  ;;  %v3617_v11 = vpop.f32.mrb[16].mxu1 }
 0x4cb   : > { %13482 = vmatpush3.bf16.msra.mxu0 %v6195_v25  ;;  %v3628_v34 = vadd.f32 %v3617_v11, %v3447_v59  ;;  %v13395_v39 = vpop.f32.mrb[17].mxu1  ;;  %13483 = vmatprep.mubr.msk.bf16.mxu0 %vm14985_vm5, %v14984_v17 }
 0x4cc   : > { %12259 = vmatprep.subr.msk.bf16.mxu0 %vm2246_vm0, %v6353_v19  ;;  %v3620_v6 = vpop.f32.mrb[18].mxu1 }
 0x4cd   : > { %v3633_v7 = vadd.f32 %v3620_v6, %v3452_v20  ;;  %v13396_v35 = vpop.f32.mrb[19].mxu1 }
 0x4cf   : > { %12262 = vmatmul.mubr.msk.bf16.vlgmr.msra.gmra.mrb[0].mxu1 %vm2242_vm4, %v14742_v3 }
 0x4d0   : > { %13488 = vmatpush3.bf16.msra.mxu1 %v6372_v4  ;;  %13489 = vmatprep.mubr.msk.bf16.mxu1 %vm14985_vm5, %v14984_v17 }
 0x4d1   : > { %12269 = vmatprep.subr.msk.bf16.mxu1 %vm2246_vm0, %v6532_v46 }
 0x4d2   : > { %13484 = vmatmul.mubr.msk.bf16.vlgmr.msra.gmra.mrb[48].mxu0 %vm2242_vm4, %v14741_v57 }
 0x4d3   : > { %6375 = vmatpush1.bf16.msra.mxu0 %v6360_v54  ;;  %6406 = vmatprep.mubr.bf16.mxu0 %v19089_v26 }
 0x4d4   : > { %12267 = vmatprep.subr.msk.bf16.mxu0 %vm2246_vm0, %v6530_v13 }
 0x4d7   : > { %13490 = vmatmul.mubr.msk.bf16.vlgmr.msra.gmra.mrb[48].mxu1 %vm2242_vm4, %v14742_v3 }
 0x4d8   : > { %6595 = vmatpush1.bf16.msra.mxu1 %v6543_v40  ;;  %6626 = vmatprep.mubr.bf16.mxu1 %v19089_v26 }
 0x4da   : > { %12260 = vmatmul.mubr.msk.bf16.vlgmr.msra.gmra.mrb[0].mxu0 %vm2242_vm4, %v14742_v3 }
 0x4db   : > { %6552 = vmatpush1.bf16.msra.mxu0 %v6537_v30  ;;  %6583 = vmatprep.mubr.bf16.mxu0 %v19089_v26 }
 0x4dc   : > { %13493 = vmatprep.subr.bf16.mxu0 %v14984_v17 }
 0x4df   : > { %12270 = vmatmul.mubr.msk.bf16.vlgmr.msra.gmra.mrb[0].mxu1 %vm2242_vm4, %v14743_v5 }
 0x4e1   : > { %v3798_v18 = vpop.f32.mrb[20].mxu0 }
 0x4e2   : > { %v3809_v62 = vadd.f32 %v3798_v18, %v3628_v34  ;;  %v13401_v52 = vpop.f32.mrb[21].mxu0 }
 0x4e3   : > { %v3801_v31 = vpop.f32.mrb[22].mxu0 }
 0x4e4   : > { %v3814_v21 = vadd.f32 %v3801_v31, %v3633_v7  ;;  %v13402_v32 = vpop.f32.mrb[23].mxu0 }
 0x4e6   : > { %12268 = vmatmul.mubr.msk.bf16.vlgmr.msra.gmra.mrb[0].mxu0 %vm2242_vm4, %v14743_v5  ;;  %v3979_v27 = vpop.f32.mrb[20].mxu1 }
 0x4e7   : > { %13494 = vmatpush3.bf16.msra.mxu0 %v6549_v0  ;;  %v3990_v22 = vadd.f32 %v3979_v27, %v3809_v62  ;;  %v13407_v50 = vpop.f32.mrb[21].mxu1  ;;  %13495 = vmatprep.mubr.msk.bf16.mxu0 %vm14985_vm5, %v14984_v17 }
 0x4e8   : > { %v3982_v26 = vpop.f32.mrb[22].mxu1 }
 0x4e9   : > { %v3995_v28 = vadd.f32 %v3982_v26, %v3814_v21  ;;  %v13408_v24 = vpop.f32.mrb[23].mxu1 }
 0x4ee   : > { %13496 = vmatmul.mubr.msk.bf16.vlgmr.msra.gmra.mrb[52].mxu0 %vm2242_vm4, %v14743_v5 }
 0x4fd   : > { %v4158_v56 = vpop.f32.mrb[24].mxu0 }
 0x4fe   : > { %v4169_v12 = vadd.f32 %v4158_v56, %v3990_v22  ;;  %v13413_v55 = vpop.f32.mrb[25].mxu0 }
 0x4ff   : > { %v4161_v44 = vpop.f32.mrb[26].mxu0 }
 0x500   : > { %v4174_v33 = vadd.f32 %v4161_v44, %v3995_v28  ;;  %v13414_v10 = vpop.f32.mrb[27].mxu0 }
 0x502   : > { %v4335_v53 = vpop.f32.mrb[24].mxu1 }
 0x503   : > { %v4346_v42 = vadd.f32 %v4335_v53, %v4169_v12  ;;  %v13419_v47 = vpop.f32.mrb[25].mxu1 }
 0x504   : > { %v4338_v51 = vpop.f32.mrb[26].mxu1 }
 0x505   : > { %v4351_v2 = vadd.f32 %v4338_v51, %v4174_v33  ;;  %v13420_v1 = vpop.f32.mrb[27].mxu1 }
 0x519   : > { %v4512_v60 = vpop.f32.mrb[28].mxu0 }
 0x51a   : > { %v4523_v15 = vadd.f32 %v4512_v60, %v4346_v42  ;;  %v13425_v41 = vpop.f32.mrb[29].mxu0 }
 0x51b   : > { %v4515_v38 = vpop.f32.mrb[30].mxu0 }
 0x51c   : > { %v4528_v57 = vadd.f32 %v4515_v38, %v4351_v2  ;;  %v13426_v45 = vpop.f32.mrb[31].mxu0 }
 0x51e   : > { %v4689_v29 = vpop.f32.mrb[28].mxu1 }
 0x51f   : > { %v4700_v63 = vadd.f32 %v4689_v29, %v4523_v15  ;;  %v13431_v48 = vpop.f32.mrb[29].mxu1 }
 0x520   : > { %v4692_v59 = vpop.f32.mrb[30].mxu1 }
 0x521   : > { %v4705_v23 = vadd.f32 %v4692_v59, %v4528_v57  ;;  %v13432_v8 = vpop.f32.mrb[31].mxu1  ;;  %v6693_v59 = vpop.permute.xlu0 %6692 }
 0x535   : > { %v4866_v58 = vpop.f32.mrb[32].mxu0 }
 0x536   : > { %v4877_v20 = vadd.f32 %v4866_v58, %v4700_v63  ;;  %v13437_v16 = vpop.f32.mrb[33].mxu0 }
 0x537   : > { %v4869_v25 = vpop.f32.mrb[34].mxu0 }
 0x538   : > { %v4882_v14 = vadd.f32 %v4869_v25, %v4705_v23  ;;  %v13438_v11 = vpop.f32.mrb[35].mxu0 }
 0x53a   : > { %v5064_v19 = vpop.f32.mrb[32].mxu1 }
 0x53b   : > { %v5075_v34 = vadd.f32 %v5064_v19, %v4877_v20  ;;  %v13443_v39 = vpop.f32.mrb[33].mxu1  ;;  %v6698_v20 = vpop.permute.xlu1 %6697 }
 0x53c   : > { %v5067_v3 = vpop.f32.mrb[34].mxu1 }
 0x53d   : > { %v5080_v6 = vadd.f32 %v5067_v3, %v4882_v14  ;;  %v13444_v7 = vpop.f32.mrb[35].mxu1 }
 0x551   : > { %v5244_v35 = vpop.f32.mrb[36].mxu0 }
 0x552   : > { %v5255_v4 = vadd.f32 %v5244_v35, %v5075_v34  ;;  %v13449_v43 = vpop.f32.mrb[37].mxu0 }
 0x553   : > { %v5247_v36 = vpop.f32.mrb[38].mxu0 }
 0x554   : > { %v5260_v46 = vadd.f32 %v5247_v36, %v5080_v6  ;;  %v13450_v37 = vpop.f32.mrb[39].mxu0 }
 0x556   : > { %v5424_v54 = vpop.f32.mrb[36].mxu1 }
 0x557   : > { %v5435_v13 = vadd.f32 %v5424_v54, %v5255_v4  ;;  %v13455_v9 = vpop.f32.mrb[37].mxu1 }
 0x558   : > { %v5427_v61 = vpop.f32.mrb[38].mxu1 }
 0x559   : > { %v5440_v40 = vadd.f32 %v5427_v61, %v5260_v46  ;;  %v13456_v49 = vpop.f32.mrb[39].mxu1 }
 0x56d   : > { %v5604_v30 = vpop.f32.mrb[40].mxu0 }
 0x56e   : > { %v5615_v5 = vadd.f32 %v5604_v30, %v5435_v13  ;;  %v13461_v18 = vpop.f32.mrb[41].mxu0 }
 0x56f   : > { %v5607_v62 = vpop.f32.mrb[42].mxu0 }
 0x570   : > { %v5620_v52 = vadd.f32 %v5607_v62, %v5440_v40  ;;  %v13462_v31 = vpop.f32.mrb[43].mxu0 }
 0x572   : > { %v5784_v21 = vpop.f32.mrb[40].mxu1 }
 0x573   : > { %v5795_v32 = vadd.f32 %v5784_v21, %v5615_v5  ;;  %v13467_v0 = vpop.f32.mrb[41].mxu1 }
 0x574   : > { %v5787_v27 = vpop.f32.mrb[42].mxu1 }
 0x575   : > { %v5800_v22 = vadd.f32 %v5787_v27, %v5620_v52  ;;  %v13468_v50 = vpop.f32.mrb[43].mxu1 }
 0x589   : > { %v5963_v26 = vpop.f32.mrb[44].mxu0 }
 0x58a   : > { %v5974_v28 = vadd.f32 %v5963_v26, %v5795_v32  ;;  %v13473_v24 = vpop.f32.mrb[45].mxu0 }
 0x58b   : > { %v5966_v56 = vpop.f32.mrb[46].mxu0 }
 0x58c   : > { %v5979_v12 = vadd.f32 %v5966_v56, %v5800_v22  ;;  %v13474_v55 = vpop.f32.mrb[47].mxu0 }
 0x58e   : > { %v6140_v44 = vpop.f32.mrb[44].mxu1 }
 0x58f   : > { %v6151_v33 = vadd.f32 %v6140_v44, %v5974_v28  ;;  %v13479_v10 = vpop.f32.mrb[45].mxu1 }
 0x590   : > { %v6143_v53 = vpop.f32.mrb[46].mxu1 }
 0x591   : > { %v6156_v42 = vadd.f32 %v6143_v53, %v5979_v12  ;;  %v13480_v47 = vpop.f32.mrb[47].mxu1 }
 0x592   : > { %v14744_v47 = vld [vmem:[%s18807_s5 + $0x2d0] sm:$0xff]  }
 0x593   : > { %13717 = vmatprep.mubr.msk.bf16.mxu1 %vm6980_vm13, %v14744_v47 }
 0x5a5   : > { %v6317_v51 = vpop.f32.mrb[48].mxu0 }
 0x5a6   : > { %v6328_v2 = vadd.f32 %v6317_v51, %v6151_v33  ;;  %v13485_v1 = vpop.f32.mrb[49].mxu0 }
 0x5a7   : > { %v6320_v60 = vpop.f32.mrb[50].mxu0 }
 0x5a8   : > { %v6333_v15 = vadd.f32 %v6320_v60, %v6156_v42  ;;  %v13486_v41 = vpop.f32.mrb[51].mxu0 }
 0x5aa   : > { %v6494_v38 = vpop.f32.mrb[48].mxu1 }
 0x5ab   : > { %v6505_v57 = vadd.f32 %v6494_v38, %v6328_v2  ;;  %v13491_v45 = vpop.f32.mrb[49].mxu1 }
 0x5ac   : > { %v6497_v29 = vpop.f32.mrb[50].mxu1 }
 0x5ad   : > { %v6510_v63 = vadd.f32 %v6497_v29, %v6333_v15  ;;  %v13492_v48 = vpop.f32.mrb[51].mxu1 }
 0x5b2   : > { %v6628_v23 = vpop.f32.mrb[0].mxu1 }
 0x5b3   : > { %v17537_v8 = vadd.f32 %v6693_v59, %v6628_v23  ;;  %v6630_v58 = vpop.f32.mrb[1].mxu1 }
 0x5b4   : > { %v17539_v16 = vadd.f32 %v6693_v59, %v6630_v58  ;;  %v6632_v25 = vpop.f32.mrb[2].mxu1 }
 0x5b5   : > { %v6712_v14 = vmax.f32 %v17537_v8, 0.0  ;;  %v17542_v11 = vadd.f32 %v6698_v20, %v6632_v25  ;;  %v6634_v19 = vpop.f32.mrb[3].mxu1 }
 0x5b6   : > { %v6713_v34 = vmax.f32 %v17539_v16, 0.0  ;;  %v17545_v39 = vadd.f32 %v6698_v20, %v6634_v19  ;;  %v14756_v16 = vld [vmem:[%s18807_s5 + $0x5c] sm:$0xff]  }
 0x5b7   : > { %v6717_v3 = vmax.f32 %v17542_v11, 0.0 }
 0x5b8   : > { %v6718_v6 = vmax.f32 %v17545_v39, 0.0  ;;  %v14617_v7 = vpack.i.bf16 %v6713_v34, %v6712_v14 }
 0x5b9   : > { %v6585_v35 = vpop.f32.mrb[0].mxu0 }
 0x5ba   : > { %v17553_v4 = vadd.f32 %v6693_v59, %v6585_v35  ;;  %v6587_v43 = vpop.f32.mrb[1].mxu0  ;;  %14618 = vrot.lane.b32.xlu0 %v14617_v7, %s14962_s16  ;;  %v14647_v36 = vpack.i.bf16 %v6718_v6, %v6717_v3 }
 0x5bb   : > { %v17560_v46 = vadd.f32 %v6693_v59, %v6587_v43  ;;  %v6589_v37 = vpop.f32.mrb[2].mxu0 }
 0x5bc   : > { %v6710_v54 = vmax.f32 %v17553_v4, 0.0  ;;  %v17563_v13 = vadd.f32 %v6698_v20, %v6589_v37  ;;  %v6591_v9 = vpop.f32.mrb[3].mxu0  ;;  %14648 = vrot.lane.b32.xlu1 %v14647_v36, %s14962_s16 }
 0x5bd   : > { %v6711_v61 = vmax.f32 %v17560_v46, 0.0  ;;  %v17567_v40 = vadd.f32 %v6698_v20, %v6591_v9 }
 0x5be   : > { %v6715_v49 = vmax.f32 %v17563_v13, 0.0  ;;  %14623 = vrot.lane.b32.xlu0 %v14617_v7, %s14970_s30 }
 0x5bf   : > { %v6716_v30 = vmax.f32 %v17567_v40, 0.0  ;;  %v14632_v32 = vpack.i.bf16 %v6711_v61, %v6710_v54 }
 0x5c0   : > { %14653 = vrot.lane.b32.xlu1 %v14647_v36, %s14970_s30 }
 0x5c1   : > { %v6671_v5 = vpop.f32.mrb[52].mxu0  ;;  %v14662_v50 = vpack.i.bf16 %v6716_v30, %v6715_v49 }
 0x5c2   : > { %v6682_v18 = vadd.f32 %v6671_v5, %v6505_v57  ;;  %v13497_v62 = vpop.f32.mrb[53].mxu0  ;;  %14628 = vrot.lane.b32.xlu0 %v14617_v7, %s14972_s13 }
 0x5c3   : > { %v6674_v52 = vpop.f32.mrb[54].mxu0 }
 0x5c4   : > { %v6704_v31 = vadd.f32 %v6693_v59, %v6682_v18  ;;  %v6687_v21 = vadd.f32 %v6674_v52, %v6510_v63  ;;  %14658 = vrot.lane.b32.xlu1 %v14647_v36, %s14972_s13  ;;  %v13498_v0 = vpop.f32.mrb[55].mxu0 }
 0x5c6   : > { %v6714_v27 = vmax.f32 %v6704_v31, 0.0  ;;  %v6709_v22 = vadd.f32 %v6698_v20, %v6687_v21  ;;  %14633 = vrot.lane.b32.xlu0 %v14632_v32, %s14962_s16 }
 0x5c8   : > { %6725 = vst.msk [vmem:[#allocation4 + $0x20] sm:$0xff] %vm6724_vm3, %v6714_v27  ;;  %v6719_v26 = vmax.f32 %v6709_v22, 0.0  ;;  %14663 = vrot.lane.b32.xlu1 %v14662_v50, %s14962_s16 }
 0x5ca   : > { %6730 = vst.msk [vmem:[#allocation4 + $0x48] sm:$0xff] %vm6724_vm3, %v6719_v26  ;;  %14638 = vrot.lane.b32.xlu0 %v14632_v32, %s14970_s30  ;;  %v14748_v26 = vld [vmem:[%s18807_s5 + $0x3c] sm:$0xff]  }
 0x5cb   : > { %13501 = vmatprep.mubr.msk.bf16.mxu0 %vm6980_vm13, %v14748_v26 }
 0x5cc   : > { %14668 = vrot.lane.b32.xlu1 %v14662_v50, %s14970_s30 }
 0x5ce   : > { %14643 = vrot.lane.b32.xlu0 %v14632_v32, %s14972_s13 }
 0x5d0   : > { %14673 = vrot.lane.b32.xlu1 %v14662_v50, %s14972_s13  ;;  %v17649_v50 = vld [vmem:[#allocation4 + $0x20] sm:$0xff] }
 0x5d1   : > { %v17641_v62 = vld [vmem:[#allocation4 + $0x48] sm:$0xff] }
 0x62c   : > { %v17589_v28 = vpop.permute.xlu0 %14618 }
 0x62d   : > { %v14621_v56 = vunpack.i.h.bf16 %v17589_v28  ;;  %v14620_v12 = vunpack.i.l.bf16 %v17589_v28 }
 0x62e   : > { %v17591_v24 = vpop.permute.xlu1 %14648 }
 0x62f   : > { %v14651_v55 = vunpack.i.h.bf16 %v17591_v24  ;;  %v14650_v44 = vunpack.i.l.bf16 %v17591_v24  ;;  %v6773_v51 = vsel %vm567_vm1, %v14620_v12, %v14621_v56 }
 0x630   : > { %v17597_v33 = vpop.permute.xlu0 %14623  ;;  %v6791_v29 = vmax.f32 %v6712_v14, %v6773_v51 }
 0x631   : > { %v14626_v10 = vunpack.i.h.bf16 %v17597_v33  ;;  %v14625_v53 = vunpack.i.l.bf16 %v17597_v33  ;;  %v6777_v2 = vsel %vm567_vm1, %v14650_v44, %v14651_v55 }
 0x632   : > { %v17601_v42 = vpop.permute.xlu1 %14653  ;;  %v6796_v63 = vmax.f32 %v6717_v3, %v6777_v2  ;;  %v14682_v2 = vpack.i.bf16 %v17641_v62, %v17649_v50 }
 0x633   : > { %v14656_v1 = vunpack.i.h.bf16 %v17601_v42  ;;  %v14655_v60 = vunpack.i.l.bf16 %v17601_v42  ;;  %v6821_v41 = vsel %vm1129_vm9, %v14625_v53, %v14626_v10  ;;  %v14753_v42 = vld [vmem:[%s18807_s5 + $0x54] sm:$0xff]  }
 0x634   : > { %v17614_v15 = vpop.permute.xlu0 %14628  ;;  %v6839_v20 = vmax.f32 %v6791_v29, %v6821_v41 }
 0x635   : > { %v6825_v38 = vsel %vm1129_vm9, %v14655_v60, %v14656_v1  ;;  %v14631_v57 = vunpack.i.h.bf16 %v17614_v15  ;;  %v14630_v45 = vunpack.i.l.bf16 %v17614_v15  ;;  %v14755_v15 = vld [vmem:[%s18807_s5 + $0x308] ss:$0 sps:$4 sm:$0xff]  }
 0x636   : > { %v17629_v48 = vpop.permute.xlu1 %14658  ;;  %v6844_v25 = vmax.f32 %v6796_v63, %v6825_v38 }
 0x637   : > { %v6869_v59 = vsel %vm1253_vm11, %v14630_v45, %v14631_v57  ;;  %v14661_v23 = vunpack.i.h.bf16 %v17629_v48  ;;  %v14660_v58 = vunpack.i.l.bf16 %v17629_v48  ;;  %v14757_v48 = vld [vmem:[%s18807_s5 + $0x64] sm:$0xff]  }
 0x638   : > { %v14634_v19 = vpop.permute.xlu0 %14633  ;;  %v6887_v14 = vmax.f32 %v6839_v20, %v6869_v59 }
 0x639   : > { %v6873_v8 = vsel %vm1253_vm11, %v14660_v58, %v14661_v23  ;;  %v14636_v3 = vunpack.i.h.bf16 %v14634_v19  ;;  %v14635_v7 = vunpack.i.l.bf16 %v14634_v19 }
 0x63a   : > { %v6892_v11 = vmax.f32 %v6844_v25, %v6873_v8  ;;  %v14664_v35 = vpop.permute.xlu1 %14663 }
 0x63b   : > { %v14666_v43 = vunpack.i.h.bf16 %v14664_v35  ;;  %v14665_v36 = vunpack.i.l.bf16 %v14664_v35  ;;  %v6771_v52 = vsel %vm567_vm1, %v14635_v7, %v14636_v3  ;;  %v6772_v31 = vsel %vm567_vm1, %v14636_v3, %v14620_v12 }
 0x63c   : > { %v17639_v37 = vpack.c.bf16 %v6892_v11, %v6887_v14  ;;  %v14639_v9 = vpop.permute.xlu0 %14638  ;;  %v6789_v63 = vmax.f32 %v6710_v54, %v6771_v52  ;;  %v6790_v59 = vmax.f32 %v6711_v61, %v6772_v31 }
 0x63d   : > { %v14641_v5 = vunpack.i.h.bf16 %v14639_v9  ;;  %v14640_v18 = vunpack.i.l.bf16 %v14639_v9  ;;  %v6775_v32 = vsel %vm567_vm1, %v14665_v36, %v14666_v43  ;;  %v6776_v0 = vsel %vm567_vm1, %v14666_v43, %v14650_v44  ;;  %v14746_v43 = vld [vmem:[%s18807_s5 + $0x2e0] sm:$0xff]  }
 0x63e   : > { %v14669_v21 = vpop.permute.xlu1 %14668  ;;  %9231 = vrot.lane.b32.xlu0 %v17639_v37, %s14981_s23  ;;  %v6795_v20 = vmax.f32 %v6716_v30, %v6776_v0 }
 0x63f   : > { %v14671_v27 = vunpack.i.h.bf16 %v14669_v21  ;;  %v14670_v22 = vunpack.i.l.bf16 %v14669_v21  ;;  %v6819_v47 = vsel %vm1129_vm9, %v14640_v18, %v14641_v5  ;;  %v6820_v12 = vsel %vm1129_vm9, %v14641_v5, %v14625_v53  ;;  %v14747_v5 = vld [vmem:[%s18807_s5 + $0x2e8] sm:$0xff]   ;;  %v14750_v18 = vld [vmem:[%s18807_s5 + $0x2f0] sm:$0xff]  }
 0x640   : > { %v14644_v51 = vpop.permute.xlu0 %14643  ;;  %v6794_v53 = vmax.f32 %v6715_v49, %v6775_v32  ;;  %v6837_v8 = vmax.f32 %v6789_v63, %v6819_v47  ;;  %v6838_v46 = vmax.f32 %v6790_v59, %v6820_v12  ;;  %v14749_v21 = vld [vmem:[%s18807_s5 + $0x44] sm:$0xff]   ;;  %v14752_v32 = vld [vmem:[%s18807_s5 + $0x4c] sm:$0xff]   ;;  %v14751_v12 = vld [vmem:[%s18807_s5 + $0x2f8] sm:$0xff]  }
 0x641   : > { %v6823_v41 = vsel %vm1129_vm9, %v14670_v22, %v14671_v27  ;;  %v6824_v44 = vsel %vm1129_vm9, %v14671_v27, %v14655_v60  ;;  %v14646_v38 = vunpack.i.h.bf16 %v14644_v51  ;;  %v14645_v29 = vunpack.i.l.bf16 %v14644_v51  ;;  %v14754_v51 = vld [vmem:[%s18807_s5 + $0x300] sm:$0xff]  }
 0x642   : > { %v14674_v25 = vpop.permute.xlu1 %14673  ;;  %9423 = vrot.lane.b32.xlu0 %v17639_v37, %s14986_s15  ;;  %v6842_v61 = vmax.f32 %v6794_v53, %v6823_v41  ;;  %v6843_v14 = vmax.f32 %v6795_v20, %v6824_v44 }
 0x643   : > { %v6867_v60 = vsel %vm1253_vm11, %v14645_v29, %v14646_v38  ;;  %v6868_v19 = vsel %vm1253_vm11, %v14646_v38, %v14630_v45  ;;  %v14676_v4 = vunpack.i.h.bf16 %v14674_v25  ;;  %v14675_v54 = vunpack.i.l.bf16 %v14674_v25 }
 0x644   : > { %v6885_v49 = vmax.f32 %v6837_v8, %v6867_v60  ;;  %v6886_v30 = vmax.f32 %v6838_v46, %v6868_v19  ;;  %v14761_v8 = vld [vmem:[%s18807_s5 + $0x74] ss:$0 sps:$4 sm:$0xff]   ;;  %v14764_v46 = vld [vmem:[%s18807_s5] sm:$0xff]  }
 0x645   : > { %v6871_v13 = vsel %vm1253_vm11, %v14675_v54, %v14676_v4  ;;  %v6872_v40 = vsel %vm1253_vm11, %v14676_v4, %v14660_v58  ;;  %v14745_v58 = vld [vmem:[%s18807_s5 + $0x2d8] sm:$0xff]  }
 0x646   : > { %v6890_v11 = vmax.f32 %v6842_v61, %v6871_v13  ;;  %v6891_v3 = vmax.f32 %v6843_v14, %v6872_v40  ;;  %14683 = vrot.lane.b32.xlu0 %v14682_v2, %s14970_s30  ;;  %v14759_v4 = vld [vmem:[%s18807_s5 + $0x314] sm:$0xff]   ;;  %v14762_v54 = vld [vmem:[%s18807_s5 + $0x31c] sm:$0xff]   ;;  %v14763_v61 = vld [vmem:[%s18807_s5 + $0x324] sm:$0xff]  }
 0x647   : > { %v14766_v14 = vld [vmem:[%s18807_s5 + $0x32c] sm:$0xff]  }
 0x648   : > { %v6895_v7 = vpack.c.bf16 %v6890_v11, %v6885_v49  ;;  %v17676_v35 = vpack.c.bf16 %v6891_v3, %v6886_v30  ;;  %v14765_v40 = vld [vmem:[%s18807_s5 + $0x8] sm:$0xff]   ;;  %v14768_v49 = vld [vmem:[%s18807_s5 + $0x10] sm:$0xff]   ;;  %v14770_v3 = vld [vmem:[%s18807_s5 + $0x33c] sm:$0xff]  }
 0x649   : > { %v14767_v30 = vld [vmem:[%s18807_s5 + $0x334] sm:$0xff]  }
 0x64a   : > { %6977 = vrot.lane.b32.xlu1 %v6895_v7, %s14964_s24  ;;  %9615 = vrot.lane.b32.xlu0 %v17639_v37, %s14987_s27 }
 0x64e   : > { %14678 = vrot.lane.b32.xlu1 %v14682_v2, %s14962_s16  ;;  %7505 = vrot.lane.b32.xlu0 %v6895_v7, %s14986_s15 }
 0x652   : > { %14688 = vrot.lane.b32.xlu1 %v14682_v2, %s14972_s13  ;;  %7697 = vrot.lane.b32.xlu0 %v6895_v7, %s14987_s27 }
 0x656   : > { %7313 = vrot.lane.b32.xlu1 %v6895_v7, %s14981_s23 }
 0x6b0   : > { %v9232_v45 = vpop.permute.xlu0 %9231 }
 0x6b1   : > { %13715 = vmatprep.subr.bf16.mxu1 %v9232_v45 }
 0x6b2   : > { %13716 = vmatpush3.bf16.msra.mxu1 %v9232_v45  ;;  %v14772_v45 = vld [vmem:[%s18807_s5 + $0x20] sm:$0xff]  }
 0x6b4   : > { %v9424_v36 = vpop.permute.xlu0 %9423 }
 0x6b5   : > { %13718 = vmatmul.mubr.msk.bf16.vlgmr.msra.gmra.mrb[52].mxu1 %vm6980_vm13, %v14745_v58  ;;  %13733 = vmatprep.subr.bf16.mxu1 %v9424_v36  ;;  %v14771_v58 = vld [vmem:[%s18807_s5 + $0x344] ss:$0 sps:$4 sm:$0xff]  }
 0x6b6   : > { %13734 = vmatpush3.bf16.msra.mxu1 %v9424_v36  ;;  %13721 = vmatprep.mubr.msk.bf16.mxu1 %vm6980_vm13, %v14746_v43  ;;  %v14774_v43 = vld [vmem:[%s18807_s5 + $0x348] sm:$0xff]  }
 0x6b7   : > { %v14773_v36 = vld [vmem:[%s18807_s5 + $0x28] sm:$0xff]  }
 0x6b8   : > { %v14684_v9 = vpop.permute.xlu0 %14683 }
 0x6b9   : > { %v14686_v0 = vunpack.i.h.bf16 %v14684_v9  ;;  %v14685_v27 = vunpack.i.l.bf16 %v14684_v9  ;;  %v14776_v9 = vld [vmem:[%s18807_s5 + $0x30] sm:$0xff]  }
 0x6bb   : > { %v6826_v29 = vsel %vm1129_vm9, %v14656_v1, %v14686_v0  ;;  %v6822_v63 = vsel %vm1129_vm9, %v14626_v10, %v14685_v27  ;;  %vm11793_vm9 = vcmask 1043456  }
 0x6bc   : > { %v6978_v52 = vpop.permute.xlu1 %6977  ;;  %v17700_v31 = vpop.permute.xlu0 %9615 }
 0x6bd   : > { %13499 = vmatprep.subr.bf16.mxu0 %v6978_v52  ;;  %13722 = vmatmul.mubr.msk.bf16.gmra.mrb[56].mxu1 %vm6980_vm13, %v14747_v5  ;;  %v14775_v5 = vld [vmem:[%s18807_s5 + $0x350] sm:$0xff]  }
 0x6be   : > { %13751 = vmatprep.subr.bf16.mxu1 %v17700_v31  ;;  %13500 = vmatpush3.bf16.msra.mxu0 %v6978_v52  ;;  %v14777_v52 = vld [vmem:[%s18807_s5 + $0x38] ss:$0 sps:$4 sm:$0xff]  }
 0x6bf   : > { %13517 = vmatprep.subr.bf16.mxu0 %v6895_v7  ;;  %13725 = vmatprep.mubr.msk.bf16.mxu1 %vm6980_vm13, %v14750_v18  ;;  %v14784_v18 = vld [vmem:[%s18807_s5 + $0x358] sm:$0xff]  }
 0x6c0   : > { %v14679_v22 = vpop.permute.xlu1 %14678  ;;  %v7506_v11 = vpop.permute.xlu0 %7505 }
 0x6c1   : > { %v14681_v26 = vunpack.i.h.bf16 %v14679_v22  ;;  %v14680_v47 = vunpack.i.l.bf16 %v14679_v22  ;;  %13502 = vmatmul.mubr.msk.bf16.vlgmr.msra.gmra.mrb[56].mxu0 %vm6980_vm13, %v14749_v21  ;;  %v14785_v21 = vld [vmem:[%s18807_s5 + $0x360] sm:$0xff]   ;;  %v14789_v22 = vld [vmem:[%s18807_s5 + $0x370] sm:$0xff]  }
 0x6c2   : > { %13518 = vmatpush3.bf16.msra.mxu0 %v6895_v7  ;;  %13505 = vmatprep.mubr.msk.bf16.mxu0 %vm6980_vm13, %v14752_v32  ;;  %v14769_v7 = vld [vmem:[%s18807_s5 + $0x18] sm:$0xff]   ;;  %v14788_v32 = vld [vmem:[%s18807_s5 + $0x368] sm:$0xff]  }
 0x6c3   : > { %v6798_v2 = vmax.f32 %v17641_v62, %v14681_v26  ;;  %v6774_v41 = vsel %vm567_vm1, %v14621_v56, %v14680_v47  ;;  %v6778_v44 = vsel %vm567_vm1, %v14651_v55, %v14681_v26  ;;  %v6793_v38 = vmax.f32 %v17649_v50, %v14680_v47  ;;  %v14792_v47 = vld [vmem:[%s18807_s5 + $0x378] sm:$0xff]  }
 0x6c4   : > { %v6792_v62 = vmax.f32 %v6713_v34, %v6774_v41  ;;  %v6797_v28 = vmax.f32 %v6718_v6, %v6778_v44  ;;  %v14689_v56 = vpop.permute.xlu1 %14688  ;;  %vm6904_vm1 = vcmask 138240   ;;  %v7698_v26 = vpop.permute.xlu0 %7697  ;;  %v14796_v41 = vld [vmem:[%s18807_s5 + $0x384] sm:$0xff]  }
 0x6c5   : > { %v14691_v24 = vunpack.i.h.bf16 %v14689_v56  ;;  %v14690_v59 = vunpack.i.l.bf16 %v14689_v56  ;;  %v6841_v55 = vmax.f32 %v6793_v38, %v14685_v27  ;;  %v6846_v53 = vmax.f32 %v6798_v2, %v14686_v0  ;;  %13726 = vmatmul.mubr.msk.bf16.gmra.mrb[60].mxu1 %vm6980_vm13, %v14751_v12  ;;  %v14779_v0 = vld [vmem:[%s18807_s5 + $0x80] sm:$0xff]   ;;  %v14780_v27 = vld [vmem:[%s18807_s5 + $0x88] sm:$0xff]   ;;  %v14781_v12 = vld [vmem:[%s18807_s5 + $0x90] sm:$0xff]  }
 0x6c6   : > { %v6840_v33 = vmax.f32 %v6792_v62, %v6822_v63  ;;  %v6845_v1 = vmax.f32 %v6797_v28, %v6826_v29  ;;  %13729 = vmatprep.mubr.msk.bf16.mxu1 %vm6980_vm13, %v14754_v51  ;;  %v14782_v51 = vld [vmem:[%s18807_s5 + $0x98] sm:$0xff]   ;;  %v14793_v2 = vld [vmem:[%s18807_s5 + $0x380] ss:$0 sps:$4 sm:$0xff]   ;;  %v14786_v38 = vld [vmem:[%s18807_s5 + $0xa8] sm:$0xff]  }
 0x6c7   : > { %v6870_v34 = vsel %vm1253_vm11, %v14631_v57, %v14690_v59  ;;  %v6874_v39 = vsel %vm1253_vm11, %v14661_v23, %v14691_v24  ;;  %v6889_v6 = vmax.f32 %v6841_v55, %v14690_v59  ;;  %v6894_v10 = vmax.f32 %v6846_v53, %v14691_v24  ;;  %v14758_v57 = vld [vmem:[%s18807_s5 + $0x30c] sm:$0xff]   ;;  %v14783_v44 = vld [vmem:[%s18807_s5 + $0xa0] sm:$0xff]   ;;  %v14800_v63 = vld [vmem:[%s18807_s5 + $0x394] sm:$0xff]  }
 0x6c8   : > { %v6888_v50 = vmax.f32 %v6840_v33, %v6870_v34  ;;  %v6893_v20 = vmax.f32 %v6845_v1, %v6874_v39  ;;  %v7314_v25 = vpop.permute.xlu1 %7313  ;;  %v14760_v23 = vld [vmem:[%s18807_s5 + $0x6c] sm:$0xff]   ;;  %v14790_v28 = vld [vmem:[%s18807_s5 + $0xb4] sm:$0xff]   ;;  %v14801_v56 = vld [vmem:[%s18807_s5 + $0x39c] sm:$0xff]   ;;  %vm11907_vm11 = vcmask 1041408  }
 0x6c9   : > { %v6899_v60 = vpack.c.bf16 %v6894_v10, %v6889_v6  ;;  %13506 = vmatmul.mubr.msk.bf16.gmra.mrb[60].mxu0 %vm6980_vm13, %v14753_v42  ;;  %13535 = vmatprep.subr.bf16.mxu0 %v7314_v25  ;;  %v14797_v29 = vld [vmem:[%s18807_s5 + $0x38c] sm:$0xff]   ;;  %v14804_v24 = vld [vmem:[%s18807_s5 + $0x3a4] sm:$0xff]   ;;  %v14791_v59 = vld [vmem:[%s18807_s5 + $0xbc] sm:$0xff]  }
 0x6ca   : > { %v17755_v19 = vpack.c.bf16 %v6893_v20, %v6888_v50  ;;  %13509 = vmatprep.mubr.msk.bf16.mxu0 %vm6980_vm13, %v14756_v16  ;;  %v14787_v62 = vld [vmem:[%s18807_s5 + $0xb0] ss:$0 sps:$4 sm:$0xff]   ;;  %v14794_v55 = vld [vmem:[%s18807_s5 + $0xc4] sm:$0xff]   ;;  %v14808_v42 = vld [vmem:[%s18807_s5 + $0x3b4] sm:$0xff]  }
 0x6cb   : > { %6905 = vst.msk [vmem:[#allocation5 + $0x20] sm:$0xff] %vm6904_vm1, %v6899_v60  ;;  %v14805_v53 = vld [vmem:[%s18807_s5 + $0x3ac] sm:$0xff]   ;;  %v14798_v1 = vld [vmem:[%s18807_s5 + $0xd4] sm:$0xff]   ;;  %v14809_v16 = vld [vmem:[%s18807_s5 + $0x3bc] ss:$0 sps:$4 sm:$0xff]  }
 0x6cc   : > { %10382 = vrot.lane.b32.xlu0 %v17755_v19, %s14986_s15  ;;  %9998 = vrot.lane.b32.xlu1 %v17755_v19, %s14964_s24  ;;  %v14795_v33 = vld [vmem:[%s18807_s5 + $0xcc] sm:$0xff]   ;;  %v14812_v34 = vld [vmem:[%s18807_s5 + $0x3c0] sm:$0xff]  }
 0x6cd   : > { %13730 = vmatmul.mubr.msk.bf16.gmra.mrb[64].mxu1 %vm6980_vm13, %v14755_v15  ;;  %v14799_v39 = vld [vmem:[%s18807_s5 + $0xdc] sm:$0xff]   ;;  %v14802_v6 = vld [vmem:[%s18807_s5 + $0xe4] sm:$0xff]   ;;  %v14803_v10 = vld [vmem:[%s18807_s5 + $0xec] ss:$0 sps:$4 sm:$0xff]  }
 0x6ce   : > { %13735 = vmatprep.mubr.msk.bf16.mxu1 %vm6980_vm13, %v14758_v57  ;;  %v14806_v50 = vld [vmem:[%s18807_s5 + $0xf0] sm:$0xff]   ;;  %v14807_v20 = vld [vmem:[%s18807_s5 + $0xf8] sm:$0xff]   ;;  %v14810_v60 = vld [vmem:[%s18807_s5 + $0x100] sm:$0xff]  }
 0x6cf   : > { %v14813_v15 = vld [vmem:[%s18807_s5 + $0x3c8] sm:$0xff]  }
 0x6d0   : > { %10574 = vrot.lane.b32.xlu0 %v17755_v19, %s14987_s27  ;;  %10190 = vrot.lane.b32.xlu1 %v17755_v19, %s14981_s23 }
 0x6d1   : > { %13510 = vmatmul.mubr.msk.bf16.gmra.mrb[64].mxu0 %vm6980_vm13, %v14757_v48 }
 0x6d2   : > { %13513 = vmatprep.mubr.msk.bf16.mxu0 %vm6980_vm13, %v14760_v23  ;;  %v17811_v13 = vld [vmem:[#allocation5 + $0x20] sm:$0xff] }
 0x6d3   : > { %v14811_v23 = vld [vmem:[%s18807_s5 + $0x108] sm:$0xff]  }
 0x6d4   : > { %8464 = vrot.lane.b32.xlu0 %v17676_v35, %s14986_s15  ;;  %8080 = vrot.lane.b32.xlu1 %v17676_v35, %s14964_s24 }
 0x6d5   : > { %13736 = vmatmul.mubr.msk.bf16.vlgmr.msra.gmra.mrb[52].mxu1 %vm6980_vm13, %v14759_v4 }
 0x6d6   : > { %13752 = vmatpush3.bf16.msra.mxu1 %v17700_v31  ;;  %13739 = vmatprep.mubr.msk.bf16.mxu1 %vm6980_vm13, %v14762_v54  ;;  %v14778_v31 = vld [vmem:[%s18807_s5 + $0x78] sm:$0xff]  }
 0x6d7   : > { %13769 = vmatprep.subr.bf16.mxu1 %v17755_v19  ;;  %v14817_v54 = vld [vmem:[%s18807_s5 + $0x3d8] sm:$0xff]  }
 0x6d8   : > { %8656 = vrot.lane.b32.xlu0 %v17676_v35, %s14987_s27  ;;  %8272 = vrot.lane.b32.xlu1 %v17676_v35, %s14981_s23 }
 0x6d9   : > { %13514 = vmatmul.mubr.msk.bf16.gmra.mrb[68].mxu0 %vm6980_vm13, %v14761_v8  ;;  %v14820_v8 = vld [vmem:[%s18807_s5 + $0x3e0] sm:$0xff]  }
 0x6da   : > { %13519 = vmatprep.mubr.msk.bf16.mxu0 %vm6980_vm13, %v14764_v46  ;;  %v14815_v46 = vld [vmem:[%s18807_s5 + $0x118] sm:$0xff]  }
 0x6dc   : > { %11341 = vrot.lane.b32.xlu0 %v17811_v13, %s14986_s15  ;;  %10957 = vrot.lane.b32.xlu1 %v17811_v13, %s14964_s24 }
 0x6dd   : > { %13740 = vmatmul.mubr.msk.bf16.gmra.mrb[56].mxu1 %vm6980_vm13, %v14763_v61  ;;  %v14818_v61 = vld [vmem:[%s18807_s5 + $0x120] sm:$0xff]  }
 0x6de   : > { %13743 = vmatprep.mubr.msk.bf16.mxu1 %vm6980_vm13, %v14766_v14  ;;  %v14821_v14 = vld [vmem:[%s18807_s5 + $0x3e8] sm:$0xff]  }
 0x6e0   : > { %11533 = vrot.lane.b32.xlu0 %v17811_v13, %s14987_s27  ;;  %11149 = vrot.lane.b32.xlu1 %v17811_v13, %s14981_s23 }
 0x6e1   : > { %13520 = vmatmul.mubr.msk.bf16.vlgmr.msra.gmra.mrb[56].mxu0 %vm6980_vm13, %v14765_v40  ;;  %v14824_v40 = vld [vmem:[%s18807_s5 + $0x3f0] sm:$0xff]  }
 0x6e2   : > { %13536 = vmatpush3.bf16.msra.mxu0 %v7314_v25  ;;  %13523 = vmatprep.mubr.msk.bf16.mxu0 %vm6980_vm13, %v14768_v49  ;;  %v14819_v49 = vld [vmem:[%s18807_s5 + $0x128] ss:$0 sps:$4 sm:$0xff]  }
 0x6e3   : > { %13553 = vmatprep.subr.bf16.mxu0 %v7506_v11 }
 0x6e4   : > { %9039 = vrot.lane.b32.xlu1 %v17639_v37, %s14964_s24  ;;  %s13048_s24 = sshll.u32 %s19091_s18, 4 }
 0x6e5   : > { %13744 = vmatmul.mubr.msk.bf16.gmra.mrb[60].mxu1 %vm6980_vm13, %v14767_v30  ;;  %v14822_v30 = vld [vmem:[%s18807_s5 + $0x12c] sm:$0xff]   ;;  %s383_s26 = scalar_lea.vmem %s18813_s11, %s13048_s24 }
 0x6e6   : > { %13747 = vmatprep.mubr.msk.bf16.mxu1 %vm6980_vm13, %v14770_v3  ;;  %v14828_v3 = vld [vmem:[%s18807_s5 + $0x3fc] sm:$0xff]  }
 0x6e9   : > { %13524 = vmatmul.mubr.msk.bf16.gmra.mrb[60].mxu0 %vm6980_vm13, %v14769_v7  ;;  %v14823_v7 = vld [vmem:[%s18807_s5 + $0x134] sm:$0xff]  }
 0x6ea   : > { %13527 = vmatprep.mubr.msk.bf16.mxu0 %vm6980_vm13, %v14772_v45  ;;  %v14826_v45 = vld [vmem:[%s18807_s5 + $0x13c] sm:$0xff]  }
 0x6ed   : > { %13748 = vmatmul.mubr.msk.bf16.gmra.mrb[68].mxu1 %vm6980_vm13, %v14771_v58  ;;  %v14829_v58 = vld [vmem:[%s18807_s5 + $0x404] sm:$0xff]  }
 0x6ee   : > { %13753 = vmatprep.mubr.msk.bf16.mxu1 %vm6980_vm13, %v14774_v43  ;;  %v14832_v43 = vld [vmem:[%s18807_s5 + $0x40c] sm:$0xff]  }
 0x6f1   : > { %13528 = vmatmul.mubr.msk.bf16.gmra.mrb[64].mxu0 %vm6980_vm13, %v14773_v36 }
 0x6f2   : > { %13531 = vmatprep.mubr.msk.bf16.mxu0 %vm6980_vm13, %v14776_v9 }
 0x6f5   : > { %13754 = vmatmul.mubr.msk.bf16.vlgmr.msra.gmra.mrb[52].mxu1 %vm6980_vm13, %v14775_v5  ;;  %v14827_v5 = vld [vmem:[%s18807_s5 + $0x144] sm:$0xff]  }
 0x6f6   : > { %13770 = vmatpush3.bf16.msra.mxu1 %v17755_v19  ;;  %13757 = vmatprep.mubr.msk.bf16.mxu1 %vm6980_vm13, %v14784_v18  ;;  %v14816_v19 = vld [vmem:[%s18807_s5 + $0x3d0] sm:$0xff]  }
 0x6f7   : > { %v14830_v18 = vld [vmem:[%s18807_s5 + $0x14c] sm:$0xff]  }
 0x6f9   : > { %13532 = vmatmul.mubr.msk.bf16.gmra.mrb[72].mxu0 %vm6980_vm13, %v14777_v52  ;;  %v14833_v52 = vld [vmem:[%s18807_s5 + $0x414] sm:$0xff]  }
 0x6fa   : > { %13537 = vmatprep.mubr.msk.bf16.mxu0 %vm6980_vm13, %v14778_v31  ;;  %v14836_v31 = vld [vmem:[%s18807_s5 + $0x41c] sm:$0xff]  }
 0x6fd   : > { %13758 = vmatmul.mubr.msk.bf16.gmra.mrb[56].mxu1 %vm6980_vm13, %v14785_v21  ;;  %v14831_v21 = vld [vmem:[%s18807_s5 + $0x154] sm:$0xff]  }
 0x6fe   : > { %13761 = vmatprep.mubr.msk.bf16.mxu1 %vm6980_vm13, %v14788_v32  ;;  %v14834_v32 = vld [vmem:[%s18807_s5 + $0x15c] sm:$0xff]  }
 0x701   : > { %13538 = vmatmul.mubr.msk.bf16.vlgmr.msra.gmra.mrb[56].mxu0 %vm6980_vm13, %v14779_v0  ;;  %v14837_v0 = vld [vmem:[%s18807_s5 + $0x424] sm:$0xff]  }
 0x702   : > { %13554 = vmatpush3.bf16.msra.mxu0 %v7506_v11  ;;  %13541 = vmatprep.mubr.msk.bf16.mxu0 %vm6980_vm13, %v14780_v27  ;;  %v14825_v11 = vld [vmem:[%s18807_s5 + $0x3f8] ss:$0 sps:$4 sm:$0xff]   ;;  %v14840_v27 = vld [vmem:[%s18807_s5 + $0x42c] sm:$0xff]  }
 0x703   : > { %13571 = vmatprep.subr.bf16.mxu0 %v7698_v26 }
 0x705   : > { %13762 = vmatmul.mubr.msk.bf16.gmra.mrb[60].mxu1 %vm6980_vm13, %v14789_v22  ;;  %v14835_v22 = vld [vmem:[%s18807_s5 + $0x164] ss:$0 sps:$4 sm:$0xff]  }
 0x706   : > { %13765 = vmatprep.mubr.msk.bf16.mxu1 %vm6980_vm13, %v14792_v47  ;;  %v14841_v47 = vld [vmem:[%s18807_s5 + $0x434] ss:$0 sps:$4 sm:$0xff]  }
 0x709   : > { %13542 = vmatmul.mubr.msk.bf16.gmra.mrb[60].mxu0 %vm6980_vm13, %v14781_v12  ;;  %v14844_v12 = vld [vmem:[%s18807_s5 + $0x438] sm:$0xff]  }
 0x70a   : > { %13545 = vmatprep.mubr.msk.bf16.mxu0 %vm6980_vm13, %v14782_v51  ;;  %v14839_v51 = vld [vmem:[%s18807_s5 + $0x170] sm:$0xff]  }
 0x70d   : > { %13766 = vmatmul.mubr.msk.bf16.gmra.mrb[72].mxu1 %vm6980_vm13, %v14793_v2  ;;  %v14842_v2 = vld [vmem:[%s18807_s5 + $0x178] sm:$0xff]  }
 0x70e   : > { %13771 = vmatprep.mubr.msk.bf16.mxu1 %vm6980_vm13, %v14796_v41  ;;  %v14845_v41 = vld [vmem:[%s18807_s5 + $0x440] sm:$0xff]  }
 0x711   : > { %13546 = vmatmul.mubr.msk.bf16.gmra.mrb[64].mxu0 %vm6980_vm13, %v14783_v44  ;;  %v14848_v44 = vld [vmem:[%s18807_s5 + $0x448] sm:$0xff]  }
 0x712   : > { %13549 = vmatprep.mubr.msk.bf16.mxu0 %vm6980_vm13, %v14786_v38 }
 0x715   : > { %13772 = vmatmul.mubr.msk.bf16.vlgmr.msra.gmra.mrb[52].mxu1 %vm6980_vm13, %v14797_v29  ;;  %v14843_v29 = vld [vmem:[%s18807_s5 + $0x180] sm:$0xff]  }
 0x716   : > { %13775 = vmatprep.mubr.msk.bf16.mxu1 %vm6980_vm13, %v14800_v63  ;;  %v14846_v63 = vld [vmem:[%s18807_s5 + $0x188] sm:$0xff]  }
 0x719   : > { %13550 = vmatmul.mubr.msk.bf16.gmra.mrb[76].mxu0 %vm6980_vm13, %v14787_v62  ;;  %v14849_v62 = vld [vmem:[%s18807_s5 + $0x450] sm:$0xff]  }
 0x71a   : > { %13555 = vmatprep.mubr.msk.bf16.mxu0 %vm6980_vm13, %v14790_v28  ;;  %v14852_v28 = vld [vmem:[%s18807_s5 + $0x458] sm:$0xff]  }
 0x71d   : > { %13776 = vmatmul.mubr.msk.bf16.gmra.mrb[56].mxu1 %vm6980_vm13, %v14801_v56  ;;  %v14847_v56 = vld [vmem:[%s18807_s5 + $0x190] sm:$0xff]  }
 0x71e   : > { %13779 = vmatprep.mubr.msk.bf16.mxu1 %vm6980_vm13, %v14804_v24  ;;  %v14850_v24 = vld [vmem:[%s18807_s5 + $0x198] sm:$0xff]  }
 0x721   : > { %13556 = vmatmul.mubr.msk.bf16.vlgmr.msra.gmra.mrb[56].mxu0 %vm6980_vm13, %v14791_v59  ;;  %v14853_v59 = vld [vmem:[%s18807_s5 + $0x460] sm:$0xff]  }
 0x722   : > { %13572 = vmatpush3.bf16.msra.mxu0 %v7698_v26  ;;  %13559 = vmatprep.mubr.msk.bf16.mxu0 %vm6980_vm13, %v14794_v55  ;;  %v14838_v26 = vld [vmem:[%s18807_s5 + $0x168] sm:$0xff]  }
 0x723   : > { %13589 = vmatprep.subr.bf16.mxu0 %v17676_v35  ;;  %v14856_v55 = vld [vmem:[%s18807_s5 + $0x468] sm:$0xff]  }
 0x725   : > { %13780 = vmatmul.mubr.msk.bf16.gmra.mrb[60].mxu1 %vm6980_vm13, %v14805_v53  ;;  %v14851_v53 = vld [vmem:[%s18807_s5 + $0x1a0] ss:$0 sps:$4 sm:$0xff]  }
 0x726   : > { %13783 = vmatprep.mubr.msk.bf16.mxu1 %vm6980_vm13, %v14808_v42  ;;  %v14854_v42 = vld [vmem:[%s18807_s5 + $0x1a4] sm:$0xff]  }
 0x729   : > { %13560 = vmatmul.mubr.msk.bf16.gmra.mrb[60].mxu0 %vm6980_vm13, %v14795_v33  ;;  %v14857_v33 = vld [vmem:[%s18807_s5 + $0x470] ss:$0 sps:$4 sm:$0xff]  }
 0x72a   : > { %13563 = vmatprep.mubr.msk.bf16.mxu0 %vm6980_vm13, %v14798_v1  ;;  %v14860_v1 = vld [vmem:[%s18807_s5 + $0x474] sm:$0xff]  }
 0x72d   : > { %13784 = vmatmul.mubr.msk.bf16.gmra.mrb[76].mxu1 %vm6980_vm13, %v14809_v16  ;;  %v14855_v16 = vld [vmem:[%s18807_s5 + $0x1ac] sm:$0xff]  }
 0x72e   : > { %13789 = vmatprep.mubr.msk.bf16.mxu1 %vm6980_vm13, %v14812_v34  ;;  %v14858_v34 = vld [vmem:[%s18807_s5 + $0x1b4] sm:$0xff]  }
 0x731   : > { %13564 = vmatmul.mubr.msk.bf16.gmra.mrb[64].mxu0 %vm6980_vm13, %v14799_v39  ;;  %v14861_v39 = vld [vmem:[%s18807_s5 + $0x47c] sm:$0xff]  }
 0x732   : > { %13567 = vmatprep.mubr.msk.bf16.mxu0 %vm6980_vm13, %v14802_v6  ;;  %v14864_v6 = vld [vmem:[%s18807_s5 + $0x484] sm:$0xff]  }
 0x739   : > { %13568 = vmatmul.mubr.msk.bf16.gmra.mrb[80].mxu0 %vm6980_vm13, %v14803_v10 }
 0x73a   : > { %13573 = vmatprep.mubr.msk.bf16.mxu0 %vm6980_vm13, %v14806_v50 }
 0x73e   : > { %v9999_v25 = vpop.permute.xlu1 %9998  ;;  %v10383_v48 = vpop.permute.xlu0 %10382 }
 0x73f   : > { %13787 = vmatprep.subr.bf16.mxu1 %v9999_v25 }
 0x740   : > { %13788 = vmatpush3.bf16.msra.mxu1 %v9999_v25 }
 0x741   : > { %13574 = vmatmul.mubr.msk.bf16.vlgmr.msra.gmra.mrb[56].mxu0 %vm6980_vm13, %v14807_v20 }
 0x742   : > { %13590 = vmatpush3.bf16.msra.mxu0 %v17676_v35  ;;  %13577 = vmatprep.mubr.msk.bf16.mxu0 %vm6980_vm13, %v14810_v60  ;;  %v10191_v57 = vpop.permute.xlu1 %10190  ;;  %v14814_v35 = vld [vmem:[%s18807_s5 + $0x110] sm:$0xff]   ;;  %v10575_v9 = vpop.permute.xlu0 %10574 }
 0x743   : > { %13790 = vmatmul.mubr.msk.bf16.vlgmr.msra.gmra.mrb[52].mxu1 %vm6980_vm13, %v14813_v15  ;;  %13805 = vmatprep.subr.bf16.mxu1 %v10191_v57 }
 0x744   : > { %13806 = vmatpush3.bf16.msra.mxu1 %v10191_v57  ;;  %13793 = vmatprep.mubr.msk.bf16.mxu1 %vm6980_vm13, %v14816_v19  ;;  %v14859_v19 = vld [vmem:[%s18807_s5 + $0x1bc] sm:$0xff]   ;;  %v14862_v57 = vld [vmem:[%s18807_s5 + $0x1c4] sm:$0xff]  }
 0x745   : > { %13823 = vmatprep.subr.bf16.mxu1 %v10383_v48 }
 0x746   : > { %v8081_v4 = vpop.permute.xlu1 %8080  ;;  %v8465_v38 = vpop.permute.xlu0 %8464 }
 0x747   : > { %13607 = vmatprep.subr.bf16.mxu0 %v8081_v4 }
 0x749   : > { %13578 = vmatmul.mubr.msk.bf16.gmra.mrb[60].mxu0 %vm6980_vm13, %v14811_v23  ;;  %v14868_v23 = vld [vmem:[%s18807_s5 + $0x494] sm:$0xff]  }
 0x74a   : > { %13581 = vmatprep.mubr.msk.bf16.mxu0 %vm6980_vm13, %v14814_v35  ;;  %v8273_v36 = vpop.permute.xlu1 %8272  ;;  %v8657_v20 = vpop.permute.xlu0 %8656 }
 0x74b   : > { %13794 = vmatmul.mubr.msk.bf16.gmra.mrb[56].mxu1 %vm6980_vm13, %v14817_v54  ;;  %v14866_v54 = vld [vmem:[%s18807_s5 + $0x1d4] sm:$0xff]  }
 0x74c   : > { %13797 = vmatprep.mubr.msk.bf16.mxu1 %vm6980_vm13, %v14820_v8 }
 0x74e   : > { %v10958_v15 = vpop.permute.xlu1 %10957 }
 0x751   : > { %13582 = vmatmul.mubr.msk.bf16.gmra.mrb[64].mxu0 %vm6980_vm13, %v14815_v46  ;;  %v14869_v46 = vld [vmem:[%s18807_s5 + $0x49c] sm:$0xff]  }
 0x752   : > { %13585 = vmatprep.mubr.msk.bf16.mxu0 %vm6980_vm13, %v14818_v61 }
 0x753   : > { %13798 = vmatmul.mubr.msk.bf16.gmra.mrb[60].mxu1 %vm6980_vm13, %v14821_v14  ;;  %v14872_v14 = vld [vmem:[%s18807_s5 + $0x4a4] sm:$0xff]  }
 0x754   : > { %13801 = vmatprep.mubr.msk.bf16.mxu1 %vm6980_vm13, %v14824_v40  ;;  %v14867_v40 = vld [vmem:[%s18807_s5 + $0x1dc] ss:$0 sps:$4 sm:$0xff]  }
 0x759   : > { %13586 = vmatmul.mubr.msk.bf16.gmra.mrb[84].mxu0 %vm6980_vm13, %v14819_v49  ;;  %v14870_v49 = vld [vmem:[%s18807_s5 + $0x1e0] sm:$0xff]  }
 0x75a   : > { %13591 = vmatprep.mubr.msk.bf16.mxu0 %vm6980_vm13, %v14822_v30  ;;  %v14873_v30 = vld [vmem:[%s18807_s5 + $0x4ac] ss:$0 sps:$4 sm:$0xff]  }
 0x75b   : > { %13802 = vmatmul.mubr.msk.bf16.gmra.mrb[80].mxu1 %vm6980_vm13, %v14825_v11  ;;  %v14876_v11 = vld [vmem:[%s18807_s5 + $0x4b0] sm:$0xff]  }
 0x75c   : > { %13807 = vmatprep.mubr.msk.bf16.mxu1 %vm6980_vm13, %v14828_v3  ;;  %v14871_v3 = vld [vmem:[%s18807_s5 + $0x1e8] sm:$0xff]  }
 0x761   : > { %13592 = vmatmul.mubr.msk.bf16.vlgmr.msra.gmra.mrb[56].mxu0 %vm6980_vm13, %v14823_v7  ;;  %v14874_v7 = vld [vmem:[%s18807_s5 + $0x1f0] sm:$0xff]  }
 0x762   : > { %13608 = vmatpush3.bf16.msra.mxu0 %v8081_v4  ;;  %13595 = vmatprep.mubr.msk.bf16.mxu0 %vm6980_vm13, %v14826_v45  ;;  %v14863_v4 = vld [vmem:[%s18807_s5 + $0x1cc] sm:$0xff]   ;;  %v14877_v45 = vld [vmem:[%s18807_s5 + $0x4b8] sm:$0xff]  }
 0x763   : > { %13625 = vmatprep.subr.bf16.mxu0 %v8273_v36  ;;  %13808 = vmatmul.mubr.msk.bf16.vlgmr.msra.gmra.mrb[52].mxu1 %vm6980_vm13, %v14829_v58  ;;  %v14880_v58 = vld [vmem:[%s18807_s5 + $0x4c0] sm:$0xff]  }
 0x764   : > { %13824 = vmatpush3.bf16.msra.mxu1 %v10383_v48  ;;  %13811 = vmatprep.mubr.msk.bf16.mxu1 %vm6980_vm13, %v14832_v43  ;;  %v14865_v48 = vld [vmem:[%s18807_s5 + $0x48c] sm:$0xff]  }
 0x765   : > { %13841 = vmatprep.subr.bf16.mxu1 %v10575_v9 }
 0x769   : > { %13596 = vmatmul.mubr.msk.bf16.gmra.mrb[60].mxu0 %vm6980_vm13, %v14827_v5 }
 0x76a   : > { %13599 = vmatprep.mubr.msk.bf16.mxu0 %vm6980_vm13, %v14830_v18  ;;  %v11150_v18 = vpop.permute.xlu1 %11149 }
 0x76b   : > { %13812 = vmatmul.mubr.msk.bf16.gmra.mrb[56].mxu1 %vm6980_vm13, %v14833_v52  ;;  %v14875_v52 = vld [vmem:[%s18807_s5 + $0x1f8] sm:$0xff]  }
 0x76c   : > { %13815 = vmatprep.mubr.msk.bf16.mxu1 %vm6980_vm13, %v14836_v31  ;;  %v14878_v31 = vld [vmem:[%s18807_s5 + $0x200] sm:$0xff]  }
 0x771   : > { %13600 = vmatmul.mubr.msk.bf16.gmra.mrb[64].mxu0 %vm6980_vm13, %v14831_v21  ;;  %v14881_v21 = vld [vmem:[%s18807_s5 + $0x4c8] sm:$0xff]  }
 0x772   : > { %13603 = vmatprep.mubr.msk.bf16.mxu0 %vm6980_vm13, %v14834_v32  ;;  %v14884_v32 = vld [vmem:[%s18807_s5 + $0x4d0] sm:$0xff]  }
 0x773   : > { %13816 = vmatmul.mubr.msk.bf16.gmra.mrb[60].mxu1 %vm6980_vm13, %v14837_v0 }
 0x774   : > { %13819 = vmatprep.mubr.msk.bf16.mxu1 %vm6980_vm13, %v14840_v27  ;;  %v14879_v27 = vld [vmem:[%s18807_s5 + $0x208] sm:$0xff]  }
 0x779   : > { %13604 = vmatmul.mubr.msk.bf16.gmra.mrb[88].mxu0 %vm6980_vm13, %v14835_v22 }
 0x77a   : > { %13609 = vmatprep.mubr.msk.bf16.mxu0 %vm6980_vm13, %v14838_v26 }
 0x77b   : > { %13820 = vmatmul.mubr.msk.bf16.gmra.mrb[84].mxu1 %vm6980_vm13, %v14841_v47 }
 0x77c   : > { %13825 = vmatprep.mubr.msk.bf16.mxu1 %vm6980_vm13, %v14844_v12 }
 0x781   : > { %13610 = vmatmul.mubr.msk.bf16.vlgmr.msra.gmra.mrb[56].mxu0 %vm6980_vm13, %v14839_v51  ;;  %v14882_v51 = vld [vmem:[%s18807_s5 + $0x210] sm:$0xff]  }
 0x782   : > { %13626 = vmatpush3.bf16.msra.mxu0 %v8273_v36  ;;  %13613 = vmatprep.mubr.msk.bf16.mxu0 %vm6980_vm13, %v14842_v2 }
 0x783   : > { %13643 = vmatprep.subr.bf16.mxu0 %v8465_v38  ;;  %13826 = vmatmul.mubr.msk.bf16.vlgmr.msra.gmra.mrb[52].mxu1 %vm6980_vm13, %v14845_v41  ;;  %v14885_v41 = vld [vmem:[%s18807_s5 + $0x4d8] sm:$0xff]  }
 0x784   : > { %13842 = vmatpush3.bf16.msra.mxu1 %v10575_v9  ;;  %13829 = vmatprep.mubr.msk.bf16.mxu1 %vm6980_vm13, %v14848_v44 }
 0x785   : > { %13859 = vmatprep.subr.bf16.mxu1 %v17811_v13 }
 0x789   : > { %13614 = vmatmul.mubr.msk.bf16.gmra.mrb[60].mxu0 %vm6980_vm13, %v14843_v29  ;;  %v14883_v29 = vld [vmem:[%s18807_s5 + $0x218] ss:$0 sps:$4 sm:$0xff]  }
 0x78a   : > { %13617 = vmatprep.mubr.msk.bf16.mxu0 %vm6980_vm13, %v14846_v63  ;;  %v14886_v63 = vld [vmem:[%s18807_s5 + $0x21c] sm:$0xff]  }
 0x78b   : > { %13830 = vmatmul.mubr.msk.bf16.gmra.mrb[56].mxu1 %vm6980_vm13, %v14849_v62  ;;  %v14889_v62 = vld [vmem:[%s18807_s5 + $0x4e8] ss:$0 sps:$4 sm:$0xff]  }
 0x78c   : > { %13833 = vmatprep.mubr.msk.bf16.mxu1 %vm6980_vm13, %v14852_v28  ;;  %v14892_v28 = vld [vmem:[%s18807_s5 + $0x4ec] sm:$0xff]  }
 0x791   : > { %13618 = vmatmul.mubr.msk.bf16.gmra.mrb[64].mxu0 %vm6980_vm13, %v14847_v56  ;;  %v14887_v56 = vld [vmem:[%s18807_s5 + $0x224] sm:$0xff]  }
 0x792   : > { %13621 = vmatprep.mubr.msk.bf16.mxu0 %vm6980_vm13, %v14850_v24  ;;  %v14890_v24 = vld [vmem:[%s18807_s5 + $0x22c] sm:$0xff]  }
 0x793   : > { %13834 = vmatmul.mubr.msk.bf16.gmra.mrb[60].mxu1 %vm6980_vm13, %v14853_v59  ;;  %v14893_v59 = vld [vmem:[%s18807_s5 + $0x4f4] sm:$0xff]  }
 0x794   : > { %13837 = vmatprep.mubr.msk.bf16.mxu1 %vm6980_vm13, %v14856_v55  ;;  %v14896_v55 = vld [vmem:[%s18807_s5 + $0x4fc] sm:$0xff]  }
 0x799   : > { %13622 = vmatmul.mubr.msk.bf16.gmra.mrb[92].mxu0 %vm6980_vm13, %v14851_v53 }
 0x79a   : > { %13627 = vmatprep.mubr.msk.bf16.mxu0 %vm6980_vm13, %v14854_v42 }
 0x79b   : > { %13838 = vmatmul.mubr.msk.bf16.gmra.mrb[88].mxu1 %vm6980_vm13, %v14857_v33  ;;  %v9040_v33 = vpop.permute.xlu1 %9039 }
 0x79c   : > { %13843 = vmatprep.mubr.msk.bf16.mxu1 %vm6980_vm13, %v14860_v1 }
 0x7a0   : > { %v18209_v10 = vpop.f32.mrb[64].mxu1 }
 0x7a1   : > { %13628 = vmatmul.mubr.msk.bf16.vlgmr.msra.gmra.mrb[56].mxu0 %vm6980_vm13, %v14855_v16  ;;  %v18212_v50 = vpop.f32.mrb[65].mxu1 }
 0x7a2   : > { %13644 = vmatpush3.bf16.msra.mxu0 %v8465_v38  ;;  %13631 = vmatprep.mubr.msk.bf16.mxu0 %vm6980_vm13, %v14858_v34  ;;  %v13732_v25 = vpop.f32.mrb[66].mxu1  ;;  %v14888_v38 = vld [vmem:[%s18807_s5 + $0x4e0] sm:$0xff]   ;;  %v11342_v34 = vpop.permute.xlu0 %11341 }
 0x7a3   : > { %13661 = vmatprep.subr.bf16.mxu0 %v8657_v20  ;;  %13844 = vmatmul.mubr.msk.bf16.vlgmr.msra.gmra.mrb[52].mxu1 %vm6980_vm13, %v14861_v39  ;;  %v18216_v60 = vpop.f32.mrb[67].mxu1  ;;  %v14891_v39 = vld [vmem:[%s18807_s5 + $0x234] sm:$0xff]  }
 0x7a4   : > { %13860 = vmatpush3.bf16.msra.mxu1 %v17811_v13  ;;  %13847 = vmatprep.mubr.msk.bf16.mxu1 %vm6980_vm13, %v14864_v6  ;;  %v14897_v6 = vld [vmem:[%s18807_s5 + $0x504] sm:$0xff]  }
 0x7a5   : > { %13877 = vmatprep.subr.bf16.mxu1 %v10958_v15 }
 0x7a9   : > { %13632 = vmatmul.mubr.msk.bf16.gmra.mrb[60].mxu0 %vm6980_vm13, %v14859_v19 }
 0x7aa   : > { %13635 = vmatprep.mubr.msk.bf16.mxu0 %vm6980_vm13, %v14862_v57  ;;  %v14895_v57 = vld [vmem:[%s18807_s5 + $0x244] sm:$0xff]  }
 0x7ab   : > { %13848 = vmatmul.mubr.msk.bf16.gmra.mrb[56].mxu1 %vm6980_vm13, %v14865_v48 }
 0x7ac   : > { %13851 = vmatprep.mubr.msk.bf16.mxu1 %vm6980_vm13, %v14868_v23  ;;  %v13515_v13 = vpop.f32.mrb[68].mxu0 }
 0x7ad   : > { %v7087_v35 = vpop.f32.mrb[69].mxu0 }
 0x7ae   : > { %v13516_v8 = vpop.f32.mrb[70].mxu0 }
 0x7af   : > { %v7090_v61 = vpop.f32.mrb[71].mxu0  ;;  %v14904_v8 = vld [vmem:[%s18807_s5 + $0x51c] sm:$0xff]  }
 0x7b1   : > { %13636 = vmatmul.mubr.msk.bf16.gmra.mrb[64].mxu0 %vm6980_vm13, %v14863_v4 }
 0x7b2   : > { %13639 = vmatprep.mubr.msk.bf16.mxu0 %vm6980_vm13, %v14866_v54 }
 0x7b3   : > { %13852 = vmatmul.mubr.msk.bf16.gmra.mrb[60].mxu1 %vm6980_vm13, %v14869_v46  ;;  %v14899_v46 = vld [vmem:[%s18807_s5 + $0x254] ss:$0 sps:$4 sm:$0xff]  }
 0x7b4   : > { %13855 = vmatprep.mubr.msk.bf16.mxu1 %vm6980_vm13, %v14872_v14  ;;  %v14905_v14 = vld [vmem:[%s18807_s5 + $0x524] ss:$0 sps:$4 sm:$0xff]  }
 0x7b9   : > { %13640 = vmatmul.mubr.msk.bf16.gmra.mrb[96].mxu0 %vm6980_vm13, %v14867_v40  ;;  %v14908_v40 = vld [vmem:[%s18807_s5 + $0x528] sm:$0xff]  }
 0x7ba   : > { %13645 = vmatprep.mubr.msk.bf16.mxu0 %vm6980_vm13, %v14870_v49  ;;  %v14903_v49 = vld [vmem:[%s18807_s5 + $0x260] sm:$0xff]  }
 0x7bb   : > { %13856 = vmatmul.mubr.msk.bf16.gmra.mrb[92].mxu1 %vm6980_vm13, %v14873_v30  ;;  %v14906_v30 = vld [vmem:[%s18807_s5 + $0x268] sm:$0xff]  }
 0x7bc   : > { %13861 = vmatprep.mubr.msk.bf16.mxu1 %vm6980_vm13, %v14876_v11  ;;  %v14909_v11 = vld [vmem:[%s18807_s5 + $0x530] sm:$0xff]  }
 0x7c0   : > { %v18280_v43 = vpop.f32.mrb[68].mxu1 }
 0x7c1   : > { %13646 = vmatmul.mubr.msk.bf16.vlgmr.msra.gmra.mrb[56].mxu0 %vm6980_vm13, %v14871_v3  ;;  %v18283_v36 = vpop.f32.mrb[69].mxu1  ;;  %v14912_v3 = vld [vmem:[%s18807_s5 + $0x538] sm:$0xff]  }
 0x7c2   : > { %13662 = vmatpush3.bf16.msra.mxu0 %v8657_v20  ;;  %13649 = vmatprep.mubr.msk.bf16.mxu0 %vm6980_vm13, %v14874_v7  ;;  %v13750_v9 = vpop.f32.mrb[70].mxu1  ;;  %v14900_v20 = vld [vmem:[%s18807_s5 + $0x50c] sm:$0xff]  }
 0x7c3   : > { %13679 = vmatprep.subr.bf16.mxu0 %v17639_v37  ;;  %13862 = vmatmul.mubr.msk.bf16.vlgmr.msra.gmra.mrb[52].mxu1 %vm6980_vm13, %v14877_v45  ;;  %v18288_v5 = vpop.f32.mrb[71].mxu1 }
 0x7c4   : > { %13878 = vmatpush3.bf16.msra.mxu1 %v10958_v15  ;;  %13865 = vmatprep.mubr.msk.bf16.mxu1 %vm6980_vm13, %v14880_v58 }
 0x7c5   : > { %13895 = vmatprep.subr.bf16.mxu1 %v11150_v18 }
 0x7c9   : > { %13650 = vmatmul.mubr.msk.bf16.gmra.mrb[60].mxu0 %vm6980_vm13, %v14875_v52  ;;  %v14907_v52 = vld [vmem:[%s18807_s5 + $0x270] sm:$0xff]  }
 0x7ca   : > { %13653 = vmatprep.mubr.msk.bf16.mxu0 %vm6980_vm13, %v14878_v31  ;;  %v14910_v31 = vld [vmem:[%s18807_s5 + $0x278] sm:$0xff]  }
 0x7cb   : > { %13866 = vmatmul.mubr.msk.bf16.gmra.mrb[56].mxu1 %vm6980_vm13, %v14881_v21  ;;  %v14913_v21 = vld [vmem:[%s18807_s5 + $0x540] sm:$0xff]  }
 0x7cc   : > { %v13533_v0 = vpop.f32.mrb[72].mxu0  ;;  %13869 = vmatprep.mubr.msk.bf16.mxu1 %vm6980_vm13, %v14884_v32  ;;  %v14916_v32 = vld [vmem:[%s18807_s5 + $0x548] sm:$0xff]  }
 0x7cd   : > { %v7254_v22 = vadd.f32 %v13533_v0, %v13515_v13  ;;  %v7245_v26 = vpop.f32.mrb[73].mxu0  ;;  %v14898_v13 = vld [vmem:[%s18807_s5 + $0x24c] sm:$0xff]  }
 0x7ce   : > { %v7246_v47 = vadd.f32 %v7245_v26, %v7087_v35  ;;  %v13534_v12 = vpop.f32.mrb[74].mxu0  ;;  %v14901_v35 = vld [vmem:[%s18807_s5 + $0x514] sm:$0xff]   ;;  %v14911_v26 = vld [vmem:[%s18807_s5 + $0x280] sm:$0xff]  }
 0x7cf   : > { %v7248_v2 = vpop.f32.mrb[75].mxu0 }
 0x7d0   : > { %v7249_v44 = vadd.f32 %v7248_v2, %v7090_v61  ;;  %v14902_v61 = vld [vmem:[%s18807_s5 + $0x258] sm:$0xff]  }
 0x7d1   : > { %13654 = vmatmul.mubr.msk.bf16.gmra.mrb[64].mxu0 %vm6980_vm13, %v14879_v27 }
 0x7d2   : > { %13657 = vmatprep.mubr.msk.bf16.mxu0 %vm6980_vm13, %v14882_v51  ;;  %v14914_v51 = vld [vmem:[%s18807_s5 + $0x288] sm:$0xff]  }
 0x7d3   : > { %13870 = vmatmul.mubr.msk.bf16.gmra.mrb[60].mxu1 %vm6980_vm13, %v14885_v41  ;;  %v14917_v41 = vld [vmem:[%s18807_s5 + $0x550] sm:$0xff]  }
 0x7d4   : > { %13873 = vmatprep.mubr.msk.bf16.mxu1 %vm6980_vm13, %v14888_v38  ;;  %v14920_v38 = vld [vmem:[%s18807_s5 + $0x558] sm:$0xff]  }
 0x7d9   : > { %13658 = vmatmul.mubr.msk.bf16.gmra.mrb[100].mxu0 %vm6980_vm13, %v14883_v29  ;;  %v14915_v29 = vld [vmem:[%s18807_s5 + $0x290] ss:$0 sps:$4 sm:$0xff]  }
 0x7da   : > { %13663 = vmatprep.mubr.msk.bf16.mxu0 %vm6980_vm13, %v14886_v63  ;;  %v14918_v63 = vld [vmem:[%s18807_s5 + $0x294] sm:$0xff]  }
 0x7db   : > { %13874 = vmatmul.mubr.msk.bf16.gmra.mrb[96].mxu1 %vm6980_vm13, %v14889_v62  ;;  %v14921_v62 = vld [vmem:[%s18807_s5 + $0x560] ss:$0 sps:$4 sm:$0xff]  }
 0x7dc   : > { %13879 = vmatprep.mubr.msk.bf16.mxu1 %vm6980_vm13, %v14892_v28  ;;  %v14924_v28 = vld [vmem:[%s18807_s5 + $0x564] sm:$0xff]  }
 0x7e0   : > { %v18351_v53 = vpop.f32.mrb[72].mxu1 }
 0x7e1   : > { %13664 = vmatmul.mubr.msk.bf16.vlgmr.msra.gmra.mrb[56].mxu0 %vm6980_vm13, %v14887_v56  ;;  %v18354_v42 = vpop.f32.mrb[73].mxu1  ;;  %v14919_v56 = vld [vmem:[%s18807_s5 + $0x29c] sm:$0xff]  }
 0x7e2   : > { %13680 = vmatpush3.bf16.msra.mxu0 %v17639_v37  ;;  %13667 = vmatprep.mubr.msk.bf16.mxu0 %vm6980_vm13, %v14890_v24  ;;  %v13768_v1 = vpop.f32.mrb[74].mxu1  ;;  %v14894_v37 = vld [vmem:[%s18807_s5 + $0x23c] sm:$0xff]   ;;  %v14922_v24 = vld [vmem:[%s18807_s5 + $0x2a4] sm:$0xff]  }
 0x7e3   : > { %13697 = vmatprep.subr.bf16.mxu0 %v9040_v33  ;;  %13880 = vmatmul.mubr.msk.bf16.vlgmr.msra.gmra.mrb[52].mxu1 %vm6980_vm13, %v14893_v59  ;;  %v18359_v16 = vpop.f32.mrb[75].mxu1  ;;  %v14925_v59 = vld [vmem:[%s18807_s5 + $0x56c] sm:$0xff]   ;;  %v14926_v1 = vld [vmem:[%s18807_s5 + $0x2b4] sm:$0xff]  }
 0x7e4   : > { %13896 = vmatpush3.bf16.msra.mxu1 %v11150_v18  ;;  %13883 = vmatprep.mubr.msk.bf16.mxu1 %vm6980_vm13, %v14896_v55  ;;  %v11534_v18 = vpop.permute.xlu0 %11533  ;;  %v14928_v55 = vld [vmem:[%s18807_s5 + $0x574] sm:$0xff]  }
 0x7e5   : > { %13913 = vmatprep.subr.bf16.mxu1 %v11342_v34 }
 0x7e9   : > { %13668 = vmatmul.mubr.msk.bf16.gmra.mrb[60].mxu0 %vm6980_vm13, %v14891_v39  ;;  %v14932_v39 = vld [vmem:[%s18807_s5 + $0x584] sm:$0xff]  }
 0x7ea   : > { %13671 = vmatprep.mubr.msk.bf16.mxu0 %vm6980_vm13, %v14894_v37 }
 0x7eb   : > { %13884 = vmatmul.mubr.msk.bf16.gmra.mrb[56].mxu1 %vm6980_vm13, %v14897_v6 }
 0x7ec   : > { %v13551_v25 = vpop.f32.mrb[76].mxu0  ;;  %13887 = vmatprep.mubr.msk.bf16.mxu1 %vm6980_vm13, %v14900_v20 }
 0x7ed   : > { %v7450_v15 = vadd.f32 %v13551_v25, %v7254_v22  ;;  %v7422_v19 = vpop.f32.mrb[77].mxu0  ;;  %v14927_v25 = vld [vmem:[%s18807_s5 + $0x2bc] sm:$0xff]  }
 0x7ee   : > { %v7448_v48 = vadd.f32 %v7422_v19, %v7246_v47  ;;  %v13552_v23 = vpop.f32.mrb[78].mxu0 }
 0x7ef   : > { %v7425_v4 = vpop.f32.mrb[79].mxu0 }
 0x7f0   : > { %v7449_v54 = vadd.f32 %v7425_v4, %v7249_v44 }
 0x7f1   : > { %13672 = vmatmul.mubr.msk.bf16.gmra.mrb[64].mxu0 %vm6980_vm13, %v14895_v57  ;;  %v14930_v57 = vld [vmem:[%s18807_s5 + $0x2c4] sm:$0xff]  }
 0x7f2   : > { %13675 = vmatprep.mubr.msk.bf16.mxu0 %vm6980_vm13, %v14898_v13  ;;  %v14933_v13 = vld [vmem:[%s18807_s5 + $0x58c] sm:$0xff]  }
 0x7f3   : > { %13888 = vmatmul.mubr.msk.bf16.gmra.mrb[60].mxu1 %vm6980_vm13, %v14901_v35 }
 0x7f4   : > { %13891 = vmatprep.mubr.msk.bf16.mxu1 %vm6980_vm13, %v14904_v8 }
 0x7f9   : > { %13676 = vmatmul.mubr.msk.bf16.gmra.mrb[104].mxu0 %vm6980_vm13, %v14899_v46 }
 0x7fa   : > { %13681 = vmatprep.mubr.msk.bf16.mxu0 %vm6980_vm13, %v14902_v61  ;;  %v14931_v61 = vld [vmem:[%s18807_s5 + $0x2cc] ss:$0 sps:$4 sm:$0xff]  }
 0x7fb   : > { %13892 = vmatmul.mubr.msk.bf16.gmra.mrb[100].mxu1 %vm6980_vm13, %v14905_v14  ;;  %v14935_v14 = vld [vmem:[%s18807_s5 + $0x59c] ss:$0 sps:$4 sm:$0xff]  }
 0x7fc   : > { %13897 = vmatprep.mubr.msk.bf16.mxu1 %vm6980_vm13, %v14908_v40  ;;  %v14936_v40 = vld [vmem:[%s18807_s5 + $0x5a0] sm:$0xff]  }
 0x800   : > { %v18422_v7 = vpop.f32.mrb[76].mxu1 }
 0x801   : > { %13682 = vmatmul.mubr.msk.bf16.vlgmr.msra.gmra.mrb[56].mxu0 %vm6980_vm13, %v14903_v49  ;;  %v18425_v45 = vpop.f32.mrb[77].mxu1  ;;  %v14937_v49 = vld [vmem:[%s18807_s5 + $0x5a8] sm:$0xff]  }
 0x802   : > { %13698 = vmatpush3.bf16.msra.mxu0 %v9040_v33  ;;  %13685 = vmatprep.mubr.msk.bf16.mxu0 %vm6980_vm13, %v14906_v30  ;;  %v13786_v58 = vpop.f32.mrb[78].mxu1  ;;  %v14923_v33 = vld [vmem:[%s18807_s5 + $0x2ac] sm:$0xff]  }
 0x803   : > { %13898 = vmatmul.mubr.msk.bf16.vlgmr.msra.gmra.mrb[52].mxu1 %vm6980_vm13, %v14909_v11  ;;  %v18429_v9 = vpop.f32.mrb[79].mxu1  ;;  %v14938_v30 = vld [vmem:[%s18807_s5 + $0x5b0] sm:$0xff]   ;;  %v14939_v11 = vld [vmem:[%s18807_s5 + $0x5b8] sm:$0xff]  }
 0x804   : > { %13914 = vmatpush3.bf16.msra.mxu1 %v11342_v34  ;;  %13901 = vmatprep.mubr.msk.bf16.mxu1 %vm6980_vm13, %v14912_v3  ;;  %v14929_v34 = vld [vmem:[%s18807_s5 + $0x57c] sm:$0xff]  }
 0x805   : > { %13931 = vmatprep.subr.bf16.mxu1 %v11534_v18  ;;  %v14940_v3 = vld [vmem:[%s18807_s5 + $0x5c0] sm:$0xff]  }
 0x809   : > { %13686 = vmatmul.mubr.msk.bf16.gmra.mrb[60].mxu0 %vm6980_vm13, %v14907_v52 }
 0x80a   : > { %13689 = vmatprep.mubr.msk.bf16.mxu0 %vm6980_vm13, %v14910_v31 }
 0x80b   : > { %13902 = vmatmul.mubr.msk.bf16.gmra.mrb[56].mxu1 %vm6980_vm13, %v14913_v21 }
 0x80c   : > { %v13569_v0 = vpop.f32.mrb[80].mxu0  ;;  %13905 = vmatprep.mubr.msk.bf16.mxu1 %vm6980_vm13, %v14916_v32 }
 0x80d   : > { %v7642_v27 = vadd.f32 %v13569_v0, %v7450_v15  ;;  %v7614_v22 = vpop.f32.mrb[81].mxu0 }
 0x80e   : > { %v7640_v47 = vadd.f32 %v7614_v22, %v7448_v48  ;;  %v13570_v12 = vpop.f32.mrb[82].mxu0 }
 0x80f   : > { %v7617_v2 = vpop.f32.mrb[83].mxu0 }
 0x810   : > { %v7641_v44 = vadd.f32 %v7617_v2, %v7449_v54  ;;  %v14934_v54 = vld [vmem:[%s18807_s5 + $0x594] sm:$0xff]  }
 0x811   : > { %13690 = vmatmul.mubr.msk.bf16.gmra.mrb[64].mxu0 %vm6980_vm13, %v14911_v26  ;;  %v14943_v2 = vld [vmem:[%s18807_s5 + $0x5d8] ss:$0 sps:$4 sm:$0xff]  }
 0x812   : > { %13693 = vmatprep.mubr.msk.bf16.mxu0 %vm6980_vm13, %v14914_v51 }
 0x813   : > { %13906 = vmatmul.mubr.msk.bf16.gmra.mrb[60].mxu1 %vm6980_vm13, %v14917_v41 }
 0x814   : > { %13909 = vmatprep.mubr.msk.bf16.mxu1 %vm6980_vm13, %v14920_v38 }
 0x819   : > { %13694 = vmatmul.mubr.msk.bf16.gmra.mrb[108].mxu0 %vm6980_vm13, %v14915_v29 }
 0x81a   : > { %13699 = vmatprep.mubr.msk.bf16.mxu0 %vm6980_vm13, %v14918_v63 }
 0x81b   : > { %13910 = vmatmul.mubr.msk.bf16.gmra.mrb[104].mxu1 %vm6980_vm13, %v14921_v62 }
 0x81c   : > { %13915 = vmatprep.mubr.msk.bf16.mxu1 %vm6980_vm13, %v14924_v28 }
 0x821   : > { %13700 = vmatmul.mubr.msk.bf16.vlgmr.msra.gmra.mrb[56].mxu0 %vm6980_vm13, %v14919_v56 }
 0x822   : > { %13703 = vmatprep.mubr.msk.bf16.mxu0 %vm6980_vm13, %v14922_v24 }
 0x823   : > { %13916 = vmatmul.mubr.msk.bf16.vlgmr.msra.gmra.mrb[52].mxu1 %vm6980_vm13, %v14925_v59 }
 0x824   : > { %13932 = vmatpush3.bf16.msra.mxu1 %v11534_v18  ;;  %13919 = vmatprep.mubr.msk.bf16.mxu1 %vm6980_vm13, %v14928_v55 }
 0x829   : > { %13704 = vmatmul.mubr.msk.bf16.gmra.mrb[60].mxu0 %vm6980_vm13, %v14923_v33 }
 0x82a   : > { %13707 = vmatprep.mubr.msk.bf16.mxu0 %vm6980_vm13, %v14926_v1 }
 0x82b   : > { %13920 = vmatmul.mubr.msk.bf16.gmra.mrb[56].mxu1 %vm6980_vm13, %v14929_v34 }
 0x82c   : > { %v13587_v37 = vpop.f32.mrb[84].mxu0  ;;  %13923 = vmatprep.mubr.msk.bf16.mxu1 %vm6980_vm13, %v14932_v39 }
 0x82d   : > { %v7834_v6 = vadd.f32 %v13587_v37, %v7642_v27  ;;  %v7806_v20 = vpop.f32.mrb[85].mxu0  ;;  %v14941_v27 = vld [vmem:[%s18807_s5 + $0x5c8] sm:$0xff]  }
 0x82e   : > { %v7832_v15 = vadd.f32 %v7806_v20, %v7640_v47  ;;  %v13588_v19 = vpop.f32.mrb[86].mxu0  ;;  %v18518_v48 = vpop.f32.mrb[80].mxu1  ;;  %v14942_v47 = vld [vmem:[%s18807_s5 + $0x5d0] sm:$0xff]  }
 0x82f   : > { %v7809_v23 = vpop.f32.mrb[87].mxu0  ;;  %v18523_v4 = vpop.f32.mrb[81].mxu1 }
 0x830   : > { %v7833_v35 = vadd.f32 %v7809_v23, %v7641_v44  ;;  %v13804_v8 = vpop.f32.mrb[82].mxu1 }
 0x831   : > { %13708 = vmatmul.mubr.msk.bf16.gmra.mrb[64].mxu0 %vm6980_vm13, %v14927_v25  ;;  %v18529_v46 = vpop.f32.mrb[83].mxu1 }
 0x832   : > { %13711 = vmatprep.mubr.msk.bf16.mxu0 %vm6980_vm13, %v14930_v57 }
 0x833   : > { %13924 = vmatmul.mubr.msk.bf16.gmra.mrb[60].mxu1 %vm6980_vm13, %v14933_v13 }
 0x834   : > { %13927 = vmatprep.mubr.msk.bf16.mxu1 %vm6980_vm13, %v14934_v54 }
 0x839   : > { %13712 = vmatmul.mubr.msk.bf16.gmra.mrb[112].mxu0 %vm6980_vm13, %v14931_v61 }
 0x83b   : > { %13928 = vmatmul.mubr.msk.bf16.gmra.mrb[108].mxu1 %vm6980_vm13, %v14935_v14 }
 0x83c   : > { %13933 = vmatprep.mubr.msk.bf16.mxu1 %vm6980_vm13, %v14936_v40 }
 0x843   : > { %13934 = vmatmul.mubr.msk.bf16.vlgmr.msra.gmra.mrb[52].mxu1 %vm6980_vm13, %v14937_v49 }
 0x844   : > { %13937 = vmatprep.mubr.msk.bf16.mxu1 %vm6980_vm13, %v14938_v30 }
 0x84b   : > { %13938 = vmatmul.mubr.msk.bf16.gmra.mrb[56].mxu1 %vm6980_vm13, %v14939_v11 }
 0x84c   : > { %v13605_v58 = vpop.f32.mrb[88].mxu0  ;;  %13941 = vmatprep.mubr.msk.bf16.mxu1 %vm6980_vm13, %v14940_v3  ;;  %v14944_v3 = vld [vmem:[%s18809_s7] sm:$0xff]  }
 0x84d   : > { %v8024_v18 = vadd.f32 %v13605_v58, %v7834_v6  ;;  %v7996_v52 = vpop.f32.mrb[89].mxu0  ;;  %13965 = vmatprep.mubr.msk.bf16.mxu0 %vm2913_vm14, %v14944_v3 }
 0x84e   : > { %v8022_v31 = vadd.f32 %v7996_v52, %v7832_v15  ;;  %v13606_v21 = vpop.f32.mrb[90].mxu0  ;;  %v18562_v32 = vpop.f32.mrb[84].mxu1 }
 0x84f   : > { %v7999_v0 = vpop.f32.mrb[91].mxu0  ;;  %v18567_v22 = vpop.f32.mrb[85].mxu1 }
 0x850   : > { %v8023_v26 = vadd.f32 %v7999_v0, %v7833_v35  ;;  %v13822_v12 = vpop.f32.mrb[86].mxu1 }
 0x851   : > { %v18572_v51 = vpop.f32.mrb[87].mxu1 }
 0x853   : > { %13942 = vmatmul.mubr.msk.bf16.gmra.mrb[60].mxu1 %vm6980_vm13, %v14941_v27 }
 0x854   : > { %13945 = vmatprep.mubr.msk.bf16.mxu1 %vm6980_vm13, %v14942_v47 }
 0x85b   : > { %13946 = vmatmul.mubr.msk.bf16.gmra.mrb[112].mxu1 %vm6980_vm13, %v14943_v2 }
 0x86c   : > { %v13623_v41 = vpop.f32.mrb[92].mxu0 }
 0x86d   : > { %v8217_v44 = vadd.f32 %v13623_v41, %v8024_v18  ;;  %v8189_v38 = vpop.f32.mrb[93].mxu0 }
 0x86e   : > { %v8215_v29 = vadd.f32 %v8189_v38, %v8022_v31  ;;  %v13624_v63 = vpop.f32.mrb[94].mxu0  ;;  %v18580_v62 = vpop.f32.mrb[88].mxu1 }
 0x86f   : > { %v8192_v28 = vpop.f32.mrb[95].mxu0  ;;  %v18582_v56 = vpop.f32.mrb[89].mxu1 }
 0x870   : > { %v8216_v24 = vadd.f32 %v8192_v28, %v8023_v26  ;;  %v13840_v59 = vpop.f32.mrb[90].mxu1 }
 0x871   : > { %v18584_v55 = vpop.f32.mrb[91].mxu1 }
 0x88c   : > { %v13641_v33 = vpop.f32.mrb[96].mxu0 }
 0x88d   : > { %v8409_v1 = vadd.f32 %v13641_v33, %v8217_v44  ;;  %v8381_v34 = vpop.f32.mrb[97].mxu0 }
 0x88e   : > { %v8407_v39 = vadd.f32 %v8381_v34, %v8215_v29  ;;  %v13642_v37 = vpop.f32.mrb[98].mxu0  ;;  %v18586_v6 = vpop.f32.mrb[92].mxu1 }
 0x88f   : > { %v8384_v20 = vpop.f32.mrb[99].mxu0  ;;  %v18588_v25 = vpop.f32.mrb[93].mxu1 }
 0x890   : > { %v8408_v15 = vadd.f32 %v8384_v20, %v8216_v24  ;;  %v13858_v19 = vpop.f32.mrb[94].mxu1 }
 0x891   : > { %v18590_v57 = vpop.f32.mrb[95].mxu1 }
 0x8ac   : > { %v13659_v23 = vpop.f32.mrb[100].mxu0 }
 0x8ad   : > { %v8601_v13 = vadd.f32 %v13659_v23, %v8409_v1  ;;  %v8573_v35 = vpop.f32.mrb[101].mxu0 }
 0x8ae   : > { %v8599_v54 = vadd.f32 %v8573_v35, %v8407_v39  ;;  %v13660_v8 = vpop.f32.mrb[102].mxu0  ;;  %v18592_v61 = vpop.f32.mrb[96].mxu1 }
 0x8af   : > { %v8576_v14 = vpop.f32.mrb[103].mxu0  ;;  %v18594_v40 = vpop.f32.mrb[97].mxu1 }
 0x8b0   : > { %v8600_v49 = vadd.f32 %v8576_v14, %v8408_v15  ;;  %v13876_v30 = vpop.f32.mrb[98].mxu1 }
 0x8b1   : > { %v18596_v11 = vpop.f32.mrb[99].mxu1 }
 0x8cc   : > { %v13677_v58 = vpop.f32.mrb[104].mxu0 }
 0x8cd   : > { %v8793_v18 = vadd.f32 %v13677_v58, %v8601_v13  ;;  %v8765_v52 = vpop.f32.mrb[105].mxu0 }
 0x8ce   : > { %v8791_v31 = vadd.f32 %v8765_v52, %v8599_v54  ;;  %v13678_v21 = vpop.f32.mrb[106].mxu0  ;;  %v18602_v0 = vpop.f32.mrb[100].mxu1 }
 0x8cf   : > { %v8768_v27 = vpop.f32.mrb[107].mxu0  ;;  %v18604_v26 = vpop.f32.mrb[101].mxu1 }
 0x8d0   : > { %v8792_v47 = vadd.f32 %v8768_v27, %v8600_v49  ;;  %v13894_v12 = vpop.f32.mrb[102].mxu1 }
 0x8d1   : > { %v18606_v2 = vpop.f32.mrb[103].mxu1 }
 0x8ec   : > { %v13695_v41 = vpop.f32.mrb[108].mxu0 }
 0x8ed   : > { %v8983_v44 = vadd.f32 %v13695_v41, %v8793_v18  ;;  %v8955_v38 = vpop.f32.mrb[109].mxu0 }
 0x8ee   : > { %v8981_v29 = vadd.f32 %v8955_v38, %v8791_v31  ;;  %v13696_v63 = vpop.f32.mrb[110].mxu0  ;;  %v18608_v28 = vpop.f32.mrb[104].mxu1 }
 0x8ef   : > { %v8958_v24 = vpop.f32.mrb[111].mxu0  ;;  %v18610_v59 = vpop.f32.mrb[105].mxu1 }
 0x8f0   : > { %v8982_v33 = vadd.f32 %v8958_v24, %v8792_v47  ;;  %v13912_v1 = vpop.f32.mrb[106].mxu1 }
 0x8f1   : > { %v18612_v34 = vpop.f32.mrb[107].mxu1 }
 0x8f4   : > { %v13701_v39 = vpop.f32.mrb[56].mxu0 }
 0x8f5   : > { %v9100_v37 = vpop.f32.mrb[57].mxu0 }
 0x8f6   : > { %v13702_v20 = vpop.f32.mrb[58].mxu0 }
 0x8f7   : > { %v9103_v15 = vpop.f32.mrb[59].mxu0 }
 0x8fc   : > { %v18614_v19 = vpop.f32.mrb[60].mxu0 }
 0x8fd   : > { %v18616_v23 = vpop.f32.mrb[61].mxu0 }
 0x8fe   : > { %v18618_v13 = vpop.f32.mrb[62].mxu0 }
 0x8ff   : > { %v18620_v35 = vpop.f32.mrb[63].mxu0 }
 0x904   : > { %v18622_v54 = vpop.f32.mrb[64].mxu0 }
 0x905   : > { %v18624_v8 = vpop.f32.mrb[65].mxu0 }
 0x906   : > { %v18626_v14 = vpop.f32.mrb[66].mxu0 }
 0x907   : > { %v18628_v49 = vpop.f32.mrb[67].mxu0 }
 0x90c   : > { %v13713_v30 = vpop.f32.mrb[112].mxu0 }
 0x90d   : > { %v9176_v3 = vadd.f32 %v13713_v30, %v8983_v44  ;;  %v9148_v58 = vpop.f32.mrb[113].mxu0 }
 0x90e   : > { %v9174_v18 = vadd.f32 %v9148_v58, %v8981_v29  ;;  %v13714_v52 = vpop.f32.mrb[114].mxu0  ;;  %v18630_v31 = vpop.f32.mrb[108].mxu1 }
 0x90f   : > { %v9368_v21 = vadd.f32 %v18209_v10, %v9176_v3  ;;  %v9151_v27 = vpop.f32.mrb[115].mxu0  ;;  %v18633_v47 = vpop.f32.mrb[109].mxu1 }
 0x910   : > { %v9366_v12 = vadd.f32 %v18212_v50, %v9174_v18  ;;  %v9175_v41 = vadd.f32 %v9151_v27, %v8982_v33  ;;  %v13930_v38 = vpop.f32.mrb[110].mxu1  ;;  %v11672_v27 = vld [vmem:[%s18808_s6 + $0x8] sm:$0xff] }
 0x911   : > { %v9560_v63 = vadd.f32 %v18280_v43, %v9368_v21  ;;  %v18637_v24 = vpop.f32.mrb[111].mxu1  ;;  %v11673_v43 = vld [vmem:[%s18808_s6 + $0x10] sm:$0xff] }
 0x912   : > { %v9558_v44 = vadd.f32 %v18283_v36, %v9366_v12  ;;  %v9367_v29 = vadd.f32 %v18216_v60, %v9175_v41 }
 0x913   : > { %v9752_v1 = vadd.f32 %v18351_v53, %v9560_v63  ;;  %v11671_v53 = vld [vmem:[%s18808_s6] sm:$0xff] }
 0x914   : > { %v9750_v30 = vadd.f32 %v18354_v42, %v9558_v44  ;;  %v9559_v10 = vadd.f32 %v18288_v5, %v9367_v29 }
 0x915   : > { %v9942_v3 = vadd.f32 %v18422_v7, %v9752_v1 }
 0x916   : > { %v9940_v50 = vadd.f32 %v18425_v45, %v9750_v30  ;;  %v9751_v33 = vadd.f32 %v18359_v16, %v9559_v10  ;;  %v13935_v58 = vpop.f32.mrb[52].mxu1  ;;  %v11674_v16 = vld [vmem:[%s18808_s6 + $0x18] sm:$0xff] }
 0x917   : > { %v10135_v36 = vadd.f32 %v18518_v48, %v9942_v3  ;;  %v13993_v60 = vadd.f32 %v13935_v58, %v13701_v39  ;;  %v11594_v18 = vpop.f32.mrb[53].mxu1 }
 0x918   : > { %v10133_v5 = vadd.f32 %v18523_v4, %v9940_v50  ;;  %v9941_v42 = vadd.f32 %v18429_v9, %v9751_v33  ;;  %v13994_v7 = vadd.f32 %v11594_v18, %v9100_v37  ;;  %v13936_v45 = vpop.f32.mrb[54].mxu1 }
 0x919   : > { %v10327_v52 = vadd.f32 %v18562_v32, %v10135_v36  ;;  %v11688_v21 = vadd.f32 %v13993_v60, %v11673_v43  ;;  %v13995_v48 = vadd.f32 %v13936_v45, %v13702_v20  ;;  %v11597_v39 = vpop.f32.mrb[55].mxu1  ;;  %v11678_v43 = vld [vmem:[%s18808_s6 + $0x38] sm:$0xff] }
 0x91a   : > { %v10134_v12 = vadd.f32 %v18529_v46, %v9941_v42  ;;  %v10325_v4 = vadd.f32 %v18567_v22, %v10133_v5  ;;  %v11686_v9 = vadd.f32 %v13994_v7, %v11671_v53  ;;  %v13996_v37 = vadd.f32 %v11597_v39, %v9103_v15 }
 0x91b   : > { %v10519_v41 = vadd.f32 %v18580_v62, %v10327_v52  ;;  %v11689_v38 = vadd.f32 %v13995_v48, %v11674_v16  ;;  %v11703_v29 = vmax.f32 %v11688_v21, 0.0  ;;  %v11677_v62 = vld [vmem:[%s18808_s6 + $0x30] sm:$0xff] }
 0x91c   : > { %v10517_v63 = vadd.f32 %v18582_v56, %v10325_v4  ;;  %v10326_v32 = vadd.f32 %v18572_v51, %v10134_v12  ;;  %v11687_v44 = vadd.f32 %v13996_v37, %v11672_v27  ;;  %v11701_v10 = vmax.f32 %v11686_v9, 0.0  ;;  %v11682_v4 = vld [vmem:[%s18808_s6 + $0x58] sm:$0xff] }
 0x91d   : > { %v10711_v20 = vadd.f32 %v18586_v6, %v10519_v41  ;;  %v11704_v1 = vmax.f32 %v11689_v38, 0.0  ;;  %v11675_v6 = vld [vmem:[%s18808_s6 + $0x20] sm:$0xff]  ;;  %v11680_v38 = vld [vmem:[%s18808_s6 + $0x48] sm:$0xff] }
 0x91e   : > { %v10709_v30 = vadd.f32 %v18588_v25, %v10517_v63  ;;  %v10518_v46 = vadd.f32 %v18584_v55, %v10326_v32  ;;  %v11702_v22 = vmax.f32 %v11687_v44, 0.0  ;;  %v13939_v3 = vpop.f32.mrb[56].mxu1 }
 0x91f   : > { %v10901_v56 = vadd.f32 %v18592_v61, %v10711_v20  ;;  %v13997_v51 = vadd.f32 %v13939_v3, %v18614_v19  ;;  %v11610_v15 = vpop.f32.mrb[57].mxu1  ;;  %v11728_v50 = vpack.c.bf16 %v11704_v1, %v11703_v29 }
 0x920   : > { %v10899_v25 = vadd.f32 %v18594_v40, %v10709_v30  ;;  %v10710_v55 = vadd.f32 %v18590_v57, %v10518_v46  ;;  %v13998_v33 = vadd.f32 %v11610_v15, %v18616_v23  ;;  %v13940_v58 = vpop.f32.mrb[58].mxu1  ;;  %v11727_v61 = vpack.c.bf16 %v11702_v22, %v11701_v10  ;;  %v11676_v40 = vld [vmem:[%s18808_s6 + $0x28] sm:$0xff] }
 0x921   : > { %v11094_v19 = vadd.f32 %v18602_v0, %v10901_v56  ;;  %v11692_v36 = vadd.f32 %v13997_v51, %v11677_v62  ;;  %v13999_v60 = vadd.f32 %v13940_v58, %v18618_v13  ;;  %v11613_v18 = vpop.f32.mrb[59].mxu1  ;;  %v11684_v15 = vld [vmem:[%s18808_s6 + $0x68] sm:$0xff] }
 0x922   : > { %v11092_v57 = vadd.f32 %v18604_v26, %v10899_v25  ;;  %v10900_v23 = vadd.f32 %v18596_v11, %v10710_v55  ;;  %v11690_v53 = vadd.f32 %v13998_v33, %v11675_v6  ;;  %v14000_v5 = vadd.f32 %v11613_v18, %v18620_v35  ;;  %13949 = vmatprep.subr.bf16.mxu0 %v11727_v61  ;;  %v14946_v18 = vld [vmem:[%s18809_s7 + $0x10] sm:$0xff]  }
 0x923   : > { %v11286_v42 = vadd.f32 %v18608_v28, %v11094_v19  ;;  %v11693_v7 = vadd.f32 %v13999_v60, %v11678_v43  ;;  %13950 = vmatpush3.bf16.msra.mxu0 %v11727_v61  ;;  %v11707_v52 = vmax.f32 %v11692_v36, 0.0  ;;  %v11681_v28 = vld [vmem:[%s18808_s6 + $0x50] sm:$0xff]  ;;  %v14945_v60 = vld [vmem:[%s18809_s7 + $0x8] sm:$0xff]  }
 0x924   : > { %v11284_v0 = vadd.f32 %v18610_v59, %v11092_v57  ;;  %v11093_v13 = vadd.f32 %v18606_v2, %v10900_v23  ;;  %v11691_v45 = vadd.f32 %v14000_v5, %v11676_v40  ;;  %13951 = vmatprep.subr.bf16.mxu0 %v11728_v50  ;;  %v11705_v35 = vmax.f32 %v11690_v53, 0.0  ;;  %v14947_v40 = vld [vmem:[%s18809_s7 + $0x18] sm:$0xff]   ;;  %v14948_v57 = vld [vmem:[%s18809_s7 + $0x20] sm:$0xff]   ;;  %v14949_v23 = vld [vmem:[%s18809_s7 + $0x28] ss:$0 sps:$4 sm:$0x33]  }
 0x925   : > { %v11478_v16 = vadd.f32 %v18630_v31, %v11286_v42  ;;  %v11708_v26 = vmax.f32 %v11693_v7, 0.0  ;;  %v11679_v31 = vld [vmem:[%s18808_s6 + $0x40] sm:$0xff]  ;;  %v11737_v53 = vld [vmem:[%s18810_s8 + $0x10] sm:$0xff]  ;;  %v11738_v7 = vld [vmem:[%s18810_s8 + $0x18] sm:$0xff] }
 0x926   : > { %v11285_v11 = vadd.f32 %v18612_v34, %v11093_v13  ;;  %v11476_v21 = vadd.f32 %v18633_v47, %v11284_v0  ;;  %v11706_v48 = vmax.f32 %v11691_v45, 0.0  ;;  %v13943_v39 = vpop.f32.mrb[60].mxu1  ;;  %v11735_v5 = vld [vmem:[%s18810_s8] sm:$0xff]  ;;  %v11736_v45 = vld [vmem:[%s18810_s8 + $0x8] sm:$0xff] }
 0x927   : > { %v14001_v59 = vadd.f32 %v13943_v39, %v18622_v54  ;;  %v11626_v2 = vpop.f32.mrb[61].mxu1  ;;  %13952 = vmatpush3.bf16.msra.mxu0 %v11728_v50  ;;  %v11730_v27 = vpack.c.bf16 %v11708_v26, %v11707_v52 }
 0x928   : > { %v11477_v34 = vadd.f32 %v18637_v24, %v11285_v11  ;;  %v14002_v47 = vadd.f32 %v11626_v2, %v18624_v8  ;;  %v13944_v12 = vpop.f32.mrb[62].mxu1  ;;  %v11729_v9 = vpack.c.bf16 %v11706_v48, %v11705_v35 }
 0x929   : > { %v11696_v37 = vadd.f32 %v14001_v59, %v11681_v28  ;;  %v14003_v54 = vadd.f32 %v13944_v12, %v18626_v14  ;;  %v11629_v41 = vpop.f32.mrb[63].mxu1  ;;  %v11685_v14 = vld [vmem:[%s18808_s6 + $0x70] sm:$0xff] }
 0x92a   : > { %v11694_v63 = vadd.f32 %v14002_v47, %v11679_v31  ;;  %v14004_v32 = vadd.f32 %v11629_v41, %v18628_v49  ;;  %13953 = vmatprep.subr.bf16.mxu0 %v11729_v9  ;;  %v11683_v49 = vld [vmem:[%s18808_s6 + $0x60] sm:$0xff]  ;;  %v11741_v59 = vld [vmem:[%s18810_s8 + $0x30] sm:$0xff]  ;;  %v11742_v47 = vld [vmem:[%s18810_s8 + $0x38] sm:$0xff] }
 0x92b   : > { %v11697_v24 = vadd.f32 %v14003_v54, %v11682_v4  ;;  %13954 = vmatpush3.bf16.msra.mxu0 %v11729_v9  ;;  %v11711_v44 = vmax.f32 %v11696_v37, 0.0  ;;  %v11739_v31 = vld [vmem:[%s18810_s8 + $0x20] sm:$0xff]  ;;  %v11740_v9 = vld [vmem:[%s18810_s8 + $0x28] sm:$0xff] }
 0x92c   : > { %v11695_v8 = vadd.f32 %v14004_v32, %v11680_v38  ;;  %13955 = vmatprep.subr.bf16.mxu0 %v11730_v27  ;;  %v11709_v29 = vmax.f32 %v11694_v63, 0.0 }
 0x92d   : > { %v11712_v20 = vmax.f32 %v11697_v24, 0.0 }
 0x92e   : > { %v11710_v1 = vmax.f32 %v11695_v8, 0.0  ;;  %v13947_v30 = vpop.f32.mrb[112].mxu1 }
 0x92f   : > { %v11670_v46 = vadd.f32 %v13947_v30, %v11478_v16  ;;  %v11642_v10 = vpop.f32.mrb[113].mxu1  ;;  %13956 = vmatpush3.bf16.msra.mxu0 %v11730_v27  ;;  %v11732_v22 = vpack.c.bf16 %v11712_v20, %v11711_v44  ;;  %v11745_v20 = vld [vmem:[%s18810_s8 + $0x50] sm:$0xf] }
 0x930   : > { %v11668_v3 = vadd.f32 %v11642_v10, %v11476_v21  ;;  %v13948_v62 = vpop.f32.mrb[114].mxu1  ;;  %v11731_v56 = vpack.c.bf16 %v11710_v1, %v11709_v29  ;;  %v11743_v1 = vld [vmem:[%s18810_s8 + $0x40] sm:$0xff] }
 0x931   : > { %v11645_v51 = vpop.f32.mrb[115].mxu1  ;;  %v11700_v6 = vadd.f32 %v11685_v14, %v11670_v46 }
 0x932   : > { %v11698_v50 = vadd.f32 %v11683_v49, %v11668_v3  ;;  %v11669_v25 = vadd.f32 %v11645_v51, %v11477_v34  ;;  %13957 = vmatprep.subr.bf16.mxu0 %v11731_v56  ;;  %v11744_v49 = vld [vmem:[%s18810_s8 + $0x48] sm:$0xff] }
 0x933   : > { %13958 = vmatpush3.bf16.msra.mxu0 %v11731_v56  ;;  %v11715_v33 = vmax.f32 %v11700_v6, 0.0 }
 0x934   : > { %v11699_v55 = vadd.f32 %v11684_v15, %v11669_v25  ;;  %13959 = vmatprep.subr.bf16.mxu0 %v11732_v22  ;;  %v11713_v58 = vmax.f32 %v11698_v50, 0.0 }
 0x935   : > { %v11734_v19 = vpack.c.bf16 %v11715_v33, %v11715_v33  ;;  %v14950_v33 = vld [vmem:[%s18811_s9] sm:$0x1f]  }
 0x936   : > { %v11714_v43 = vmax.f32 %v11699_v55, 0.0 }
 0x937   : > { %13960 = vmatpush3.bf16.msra.mxu0 %v11732_v22  ;;  %v11795_v36 = vsel %vm11793_vm9, %v11734_v19, 0 }
 0x938   : > { %v11733_v61 = vpack.c.bf16 %v11714_v43, %v11713_v58  ;;  %v11896_v58 = vld [vmem:[%s18812_s10] sm:$0xff] }
 0x93a   : > { %13961 = vmatprep.subr.bf16.mxu0 %v11733_v61 }
 0x93b   : > { %13962 = vmatpush3.bf16.msra.mxu0 %v11733_v61 }
 0x93c   : > { %14473 = vmatprep.subr.msk.bf16.mxu0 %vm11793_vm9, %v11734_v19 }
 0x93f   : > { %13964 = vmatpush3.bf16.msra.mxu0 %v11795_v36 }
 0x940   : > { %13977 = vmatprep.subr.bf16.mxu0 %v14984_v17 }
 0x942   : > { %13966 = vmatmul.mubr.msk.bf16.vlgmr.msra.gmra.mrb[116].mxu0 %vm2913_vm14, %v14945_v60 }
 0x943   : > { %13969 = vmatprep.mubr.msk.bf16.mxu0 %vm2913_vm14, %v14946_v18 }
 0x94a   : > { %13970 = vmatmul.mubr.msk.bf16.gmra.mrb[120].mxu0 %vm2913_vm14, %v14947_v40 }
 0x94b   : > { %13973 = vmatprep.mubr.msk.bf16.mxu0 %vm2913_vm14, %v14948_v57 }
 0x952   : > { %13974 = vmatmul.mubr.msk.bf16.gmra.mrb[124].mxu0 %vm2913_vm14, %v14949_v23 }
 0x953   : > { %13989 = vmatprep.mubr.msk.bf16.mxu0 %vm14985_vm5, %v14984_v17 }
 0xa15   : > { %v13967_v42 = vpop.f32.mrb[116].mxu0 }
 0xa16   : > { %v11840_v0 = vadd.f32 %v13967_v42, %v11737_v53  ;;  %v11831_v13 = vpop.f32.mrb[117].mxu0 }
 0xa17   : > { %v11832_v16 = vadd.f32 %v11831_v13, %v11735_v5  ;;  %v13968_v52 = vpop.f32.mrb[118].mxu0 }
 0xa18   : > { %v11843_v26 = vadd.f32 %v13968_v52, %v11738_v7  ;;  %v11834_v11 = vpop.f32.mrb[119].mxu0  ;;  %v11879_v35 = vmax.f32 %v11840_v0, 0.0 }
 0xa19   : > { %v11835_v21 = vadd.f32 %v11834_v11, %v11736_v45  ;;  %v11877_v39 = vmax.f32 %v11832_v16, 0.0 }
 0xa1a   : > { %v11880_v48 = vmax.f32 %v11843_v26, 0.0 }
 0xa1b   : > { %v11878_v28 = vmax.f32 %v11835_v21, 0.0 }
 0xa1c   : > { %v11891_v2 = vpack.c.bf16 %v11880_v48, %v11879_v35 }
 0xa1d   : > { %v11890_v27 = vpack.c.bf16 %v11878_v28, %v11877_v39  ;;  %v13971_v34 = vpop.f32.mrb[120].mxu0 }
 0xa1e   : > { %v11856_v12 = vadd.f32 %v13971_v34, %v11741_v59  ;;  %v11847_v4 = vpop.f32.mrb[121].mxu0 }
 0xa1f   : > { %v11848_v37 = vadd.f32 %v11847_v4, %v11739_v31  ;;  %v13972_v54 = vpop.f32.mrb[122].mxu0  ;;  %13978 = vmatpush3.bf16.msra.mxu0 %v11890_v27 }
 0xa20   : > { %v11859_v41 = vadd.f32 %v13972_v54, %v11742_v47  ;;  %v11850_v38 = vpop.f32.mrb[123].mxu0  ;;  %13979 = vmatprep.subr.bf16.mxu0 %v14984_v17  ;;  %v11883_v32 = vmax.f32 %v11856_v12, 0.0 }
 0xa21   : > { %v11851_v63 = vadd.f32 %v11850_v38, %v11740_v9  ;;  %v11881_v8 = vmax.f32 %v11848_v37, 0.0 }
 0xa22   : > { %v11884_v24 = vmax.f32 %v11859_v41, 0.0 }
 0xa23   : > { %v11882_v44 = vmax.f32 %v11851_v63, 0.0  ;;  %13980 = vmatpush3.bf16.msra.mxu0 %v11891_v2 }
 0xa24   : > { %v11893_v29 = vpack.c.bf16 %v11884_v24, %v11883_v32  ;;  %13981 = vmatprep.subr.bf16.mxu0 %v14984_v17 }
 0xa25   : > { %v11892_v30 = vpack.c.bf16 %v11882_v44, %v11881_v8  ;;  %v13975_v46 = vpop.f32.mrb[124].mxu0 }
 0xa26   : > { %v11872_v14 = vadd.f32 %v13975_v46, %v11745_v20  ;;  %v11863_v10 = vpop.f32.mrb[125].mxu0 }
 0xa27   : > { %v11864_v22 = vadd.f32 %v11863_v10, %v11743_v1  ;;  %13982 = vmatpush3.bf16.msra.mxu0 %v11892_v30  ;;  %v13976_v3 = vpop.f32.mrb[126].mxu0 }
 0xa28   : > { %v11866_v62 = vpop.f32.mrb[127].mxu0  ;;  %13983 = vmatprep.subr.bf16.mxu0 %v14984_v17  ;;  %v11887_v51 = vmax.f32 %v11872_v14, 0.0 }
 0xa29   : > { %v11867_v56 = vadd.f32 %v11866_v62, %v11744_v49  ;;  %v11885_v15 = vmax.f32 %v11864_v22, 0.0 }
 0xa2a   : > { %v11895_v25 = vpack.c.bf16 %v11887_v51, %v11887_v51 }
 0xa2b   : > { %v11886_v6 = vmax.f32 %v11867_v56, 0.0  ;;  %13984 = vmatpush3.bf16.msra.mxu0 %v11893_v29 }
 0xa2c   : > { %13985 = vmatprep.subr.bf16.mxu0 %v14984_v17  ;;  %v11909_v55 = vsel %vm11907_vm11, %v11895_v25, 0 }
 0xa2d   : > { %v11894_v50 = vpack.c.bf16 %v11886_v6, %v11885_v15 }
 0xa2f   : > { %13986 = vmatpush3.bf16.msra.mxu0 %v11894_v50 }
 0xa30   : > { %13987 = vmatprep.subr.bf16.mxu0 %v14984_v17  ;;  %v11897_v17 = vld [vmem:[%s18812_s10 + $0x8] sm:$0x3] }
 0xa33   : > { %13988 = vmatpush3.bf16.msra.mxu0 %v11909_v55 }
 0xa36   : > { %13990 = vmatmul.mubr.msk.bf16.vlgmr.msra.gmra.mrb[128].mxu0 %vm11903_vm7, %v14950_v33 }
 0xb09   : > { %v11945_v43 = vpop.f32.mrb[128].mxu0 }
 0xb0a   : > { %v11946_v61 = vadd.f32 %v11945_v43, %v11896_v58  ;;  %v13991_v19 = vpop.f32.mrb[129].mxu0 }
 0xb0b   : > { %v11948_v36 = vpop.f32.mrb[130].mxu0 }
 0xb0c   : > { %11953 = vst.msk [vmem:[%s383_s26] sm:$0xff] %vm11952_vm8, %v11946_v61  ;;  %v11949_v60 = vadd.f32 %v11948_v36, %v11897_v17  ;;  %v13992_v18 = vpop.f32.mrb[131].mxu0 }
 0xb0e   : > { %11955 = vst.msk [vmem:[%s383_s26 + $0x8] sm:$0x3] %vm11954_vm10, %v11949_v60 }
 0xb0f PF: > { %s21_s17 = sadd.s32 1, %s14958_s17  }
 0xb10   : > { %p18_p4 = scmp.ge.s32.totalorder %s21_s17, 4  }
 0xb12   :  { %20 = sbr.rel (!%p18_p4) target bundleno = 1 (0x1), region = 166 }

</bundles_post_ra>
